<compile_context>
chip_gen: v7x
topology: tpu7x:2x2x1
jax: 0.10.0
libtpu: 0.0.40
codegen_flags: <defaults>
</compile_context>

<pallas_src>
import jax
import jax.numpy as jnp
from jax.experimental import pallas as pl
from jax.experimental.pallas import tpu as pltpu

_VMEM_LIMIT = 32 * 1024 * 1024   # explicit scoped-VMEM budget (safe on v5e/v6e/v7x)
_TM_CAP = 256                    # M-tile cap: good for v6e/v7x 256x256 MXU, 2x128 on v5e


def _round_up(x, m):
    return (x + m - 1) // m * m


def _pick_tm(m):
    m16 = _round_up(m, 16)       # 16 = bf16 sublane packing
    return m16 if m16 <= _TM_CAP else _TM_CAP


def _compiler_params(n_axes=1):
    return pltpu.CompilerParams(
        dimension_semantics=("parallel",) * n_axes,
        vmem_limit_bytes=_VMEM_LIMIT)


def _pad_rows(a, mp, axis):
    m = a.shape[axis]
    if mp == m:
        return a
    pads = [(0, 0)] * a.ndim
    pads[axis] = (0, mp - m)
    return jnp.pad(a, pads)


# ----------------------------------------------------------------------------
# Pallas kernels
# ----------------------------------------------------------------------------
def _matmul_bias_relu_kernel(a_ref, w_ref, b_ref, o_ref):
    # a: [tm, K] bf16, w: [K, N] bf16, b: [1, N] f32 -> o: [tm, N] bf16
    acc = jnp.dot(a_ref[...], w_ref[...], preferred_element_type=jnp.float32)
    o_ref[...] = jnp.maximum(acc + b_ref[...], 0.0).astype(o_ref.dtype)


def _inception_matmul_kernel(a_ref, w_ref, b_ref, o_ref):
    # a: [3, tm, K] bf16, w: [3, K, N] bf16, b: [3, 1, N] f32 -> o: [tm, 3N] bf16.
    # All 3 dilated branches in one call; writing the concatenated block makes the
    # channel concat free and the output store lane-dense (192 / 384 lanes).
    outs = []
    for br in range(3):
        acc = jnp.dot(a_ref[br], w_ref[br], preferred_element_type=jnp.float32)
        outs.append(jnp.maximum(acc + b_ref[br], 0.0).astype(o_ref.dtype))
    o_ref[...] = jnp.concatenate(outs, axis=-1)


def _maxpool9_kernel(x_ref, o_ref):
    # x: [9, tm, C] window taps -> o: [tm, C]; pairwise max tree (4 levels, not a chain).
    taps = [x_ref[i] for i in range(9)]
    while len(taps) > 1:
        nxt = [jnp.maximum(taps[i], taps[i + 1]) for i in range(0, len(taps) - 1, 2)]
        if len(taps) % 2:
            nxt.append(taps[-1])
        taps = nxt
    o_ref[...] = taps[0]


# ----------------------------------------------------------------------------
# Pallas-call wrappers
# ----------------------------------------------------------------------------
def fused_matmul_bias_relu(a, w, b):
    """relu(a @ w + b): a [M,K] bf16, w [K,N] bf16, b [1,N] f32 -> [M,N] bf16."""
    M, K = a.shape
    N = w.shape[1]
    tm = _pick_tm(M)
    Mp = _round_up(M, tm)
    a = _pad_rows(a, Mp, 0)
    cost = pl.CostEstimate(
        flops=2 * M * K * N, transcendentals=0,
        bytes_accessed=Mp * K * 2 + K * N * 2 + N * 4 + Mp * N * 2)
    out = pl.pallas_call(
        _matmul_bias_relu_kernel,
        out_shape=jax.ShapeDtypeStruct((Mp, N), jnp.bfloat16),
        grid=(Mp // tm,),
        in_specs=[pl.BlockSpec((tm, K), lambda i: (i, 0)),
                  pl.BlockSpec((K, N), lambda i: (0, 0)),
                  pl.BlockSpec((1, N), lambda i: (0, 0))],
        out_specs=pl.BlockSpec((tm, N), lambda i: (i, 0)),
        compiler_params=_compiler_params(1),
        cost_estimate=cost,
    )(a, w, b)
    return out[:M]


def fused_inception_matmul(a3, w3, b3):
    """Batched 3-branch relu(a @ w + b): a3 [3,M,K] bf16, w3 [3,K,N] bf16, b3 [3,1,N] f32
    -> [M, 3N] bf16 (branch outputs already concatenated along channels)."""
    _, M, K = a3.shape
    N = w3.shape[2]
    tm = _pick_tm(M)
    Mp = _round_up(M, tm)
    a3 = _pad_rows(a3, Mp, 1)
    cost = pl.CostEstimate(
        flops=2 * 3 * M * K * N, transcendentals=0,
        bytes_accessed=3 * Mp * K * 2 + 3 * K * N * 2 + 3 * N * 4 + Mp * 3 * N * 2)
    out = pl.pallas_call(
        _inception_matmul_kernel,
        out_shape=jax.ShapeDtypeStruct((Mp, 3 * N), jnp.bfloat16),
        grid=(Mp // tm,),
        in_specs=[pl.BlockSpec((3, tm, K), lambda i: (0, i, 0)),
                  pl.BlockSpec((3, K, N), lambda i: (0, 0, 0)),
                  pl.BlockSpec((3, 1, N), lambda i: (0, 0, 0))],
        out_specs=pl.BlockSpec((tm, 3 * N), lambda i: (i, 0)),
        compiler_params=_compiler_params(1),
        cost_estimate=cost,
    )(a3, w3, b3)
    return out[:M]


# ----------------------------------------------------------------------------
# Conv / pool layers (im2col & window gather are XLA glue; compute is in Pallas)
# ----------------------------------------------------------------------------
def _im2col(x, k, stride, padding, dilation):
    # x: NHWC -> patches [N*Ho*Wo, k*k*C], feature order (kh, kw, ci) to match weight prep.
    N, H, W, C = x.shape
    if padding:
        x = jnp.pad(x, ((0, 0), (padding, padding), (padding, padding), (0, 0)))
    Ho = (H + 2 * padding - dilation * (k - 1) - 1) // stride + 1
    Wo = (W + 2 * padding - dilation * (k - 1) - 1) // stride + 1
    cols = []
    for kh in range(k):
        for kw in range(k):
            sl = x[:,
                   kh * dilation: kh * dilation + (Ho - 1) * stride + 1: stride,
                   kw * dilation: kw * dilation + (Wo - 1) * stride + 1: stride,
                   :]
            cols.append(sl)
    patches = jnp.stack(cols, axis=3)                 # [N, Ho, Wo, k*k, C]
    return patches.reshape(N * Ho * Wo, k * k * C), (N, Ho, Wo)


def conv2d_relu(x, wb, *, kernel, stride=1, padding=0, dilation=1):
    w_mat, b_row = wb                                 # [K, Cout] bf16, [1, Cout] f32
    a, (N, Ho, Wo) = _im2col(x, kernel, stride, padding, dilation)
    out = fused_matmul_bias_relu(a, w_mat, b_row)
    return out.reshape(N, Ho, Wo, w_mat.shape[1])


def inception_relu(x, wb3):
    # Inception = concat of 3 dilated 3x3 convs (padding == dilation); the module's
    # trailing ReLU commutes with concat and is fused into the kernel epilogue.
    # NOTE: at 3x3 spatial maps the dilation-3 branch only ever touches its center tap;
    # pruning those all-zero K columns would be bit-identical but would split the single
    # batched call (branches get different K), so it is intentionally not done here.
    w3, b3 = wb3                                      # [3,K,Cout] bf16, [3,1,Cout] f32
    cols = []
    N = Ho = Wo = None
    for dil in (1, 2, 3):
        a, (N, Ho, Wo) = _im2col(x, 3, 1, dil, dil)
        cols.append(a)
    a3 = jnp.stack(cols, axis=0)                      # [3, M, K]
    out = fused_inception_matmul(a3, w3, b3)          # [M, 3*Cout]
    return out.reshape(N, Ho, Wo, 3 * w3.shape[2])


def maxpool_3x3_s2(x):
    # MaxPool2d(kernel_size=3, stride=2), no padding.  x NHWC (bf16).
    N, H, W, C = x.shape
    Ho = (H - 3) // 2 + 1
    Wo = (W - 3) // 2 + 1
    taps = []
    for kh in range(3):
        for kw in range(3):
            taps.append(x[:, kh: kh + (Ho - 1) * 2 + 1: 2,
                             kw: kw + (Wo - 1) * 2 + 1: 2, :])
    stacked = jnp.stack(taps, axis=0).reshape(9, N * Ho * Wo, C)
    M = N * Ho * Wo
    tm = _pick_tm(M)
    Mp = _round_up(M, tm)
    stacked = _pad_rows(stacked, Mp, 1)
    out = pl.pallas_call(
        _maxpool9_kernel,
        out_shape=jax.ShapeDtypeStruct((Mp, C), x.dtype),
        grid=(Mp // tm,),
        in_specs=[pl.BlockSpec((9, tm, C), lambda i: (0, i, 0))],
        out_specs=pl.BlockSpec((tm, C), lambda i: (i, 0)),
        compiler_params=_compiler_params(1),
    )(stacked)
    return out[:M].reshape(N, Ho, Wo, C)


# ----------------------------------------------------------------------------
# Parameters
# ----------------------------------------------------------------------------
def init_params(key):
    # PyTorch-layout f32 parameters (Conv2d default init).
    def conv_init(key, cout, cin, kh, kw):
        k1, k2 = jax.random.split(key)
        fan_in = cin * kh * kw
        bound = 1.0 / jnp.sqrt(fan_in)
        w = jax.random.uniform(k1, (cout, cin, kh, kw), jnp.float32, -bound, bound)
        b = jax.random.uniform(k2, (cout,), jnp.float32, -bound, bound)
        return w, b

    keys = jax.random.split(key, 11)
    p = {}
    p["conv1_w"], p["conv1_b"] = conv_init(keys[0], 64, 3, 11, 11)
    for name, cin, cout, koff in [("inc2", 64, 64, 1),
                                  ("inc3", 192, 128, 4),
                                  ("inc4", 384, 128, 7)]:
        for j in range(3):
            w, b = conv_init(keys[koff + j], cout, cin, 3, 3)
            p[f"{name}_w{j+1}"], p[f"{name}_b{j+1}"] = w, b
    p["conv5_w"], p["conv5_b"] = conv_init(keys[10], 256, 384, 3, 3)
    return p


def prepare_params(p):
    # One-time conversion to MXU-ready layouts: W -> [K, Cout] bf16 with (kh, kw, ci)
    # feature order matching _im2col, bias -> [1, Cout] f32.  Done OUTSIDE the jitted
    # forward so no per-step transposes / re-pads sit on the critical path.
    def prep(w, b):
        cout, cin, kh, kw = w.shape
        w_mat = jnp.transpose(w, (2, 3, 1, 0)).reshape(kh * kw * cin, cout)
        return w_mat.astype(jnp.bfloat16), b.reshape(1, cout).astype(jnp.float32)

    prepped = {
        "conv1": prep(p["conv1_w"], p["conv1_b"]),
        "conv5": prep(p["conv5_w"], p["conv5_b"]),
    }
    for name in ("inc2", "inc3", "inc4"):
        ws, bs = zip(*(prep(p[f"{name}_w{j}"], p[f"{name}_b{j}"]) for j in (1, 2, 3)))
        prepped[name] = (jnp.stack(ws, axis=0), jnp.stack(bs, axis=0))
    return prepped


# ----------------------------------------------------------------------------
# Model forward
# ----------------------------------------------------------------------------
@jax.jit
def few_shot_forward(x_nchw, prepped):
    x = jnp.transpose(x_nchw, (0, 2, 3, 1)).astype(jnp.bfloat16)   # NCHW -> NHWC, bf16
    out = conv2d_relu(x, prepped["conv1"], kernel=11, stride=4, padding=2)
    out = maxpool_3x3_s2(out)
    out = inception_relu(out, prepped["inc2"])      # -> 192 channels
    out = maxpool_3x3_s2(out)
    out = inception_relu(out, prepped["inc3"])      # -> 384 channels
    out = inception_relu(out, prepped["inc4"])      # -> 384 channels
    out = conv2d_relu(out, prepped["conv5"], kernel=3, padding=1)
    out = maxpool_3x3_s2(out)
    out_nchw = jnp.transpose(out, (0, 3, 1, 2))     # match PyTorch's NCHW flatten order
    return out_nchw.reshape(out_nchw.shape[0], -1).astype(jnp.float32)


if __name__ == "__main__":
    key = jax.random.PRNGKey(0)
    pk, xk = jax.random.split(key)
    params = prepare_params(init_params(pk))
    # Small input: 63x63 -> conv1 15x15 -> pool 7x7 -> pool 3x3 -> pool 1x1 -> emb 256.
    x = jax.random.normal(xk, (2, 3, 63, 63), jnp.float32)
    emb = few_shot_forward(x, params)
    jax.block_until_ready(emb)
    assert emb.shape == (2, 256), emb.shape
    print("KERNEL_OK")
</pallas_src>

<mosaic_0001>
module attributes {stable_mosaic.version = 11 : i64} {
  func.func @_matmul_bias_relu_kernel(%arg0: i32, %arg1: memref<256x363xbf16, #tpu.memory_space<vmem>>, %arg2: memref<363x64xbf16, #tpu.memory_space<vmem>>, %arg3: memref<1x64xf32, #tpu.memory_space<vmem>>, %arg4: memref<256x64xbf16, #tpu.memory_space<vmem>>) attributes {dimension_semantics = [#tpu.dimension_semantics<parallel>], iteration_bounds = array<i64: 2>, scalar_prefetch = 0 : i64, scratch_operands = 0 : i64, tpu.core_type = #tpu.core_type<tc>, window_params = [{transform_indices = @transform_0, window_bounds = array<i64: 256, 363>}, {pipeline_mode = #tpu.pipeline_mode<synchronous>, transform_indices = @transform_1, window_bounds = array<i64: 363, 64>}, {pipeline_mode = #tpu.pipeline_mode<synchronous>, transform_indices = @transform_2, window_bounds = array<i64: 1, 64>}, {transform_indices = @transform_3, window_bounds = array<i64: 256, 64>}]} {
    %c0 = arith.constant 0 : index
    %c0_0 = arith.constant 0 : index
    %0 = vector.load %arg1[%c0, %c0_0] : memref<256x363xbf16, #tpu.memory_space<vmem>>, vector<256x363xbf16>
    %c0_1 = arith.constant 0 : index
    %c0_2 = arith.constant 0 : index
    %1 = vector.load %arg2[%c0_1, %c0_2] : memref<363x64xbf16, #tpu.memory_space<vmem>>, vector<363x64xbf16>
    %cst = arith.constant dense<0.000000e+00> : vector<256x64xf32>
    %2 = tpu.matmul %0, %1, %cst {dimension_numbers = #tpu.dot_dimension_numbers<[1], [0], [0], [1], [0, 0, 1, 1], [], []>} : vector<256x363xbf16>, vector<363x64xbf16>, vector<256x64xf32> -> vector<256x64xf32>
    %c0_3 = arith.constant 0 : index
    %c0_4 = arith.constant 0 : index
    %3 = vector.load %arg3[%c0_3, %c0_4] : memref<1x64xf32, #tpu.memory_space<vmem>>, vector<1x64xf32>
    %4 = vector.broadcast %3 : vector<1x64xf32> to vector<256x64xf32>
    %5 = arith.addf %2, %4 : vector<256x64xf32>
    %cst_5 = arith.constant 0.000000e+00 : f32
    %6 = vector.broadcast %cst_5 : f32 to vector<256x64xf32>
    %7 = arith.maximumf %5, %6 : vector<256x64xf32>
    %8 = arith.truncf %7 : vector<256x64xf32> to vector<256x64xbf16>
    %c0_6 = arith.constant 0 : index
    %c0_7 = arith.constant 0 : index
    %9 = vector.load %arg4[%c0_6, %c0_7] : memref<256x64xbf16, #tpu.memory_space<vmem>>, vector<256x64xbf16>
    tpu.vector_store %arg4[%c0_6, %c0_7], %8 {strides = array<i32>} : memref<256x64xbf16, #tpu.memory_space<vmem>>, vector<256x64xbf16>,
    return
  }
  func.func @transform_0(%arg0: i32) -> (i32, i32) {
    %c0_i32 = arith.constant 0 : i32
    %c0_i32_0 = arith.constant 0 : i32
    return %arg0, %c0_i32 : i32, i32
  }
  func.func @transform_1(%arg0: i32) -> (i32, i32) {
    %c0_i32 = arith.constant 0 : i32
    %c0_i32_0 = arith.constant 0 : i32
    %c0_i32_1 = arith.constant 0 : i32
    return %c0_i32, %c0_i32_0 : i32, i32
  }
  func.func @transform_2(%arg0: i32) -> (i32, i32) {
    %c0_i32 = arith.constant 0 : i32
    %c0_i32_0 = arith.constant 0 : i32
    %c0_i32_1 = arith.constant 0 : i32
    return %c0_i32, %c0_i32_0 : i32, i32
  }
  func.func @transform_3(%arg0: i32) -> (i32, i32) {
    %c0_i32 = arith.constant 0 : i32
    %c0_i32_0 = arith.constant 0 : i32
    return %arg0, %c0_i32 : i32, i32
  }
}

module attributes {stable_mosaic.version = 11 : i64} {
  func.func @_maxpool9_kernel(%arg0: i32, %arg1: memref<9x112x64xbf16, #tpu.memory_space<vmem>>, %arg2: memref<112x64xbf16, #tpu.memory_space<vmem>>) attributes {dimension_semantics = [#tpu.dimension_semantics<parallel>], iteration_bounds = array<i64: 1>, scalar_prefetch = 0 : i64, scratch_operands = 0 : i64, tpu.core_type = #tpu.core_type<tc>, window_params = [{transform_indices = @transform_0, window_bounds = array<i64: 9, 112, 64>}, {transform_indices = @transform_1, window_bounds = array<i64: 112, 64>}]} {
    %c0 = arith.constant 0 : index
    %c0_0 = arith.constant 0 : index
    %c0_1 = arith.constant 0 : index
    %0 = vector.load %arg1[%c0, %c0_0, %c0_1] : memref<9x112x64xbf16, #tpu.memory_space<vmem>>, vector<1x112x64xbf16>
    %1 = vector.shape_cast %0 : vector<1x112x64xbf16> to vector<112x64xbf16>
    %c1 = arith.constant 1 : index
    %c0_2 = arith.constant 0 : index
    %c0_3 = arith.constant 0 : index
    %2 = vector.load %arg1[%c1, %c0_2, %c0_3] : memref<9x112x64xbf16, #tpu.memory_space<vmem>>, vector<1x112x64xbf16>
    %3 = vector.shape_cast %2 : vector<1x112x64xbf16> to vector<112x64xbf16>
    %c2 = arith.constant 2 : index
    %c0_4 = arith.constant 0 : index
    %c0_5 = arith.constant 0 : index
    %4 = vector.load %arg1[%c2, %c0_4, %c0_5] : memref<9x112x64xbf16, #tpu.memory_space<vmem>>, vector<1x112x64xbf16>
    %5 = vector.shape_cast %4 : vector<1x112x64xbf16> to vector<112x64xbf16>
    %c3 = arith.constant 3 : index
    %c0_6 = arith.constant 0 : index
    %c0_7 = arith.constant 0 : index
    %6 = vector.load %arg1[%c3, %c0_6, %c0_7] : memref<9x112x64xbf16, #tpu.memory_space<vmem>>, vector<1x112x64xbf16>
    %7 = vector.shape_cast %6 : vector<1x112x64xbf16> to vector<112x64xbf16>
    %c4 = arith.constant 4 : index
    %c0_8 = arith.constant 0 : index
    %c0_9 = arith.constant 0 : index
    %8 = vector.load %arg1[%c4, %c0_8, %c0_9] : memref<9x112x64xbf16, #tpu.memory_space<vmem>>, vector<1x112x64xbf16>
    %9 = vector.shape_cast %8 : vector<1x112x64xbf16> to vector<112x64xbf16>
    %c5 = arith.constant 5 : index
    %c0_10 = arith.constant 0 : index
    %c0_11 = arith.constant 0 : index
    %10 = vector.load %arg1[%c5, %c0_10, %c0_11] : memref<9x112x64xbf16, #tpu.memory_space<vmem>>, vector<1x112x64xbf16>
    %11 = vector.shape_cast %10 : vector<1x112x64xbf16> to vector<112x64xbf16>
    %c6 = arith.constant 6 : index
    %c0_12 = arith.constant 0 : index
    %c0_13 = arith.constant 0 : index
    %12 = vector.load %arg1[%c6, %c0_12, %c0_13] : memref<9x112x64xbf16, #tpu.memory_space<vmem>>, vector<1x112x64xbf16>
    %13 = vector.shape_cast %12 : vector<1x112x64xbf16> to vector<112x64xbf16>
    %c7 = arith.constant 7 : index
    %c0_14 = arith.constant 0 : index
    %c0_15 = arith.constant 0 : index
    %14 = vector.load %arg1[%c7, %c0_14, %c0_15] : memref<9x112x64xbf16, #tpu.memory_space<vmem>>, vector<1x112x64xbf16>
    %15 = vector.shape_cast %14 : vector<1x112x64xbf16> to vector<112x64xbf16>
    %c8 = arith.constant 8 : index
    %c0_16 = arith.constant 0 : index
    %c0_17 = arith.constant 0 : index
    %16 = vector.load %arg1[%c8, %c0_16, %c0_17] : memref<9x112x64xbf16, #tpu.memory_space<vmem>>, vector<1x112x64xbf16>
    %17 = vector.shape_cast %16 : vector<1x112x64xbf16> to vector<112x64xbf16>
    %18 = arith.maximumf %1, %3 : vector<112x64xbf16>
    %19 = arith.maximumf %5, %7 : vector<112x64xbf16>
    %20 = arith.maximumf %9, %11 : vector<112x64xbf16>
    %21 = arith.maximumf %13, %15 : vector<112x64xbf16>
    %22 = arith.maximumf %18, %19 : vector<112x64xbf16>
    %23 = arith.maximumf %20, %21 : vector<112x64xbf16>
    %24 = arith.maximumf %22, %23 : vector<112x64xbf16>
    %25 = arith.maximumf %24, %17 : vector<112x64xbf16>
    %c0_18 = arith.constant 0 : index
    %c0_19 = arith.constant 0 : index
    %26 = vector.load %arg2[%c0_18, %c0_19] : memref<112x64xbf16, #tpu.memory_space<vmem>>, vector<112x64xbf16>
    tpu.vector_store %arg2[%c0_18, %c0_19], %25 {strides = array<i32>} : memref<112x64xbf16, #tpu.memory_space<vmem>>, vector<112x64xbf16>,
    return
  }
  func.func @transform_0(%arg0: i32) -> (i32, i32, i32) {
    %c0_i32 = arith.constant 0 : i32
    %c0_i32_0 = arith.constant 0 : i32
    %c0_i32_1 = arith.constant 0 : i32
    return %c0_i32, %arg0, %c0_i32_0 : i32, i32, i32
  }
  func.func @transform_1(%arg0: i32) -> (i32, i32) {
    %c0_i32 = arith.constant 0 : i32
    %c0_i32_0 = arith.constant 0 : i32
    return %arg0, %c0_i32 : i32, i32
  }
}

module attributes {stable_mosaic.version = 11 : i64} {
  func.func @_inception_matmul_kernel(%arg0: i32, %arg1: memref<3x112x576xbf16, #tpu.memory_space<vmem>>, %arg2: memref<3x576x64xbf16, #tpu.memory_space<vmem>>, %arg3: memref<3x1x64xf32, #tpu.memory_space<vmem>>, %arg4: memref<112x192xbf16, #tpu.memory_space<vmem>>) attributes {dimension_semantics = [#tpu.dimension_semantics<parallel>], iteration_bounds = array<i64: 1>, scalar_prefetch = 0 : i64, scratch_operands = 0 : i64, tpu.core_type = #tpu.core_type<tc>, window_params = [{transform_indices = @transform_0, window_bounds = array<i64: 3, 112, 576>}, {pipeline_mode = #tpu.pipeline_mode<synchronous>, transform_indices = @transform_1, window_bounds = array<i64: 3, 576, 64>}, {pipeline_mode = #tpu.pipeline_mode<synchronous>, transform_indices = @transform_2, window_bounds = array<i64: 3, 1, 64>}, {transform_indices = @transform_3, window_bounds = array<i64: 112, 192>}]} {
    %c0 = arith.constant 0 : index
    %c0_0 = arith.constant 0 : index
    %c0_1 = arith.constant 0 : index
    %0 = vector.load %arg1[%c0, %c0_0, %c0_1] : memref<3x112x576xbf16, #tpu.memory_space<vmem>>, vector<1x112x576xbf16>
    %1 = vector.shape_cast %0 : vector<1x112x576xbf16> to vector<112x576xbf16>
    %c0_2 = arith.constant 0 : index
    %c0_3 = arith.constant 0 : index
    %c0_4 = arith.constant 0 : index
    %2 = vector.load %arg2[%c0_2, %c0_3, %c0_4] : memref<3x576x64xbf16, #tpu.memory_space<vmem>>, vector<1x576x64xbf16>
    %3 = vector.shape_cast %2 : vector<1x576x64xbf16> to vector<576x64xbf16>
    %cst = arith.constant dense<0.000000e+00> : vector<112x64xf32>
    %4 = tpu.matmul %1, %3, %cst {dimension_numbers = #tpu.dot_dimension_numbers<[1], [0], [0], [1], [0, 0, 1, 1], [], []>} : vector<112x576xbf16>, vector<576x64xbf16>, vector<112x64xf32> -> vector<112x64xf32>
    %c0_5 = arith.constant 0 : index
    %c0_6 = arith.constant 0 : index
    %c0_7 = arith.constant 0 : index
    %5 = vector.load %arg3[%c0_5, %c0_6, %c0_7] : memref<3x1x64xf32, #tpu.memory_space<vmem>>, vector<1x1x64xf32>
    %6 = vector.shape_cast %5 : vector<1x1x64xf32> to vector<1x64xf32>
    %7 = vector.broadcast %6 : vector<1x64xf32> to vector<112x64xf32>
    %8 = arith.addf %4, %7 : vector<112x64xf32>
    %cst_8 = arith.constant 0.000000e+00 : f32
    %9 = vector.broadcast %cst_8 : f32 to vector<112x64xf32>
    %10 = arith.maximumf %8, %9 : vector<112x64xf32>
    %11 = arith.truncf %10 : vector<112x64xf32> to vector<112x64xbf16>
    %c1 = arith.constant 1 : index
    %c0_9 = arith.constant 0 : index
    %c0_10 = arith.constant 0 : index
    %12 = vector.load %arg1[%c1, %c0_9, %c0_10] : memref<3x112x576xbf16, #tpu.memory_space<vmem>>, vector<1x112x576xbf16>
    %13 = vector.shape_cast %12 : vector<1x112x576xbf16> to vector<112x576xbf16>
    %c1_11 = arith.constant 1 : index
    %c0_12 = arith.constant 0 : index
    %c0_13 = arith.constant 0 : index
    %14 = vector.load %arg2[%c1_11, %c0_12, %c0_13] : memref<3x576x64xbf16, #tpu.memory_space<vmem>>, vector<1x576x64xbf16>
    %15 = vector.shape_cast %14 : vector<1x576x64xbf16> to vector<576x64xbf16>
    %cst_14 = arith.constant dense<0.000000e+00> : vector<112x64xf32>
    %16 = tpu.matmul %13, %15, %cst_14 {dimension_numbers = #tpu.dot_dimension_numbers<[1], [0], [0], [1], [0, 0, 1, 1], [], []>} : vector<112x576xbf16>, vector<576x64xbf16>, vector<112x64xf32> -> vector<112x64xf32>
    %c1_15 = arith.constant 1 : index
    %c0_16 = arith.constant 0 : index
    %c0_17 = arith.constant 0 : index
    %17 = vector.load %arg3[%c1_15, %c0_16, %c0_17] : memref<3x1x64xf32, #tpu.memory_space<vmem>>, vector<1x1x64xf32>
    %18 = vector.shape_cast %17 : vector<1x1x64xf32> to vector<1x64xf32>
    %19 = vector.broadcast %18 : vector<1x64xf32> to vector<112x64xf32>
    %20 = arith.addf %16, %19 : vector<112x64xf32>
    %cst_18 = arith.constant 0.000000e+00 : f32
    %21 = vector.broadcast %cst_18 : f32 to vector<112x64xf32>
    %22 = arith.maximumf %20, %21 : vector<112x64xf32>
    %23 = arith.truncf %22 : vector<112x64xf32> to vector<112x64xbf16>
    %c2 = arith.constant 2 : index
    %c0_19 = arith.constant 0 : index
    %c0_20 = arith.constant 0 : index
    %24 = vector.load %arg1[%c2, %c0_19, %c0_20] : memref<3x112x576xbf16, #tpu.memory_space<vmem>>, vector<1x112x576xbf16>
    %25 = vector.shape_cast %24 : vector<1x112x576xbf16> to vector<112x576xbf16>
    %c2_21 = arith.constant 2 : index
    %c0_22 = arith.constant 0 : index
    %c0_23 = arith.constant 0 : index
    %26 = vector.load %arg2[%c2_21, %c0_22, %c0_23] : memref<3x576x64xbf16, #tpu.memory_space<vmem>>, vector<1x576x64xbf16>
    %27 = vector.shape_cast %26 : vector<1x576x64xbf16> to vector<576x64xbf16>
    %cst_24 = arith.constant dense<0.000000e+00> : vector<112x64xf32>
    %28 = tpu.matmul %25, %27, %cst_24 {dimension_numbers = #tpu.dot_dimension_numbers<[1], [0], [0], [1], [0, 0, 1, 1], [], []>} : vector<112x576xbf16>, vector<576x64xbf16>, vector<112x64xf32> -> vector<112x64xf32>
    %c2_25 = arith.constant 2 : index
    %c0_26 = arith.constant 0 : index
    %c0_27 = arith.constant 0 : index
    %29 = vector.load %arg3[%c2_25, %c0_26, %c0_27] : memref<3x1x64xf32, #tpu.memory_space<vmem>>, vector<1x1x64xf32>
    %30 = vector.shape_cast %29 : vector<1x1x64xf32> to vector<1x64xf32>
    %31 = vector.broadcast %30 : vector<1x64xf32> to vector<112x64xf32>
    %32 = arith.addf %28, %31 : vector<112x64xf32>
    %cst_28 = arith.constant 0.000000e+00 : f32
    %33 = vector.broadcast %cst_28 : f32 to vector<112x64xf32>
    %34 = arith.maximumf %32, %33 : vector<112x64xf32>
    %35 = arith.truncf %34 : vector<112x64xf32> to vector<112x64xbf16>
    %36 = tpu.concatenate %11, %23, %35 in 1 : vector<112x64xbf16>, vector<112x64xbf16>, vector<112x64xbf16> -> vector<112x192xbf16>
    %c0_29 = arith.constant 0 : index
    %c0_30 = arith.constant 0 : index
    %37 = vector.load %arg4[%c0_29, %c0_30] : memref<112x192xbf16, #tpu.memory_space<vmem>>, vector<112x192xbf16>
    tpu.vector_store %arg4[%c0_29, %c0_30], %36 {strides = array<i32>} : memref<112x192xbf16, #tpu.memory_space<vmem>>, vector<112x192xbf16>,
    return
  }
  func.func @transform_0(%arg0: i32) -> (i32, i32, i32) {
    %c0_i32 = arith.constant 0 : i32
    %c0_i32_0 = arith.constant 0 : i32
    %c0_i32_1 = arith.constant 0 : i32
    return %c0_i32, %arg0, %c0_i32_0 : i32, i32, i32
  }
  func.func @transform_1(%arg0: i32) -> (i32, i32, i32) {
    %c0_i32 = arith.constant 0 : i32
    %c0_i32_0 = arith.constant 0 : i32
    %c0_i32_1 = arith.constant 0 : i32
    %c0_i32_2 = arith.constant 0 : i32
    return %c0_i32, %c0_i32_0, %c0_i32_1 : i32, i32, i32
  }
  func.func @transform_2(%arg0: i32) -> (i32, i32, i32) {
    %c0_i32 = arith.constant 0 : i32
    %c0_i32_0 = arith.constant 0 : i32
    %c0_i32_1 = arith.constant 0 : i32
    %c0_i32_2 = arith.constant 0 : i32
    return %c0_i32, %c0_i32_0, %c0_i32_1 : i32, i32, i32
  }
  func.func @transform_3(%arg0: i32) -> (i32, i32) {
    %c0_i32 = arith.constant 0 : i32
    %c0_i32_0 = arith.constant 0 : i32
    return %arg0, %c0_i32 : i32, i32
  }
}

module attributes {stable_mosaic.version = 11 : i64} {
  func.func @_maxpool9_kernel(%arg0: i32, %arg1: memref<9x32x192xbf16, #tpu.memory_space<vmem>>, %arg2: memref<32x192xbf16, #tpu.memory_space<vmem>>) attributes {dimension_semantics = [#tpu.dimension_semantics<parallel>], iteration_bounds = array<i64: 1>, scalar_prefetch = 0 : i64, scratch_operands = 0 : i64, tpu.core_type = #tpu.core_type<tc>, window_params = [{transform_indices = @transform_0, window_bounds = array<i64: 9, 32, 192>}, {transform_indices = @transform_1, window_bounds = array<i64: 32, 192>}]} {
    %c0 = arith.constant 0 : index
    %c0_0 = arith.constant 0 : index
    %c0_1 = arith.constant 0 : index
    %0 = vector.load %arg1[%c0, %c0_0, %c0_1] : memref<9x32x192xbf16, #tpu.memory_space<vmem>>, vector<1x32x192xbf16>
    %1 = vector.shape_cast %0 : vector<1x32x192xbf16> to vector<32x192xbf16>
    %c1 = arith.constant 1 : index
    %c0_2 = arith.constant 0 : index
    %c0_3 = arith.constant 0 : index
    %2 = vector.load %arg1[%c1, %c0_2, %c0_3] : memref<9x32x192xbf16, #tpu.memory_space<vmem>>, vector<1x32x192xbf16>
    %3 = vector.shape_cast %2 : vector<1x32x192xbf16> to vector<32x192xbf16>
    %c2 = arith.constant 2 : index
    %c0_4 = arith.constant 0 : index
    %c0_5 = arith.constant 0 : index
    %4 = vector.load %arg1[%c2, %c0_4, %c0_5] : memref<9x32x192xbf16, #tpu.memory_space<vmem>>, vector<1x32x192xbf16>
    %5 = vector.shape_cast %4 : vector<1x32x192xbf16> to vector<32x192xbf16>
    %c3 = arith.constant 3 : index
    %c0_6 = arith.constant 0 : index
    %c0_7 = arith.constant 0 : index
    %6 = vector.load %arg1[%c3, %c0_6, %c0_7] : memref<9x32x192xbf16, #tpu.memory_space<vmem>>, vector<1x32x192xbf16>
    %7 = vector.shape_cast %6 : vector<1x32x192xbf16> to vector<32x192xbf16>
    %c4 = arith.constant 4 : index
    %c0_8 = arith.constant 0 : index
    %c0_9 = arith.constant 0 : index
    %8 = vector.load %arg1[%c4, %c0_8, %c0_9] : memref<9x32x192xbf16, #tpu.memory_space<vmem>>, vector<1x32x192xbf16>
    %9 = vector.shape_cast %8 : vector<1x32x192xbf16> to vector<32x192xbf16>
    %c5 = arith.constant 5 : index
    %c0_10 = arith.constant 0 : index
    %c0_11 = arith.constant 0 : index
    %10 = vector.load %arg1[%c5, %c0_10, %c0_11] : memref<9x32x192xbf16, #tpu.memory_space<vmem>>, vector<1x32x192xbf16>
    %11 = vector.shape_cast %10 : vector<1x32x192xbf16> to vector<32x192xbf16>
    %c6 = arith.constant 6 : index
    %c0_12 = arith.constant 0 : index
    %c0_13 = arith.constant 0 : index
    %12 = vector.load %arg1[%c6, %c0_12, %c0_13] : memref<9x32x192xbf16, #tpu.memory_space<vmem>>, vector<1x32x192xbf16>
    %13 = vector.shape_cast %12 : vector<1x32x192xbf16> to vector<32x192xbf16>
    %c7 = arith.constant 7 : index
    %c0_14 = arith.constant 0 : index
    %c0_15 = arith.constant 0 : index
    %14 = vector.load %arg1[%c7, %c0_14, %c0_15] : memref<9x32x192xbf16, #tpu.memory_space<vmem>>, vector<1x32x192xbf16>
    %15 = vector.shape_cast %14 : vector<1x32x192xbf16> to vector<32x192xbf16>
    %c8 = arith.constant 8 : index
    %c0_16 = arith.constant 0 : index
    %c0_17 = arith.constant 0 : index
    %16 = vector.load %arg1[%c8, %c0_16, %c0_17] : memref<9x32x192xbf16, #tpu.memory_space<vmem>>, vector<1x32x192xbf16>
    %17 = vector.shape_cast %16 : vector<1x32x192xbf16> to vector<32x192xbf16>
    %18 = arith.maximumf %1, %3 : vector<32x192xbf16>
    %19 = arith.maximumf %5, %7 : vector<32x192xbf16>
    %20 = arith.maximumf %9, %11 : vector<32x192xbf16>
    %21 = arith.maximumf %13, %15 : vector<32x192xbf16>
    %22 = arith.maximumf %18, %19 : vector<32x192xbf16>
    %23 = arith.maximumf %20, %21 : vector<32x192xbf16>
    %24 = arith.maximumf %22, %23 : vector<32x192xbf16>
    %25 = arith.maximumf %24, %17 : vector<32x192xbf16>
    %c0_18 = arith.constant 0 : index
    %c0_19 = arith.constant 0 : index
    %26 = vector.load %arg2[%c0_18, %c0_19] : memref<32x192xbf16, #tpu.memory_space<vmem>>, vector<32x192xbf16>
    tpu.vector_store %arg2[%c0_18, %c0_19], %25 {strides = array<i32>} : memref<32x192xbf16, #tpu.memory_space<vmem>>, vector<32x192xbf16>,
    return
  }
  func.func @transform_0(%arg0: i32) -> (i32, i32, i32) {
    %c0_i32 = arith.constant 0 : i32
    %c0_i32_0 = arith.constant 0 : i32
    %c0_i32_1 = arith.constant 0 : i32
    return %c0_i32, %arg0, %c0_i32_0 : i32, i32, i32
  }
  func.func @transform_1(%arg0: i32) -> (i32, i32) {
    %c0_i32 = arith.constant 0 : i32
    %c0_i32_0 = arith.constant 0 : i32
    return %arg0, %c0_i32 : i32, i32
  }
}

module attributes {stable_mosaic.version = 11 : i64} {
  func.func @_inception_matmul_kernel(%arg0: i32, %arg1: memref<3x32x1728xbf16, #tpu.memory_space<vmem>>, %arg2: memref<3x1728x128xbf16, #tpu.memory_space<vmem>>, %arg3: memref<3x1x128xf32, #tpu.memory_space<vmem>>, %arg4: memref<32x384xbf16, #tpu.memory_space<vmem>>) attributes {dimension_semantics = [#tpu.dimension_semantics<parallel>], iteration_bounds = array<i64: 1>, scalar_prefetch = 0 : i64, scratch_operands = 0 : i64, tpu.core_type = #tpu.core_type<tc>, window_params = [{transform_indices = @transform_0, window_bounds = array<i64: 3, 32, 1728>}, {pipeline_mode = #tpu.pipeline_mode<synchronous>, transform_indices = @transform_1, window_bounds = array<i64: 3, 1728, 128>}, {pipeline_mode = #tpu.pipeline_mode<synchronous>, transform_indices = @transform_2, window_bounds = array<i64: 3, 1, 128>}, {transform_indices = @transform_3, window_bounds = array<i64: 32, 384>}]} {
    %c0 = arith.constant 0 : index
    %c0_0 = arith.constant 0 : index
    %c0_1 = arith.constant 0 : index
    %0 = vector.load %arg1[%c0, %c0_0, %c0_1] : memref<3x32x1728xbf16, #tpu.memory_space<vmem>>, vector<1x32x1728xbf16>
    %1 = vector.shape_cast %0 : vector<1x32x1728xbf16> to vector<32x1728xbf16>
    %c0_2 = arith.constant 0 : index
    %c0_3 = arith.constant 0 : index
    %c0_4 = arith.constant 0 : index
    %2 = vector.load %arg2[%c0_2, %c0_3, %c0_4] : memref<3x1728x128xbf16, #tpu.memory_space<vmem>>, vector<1x1728x128xbf16>
    %3 = vector.shape_cast %2 : vector<1x1728x128xbf16> to vector<1728x128xbf16>
    %cst = arith.constant dense<0.000000e+00> : vector<32x128xf32>
    %4 = tpu.matmul %1, %3, %cst {dimension_numbers = #tpu.dot_dimension_numbers<[1], [0], [0], [1], [0, 0, 1, 1], [], []>} : vector<32x1728xbf16>, vector<1728x128xbf16>, vector<32x128xf32> -> vector<32x128xf32>
    %c0_5 = arith.constant 0 : index
    %c0_6 = arith.constant 0 : index
    %c0_7 = arith.constant 0 : index
    %5 = vector.load %arg3[%c0_5, %c0_6, %c0_7] : memref<3x1x128xf32, #tpu.memory_space<vmem>>, vector<1x1x128xf32>
    %6 = vector.shape_cast %5 : vector<1x1x128xf32> to vector<1x128xf32>
    %7 = vector.broadcast %6 : vector<1x128xf32> to vector<32x128xf32>
    %8 = arith.addf %4, %7 : vector<32x128xf32>
    %cst_8 = arith.constant 0.000000e+00 : f32
    %9 = vector.broadcast %cst_8 : f32 to vector<32x128xf32>
    %10 = arith.maximumf %8, %9 : vector<32x128xf32>
    %11 = arith.truncf %10 : vector<32x128xf32> to vector<32x128xbf16>
    %c1 = arith.constant 1 : index
    %c0_9 = arith.constant 0 : index
    %c0_10 = arith.constant 0 : index
    %12 = vector.load %arg1[%c1, %c0_9, %c0_10] : memref<3x32x1728xbf16, #tpu.memory_space<vmem>>, vector<1x32x1728xbf16>
    %13 = vector.shape_cast %12 : vector<1x32x1728xbf16> to vector<32x1728xbf16>
    %c1_11 = arith.constant 1 : index
    %c0_12 = arith.constant 0 : index
    %c0_13 = arith.constant 0 : index
    %14 = vector.load %arg2[%c1_11, %c0_12, %c0_13] : memref<3x1728x128xbf16, #tpu.memory_space<vmem>>, vector<1x1728x128xbf16>
    %15 = vector.shape_cast %14 : vector<1x1728x128xbf16> to vector<1728x128xbf16>
    %cst_14 = arith.constant dense<0.000000e+00> : vector<32x128xf32>
    %16 = tpu.matmul %13, %15, %cst_14 {dimension_numbers = #tpu.dot_dimension_numbers<[1], [0], [0], [1], [0, 0, 1, 1], [], []>} : vector<32x1728xbf16>, vector<1728x128xbf16>, vector<32x128xf32> -> vector<32x128xf32>
    %c1_15 = arith.constant 1 : index
    %c0_16 = arith.constant 0 : index
    %c0_17 = arith.constant 0 : index
    %17 = vector.load %arg3[%c1_15, %c0_16, %c0_17] : memref<3x1x128xf32, #tpu.memory_space<vmem>>, vector<1x1x128xf32>
    %18 = vector.shape_cast %17 : vector<1x1x128xf32> to vector<1x128xf32>
    %19 = vector.broadcast %18 : vector<1x128xf32> to vector<32x128xf32>
    %20 = arith.addf %16, %19 : vector<32x128xf32>
    %cst_18 = arith.constant 0.000000e+00 : f32
    %21 = vector.broadcast %cst_18 : f32 to vector<32x128xf32>
    %22 = arith.maximumf %20, %21 : vector<32x128xf32>
    %23 = arith.truncf %22 : vector<32x128xf32> to vector<32x128xbf16>
    %c2 = arith.constant 2 : index
    %c0_19 = arith.constant 0 : index
    %c0_20 = arith.constant 0 : index
    %24 = vector.load %arg1[%c2, %c0_19, %c0_20] : memref<3x32x1728xbf16, #tpu.memory_space<vmem>>, vector<1x32x1728xbf16>
    %25 = vector.shape_cast %24 : vector<1x32x1728xbf16> to vector<32x1728xbf16>
    %c2_21 = arith.constant 2 : index
    %c0_22 = arith.constant 0 : index
    %c0_23 = arith.constant 0 : index
    %26 = vector.load %arg2[%c2_21, %c0_22, %c0_23] : memref<3x1728x128xbf16, #tpu.memory_space<vmem>>, vector<1x1728x128xbf16>
    %27 = vector.shape_cast %26 : vector<1x1728x128xbf16> to vector<1728x128xbf16>
    %cst_24 = arith.constant dense<0.000000e+00> : vector<32x128xf32>
    %28 = tpu.matmul %25, %27, %cst_24 {dimension_numbers = #tpu.dot_dimension_numbers<[1], [0], [0], [1], [0, 0, 1, 1], [], []>} : vector<32x1728xbf16>, vector<1728x128xbf16>, vector<32x128xf32> -> vector<32x128xf32>
    %c2_25 = arith.constant 2 : index
    %c0_26 = arith.constant 0 : index
    %c0_27 = arith.constant 0 : index
    %29 = vector.load %arg3[%c2_25, %c0_26, %c0_27] : memref<3x1x128xf32, #tpu.memory_space<vmem>>, vector<1x1x128xf32>
    %30 = vector.shape_cast %29 : vector<1x1x128xf32> to vector<1x128xf32>
    %31 = vector.broadcast %30 : vector<1x128xf32> to vector<32x128xf32>
    %32 = arith.addf %28, %31 : vector<32x128xf32>
    %cst_28 = arith.constant 0.000000e+00 : f32
    %33 = vector.broadcast %cst_28 : f32 to vector<32x128xf32>
    %34 = arith.maximumf %32, %33 : vector<32x128xf32>
    %35 = arith.truncf %34 : vector<32x128xf32> to vector<32x128xbf16>
    %36 = tpu.concatenate %11, %23, %35 in 1 : vector<32x128xbf16>, vector<32x128xbf16>, vector<32x128xbf16> -> vector<32x384xbf16>
    %c0_29 = arith.constant 0 : index
    %c0_30 = arith.constant 0 : index
    %37 = vector.load %arg4[%c0_29, %c0_30] : memref<32x384xbf16, #tpu.memory_space<vmem>>, vector<32x384xbf16>
    tpu.vector_store %arg4[%c0_29, %c0_30], %36 {strides = array<i32>} : memref<32x384xbf16, #tpu.memory_space<vmem>>, vector<32x384xbf16>,
    return
  }
  func.func @transform_0(%arg0: i32) -> (i32, i32, i32) {
    %c0_i32 = arith.constant 0 : i32
    %c0_i32_0 = arith.constant 0 : i32
    %c0_i32_1 = arith.constant 0 : i32
    return %c0_i32, %arg0, %c0_i32_0 : i32, i32, i32
  }
  func.func @transform_1(%arg0: i32) -> (i32, i32, i32) {
    %c0_i32 = arith.constant 0 : i32
    %c0_i32_0 = arith.constant 0 : i32
    %c0_i32_1 = arith.constant 0 : i32
    %c0_i32_2 = arith.constant 0 : i32
    return %c0_i32, %c0_i32_0, %c0_i32_1 : i32, i32, i32
  }
  func.func @transform_2(%arg0: i32) -> (i32, i32, i32) {
    %c0_i32 = arith.constant 0 : i32
    %c0_i32_0 = arith.constant 0 : i32
    %c0_i32_1 = arith.constant 0 : i32
    %c0_i32_2 = arith.constant 0 : i32
    return %c0_i32, %c0_i32_0, %c0_i32_1 : i32, i32, i32
  }
  func.func @transform_3(%arg0: i32) -> (i32, i32) {
    %c0_i32 = arith.constant 0 : i32
    %c0_i32_0 = arith.constant 0 : i32
    return %arg0, %c0_i32 : i32, i32
  }
}

module attributes {stable_mosaic.version = 11 : i64} {
  func.func @_inception_matmul_kernel(%arg0: i32, %arg1: memref<3x32x3456xbf16, #tpu.memory_space<vmem>>, %arg2: memref<3x3456x128xbf16, #tpu.memory_space<vmem>>, %arg3: memref<3x1x128xf32, #tpu.memory_space<vmem>>, %arg4: memref<32x384xbf16, #tpu.memory_space<vmem>>) attributes {dimension_semantics = [#tpu.dimension_semantics<parallel>], iteration_bounds = array<i64: 1>, scalar_prefetch = 0 : i64, scratch_operands = 0 : i64, tpu.core_type = #tpu.core_type<tc>, window_params = [{transform_indices = @transform_0, window_bounds = array<i64: 3, 32, 3456>}, {pipeline_mode = #tpu.pipeline_mode<synchronous>, transform_indices = @transform_1, window_bounds = array<i64: 3, 3456, 128>}, {pipeline_mode = #tpu.pipeline_mode<synchronous>, transform_indices = @transform_2, window_bounds = array<i64: 3, 1, 128>}, {transform_indices = @transform_3, window_bounds = array<i64: 32, 384>}]} {
    %c0 = arith.constant 0 : index
    %c0_0 = arith.constant 0 : index
    %c0_1 = arith.constant 0 : index
    %0 = vector.load %arg1[%c0, %c0_0, %c0_1] : memref<3x32x3456xbf16, #tpu.memory_space<vmem>>, vector<1x32x3456xbf16>
    %1 = vector.shape_cast %0 : vector<1x32x3456xbf16> to vector<32x3456xbf16>
    %c0_2 = arith.constant 0 : index
    %c0_3 = arith.constant 0 : index
    %c0_4 = arith.constant 0 : index
    %2 = vector.load %arg2[%c0_2, %c0_3, %c0_4] : memref<3x3456x128xbf16, #tpu.memory_space<vmem>>, vector<1x3456x128xbf16>
    %3 = vector.shape_cast %2 : vector<1x3456x128xbf16> to vector<3456x128xbf16>
    %cst = arith.constant dense<0.000000e+00> : vector<32x128xf32>
    %4 = tpu.matmul %1, %3, %cst {dimension_numbers = #tpu.dot_dimension_numbers<[1], [0], [0], [1], [0, 0, 1, 1], [], []>} : vector<32x3456xbf16>, vector<3456x128xbf16>, vector<32x128xf32> -> vector<32x128xf32>
    %c0_5 = arith.constant 0 : index
    %c0_6 = arith.constant 0 : index
    %c0_7 = arith.constant 0 : index
    %5 = vector.load %arg3[%c0_5, %c0_6, %c0_7] : memref<3x1x128xf32, #tpu.memory_space<vmem>>, vector<1x1x128xf32>
    %6 = vector.shape_cast %5 : vector<1x1x128xf32> to vector<1x128xf32>
    %7 = vector.broadcast %6 : vector<1x128xf32> to vector<32x128xf32>
    %8 = arith.addf %4, %7 : vector<32x128xf32>
    %cst_8 = arith.constant 0.000000e+00 : f32
    %9 = vector.broadcast %cst_8 : f32 to vector<32x128xf32>
    %10 = arith.maximumf %8, %9 : vector<32x128xf32>
    %11 = arith.truncf %10 : vector<32x128xf32> to vector<32x128xbf16>
    %c1 = arith.constant 1 : index
    %c0_9 = arith.constant 0 : index
    %c0_10 = arith.constant 0 : index
    %12 = vector.load %arg1[%c1, %c0_9, %c0_10] : memref<3x32x3456xbf16, #tpu.memory_space<vmem>>, vector<1x32x3456xbf16>
    %13 = vector.shape_cast %12 : vector<1x32x3456xbf16> to vector<32x3456xbf16>
    %c1_11 = arith.constant 1 : index
    %c0_12 = arith.constant 0 : index
    %c0_13 = arith.constant 0 : index
    %14 = vector.load %arg2[%c1_11, %c0_12, %c0_13] : memref<3x3456x128xbf16, #tpu.memory_space<vmem>>, vector<1x3456x128xbf16>
    %15 = vector.shape_cast %14 : vector<1x3456x128xbf16> to vector<3456x128xbf16>
    %cst_14 = arith.constant dense<0.000000e+00> : vector<32x128xf32>
    %16 = tpu.matmul %13, %15, %cst_14 {dimension_numbers = #tpu.dot_dimension_numbers<[1], [0], [0], [1], [0, 0, 1, 1], [], []>} : vector<32x3456xbf16>, vector<3456x128xbf16>, vector<32x128xf32> -> vector<32x128xf32>
    %c1_15 = arith.constant 1 : index
    %c0_16 = arith.constant 0 : index
    %c0_17 = arith.constant 0 : index
    %17 = vector.load %arg3[%c1_15, %c0_16, %c0_17] : memref<3x1x128xf32, #tpu.memory_space<vmem>>, vector<1x1x128xf32>
    %18 = vector.shape_cast %17 : vector<1x1x128xf32> to vector<1x128xf32>
    %19 = vector.broadcast %18 : vector<1x128xf32> to vector<32x128xf32>
    %20 = arith.addf %16, %19 : vector<32x128xf32>
    %cst_18 = arith.constant 0.000000e+00 : f32
    %21 = vector.broadcast %cst_18 : f32 to vector<32x128xf32>
    %22 = arith.maximumf %20, %21 : vector<32x128xf32>
    %23 = arith.truncf %22 : vector<32x128xf32> to vector<32x128xbf16>
    %c2 = arith.constant 2 : index
    %c0_19 = arith.constant 0 : index
    %c0_20 = arith.constant 0 : index
    %24 = vector.load %arg1[%c2, %c0_19, %c0_20] : memref<3x32x3456xbf16, #tpu.memory_space<vmem>>, vector<1x32x3456xbf16>
    %25 = vector.shape_cast %24 : vector<1x32x3456xbf16> to vector<32x3456xbf16>
    %c2_21 = arith.constant 2 : index
    %c0_22 = arith.constant 0 : index
    %c0_23 = arith.constant 0 : index
    %26 = vector.load %arg2[%c2_21, %c0_22, %c0_23] : memref<3x3456x128xbf16, #tpu.memory_space<vmem>>, vector<1x3456x128xbf16>
    %27 = vector.shape_cast %26 : vector<1x3456x128xbf16> to vector<3456x128xbf16>
    %cst_24 = arith.constant dense<0.000000e+00> : vector<32x128xf32>
    %28 = tpu.matmul %25, %27, %cst_24 {dimension_numbers = #tpu.dot_dimension_numbers<[1], [0], [0], [1], [0, 0, 1, 1], [], []>} : vector<32x3456xbf16>, vector<3456x128xbf16>, vector<32x128xf32> -> vector<32x128xf32>
    %c2_25 = arith.constant 2 : index
    %c0_26 = arith.constant 0 : index
    %c0_27 = arith.constant 0 : index
    %29 = vector.load %arg3[%c2_25, %c0_26, %c0_27] : memref<3x1x128xf32, #tpu.memory_space<vmem>>, vector<1x1x128xf32>
    %30 = vector.shape_cast %29 : vector<1x1x128xf32> to vector<1x128xf32>
    %31 = vector.broadcast %30 : vector<1x128xf32> to vector<32x128xf32>
    %32 = arith.addf %28, %31 : vector<32x128xf32>
    %cst_28 = arith.constant 0.000000e+00 : f32
    %33 = vector.broadcast %cst_28 : f32 to vector<32x128xf32>
    %34 = arith.maximumf %32, %33 : vector<32x128xf32>
    %35 = arith.truncf %34 : vector<32x128xf32> to vector<32x128xbf16>
    %36 = tpu.concatenate %11, %23, %35 in 1 : vector<32x128xbf16>, vector<32x128xbf16>, vector<32x128xbf16> -> vector<32x384xbf16>
    %c0_29 = arith.constant 0 : index
    %c0_30 = arith.constant 0 : index
    %37 = vector.load %arg4[%c0_29, %c0_30] : memref<32x384xbf16, #tpu.memory_space<vmem>>, vector<32x384xbf16>
    tpu.vector_store %arg4[%c0_29, %c0_30], %36 {strides = array<i32>} : memref<32x384xbf16, #tpu.memory_space<vmem>>, vector<32x384xbf16>,
    return
  }
  func.func @transform_0(%arg0: i32) -> (i32, i32, i32) {
    %c0_i32 = arith.constant 0 : i32
    %c0_i32_0 = arith.constant 0 : i32
    %c0_i32_1 = arith.constant 0 : i32
    return %c0_i32, %arg0, %c0_i32_0 : i32, i32, i32
  }
  func.func @transform_1(%arg0: i32) -> (i32, i32, i32) {
    %c0_i32 = arith.constant 0 : i32
    %c0_i32_0 = arith.constant 0 : i32
    %c0_i32_1 = arith.constant 0 : i32
    %c0_i32_2 = arith.constant 0 : i32
    return %c0_i32, %c0_i32_0, %c0_i32_1 : i32, i32, i32
  }
  func.func @transform_2(%arg0: i32) -> (i32, i32, i32) {
    %c0_i32 = arith.constant 0 : i32
    %c0_i32_0 = arith.constant 0 : i32
    %c0_i32_1 = arith.constant 0 : i32
    %c0_i32_2 = arith.constant 0 : i32
    return %c0_i32, %c0_i32_0, %c0_i32_1 : i32, i32, i32
  }
  func.func @transform_3(%arg0: i32) -> (i32, i32) {
    %c0_i32 = arith.constant 0 : i32
    %c0_i32_0 = arith.constant 0 : i32
    return %arg0, %c0_i32 : i32, i32
  }
}

module attributes {stable_mosaic.version = 11 : i64} {
  func.func @_matmul_bias_relu_kernel(%arg0: i32, %arg1: memref<32x3456xbf16, #tpu.memory_space<vmem>>, %arg2: memref<3456x256xbf16, #tpu.memory_space<vmem>>, %arg3: memref<1x256xf32, #tpu.memory_space<vmem>>, %arg4: memref<32x256xbf16, #tpu.memory_space<vmem>>) attributes {dimension_semantics = [#tpu.dimension_semantics<parallel>], iteration_bounds = array<i64: 1>, scalar_prefetch = 0 : i64, scratch_operands = 0 : i64, tpu.core_type = #tpu.core_type<tc>, window_params = [{transform_indices = @transform_0, window_bounds = array<i64: 32, 3456>}, {pipeline_mode = #tpu.pipeline_mode<synchronous>, transform_indices = @transform_1, window_bounds = array<i64: 3456, 256>}, {pipeline_mode = #tpu.pipeline_mode<synchronous>, transform_indices = @transform_2, window_bounds = array<i64: 1, 256>}, {transform_indices = @transform_3, window_bounds = array<i64: 32, 256>}]} {
    %c0 = arith.constant 0 : index
    %c0_0 = arith.constant 0 : index
    %0 = vector.load %arg1[%c0, %c0_0] : memref<32x3456xbf16, #tpu.memory_space<vmem>>, vector<32x3456xbf16>
    %c0_1 = arith.constant 0 : index
    %c0_2 = arith.constant 0 : index
    %1 = vector.load %arg2[%c0_1, %c0_2] : memref<3456x256xbf16, #tpu.memory_space<vmem>>, vector<3456x256xbf16>
    %cst = arith.constant dense<0.000000e+00> : vector<32x256xf32>
    %2 = tpu.matmul %0, %1, %cst {dimension_numbers = #tpu.dot_dimension_numbers<[1], [0], [0], [1], [0, 0, 1, 1], [], []>} : vector<32x3456xbf16>, vector<3456x256xbf16>, vector<32x256xf32> -> vector<32x256xf32>
    %c0_3 = arith.constant 0 : index
    %c0_4 = arith.constant 0 : index
    %3 = vector.load %arg3[%c0_3, %c0_4] : memref<1x256xf32, #tpu.memory_space<vmem>>, vector<1x256xf32>
    %4 = vector.broadcast %3 : vector<1x256xf32> to vector<32x256xf32>
    %5 = arith.addf %2, %4 : vector<32x256xf32>
    %cst_5 = arith.constant 0.000000e+00 : f32
    %6 = vector.broadcast %cst_5 : f32 to vector<32x256xf32>
    %7 = arith.maximumf %5, %6 : vector<32x256xf32>
    %8 = arith.truncf %7 : vector<32x256xf32> to vector<32x256xbf16>
    %c0_6 = arith.constant 0 : index
    %c0_7 = arith.constant 0 : index
    %9 = vector.load %arg4[%c0_6, %c0_7] : memref<32x256xbf16, #tpu.memory_space<vmem>>, vector<32x256xbf16>
    tpu.vector_store %arg4[%c0_6, %c0_7], %8 {strides = array<i32>} : memref<32x256xbf16, #tpu.memory_space<vmem>>, vector<32x256xbf16>,
    return
  }
  func.func @transform_0(%arg0: i32) -> (i32, i32) {
    %c0_i32 = arith.constant 0 : i32
    %c0_i32_0 = arith.constant 0 : i32
    return %arg0, %c0_i32 : i32, i32
  }
  func.func @transform_1(%arg0: i32) -> (i32, i32) {
    %c0_i32 = arith.constant 0 : i32
    %c0_i32_0 = arith.constant 0 : i32
    %c0_i32_1 = arith.constant 0 : i32
    return %c0_i32, %c0_i32_0 : i32, i32
  }
  func.func @transform_2(%arg0: i32) -> (i32, i32) {
    %c0_i32 = arith.constant 0 : i32
    %c0_i32_0 = arith.constant 0 : i32
    %c0_i32_1 = arith.constant 0 : i32
    return %c0_i32, %c0_i32_0 : i32, i32
  }
  func.func @transform_3(%arg0: i32) -> (i32, i32) {
    %c0_i32 = arith.constant 0 : i32
    %c0_i32_0 = arith.constant 0 : i32
    return %arg0, %c0_i32 : i32, i32
  }
}

module attributes {stable_mosaic.version = 11 : i64} {
  func.func @_maxpool9_kernel(%arg0: i32, %arg1: memref<9x16x256xbf16, #tpu.memory_space<vmem>>, %arg2: memref<16x256xbf16, #tpu.memory_space<vmem>>) attributes {dimension_semantics = [#tpu.dimension_semantics<parallel>], iteration_bounds = array<i64: 1>, scalar_prefetch = 0 : i64, scratch_operands = 0 : i64, tpu.core_type = #tpu.core_type<tc>, window_params = [{transform_indices = @transform_0, window_bounds = array<i64: 9, 16, 256>}, {transform_indices = @transform_1, window_bounds = array<i64: 16, 256>}]} {
    %c0 = arith.constant 0 : index
    %c0_0 = arith.constant 0 : index
    %c0_1 = arith.constant 0 : index
    %0 = vector.load %arg1[%c0, %c0_0, %c0_1] : memref<9x16x256xbf16, #tpu.memory_space<vmem>>, vector<1x16x256xbf16>
    %1 = vector.shape_cast %0 : vector<1x16x256xbf16> to vector<16x256xbf16>
    %c1 = arith.constant 1 : index
    %c0_2 = arith.constant 0 : index
    %c0_3 = arith.constant 0 : index
    %2 = vector.load %arg1[%c1, %c0_2, %c0_3] : memref<9x16x256xbf16, #tpu.memory_space<vmem>>, vector<1x16x256xbf16>
    %3 = vector.shape_cast %2 : vector<1x16x256xbf16> to vector<16x256xbf16>
    %c2 = arith.constant 2 : index
    %c0_4 = arith.constant 0 : index
    %c0_5 = arith.constant 0 : index
    %4 = vector.load %arg1[%c2, %c0_4, %c0_5] : memref<9x16x256xbf16, #tpu.memory_space<vmem>>, vector<1x16x256xbf16>
    %5 = vector.shape_cast %4 : vector<1x16x256xbf16> to vector<16x256xbf16>
    %c3 = arith.constant 3 : index
    %c0_6 = arith.constant 0 : index
    %c0_7 = arith.constant 0 : index
    %6 = vector.load %arg1[%c3, %c0_6, %c0_7] : memref<9x16x256xbf16, #tpu.memory_space<vmem>>, vector<1x16x256xbf16>
    %7 = vector.shape_cast %6 : vector<1x16x256xbf16> to vector<16x256xbf16>
    %c4 = arith.constant 4 : index
    %c0_8 = arith.constant 0 : index
    %c0_9 = arith.constant 0 : index
    %8 = vector.load %arg1[%c4, %c0_8, %c0_9] : memref<9x16x256xbf16, #tpu.memory_space<vmem>>, vector<1x16x256xbf16>
    %9 = vector.shape_cast %8 : vector<1x16x256xbf16> to vector<16x256xbf16>
    %c5 = arith.constant 5 : index
    %c0_10 = arith.constant 0 : index
    %c0_11 = arith.constant 0 : index
    %10 = vector.load %arg1[%c5, %c0_10, %c0_11] : memref<9x16x256xbf16, #tpu.memory_space<vmem>>, vector<1x16x256xbf16>
    %11 = vector.shape_cast %10 : vector<1x16x256xbf16> to vector<16x256xbf16>
    %c6 = arith.constant 6 : index
    %c0_12 = arith.constant 0 : index
    %c0_13 = arith.constant 0 : index
    %12 = vector.load %arg1[%c6, %c0_12, %c0_13] : memref<9x16x256xbf16, #tpu.memory_space<vmem>>, vector<1x16x256xbf16>
    %13 = vector.shape_cast %12 : vector<1x16x256xbf16> to vector<16x256xbf16>
    %c7 = arith.constant 7 : index
    %c0_14 = arith.constant 0 : index
    %c0_15 = arith.constant 0 : index
    %14 = vector.load %arg1[%c7, %c0_14, %c0_15] : memref<9x16x256xbf16, #tpu.memory_space<vmem>>, vector<1x16x256xbf16>
    %15 = vector.shape_cast %14 : vector<1x16x256xbf16> to vector<16x256xbf16>
    %c8 = arith.constant 8 : index
    %c0_16 = arith.constant 0 : index
    %c0_17 = arith.constant 0 : index
    %16 = vector.load %arg1[%c8, %c0_16, %c0_17] : memref<9x16x256xbf16, #tpu.memory_space<vmem>>, vector<1x16x256xbf16>
    %17 = vector.shape_cast %16 : vector<1x16x256xbf16> to vector<16x256xbf16>
    %18 = arith.maximumf %1, %3 : vector<16x256xbf16>
    %19 = arith.maximumf %5, %7 : vector<16x256xbf16>
    %20 = arith.maximumf %9, %11 : vector<16x256xbf16>
    %21 = arith.maximumf %13, %15 : vector<16x256xbf16>
    %22 = arith.maximumf %18, %19 : vector<16x256xbf16>
    %23 = arith.maximumf %20, %21 : vector<16x256xbf16>
    %24 = arith.maximumf %22, %23 : vector<16x256xbf16>
    %25 = arith.maximumf %24, %17 : vector<16x256xbf16>
    %c0_18 = arith.constant 0 : index
    %c0_19 = arith.constant 0 : index
    %26 = vector.load %arg2[%c0_18, %c0_19] : memref<16x256xbf16, #tpu.memory_space<vmem>>, vector<16x256xbf16>
    tpu.vector_store %arg2[%c0_18, %c0_19], %25 {strides = array<i32>} : memref<16x256xbf16, #tpu.memory_space<vmem>>, vector<16x256xbf16>,
    return
  }
  func.func @transform_0(%arg0: i32) -> (i32, i32, i32) {
    %c0_i32 = arith.constant 0 : i32
    %c0_i32_0 = arith.constant 0 : i32
    %c0_i32_1 = arith.constant 0 : i32
    return %c0_i32, %arg0, %c0_i32_0 : i32, i32, i32
  }
  func.func @transform_1(%arg0: i32) -> (i32, i32) {
    %c0_i32 = arith.constant 0 : i32
    %c0_i32_0 = arith.constant 0 : i32
    return %arg0, %c0_i32 : i32, i32
  }
}

</mosaic_0001>

<bundles_post_ra>
// kernel: few_shot_forward.8
= control target key start
LH: loop header
LB: loop body
LE: loop exit
PB: predicated region body
PF: predicated region fallthrough
CT: control target
= control target key end

     0   :  { %s1785_s12 = smov 0   ;;  %s2074_s0 = inlined_call_operand.vmem [shape: bf16[512,363], index: 0, kind: input, shape index: {}]   ;;  %s2075_s1 = inlined_call_operand.vmem [shape: bf16[363,64], index: 1, kind: input, shape index: {}]   ;;  %s2076_s2 = inlined_call_operand.vmem [shape: f32[1,64], index: 2, kind: input, shape index: {}]   ;;  %s2077_s3 = inlined_call_operand.vmem [shape: bf16[512,64], index: 3, kind: output, shape index: {}]  }
   0x1 LB: > { %s1299_s13 = sadd.s32 4294967295, %s1762_s12   ;;  %p1303_p0 = scmp.ge.s32.totalorder %s1762_s12, 1  ;;  %s1762_s12 = sphi %s1785_s12, %s13_s12  }
   0x2   : > { %p139_p1 = scmp.lt.s32.totalorder %s1762_s12, 3 }
   0x4   : > { %p140_p2 = pnand %p1303_p0, %p139_p1 }
   0x5   : > { %v1669_v0 = vld [vmem:[%s2075_s1 + $0x40] sm:$0xff] (!%p140_p2)   ;;  %s1304_s16 = sshll.u32 (!%p140_p2), %s1299_s13, 5  ;;  %v1671_v2 = vld [vmem:[%s2075_s1 + $0x48] sm:$0xff] (!%p140_p2)   ;;  %v1673_v4 = vld [vmem:[%s2075_s1 + $0x50] sm:$0xff] (!%p140_p2)   ;;  %vm721_vm0 = vcmask (!%p140_p2), 1044480   ;;  %vm722_vm1 = vcmask (!%p140_p2), 1045504  }
   0x6   : > { %143 = sbr.rel (%p140_p2) target bundleno = 352 (0x160), region = 32  ;;  %v1670_v1 = vld [vmem:[%s2075_s1] sm:$0xff] (!%p140_p2)   ;;  %1462 = vmatprep.subr.bf16.mxu0 (!%p140_p2), %v1669_v0  ;;  %1643 = vmatprep.subr.bf16.mxu1 (!%p140_p2), %v1669_v0  ;;  %p165_p3 = scmp.lt.s32.totalorder (!%p140_p2), %s1304_s16, 63  ;;  %v1672_v3 = vld [vmem:[%s2075_s1 + $0x8] sm:$0xff] (!%p140_p2)   ;;  %v1674_v5 = vld [vmem:[%s2075_s1 + $0x10] sm:$0xff] (!%p140_p2)   ;;  %v1764_v32 = vmov (!%p140_p2), 65535  }
   0x7   : > { %1463 = vmatpush3.bf16.msra.mxu0 (!%p140_p2), %v1670_v1  ;;  %1651 = vmatpush3.bf16.msra.mxu1 (!%p140_p2), %v1670_v1  ;;  %v1675_v6 = vld [vmem:[%s2075_s1 + $0x58] sm:$0xff] (!%p140_p2)   ;;  %v1677_v8 = vld [vmem:[%s2075_s1 + $0x60] sm:$0xff] (!%p140_p2)   ;;  %v1679_v10 = vld [vmem:[%s2075_s1 + $0x68] sm:$0xff] (!%p140_p2)   ;;  %v723_v33 = vsel (!%p140_p2), %vm721_vm0, 4294967295, %v1764_v32  ;;  %vm672_vm2 = vcmask (!%p140_p2), 875520   ;;  %vm1210_vm3 = vcmask (!%p140_p2), 519168  }
   0x8   : > { %1464 = vmatprep.subr.bf16.mxu0 (!%p140_p2), %v1671_v2  ;;  %1644 = vmatprep.subr.bf16.mxu1 (!%p140_p2), %v1671_v2  ;;  %v1676_v7 = vld [vmem:[%s2075_s1 + $0x18] sm:$0xff] (!%p140_p2)   ;;  %v1678_v9 = vld [vmem:[%s2075_s1 + $0x20] sm:$0xff] (!%p140_p2)   ;;  %v1680_v13 = vld [vmem:[%s2075_s1 + $0x28] sm:$0xff] (!%p140_p2)   ;;  %v724_v39 = vsel (!%p140_p2), %vm722_vm1, %v723_v33, 0 }
   0x9   : > { %v1681_v14 = vld [vmem:[%s2075_s1 + $0x70] sm:$0xff] (!%p140_p2)   ;;  %v1683_v16 = vld [vmem:[%s2075_s1 + $0x78] sm:$0xff] (!%p140_p2)   ;;  %v1691_v18 = vld [vmem:[%s2075_s1 + $0x80] sm:$0xff] (!%p140_p2)  }
   0xa   : > { %v1682_v15 = vld [vmem:[%s2075_s1 + $0x30] sm:$0xff] (!%p140_p2)   ;;  %v1684_v17 = vld [vmem:[%s2075_s1 + $0x38] sm:$0xff] (!%p140_p2)   ;;  %v1698_v23 = vld [vmem:[%s2075_s1 + $0x88] sm:$0xff] (!%p140_p2)  }
   0xb   : > { %1465 = vmatpush3.bf16.msra.mxu0 (!%p140_p2), %v1672_v3  ;;  %1652 = vmatpush3.bf16.msra.mxu1 (!%p140_p2), %v1672_v3  ;;  %v1699_v25 = vld [vmem:[%s2075_s1 + $0x90] sm:$0xff] (!%p140_p2)   ;;  %v1706_v29 = vld [vmem:[%s2075_s1 + $0x98] sm:$0xff] (!%p140_p2)   ;;  %v1707_v31 = vld [vmem:[%s2075_s1 + $0xa0] sm:$0xff] (!%p140_p2)  }
   0xc   : > { %1466 = vmatprep.subr.bf16.mxu0 (!%p140_p2), %v1673_v4  ;;  %1645 = vmatprep.subr.bf16.mxu1 (!%p140_p2), %v1673_v4  ;;  %v1714_v37 = vld [vmem:[%s2075_s1 + $0xa8] sm:$0xff] (!%p140_p2)   ;;  %v1715_v38 = vld [vmem:[%s2075_s1 + $0xb0] sm:$0x3f] (!%p140_p2)  }
   0xd   : > { %s2079_s16 = smov (!%p165_p3, %s1304_s16), 63  ;;  %v726_v40 = vand.u32 %v1715_v38, %v724_v39 }
   0xe   : > { %s1659_s29 = smul.u32 12, %s2079_s16  ;;  %s1307_s17 = sshll.u32 %s2079_s16, 2 }
   0xf   : > { %1467 = vmatpush3.bf16.msra.mxu0 %v1674_v5  ;;  %1653 = vmatpush3.bf16.msra.mxu1 %v1674_v5  ;;  %s1963_s20 = scalar_lea.vmem %s2077_s3, %s1307_s17 }
  0x10   : > { %1468 = vmatprep.subr.bf16.mxu0 %v1675_v6  ;;  %1646 = vmatprep.subr.bf16.mxu1 %v1675_v6  ;;  %s1826_s9 = scalar_lea.vmem %s2074_s0, %s1659_s29 }
  0x11   : > { %v1687_v11 = vld [vmem:[%s1826_s9 + $0x4] ss:$12 sps:$4 sm:$0xff]   ;;  %v1685_v19 = vld [vmem:[%s1826_s9] ss:$12 sps:$4 sm:$0xff]   ;;  %v1692_v21 = vld [vmem:[%s1826_s9 + $0x1c] ss:$12 sps:$4 sm:$0xff]  }
  0x12   : > { %v1690_v12 = vld [vmem:[%s1826_s9 + $0x124] ss:$12 sps:$4 sm:$0xff]   ;;  %760 = vmatprep.mubr.bf16.mxu0 %v1687_v11  ;;  %v1688_v20 = vld [vmem:[%s1826_s9 + $0x120] ss:$12 sps:$4 sm:$0xff]   ;;  %v1694_v22 = vld [vmem:[%s1826_s9 + $0x13c] ss:$12 sps:$4 sm:$0xff]  }
  0x13   : > { %1469 = vmatpush3.bf16.msra.mxu0 %v1676_v7  ;;  %1654 = vmatpush3.bf16.msra.mxu1 %v1676_v7  ;;  %v1696_v24 = vld [vmem:[%s1826_s9 + $0x18] ss:$12 sps:$4 sm:$0xff]   ;;  %v1700_v27 = vld [vmem:[%s1826_s9 + $0x34] ss:$12 sps:$4 sm:$0xff]   ;;  %v1704_v30 = vld [vmem:[%s1826_s9 + $0x30] ss:$12 sps:$4 sm:$0xff]  }
  0x14   : > { %1470 = vmatprep.subr.bf16.mxu0 %v1677_v8  ;;  %1647 = vmatprep.subr.bf16.mxu1 %v1677_v8  ;;  %v1697_v26 = vld [vmem:[%s1826_s9 + $0x138] ss:$12 sps:$4 sm:$0xff]   ;;  %v1702_v28 = vld [vmem:[%s1826_s9 + $0x154] ss:$12 sps:$4 sm:$0xff]   ;;  %v1705_v34 = vld [vmem:[%s1826_s9 + $0x150] ss:$12 sps:$4 sm:$0xff]  }
  0x15   : > { %856 = vmatprep.mubr.bf16.mxu1 %v1690_v12  ;;  %v1708_v35 = vld [vmem:[%s1826_s9 + $0x4c] ss:$12 sps:$4 sm:$0xff]   ;;  %v1712_v41 = vld [vmem:[%s1826_s9 + $0x48] ss:$12 sps:$4 sm:$0xff]   ;;  %v1716_v43 = vld [vmem:[%s1826_s9 + $0x64] ss:$12 sps:$4 sm:$0xff]  }
  0x16   : > { %v1710_v36 = vld [vmem:[%s1826_s9 + $0x16c] ss:$12 sps:$4 sm:$0xff]   ;;  %v1713_v42 = vld [vmem:[%s1826_s9 + $0x168] ss:$12 sps:$4 sm:$0xff]   ;;  %v1725_v50 = vld [vmem:[%s1826_s9 + $0x50] ss:$12 sps:$4 sm:$0xff]  }
  0x17   : > { %1471 = vmatpush3.bf16.msra.mxu0 %v1678_v9  ;;  %1655 = vmatpush3.bf16.msra.mxu1 %v1678_v9  ;;  %v1718_v44 = vld [vmem:[%s1826_s9 + $0x8] ss:$12 sps:$4 sm:$0xff]   ;;  %v1719_v45 = vld [vmem:[%s1826_s9 + $0x60] ss:$12 sps:$4 sm:$0xff]   ;;  %v1723_v48 = vld [vmem:[%s1826_s9 + $0x38] ss:$12 sps:$4 sm:$0xff]  }
  0x18   : > { %1472 = vmatprep.subr.bf16.mxu0 %v1679_v10  ;;  %1648 = vmatprep.subr.bf16.mxu1 %v1679_v10  ;;  %v1720_v46 = vld [vmem:[%s1826_s9 + $0x20] ss:$12 sps:$4 sm:$0xff]   ;;  %v1721_v47 = vld [vmem:[%s1826_s9 + $0x7c] ss:$12 sps:$4 sm:$0xff]   ;;  %v1724_v49 = vld [vmem:[%s1826_s9 + $0x78] ss:$12 sps:$4 sm:$0xff]  }
  0x19   : > { %v1726_v51 = vld [vmem:[%s1826_s9 + $0x94] ss:$12 sps:$4 sm:$0xff]   ;;  %v1729_v53 = vld [vmem:[%s1826_s9 + $0x90] ss:$12 sps:$4 sm:$0xff]   ;;  %v1731_v55 = vld [vmem:[%s1826_s9 + $0xac] ss:$12 sps:$4 sm:$0xff]  }
  0x1a   : > { %v1728_v52 = vld [vmem:[%s1826_s9 + $0x68] ss:$12 sps:$4 sm:$0xff]   ;;  %v1730_v54 = vld [vmem:[%s1826_s9 + $0x80] ss:$12 sps:$4 sm:$0xff]   ;;  %v1733_v56 = vld [vmem:[%s1826_s9 + $0x98] ss:$12 sps:$4 sm:$0xff]  }
  0x1b   : > { %1473 = vmatpush3.bf16.msra.mxu0 %v1680_v13  ;;  %1656 = vmatpush3.bf16.msra.mxu1 %v1680_v13  ;;  %v1734_v57 = vld [vmem:[%s1826_s9 + $0xa8] ss:$12 sps:$4 sm:$0xff]   ;;  %v1735_v58 = vld [vmem:[%s1826_s9 + $0xb0] ss:$12 sps:$4 sm:$0xff]   ;;  %v1739_v61 = vld [vmem:[%s1826_s9 + $0xc0] ss:$12 sps:$4 sm:$0xff]  }
  0x1c   : > { %1474 = vmatprep.subr.bf16.mxu0 %v1681_v14  ;;  %1649 = vmatprep.subr.bf16.mxu1 %v1681_v14  ;;  %v1736_v59 = vld [vmem:[%s1826_s9 + $0xc4] ss:$12 sps:$4 sm:$0xff]   ;;  %v1738_v60 = vld [vmem:[%s1826_s9 + $0xc8] ss:$12 sps:$4 sm:$0xff]   ;;  %v1740_v62 = vld [vmem:[%s1826_s9 + $0xe0] ss:$12 sps:$4 sm:$0xff]  }
  0x1d   : > { %v1741_v63 = vld [vmem:[%s1826_s9 + $0xdc] ss:$12 sps:$4 sm:$0xff]   ;;  %v1743_v0 = vld [vmem:[%s1826_s9 + $0xf8] ss:$12 sps:$4 sm:$0xff]   ;;  %v1746_v3 = vld [vmem:[%s1826_s9 + $0xf4] ss:$12 sps:$4 sm:$0xff]  }
  0x1e   : > { %v1744_v1 = vld [vmem:[%s1826_s9 + $0xd8] ss:$12 sps:$4 sm:$0xff]   ;;  %v1745_v2 = vld [vmem:[%s1826_s9 + $0x110] ss:$12 sps:$4 sm:$0xff]   ;;  %v1748_v4 = vld [vmem:[%s1826_s9 + $0x128] ss:$12 sps:$4 sm:$0xff]  }
  0x1f   : > { %1475 = vmatpush3.bf16.msra.mxu0 %v1682_v15  ;;  %1657 = vmatpush3.bf16.msra.mxu1 %v1682_v15  ;;  %v1749_v5 = vld [vmem:[%s1826_s9 + $0xf0] ss:$12 sps:$4 sm:$0xff]   ;;  %v1750_v6 = vld [vmem:[%s1826_s9 + $0x140] ss:$12 sps:$4 sm:$0xff]   ;;  %v1753_v8 = vld [vmem:[%s1826_s9 + $0x158] ss:$12 sps:$4 sm:$0xff]  }
  0x20   : > { %1476 = vmatprep.subr.bf16.mxu0 %v1683_v16  ;;  %1650 = vmatprep.subr.bf16.mxu1 %v1683_v16  ;;  %v1751_v7 = vld [vmem:[%s1826_s9 + $0x10c] ss:$12 sps:$4 sm:$0xff]   ;;  %v1754_v9 = vld [vmem:[%s1826_s9 + $0x108] ss:$12 sps:$4 sm:$0xff]   ;;  %v1755_v10 = vld [vmem:[%s1826_s9 + $0x170] ss:$12 sps:$4 sm:$0xff]  }
  0x23   : > { %1477 = vmatpush3.bf16.msra.mxu0 %v1684_v17  ;;  %1658 = vmatpush3.bf16.msra.mxu1 %v1684_v17 }
  0x24   : > { %1597 = vmatprep.subr.bf16.mxu1 %v1691_v18 }
  0x26   : > { %761 = vmatmul.mubr.bf16.vlgmr.msra.gmra.mrb[0].mxu0 %v1685_v19  ;;  %857 = vmatmul.mubr.bf16.vlgmr.msra.gmra.mrb[0].mxu1 %v1688_v20 }
  0x27   : > { %1598 = vmatpush3.bf16.msra.mxu1 %v1691_v18  ;;  %768 = vmatprep.mubr.bf16.mxu0 %v1692_v21 }
  0x28   : > { %864 = vmatprep.mubr.bf16.mxu1 %v1694_v22  ;;  %1599 = vmatprep.subr.bf16.mxu1 %v1698_v23 }
  0x2b   : > { %1600 = vmatpush3.bf16.msra.mxu1 %v1698_v23 }
  0x2c   : > { %1601 = vmatprep.subr.bf16.mxu1 %v1699_v25 }
  0x2e   : > { %769 = vmatmul.mubr.bf16.gmra.mrb[4].mxu0 %v1696_v24  ;;  %865 = vmatmul.mubr.bf16.gmra.mrb[4].mxu1 %v1697_v26 }
  0x2f   : > { %1602 = vmatpush3.bf16.msra.mxu1 %v1699_v25  ;;  %776 = vmatprep.mubr.bf16.mxu0 %v1700_v27 }
  0x30   : > { %872 = vmatprep.mubr.bf16.mxu1 %v1702_v28  ;;  %1603 = vmatprep.subr.bf16.mxu1 %v1706_v29 }
  0x33   : > { %1604 = vmatpush3.bf16.msra.mxu1 %v1706_v29 }
  0x34   : > { %1605 = vmatprep.subr.bf16.mxu1 %v1707_v31 }
  0x36   : > { %777 = vmatmul.mubr.bf16.gmra.mrb[8].mxu0 %v1704_v30  ;;  %873 = vmatmul.mubr.bf16.gmra.mrb[8].mxu1 %v1705_v34 }
  0x37   : > { %1606 = vmatpush3.bf16.msra.mxu1 %v1707_v31  ;;  %784 = vmatprep.mubr.bf16.mxu0 %v1708_v35 }
  0x38   : > { %880 = vmatprep.mubr.bf16.mxu1 %v1710_v36  ;;  %1607 = vmatprep.subr.bf16.mxu1 %v1714_v37 }
  0x3b   : > { %1608 = vmatpush3.bf16.msra.mxu1 %v1714_v37 }
  0x3c   : > { %1609 = vmatprep.subr.bf16.mxu1 %v726_v40 }
  0x3e   : > { %785 = vmatmul.mubr.bf16.gmra.mrb[12].mxu0 %v1712_v41  ;;  %881 = vmatmul.mubr.bf16.gmra.mrb[12].mxu1 %v1713_v42 }
  0x3f   : > { %1610 = vmatpush3.bf16.msra.mxu1 %v726_v40  ;;  %792 = vmatprep.mubr.bf16.mxu0 %v1716_v43 }
  0x40   : > { %1611 = vmatprep.mubr.msk.bf16.mxu1 %vm672_vm2, %v1718_v44 }
  0x46   : > { %793 = vmatmul.mubr.bf16.gmra.mrb[16].mxu0 %v1719_v45  ;;  %1612 = vmatmul.mubr.msk.bf16.vlgmr.msra.gmra.mrb[16].mxu1 %vm672_vm2, %v1720_v46 }
  0x47   : > { %800 = vmatprep.mubr.bf16.mxu0 %v1721_v47  ;;  %1615 = vmatprep.mubr.msk.bf16.mxu1 %vm672_vm2, %v1723_v48 }
  0x4e   : > { %801 = vmatmul.mubr.bf16.gmra.mrb[20].mxu0 %v1724_v49  ;;  %1616 = vmatmul.mubr.msk.bf16.gmra.mrb[20].mxu1 %vm672_vm2, %v1725_v50 }
  0x4f   : > { %808 = vmatprep.mubr.bf16.mxu0 %v1726_v51  ;;  %1619 = vmatprep.mubr.msk.bf16.mxu1 %vm672_vm2, %v1728_v52 }
  0x56   : > { %809 = vmatmul.mubr.bf16.gmra.mrb[24].mxu0 %v1729_v53  ;;  %1620 = vmatmul.mubr.msk.bf16.gmra.mrb[24].mxu1 %vm672_vm2, %v1730_v54 }
  0x57   : > { %816 = vmatprep.mubr.bf16.mxu0 %v1731_v55  ;;  %1623 = vmatprep.mubr.msk.bf16.mxu1 %vm672_vm2, %v1733_v56 }
  0x5e   : > { %817 = vmatmul.mubr.bf16.gmra.mrb[28].mxu0 %v1734_v57  ;;  %1624 = vmatmul.mubr.msk.bf16.gmra.mrb[28].mxu1 %vm672_vm2, %v1735_v58 }
  0x5f   : > { %824 = vmatprep.mubr.bf16.mxu0 %v1736_v59  ;;  %1627 = vmatprep.mubr.msk.bf16.mxu1 %vm672_vm2, %v1738_v60  ;;  %v1953_v59 = vld [vmem:[%s2076_s2] ss:$0 sm:$0xff] }
  0x66   : > { %825 = vmatmul.mubr.bf16.gmra.mrb[32].mxu0 %v1739_v61  ;;  %1628 = vmatmul.mubr.msk.bf16.gmra.mrb[32].mxu1 %vm672_vm2, %v1740_v62 }
  0x67   : > { %832 = vmatprep.mubr.bf16.mxu0 %v1741_v63  ;;  %1631 = vmatprep.mubr.msk.bf16.mxu1 %vm672_vm2, %v1743_v0 }
  0x6e   : > { %833 = vmatmul.mubr.bf16.gmra.mrb[36].mxu0 %v1744_v1  ;;  %1632 = vmatmul.mubr.msk.bf16.gmra.mrb[36].mxu1 %vm672_vm2, %v1745_v2 }
  0x6f   : > { %840 = vmatprep.mubr.bf16.mxu0 %v1746_v3  ;;  %1635 = vmatprep.mubr.msk.bf16.mxu1 %vm672_vm2, %v1748_v4 }
  0x76   : > { %841 = vmatmul.mubr.bf16.gmra.mrb[40].mxu0 %v1749_v5  ;;  %1636 = vmatmul.mubr.msk.bf16.gmra.mrb[40].mxu1 %vm672_vm2, %v1750_v6 }
  0x77   : > { %848 = vmatprep.mubr.bf16.mxu0 %v1751_v7  ;;  %1639 = vmatprep.mubr.msk.bf16.mxu1 %vm672_vm2, %v1753_v8 }
  0x7e   : > { %849 = vmatmul.mubr.bf16.gmra.mrb[44].mxu0 %v1754_v9  ;;  %1640 = vmatmul.mubr.msk.bf16.gmra.mrb[44].mxu1 %vm672_vm2, %v1755_v10 }
  0xf9   : > { %v1478_v11 = vpop.f32.mrb[0].mxu0  ;;  %v1550_v12 = vpop.f32.mrb[0].mxu1 }
  0xfa   : > { %v1479_v13 = vpop.f32.mrb[1].mxu0  ;;  %v1551_v14 = vpop.f32.mrb[1].mxu1 }
  0xfb   : > { %v1480_v15 = vadd.f32 %v1479_v13, %v1478_v11  ;;  %v1481_v16 = vpop.f32.mrb[2].mxu0  ;;  %v1934_v17 = vadd.f32 %v1551_v14, %v1550_v12  ;;  %v1553_v18 = vpop.f32.mrb[2].mxu1 }
  0xfc   : > { %v1482_v19 = vpop.f32.mrb[3].mxu0  ;;  %v1554_v20 = vpop.f32.mrb[3].mxu1 }
  0xfd   : > { %v1483_v21 = vadd.f32 %v1482_v19, %v1481_v16  ;;  %v1936_v22 = vadd.f32 %v1554_v20, %v1553_v18  ;;  %v763_v63 = vadd.f32 %v1480_v15, %v1953_v59 }
  0xff   : > { %v766_v8 = vadd.f32 %v1483_v21, %v1953_v59 }
 0x101   : > { %v1484_v23 = vpop.f32.mrb[4].mxu0  ;;  %v1556_v24 = vpop.f32.mrb[4].mxu1 }
 0x102   : > { %v1485_v25 = vpop.f32.mrb[5].mxu0  ;;  %v1557_v26 = vpop.f32.mrb[5].mxu1 }
 0x103   : > { %v1486_v27 = vadd.f32 %v1485_v25, %v1484_v23  ;;  %v1487_v28 = vpop.f32.mrb[6].mxu0  ;;  %v1938_v29 = vadd.f32 %v1557_v26, %v1556_v24  ;;  %v1559_v30 = vpop.f32.mrb[6].mxu1 }
 0x104   : > { %v1488_v31 = vpop.f32.mrb[7].mxu0  ;;  %v1560_v32 = vpop.f32.mrb[7].mxu1 }
 0x105   : > { %v1489_v33 = vadd.f32 %v1488_v31, %v1487_v28  ;;  %v1940_v34 = vadd.f32 %v1560_v32, %v1559_v30  ;;  %v771_v60 = vadd.f32 %v1486_v27, %v1953_v59 }
 0x107   : > { %v774_v3 = vadd.f32 %v1489_v33, %v1953_v59 }
 0x109   : > { %v1490_v35 = vpop.f32.mrb[8].mxu0  ;;  %v1562_v36 = vpop.f32.mrb[8].mxu1 }
 0x10a   : > { %v1491_v37 = vpop.f32.mrb[9].mxu0  ;;  %v1563_v38 = vpop.f32.mrb[9].mxu1 }
 0x10b   : > { %v1492_v39 = vadd.f32 %v1491_v37, %v1490_v35  ;;  %v1493_v40 = vpop.f32.mrb[10].mxu0  ;;  %v1942_v41 = vadd.f32 %v1563_v38, %v1562_v36  ;;  %v1565_v42 = vpop.f32.mrb[10].mxu1 }
 0x10c   : > { %v1494_v43 = vpop.f32.mrb[11].mxu0  ;;  %v1566_v44 = vpop.f32.mrb[11].mxu1 }
 0x10d   : > { %v1495_v45 = vadd.f32 %v1494_v43, %v1493_v40  ;;  %v1944_v46 = vadd.f32 %v1566_v44, %v1565_v42  ;;  %v779_v27 = vadd.f32 %v1492_v39, %v1953_v59 }
 0x10f   : > { %v782_v38 = vadd.f32 %v1495_v45, %v1953_v59 }
 0x111   : > { %v1496_v47 = vpop.f32.mrb[12].mxu0  ;;  %v1568_v48 = vpop.f32.mrb[12].mxu1 }
 0x112   : > { %v1497_v49 = vpop.f32.mrb[13].mxu0  ;;  %v1569_v50 = vpop.f32.mrb[13].mxu1 }
 0x113   : > { %v1498_v51 = vadd.f32 %v1497_v49, %v1496_v47  ;;  %v1499_v52 = vpop.f32.mrb[14].mxu0  ;;  %v1946_v53 = vadd.f32 %v1569_v50, %v1568_v48  ;;  %v1571_v54 = vpop.f32.mrb[14].mxu1 }
 0x114   : > { %v1500_v55 = vpop.f32.mrb[15].mxu0  ;;  %v1572_v56 = vpop.f32.mrb[15].mxu1 }
 0x115   : > { %v1501_v57 = vadd.f32 %v1500_v55, %v1499_v52  ;;  %v1948_v58 = vadd.f32 %v1572_v56, %v1571_v54  ;;  %v787_v23 = vadd.f32 %v1498_v51, %v1953_v59 }
 0x117   : > { %v790_v32 = vadd.f32 %v1501_v57, %v1953_v59 }
 0x119   : > { %v1502_v61 = vpop.f32.mrb[16].mxu0  ;;  %v1613_v62 = vpop.f32.mrb[16].mxu1 }
 0x11a   : > { %v932_v0 = vadd.f32 %v1613_v62, %v771_v60  ;;  %v1503_v1 = vpop.f32.mrb[17].mxu0  ;;  %v923_v2 = vpop.f32.mrb[17].mxu1 }
 0x11b   : > { %v1504_v4 = vadd.f32 %v1503_v1, %v1502_v61  ;;  %v924_v5 = vadd.f32 %v923_v2, %v763_v63  ;;  %v1505_v6 = vpop.f32.mrb[18].mxu0  ;;  %v1614_v7 = vpop.f32.mrb[18].mxu1 }
 0x11c   : > { %v1052_v9 = vmax.f32 %v932_v0, 0.0  ;;  %v935_v10 = vadd.f32 %v1614_v7, %v774_v3  ;;  %v1506_v11 = vpop.f32.mrb[19].mxu0  ;;  %v926_v12 = vpop.f32.mrb[19].mxu1 }
 0x11d   : > { %v1050_v13 = vmax.f32 %v924_v5, 0.0  ;;  %v1507_v14 = vadd.f32 %v1506_v11, %v1505_v6  ;;  %v927_v15 = vadd.f32 %v926_v12, %v766_v8  ;;  %v795_v60 = vadd.f32 %v1504_v4, %v1953_v59 }
 0x11e   : > { %v1432_v16 = vpack.c.bf16 %v1052_v9, %v1052_v9  ;;  %v1053_v18 = vmax.f32 %v935_v10, 0.0 }
 0x11f   : > { %v1430_v19 = vpack.c.bf16 %v1050_v13, %v1050_v13  ;;  %v1051_v20 = vmax.f32 %v927_v15, 0.0  ;;  %v798_v6 = vadd.f32 %v1507_v14, %v1953_v59 }
 0x120   : > { %1213 = vst.msk [vmem:[%s1963_s20 + $0x8] sm:$0xf] %vm1210_vm3, %v1432_v16  ;;  %v1433_v21 = vpack.c.bf16 %v1053_v18, %v1053_v18 }
 0x121   : > { %1211 = vst.msk [vmem:[%s1963_s20] sm:$0xf] %vm1210_vm3, %v1430_v19  ;;  %v1431_v24 = vpack.c.bf16 %v1051_v20, %v1051_v20  ;;  %v1508_v25 = vpop.f32.mrb[20].mxu0  ;;  %v1617_v26 = vpop.f32.mrb[20].mxu1 }
 0x122   : > { %1214 = vst.msk [vmem:[%s1963_s20 + $0xc] sm:$0xf] %vm1210_vm3, %v1433_v21  ;;  %v948_v28 = vadd.f32 %v1617_v26, %v787_v23  ;;  %v1509_v30 = vpop.f32.mrb[21].mxu0  ;;  %v939_v31 = vpop.f32.mrb[21].mxu1 }
 0x123   : > { %1212 = vst.msk [vmem:[%s1963_s20 + $0x4] sm:$0xf] %vm1210_vm3, %v1431_v24  ;;  %v1510_v33 = vadd.f32 %v1509_v30, %v1508_v25  ;;  %v940_v35 = vadd.f32 %v939_v31, %v779_v27  ;;  %v1511_v36 = vpop.f32.mrb[22].mxu0  ;;  %v1618_v37 = vpop.f32.mrb[22].mxu1 }
 0x124   : > { %v1056_v40 = vmax.f32 %v948_v28, 0.0  ;;  %v951_v42 = vadd.f32 %v1618_v37, %v790_v32  ;;  %v1512_v39 = vpop.f32.mrb[23].mxu0  ;;  %v942_v43 = vpop.f32.mrb[23].mxu1 }
 0x125   : > { %v1054_v44 = vmax.f32 %v940_v35, 0.0  ;;  %v1513_v47 = vadd.f32 %v1512_v39, %v1511_v36  ;;  %v943_v48 = vadd.f32 %v942_v43, %v782_v38  ;;  %v803_v55 = vadd.f32 %v1510_v33, %v1953_v59 }
 0x126   : > { %v1436_v49 = vpack.c.bf16 %v1056_v40, %v1056_v40  ;;  %v1057_v50 = vmax.f32 %v951_v42, 0.0 }
 0x127   : > { %v1434_v51 = vpack.c.bf16 %v1054_v44, %v1054_v44  ;;  %v1055_v52 = vmax.f32 %v943_v48, 0.0  ;;  %v806_v0 = vadd.f32 %v1513_v47, %v1953_v59 }
 0x128   : > { %1217 = vst.msk [vmem:[%s1963_s20 + $0x18] sm:$0xf] %vm1210_vm3, %v1436_v49  ;;  %v1437_v54 = vpack.c.bf16 %v1057_v50, %v1057_v50 }
 0x129   : > { %1215 = vst.msk [vmem:[%s1963_s20 + $0x10] sm:$0xf] %vm1210_vm3, %v1434_v51  ;;  %v1435_v45 = vpack.c.bf16 %v1055_v52, %v1055_v52  ;;  %v1514_v56 = vpop.f32.mrb[24].mxu0  ;;  %v1621_v57 = vpop.f32.mrb[24].mxu1 }
 0x12a   : > { %1218 = vst.msk [vmem:[%s1963_s20 + $0x1c] sm:$0xf] %vm1210_vm3, %v1437_v54  ;;  %v964_v61 = vadd.f32 %v1621_v57, %v803_v55  ;;  %v1515_v62 = vpop.f32.mrb[25].mxu0  ;;  %v955_v63 = vpop.f32.mrb[25].mxu1 }
 0x12b   : > { %1216 = vst.msk [vmem:[%s1963_s20 + $0x14] sm:$0xf] %vm1210_vm3, %v1435_v45  ;;  %v1516_v1 = vadd.f32 %v1515_v62, %v1514_v56  ;;  %v956_v2 = vadd.f32 %v955_v63, %v795_v60  ;;  %v1517_v3 = vpop.f32.mrb[26].mxu0  ;;  %v1622_v5 = vpop.f32.mrb[26].mxu1 }
 0x12c   : > { %v1060_v7 = vmax.f32 %v964_v61, 0.0  ;;  %v967_v8 = vadd.f32 %v1622_v5, %v806_v0  ;;  %v1518_v4 = vpop.f32.mrb[27].mxu0  ;;  %v958_v9 = vpop.f32.mrb[27].mxu1 }
 0x12d   : > { %v1058_v10 = vmax.f32 %v956_v2, 0.0  ;;  %v1519_v11 = vadd.f32 %v1518_v4, %v1517_v3  ;;  %v959_v12 = vadd.f32 %v958_v9, %v798_v6  ;;  %v811_v23 = vadd.f32 %v1516_v1, %v1953_v59 }
 0x12e   : > { %v1440_v13 = vpack.c.bf16 %v1060_v7, %v1060_v7  ;;  %v1061_v15 = vmax.f32 %v967_v8, 0.0 }
 0x12f   : > { %v1438_v16 = vpack.c.bf16 %v1058_v10, %v1058_v10  ;;  %v1059_v18 = vmax.f32 %v959_v12, 0.0  ;;  %v814_v31 = vadd.f32 %v1519_v11, %v1953_v59 }
 0x130   : > { %1221 = vst.msk [vmem:[%s1963_s20 + $0x28] sm:$0xf] %vm1210_vm3, %v1440_v13  ;;  %v1441_v19 = vpack.c.bf16 %v1061_v15, %v1061_v15 }
 0x131   : > { %1219 = vst.msk [vmem:[%s1963_s20 + $0x20] sm:$0xf] %vm1210_vm3, %v1438_v16  ;;  %v1439_v20 = vpack.c.bf16 %v1059_v18, %v1059_v18  ;;  %v1520_v14 = vpop.f32.mrb[28].mxu0  ;;  %v1625_v21 = vpop.f32.mrb[28].mxu1 }
 0x132   : > { %1222 = vst.msk [vmem:[%s1963_s20 + $0x2c] sm:$0xf] %vm1210_vm3, %v1441_v19  ;;  %v1521_v24 = vpop.f32.mrb[29].mxu0  ;;  %v971_v25 = vpop.f32.mrb[29].mxu1 }
 0x133   : > { %1220 = vst.msk [vmem:[%s1963_s20 + $0x24] sm:$0xf] %vm1210_vm3, %v1439_v20  ;;  %v1522_v26 = vadd.f32 %v1521_v24, %v1520_v14  ;;  %v972_v27 = vadd.f32 %v971_v25, %v811_v23  ;;  %v1523_v28 = vpop.f32.mrb[30].mxu0  ;;  %v1626_v30 = vpop.f32.mrb[30].mxu1  ;;  %v867_v23 = vadd.f32 %v1938_v29, %v1953_v59 }
 0x134   : > { %v1524_v32 = vpop.f32.mrb[31].mxu0  ;;  %v974_v33 = vpop.f32.mrb[31].mxu1 }
 0x135   : > { %v819_v35 = vadd.f32 %v1522_v26, %v1953_v59  ;;  %v1062_v36 = vmax.f32 %v972_v27, 0.0  ;;  %v1525_v37 = vadd.f32 %v1524_v32, %v1523_v28  ;;  %v975_v38 = vadd.f32 %v974_v33, %v814_v31 }
 0x136   : > { %v859_v28 = vadd.f32 %v1934_v17, %v1953_v59  ;;  %v870_v33 = vadd.f32 %v1940_v34, %v1953_v59  ;;  %v862_v17 = vadd.f32 %v1936_v22, %v1953_v59 }
 0x137   : > { %v980_v40 = vadd.f32 %v1625_v21, %v819_v35  ;;  %v1442_v42 = vpack.c.bf16 %v1062_v36, %v1062_v36  ;;  %v822_v39 = vadd.f32 %v1525_v37, %v1953_v59  ;;  %v1063_v43 = vmax.f32 %v975_v38, 0.0 }
 0x139   : > { %v1064_v44 = vmax.f32 %v980_v40, 0.0  ;;  %1223 = vst.msk [vmem:[%s1963_s20 + $0x30] sm:$0xf] %vm1210_vm3, %v1442_v42  ;;  %v983_v47 = vadd.f32 %v1626_v30, %v822_v39  ;;  %v1443_v48 = vpack.c.bf16 %v1063_v43, %v1063_v43  ;;  %v1526_v49 = vpop.f32.mrb[32].mxu0  ;;  %v1629_v50 = vpop.f32.mrb[32].mxu1 }
 0x13a   : > { %v1527_v51 = vpop.f32.mrb[33].mxu0  ;;  %v987_v52 = vpop.f32.mrb[33].mxu1 }
 0x13b   : > { %v1444_v54 = vpack.c.bf16 %v1064_v44, %v1064_v44  ;;  %v1065_v55 = vmax.f32 %v983_v47, 0.0  ;;  %1224 = vst.msk [vmem:[%s1963_s20 + $0x34] sm:$0xf] %vm1210_vm3, %v1443_v48  ;;  %v1528_v45 = vadd.f32 %v1527_v51, %v1526_v49  ;;  %v1529_v56 = vpop.f32.mrb[34].mxu0  ;;  %v1630_v57 = vpop.f32.mrb[34].mxu1 }
 0x13c   : > { %v1530_v60 = vpop.f32.mrb[35].mxu0  ;;  %v990_v61 = vpop.f32.mrb[35].mxu1 }
 0x13d   : > { %1225 = vst.msk [vmem:[%s1963_s20 + $0x38] sm:$0xf] %vm1210_vm3, %v1444_v54  ;;  %v1445_v62 = vpack.c.bf16 %v1065_v55, %v1065_v55  ;;  %v827_v63 = vadd.f32 %v1528_v45, %v1953_v59  ;;  %v1531_v0 = vadd.f32 %v1530_v60, %v1529_v56 }
 0x13f   : > { %1226 = vst.msk [vmem:[%s1963_s20 + $0x3c] sm:$0xf] %vm1210_vm3, %v1445_v62  ;;  %v988_v1 = vadd.f32 %v987_v52, %v827_v63  ;;  %v830_v2 = vadd.f32 %v1531_v0, %v1953_v59  ;;  %v875_v0 = vadd.f32 %v1942_v41, %v1953_v59 }
 0x141   : > { %v1066_v3 = vmax.f32 %v988_v1, 0.0  ;;  %v991_v5 = vadd.f32 %v990_v61, %v830_v2  ;;  %v1532_v6 = vpop.f32.mrb[36].mxu0  ;;  %v2011_v7 = vpop.f32.mrb[36].mxu1 }
 0x142   : > { %v1533_v8 = vpop.f32.mrb[37].mxu0  ;;  %v1003_v4 = vpop.f32.mrb[37].mxu1 }
 0x143   : > { %v1446_v9 = vpack.c.bf16 %v1066_v3, %v1066_v3  ;;  %v1067_v10 = vmax.f32 %v991_v5, 0.0  ;;  %v1534_v11 = vadd.f32 %v1533_v8, %v1532_v6  ;;  %v1535_v12 = vpop.f32.mrb[38].mxu0  ;;  %v2013_v13 = vpop.f32.mrb[38].mxu1 }
 0x144   : > { %v1536_v15 = vpop.f32.mrb[39].mxu0  ;;  %v1006_v16 = vpop.f32.mrb[39].mxu1 }
 0x145   : > { %1227 = vst.msk [vmem:[%s1963_s20 + $0x40] sm:$0xf] %vm1210_vm3, %v1446_v9  ;;  %v1447_v18 = vpack.c.bf16 %v1067_v10, %v1067_v10  ;;  %v835_v19 = vadd.f32 %v1534_v11, %v1953_v59  ;;  %v1537_v20 = vadd.f32 %v1536_v15, %v1535_v12 }
 0x147   : > { %1228 = vst.msk [vmem:[%s1963_s20 + $0x44] sm:$0xf] %vm1210_vm3, %v1447_v18  ;;  %v996_v14 = vadd.f32 %v1629_v50, %v835_v19  ;;  %v838_v21 = vadd.f32 %v1537_v20, %v1953_v59 }
 0x149   : > { %v1068_v24 = vmax.f32 %v996_v14, 0.0  ;;  %v999_v25 = vadd.f32 %v1630_v57, %v838_v21  ;;  %v1538_v26 = vpop.f32.mrb[40].mxu0  ;;  %v1637_v27 = vpop.f32.mrb[40].mxu1  ;;  %v883_v57 = vadd.f32 %v1946_v53, %v1953_v59  ;;  %v886_v53 = vadd.f32 %v1948_v58, %v1953_v59 }
 0x14a   : > { %v1028_v30 = vadd.f32 %v1637_v27, %v867_v23  ;;  %v1539_v31 = vpop.f32.mrb[41].mxu0  ;;  %v1019_v32 = vpop.f32.mrb[41].mxu1 }
 0x14b   : > { %v1448_v35 = vpack.c.bf16 %v1068_v24, %v1068_v24  ;;  %v1069_v36 = vmax.f32 %v999_v25, 0.0  ;;  %v1540_v37 = vadd.f32 %v1539_v31, %v1538_v26  ;;  %v1020_v38 = vadd.f32 %v1019_v32, %v859_v28  ;;  %v1541_v29 = vpop.f32.mrb[42].mxu0  ;;  %v1638_v40 = vpop.f32.mrb[42].mxu1 }
 0x14c   : > { %v1076_v42 = vmax.f32 %v1028_v30, 0.0  ;;  %v1031_v39 = vadd.f32 %v1638_v40, %v870_v33  ;;  %v1542_v43 = vpop.f32.mrb[43].mxu0  ;;  %v1022_v44 = vpop.f32.mrb[43].mxu1 }
 0x14d   : > { %1229 = vst.msk [vmem:[%s1963_s20 + $0x48] sm:$0xf] %vm1210_vm3, %v1448_v35  ;;  %v1449_v47 = vpack.c.bf16 %v1069_v36, %v1069_v36  ;;  %v843_v34 = vadd.f32 %v1540_v37, %v1953_v59  ;;  %v1074_v48 = vmax.f32 %v1020_v38, 0.0  ;;  %v1543_v49 = vadd.f32 %v1542_v43, %v1541_v29 }
 0x14e   : > { %v1456_v50 = vpack.c.bf16 %v1076_v42, %v1076_v42  ;;  %v1077_v51 = vmax.f32 %v1031_v39, 0.0  ;;  %v1023_v52 = vadd.f32 %v1022_v44, %v862_v17 }
 0x14f   : > { %1230 = vst.msk [vmem:[%s1963_s20 + $0x4c] sm:$0xf] %vm1210_vm3, %v1449_v47  ;;  %v1004_v54 = vadd.f32 %v1003_v4, %v843_v34  ;;  %v1454_v55 = vpack.c.bf16 %v1074_v48, %v1074_v48  ;;  %v846_v45 = vadd.f32 %v1543_v49, %v1953_v59 }
 0x150   : > { %1237 = vst.msk [vmem:[%s1963_s20 + $0x68] sm:$0xf] %vm1210_vm3, %v1456_v50  ;;  %v1457_v22 = vpack.c.bf16 %v1077_v51, %v1077_v51  ;;  %v1075_v56 = vmax.f32 %v1023_v52, 0.0 }
 0x151   : > { %v1070_v60 = vmax.f32 %v1004_v54, 0.0  ;;  %1235 = vst.msk [vmem:[%s1963_s20 + $0x60] sm:$0xf] %vm1210_vm3, %v1454_v55  ;;  %v1007_v61 = vadd.f32 %v1006_v16, %v846_v45  ;;  %v1544_v62 = vpop.f32.mrb[44].mxu0  ;;  %v1641_v63 = vpop.f32.mrb[44].mxu1  ;;  %v878_v16 = vadd.f32 %v1944_v46, %v1953_v59 }
 0x152   : > { %1238 = vst.msk [vmem:[%s1963_s20 + $0x6c] sm:$0xf] %vm1210_vm3, %v1457_v22  ;;  %v1455_v1 = vpack.c.bf16 %v1075_v56, %v1075_v56  ;;  %v1044_v2 = vadd.f32 %v1641_v63, %v883_v57  ;;  %v1545_v3 = vpop.f32.mrb[45].mxu0  ;;  %v1035_v5 = vpop.f32.mrb[45].mxu1 }
 0x153   : > { %v1450_v6 = vpack.c.bf16 %v1070_v60, %v1070_v60  ;;  %v1071_v8 = vmax.f32 %v1007_v61, 0.0  ;;  %v1546_v4 = vadd.f32 %v1545_v3, %v1544_v62  ;;  %v1036_v9 = vadd.f32 %v1035_v5, %v875_v0  ;;  %v1547_v10 = vpop.f32.mrb[46].mxu0  ;;  %v1642_v11 = vpop.f32.mrb[46].mxu1 }
 0x154   : > { %1236 = vst.msk [vmem:[%s1963_s20 + $0x64] sm:$0xf] %vm1210_vm3, %v1455_v1  ;;  %v1080_v41 = vmax.f32 %v1044_v2, 0.0  ;;  %v1047_v12 = vadd.f32 %v1642_v11, %v886_v53  ;;  %v1548_v15 = vpop.f32.mrb[47].mxu0  ;;  %v1038_v18 = vpop.f32.mrb[47].mxu1 }
 0x155   : > { %1231 = vst.msk [vmem:[%s1963_s20 + $0x50] sm:$0xf] %vm1210_vm3, %v1450_v6  ;;  %v1451_v58 = vpack.c.bf16 %v1071_v8, %v1071_v8  ;;  %v851_v19 = vadd.f32 %v1546_v4, %v1953_v59  ;;  %v1078_v20 = vmax.f32 %v1036_v9, 0.0  ;;  %v1549_v14 = vadd.f32 %v1548_v15, %v1547_v10 }
 0x156   : > { %v1460_v21 = vpack.c.bf16 %v1080_v41, %v1080_v41  ;;  %v1081_v23 = vmax.f32 %v1047_v12, 0.0  ;;  %v1039_v24 = vadd.f32 %v1038_v18, %v878_v16 }
 0x157   : > { %1232 = vst.msk [vmem:[%s1963_s20 + $0x54] sm:$0xf] %vm1210_vm3, %v1451_v58  ;;  %v1012_v25 = vadd.f32 %v2011_v7, %v851_v19  ;;  %v1458_v46 = vpack.c.bf16 %v1078_v20, %v1078_v20  ;;  %v854_v26 = vadd.f32 %v1549_v14, %v1953_v59 }
 0x158   : > { %1241 = vst.msk [vmem:[%s1963_s20 + $0x78] sm:$0xf] %vm1210_vm3, %v1460_v21  ;;  %v1461_v27 = vpack.c.bf16 %v1081_v23, %v1081_v23  ;;  %v1079_v28 = vmax.f32 %v1039_v24, 0.0 }
 0x159   : > { %v1072_v30 = vmax.f32 %v1012_v25, 0.0  ;;  %1239 = vst.msk [vmem:[%s1963_s20 + $0x70] sm:$0xf] %vm1210_vm3, %v1458_v46  ;;  %v1015_v31 = vadd.f32 %v2013_v13, %v854_v26 }
 0x15a   : > { %1242 = vst.msk [vmem:[%s1963_s20 + $0x7c] sm:$0xf] %vm1210_vm3, %v1461_v27  ;;  %v1459_v32 = vpack.c.bf16 %v1079_v28, %v1079_v28 }
 0x15b   : > { %v1452_v33 = vpack.c.bf16 %v1072_v30, %v1072_v30  ;;  %v1073_v35 = vmax.f32 %v1015_v31, 0.0 }
 0x15c   : > { %1240 = vst.msk [vmem:[%s1963_s20 + $0x74] sm:$0xf] %vm1210_vm3, %v1459_v32 }
 0x15d   : > { %1233 = vst.msk [vmem:[%s1963_s20 + $0x58] sm:$0xf] %vm1210_vm3, %v1452_v33  ;;  %v1453_v7 = vpack.c.bf16 %v1073_v35, %v1073_v35 }
 0x15f   : > { %1234 = vst.msk [vmem:[%s1963_s20 + $0x5c] sm:$0xf] %vm1210_vm3, %v1453_v7 }
 0x160 PF: > { %s13_s12 = sadd.s32 1, %s1762_s12  }
 0x161   : > { %p10_p4 = scmp.ge.s32.totalorder %s13_s12, 4  }
 0x163   :  { %12 = sbr.rel (!%p10_p4) target bundleno = 1 (0x1), region = 62 }

// kernel: few_shot_forward.9
= control target key start
LH: loop header
LB: loop body
LE: loop exit
PB: predicated region body
PF: predicated region fallthrough
CT: control target
= control target key end

     0   :  { %vm254_vm0 = vcmask 519168   ;;  %s829_s0 = inlined_call_operand.vmem [shape: bf16[9,112,64], index: 0, kind: input, shape index: {}]   ;;  %s830_s1 = inlined_call_operand.vmem [shape: bf16[112,64], index: 1, kind: output, shape index: {}]  }
   0x1   :  { %v8_v0 = vld [vmem:[%s829_s0] sm:$0xf]  ;;  %v273_v1 = vld [vmem:[%s829_s0 + $0x38] sm:$0xf]  ;;  %v287_v2 = vld [vmem:[%s829_s0 + $0x70] sm:$0xf] }
   0x2   :  { %v301_v3 = vld [vmem:[%s829_s0 + $0xa8] sm:$0xf]  ;;  %v315_v4 = vld [vmem:[%s829_s0 + $0xe0] sm:$0xf]  ;;  %v329_v5 = vld [vmem:[%s829_s0 + $0x118] sm:$0xf]  ;;  %v142_v6 = vmax.bf16 %v273_v1, %v8_v0 }
   0x3   :  { %v343_v7 = vld [vmem:[%s829_s0 + $0x150] sm:$0xf]  ;;  %v357_v8 = vld [vmem:[%s829_s0 + $0x188] sm:$0xf]  ;;  %v156_v9 = vmax.bf16 %v301_v3, %v287_v2  ;;  %v170_v10 = vmax.bf16 %v329_v5, %v315_v4  ;;  %v9_v12 = vld [vmem:[%s829_s0 + $0x4] sm:$0xf] }
   0x4   :  { %v184_v11 = vmax.bf16 %v357_v8, %v343_v7  ;;  %v274_v13 = vld [vmem:[%s829_s0 + $0x3c] sm:$0xf]  ;;  %v288_v14 = vld [vmem:[%s829_s0 + $0x74] sm:$0xf]  ;;  %v302_v16 = vld [vmem:[%s829_s0 + $0xac] sm:$0xf] }
   0x5   :  { %v198_v15 = vmax.bf16 %v156_v9, %v142_v6  ;;  %v316_v17 = vld [vmem:[%s829_s0 + $0xe4] sm:$0xf]  ;;  %v330_v18 = vld [vmem:[%s829_s0 + $0x11c] sm:$0xf]  ;;  %v143_v19 = vmax.bf16 %v274_v13, %v9_v12  ;;  %v371_v20 = vld [vmem:[%s829_s0 + $0x1c0] sm:$0xf]  ;;  %v157_v24 = vmax.bf16 %v302_v16, %v288_v14 }
   0x6   :  { %v212_v21 = vmax.bf16 %v184_v11, %v170_v10  ;;  %v344_v22 = vld [vmem:[%s829_s0 + $0x154] sm:$0xf]  ;;  %v358_v23 = vld [vmem:[%s829_s0 + $0x18c] sm:$0xf]  ;;  %v171_v25 = vmax.bf16 %v330_v18, %v316_v17  ;;  %v10_v27 = vld [vmem:[%s829_s0 + $0x8] sm:$0xf] }
   0x7   :  { %v185_v26 = vmax.bf16 %v358_v23, %v344_v22  ;;  %v275_v28 = vld [vmem:[%s829_s0 + $0x40] sm:$0xf]  ;;  %v289_v29 = vld [vmem:[%s829_s0 + $0x78] sm:$0xf]  ;;  %v199_v31 = vmax.bf16 %v157_v24, %v143_v19  ;;  %v303_v32 = vld [vmem:[%s829_s0 + $0xb0] sm:$0xf] }
   0x8   :  { %v226_v30 = vmax.bf16 %v212_v21, %v198_v15  ;;  %v317_v33 = vld [vmem:[%s829_s0 + $0xe8] sm:$0xf]  ;;  %v331_v34 = vld [vmem:[%s829_s0 + $0x120] sm:$0xf]  ;;  %v144_v35 = vmax.bf16 %v275_v28, %v10_v27  ;;  %v372_v36 = vld [vmem:[%s829_s0 + $0x1c4] sm:$0xf]  ;;  %v158_v40 = vmax.bf16 %v303_v32, %v289_v29 }
   0x9   :  { %v213_v37 = vmax.bf16 %v185_v26, %v171_v25  ;;  %v345_v38 = vld [vmem:[%s829_s0 + $0x158] sm:$0xf]  ;;  %v359_v39 = vld [vmem:[%s829_s0 + $0x190] sm:$0xf]  ;;  %v172_v41 = vmax.bf16 %v331_v34, %v317_v33  ;;  %v11_v44 = vld [vmem:[%s829_s0 + $0xc] sm:$0xf] }
   0xa   :  { %v240_v42 = vmax.bf16 %v371_v20, %v226_v30  ;;  %v186_v43 = vmax.bf16 %v359_v39, %v345_v38  ;;  %v276_v45 = vld [vmem:[%s829_s0 + $0x44] sm:$0xf]  ;;  %v290_v46 = vld [vmem:[%s829_s0 + $0x7c] sm:$0xf]  ;;  %v200_v48 = vmax.bf16 %v158_v40, %v144_v35  ;;  %v304_v49 = vld [vmem:[%s829_s0 + $0xb4] sm:$0xf] }
   0xb   :  { %v227_v47 = vmax.bf16 %v213_v37, %v199_v31  ;;  %v318_v50 = vld [vmem:[%s829_s0 + $0xec] sm:$0xf]  ;;  %v332_v51 = vld [vmem:[%s829_s0 + $0x124] sm:$0xf]  ;;  %v145_v52 = vmax.bf16 %v276_v45, %v11_v44  ;;  %v373_v53 = vld [vmem:[%s829_s0 + $0x1c8] sm:$0xf]  ;;  %v159_v57 = vmax.bf16 %v304_v49, %v290_v46 }
   0xc   :  { %255 = vst.msk [vmem:[%s830_s1] sm:$0xf] %vm254_vm0, %v240_v42  ;;  %v214_v54 = vmax.bf16 %v186_v43, %v172_v41  ;;  %v346_v55 = vld [vmem:[%s829_s0 + $0x15c] sm:$0xf]  ;;  %v360_v56 = vld [vmem:[%s829_s0 + $0x194] sm:$0xf]  ;;  %v173_v58 = vmax.bf16 %v332_v51, %v318_v50 }
   0xd   :  { %v241_v59 = vmax.bf16 %v372_v36, %v227_v47  ;;  %v187_v60 = vmax.bf16 %v360_v56, %v346_v55  ;;  %v12_v61 = vld [vmem:[%s829_s0 + $0x10] sm:$0xf]  ;;  %v277_v62 = vld [vmem:[%s829_s0 + $0x48] sm:$0xf]  ;;  %v291_v63 = vld [vmem:[%s829_s0 + $0x80] sm:$0xf]  ;;  %v201_v1 = vmax.bf16 %v159_v57, %v145_v52 }
   0xe   :  { %v228_v0 = vmax.bf16 %v214_v54, %v200_v48  ;;  %v305_v2 = vld [vmem:[%s829_s0 + $0xb8] sm:$0xf]  ;;  %v319_v3 = vld [vmem:[%s829_s0 + $0xf0] sm:$0xf]  ;;  %v333_v4 = vld [vmem:[%s829_s0 + $0x128] sm:$0xf]  ;;  %v146_v5 = vmax.bf16 %v277_v62, %v12_v61 }
   0xf   :  { %256 = vst.msk [vmem:[%s830_s1 + $0x4] sm:$0xf] %vm254_vm0, %v241_v59  ;;  %v374_v6 = vld [vmem:[%s829_s0 + $0x1cc] sm:$0xf]  ;;  %v215_v7 = vmax.bf16 %v187_v60, %v173_v58  ;;  %v347_v8 = vld [vmem:[%s829_s0 + $0x160] sm:$0xf]  ;;  %v160_v10 = vmax.bf16 %v305_v2, %v291_v63  ;;  %v174_v11 = vmax.bf16 %v333_v4, %v319_v3 }
  0x10   :  { %v361_v9 = vld [vmem:[%s829_s0 + $0x198] sm:$0xf]  ;;  %v242_v12 = vmax.bf16 %v373_v53, %v228_v0  ;;  %v13_v14 = vld [vmem:[%s829_s0 + $0x14] sm:$0xf]  ;;  %v278_v15 = vld [vmem:[%s829_s0 + $0x4c] sm:$0xf] }
  0x11   :  { %v188_v13 = vmax.bf16 %v361_v9, %v347_v8  ;;  %v292_v16 = vld [vmem:[%s829_s0 + $0x84] sm:$0xf]  ;;  %v229_v17 = vmax.bf16 %v215_v7, %v201_v1  ;;  %v202_v18 = vmax.bf16 %v160_v10, %v146_v5  ;;  %v306_v19 = vld [vmem:[%s829_s0 + $0xbc] sm:$0xf]  ;;  %v320_v20 = vld [vmem:[%s829_s0 + $0xf4] sm:$0xf]  ;;  %v147_v22 = vmax.bf16 %v278_v15, %v13_v14 }
  0x12   :  { %v334_v21 = vld [vmem:[%s829_s0 + $0x12c] sm:$0xf]  ;;  %257 = vst.msk [vmem:[%s830_s1 + $0x8] sm:$0xf] %vm254_vm0, %v242_v12  ;;  %v375_v23 = vld [vmem:[%s829_s0 + $0x1d0] sm:$0xf]  ;;  %v161_v27 = vmax.bf16 %v306_v19, %v292_v16 }
  0x13   :  { %v216_v24 = vmax.bf16 %v188_v13, %v174_v11  ;;  %v348_v25 = vld [vmem:[%s829_s0 + $0x164] sm:$0xf]  ;;  %v362_v26 = vld [vmem:[%s829_s0 + $0x19c] sm:$0xf]  ;;  %v175_v28 = vmax.bf16 %v334_v21, %v320_v20  ;;  %v243_v29 = vmax.bf16 %v374_v6, %v229_v17  ;;  %v14_v31 = vld [vmem:[%s829_s0 + $0x18] sm:$0xf] }
  0x14   :  { %v189_v30 = vmax.bf16 %v362_v26, %v348_v25  ;;  %v279_v32 = vld [vmem:[%s829_s0 + $0x50] sm:$0xf]  ;;  %v293_v33 = vld [vmem:[%s829_s0 + $0x88] sm:$0xf]  ;;  %v203_v35 = vmax.bf16 %v161_v27, %v147_v22  ;;  %v307_v36 = vld [vmem:[%s829_s0 + $0xc0] sm:$0xf] }
  0x15   :  { %v230_v34 = vmax.bf16 %v216_v24, %v202_v18  ;;  %v321_v37 = vld [vmem:[%s829_s0 + $0xf8] sm:$0xf]  ;;  %v335_v38 = vld [vmem:[%s829_s0 + $0x130] sm:$0xf]  ;;  %v148_v39 = vmax.bf16 %v279_v32, %v14_v31  ;;  %258 = vst.msk [vmem:[%s830_s1 + $0xc] sm:$0xf] %vm254_vm0, %v243_v29  ;;  %v162_v44 = vmax.bf16 %v307_v36, %v293_v33 }
  0x16   :  { %v376_v40 = vld [vmem:[%s829_s0 + $0x1d4] sm:$0xf]  ;;  %v217_v41 = vmax.bf16 %v189_v30, %v175_v28  ;;  %v349_v42 = vld [vmem:[%s829_s0 + $0x168] sm:$0xf]  ;;  %v363_v43 = vld [vmem:[%s829_s0 + $0x1a0] sm:$0xf]  ;;  %v176_v45 = vmax.bf16 %v335_v38, %v321_v37 }
  0x17   :  { %v244_v46 = vmax.bf16 %v375_v23, %v230_v34  ;;  %v190_v47 = vmax.bf16 %v363_v43, %v349_v42  ;;  %v15_v48 = vld [vmem:[%s829_s0 + $0x1c] sm:$0xf]  ;;  %v280_v49 = vld [vmem:[%s829_s0 + $0x54] sm:$0xf]  ;;  %v294_v50 = vld [vmem:[%s829_s0 + $0x8c] sm:$0xf]  ;;  %v204_v52 = vmax.bf16 %v162_v44, %v148_v39 }
  0x18   :  { %v231_v51 = vmax.bf16 %v217_v41, %v203_v35  ;;  %v308_v53 = vld [vmem:[%s829_s0 + $0xc4] sm:$0xf]  ;;  %v322_v54 = vld [vmem:[%s829_s0 + $0xfc] sm:$0xf]  ;;  %v336_v55 = vld [vmem:[%s829_s0 + $0x134] sm:$0xf]  ;;  %v149_v56 = vmax.bf16 %v280_v49, %v15_v48 }
  0x19   :  { %259 = vst.msk [vmem:[%s830_s1 + $0x10] sm:$0xf] %vm254_vm0, %v244_v46  ;;  %v377_v57 = vld [vmem:[%s829_s0 + $0x1d8] sm:$0xf]  ;;  %v218_v58 = vmax.bf16 %v190_v47, %v176_v45  ;;  %v350_v59 = vld [vmem:[%s829_s0 + $0x16c] sm:$0xf]  ;;  %v163_v61 = vmax.bf16 %v308_v53, %v294_v50  ;;  %v177_v62 = vmax.bf16 %v336_v55, %v322_v54 }
  0x1a   :  { %v364_v60 = vld [vmem:[%s829_s0 + $0x1a4] sm:$0xf]  ;;  %v245_v63 = vmax.bf16 %v376_v40, %v231_v51  ;;  %v16_v1 = vld [vmem:[%s829_s0 + $0x20] sm:$0xf]  ;;  %v281_v2 = vld [vmem:[%s829_s0 + $0x58] sm:$0xf] }
  0x1b   :  { %v191_v0 = vmax.bf16 %v364_v60, %v350_v59  ;;  %v295_v3 = vld [vmem:[%s829_s0 + $0x90] sm:$0xf]  ;;  %v232_v4 = vmax.bf16 %v218_v58, %v204_v52  ;;  %v205_v5 = vmax.bf16 %v163_v61, %v149_v56  ;;  %v309_v6 = vld [vmem:[%s829_s0 + $0xc8] sm:$0xf]  ;;  %v323_v7 = vld [vmem:[%s829_s0 + $0x100] sm:$0xf]  ;;  %v150_v9 = vmax.bf16 %v281_v2, %v16_v1 }
  0x1c   :  { %v337_v8 = vld [vmem:[%s829_s0 + $0x138] sm:$0xf]  ;;  %260 = vst.msk [vmem:[%s830_s1 + $0x14] sm:$0xf] %vm254_vm0, %v245_v63  ;;  %v378_v10 = vld [vmem:[%s829_s0 + $0x1dc] sm:$0xf]  ;;  %v164_v14 = vmax.bf16 %v309_v6, %v295_v3 }
  0x1d   :  { %v219_v11 = vmax.bf16 %v191_v0, %v177_v62  ;;  %v351_v12 = vld [vmem:[%s829_s0 + $0x170] sm:$0xf]  ;;  %v365_v13 = vld [vmem:[%s829_s0 + $0x1a8] sm:$0xf]  ;;  %v178_v15 = vmax.bf16 %v337_v8, %v323_v7  ;;  %v246_v16 = vmax.bf16 %v377_v57, %v232_v4  ;;  %v17_v18 = vld [vmem:[%s829_s0 + $0x24] sm:$0xf] }
  0x1e   :  { %v192_v17 = vmax.bf16 %v365_v13, %v351_v12  ;;  %v282_v19 = vld [vmem:[%s829_s0 + $0x5c] sm:$0xf]  ;;  %v296_v20 = vld [vmem:[%s829_s0 + $0x94] sm:$0xf]  ;;  %v206_v22 = vmax.bf16 %v164_v14, %v150_v9  ;;  %v310_v23 = vld [vmem:[%s829_s0 + $0xcc] sm:$0xf] }
  0x1f   :  { %v233_v21 = vmax.bf16 %v219_v11, %v205_v5  ;;  %v324_v24 = vld [vmem:[%s829_s0 + $0x104] sm:$0xf]  ;;  %v338_v25 = vld [vmem:[%s829_s0 + $0x13c] sm:$0xf]  ;;  %v151_v26 = vmax.bf16 %v282_v19, %v17_v18  ;;  %261 = vst.msk [vmem:[%s830_s1 + $0x18] sm:$0xf] %vm254_vm0, %v246_v16  ;;  %v165_v31 = vmax.bf16 %v310_v23, %v296_v20 }
  0x20   :  { %v379_v27 = vld [vmem:[%s829_s0 + $0x1e0] sm:$0xf]  ;;  %v220_v28 = vmax.bf16 %v192_v17, %v178_v15  ;;  %v352_v29 = vld [vmem:[%s829_s0 + $0x174] sm:$0xf]  ;;  %v366_v30 = vld [vmem:[%s829_s0 + $0x1ac] sm:$0xf]  ;;  %v179_v32 = vmax.bf16 %v338_v25, %v324_v24 }
  0x21   :  { %v247_v33 = vmax.bf16 %v378_v10, %v233_v21  ;;  %v193_v34 = vmax.bf16 %v366_v30, %v352_v29  ;;  %v18_v35 = vld [vmem:[%s829_s0 + $0x28] sm:$0xf]  ;;  %v283_v36 = vld [vmem:[%s829_s0 + $0x60] sm:$0xf]  ;;  %v297_v37 = vld [vmem:[%s829_s0 + $0x98] sm:$0xf]  ;;  %v207_v39 = vmax.bf16 %v165_v31, %v151_v26 }
  0x22   :  { %v234_v38 = vmax.bf16 %v220_v28, %v206_v22  ;;  %v311_v40 = vld [vmem:[%s829_s0 + $0xd0] sm:$0xf]  ;;  %v325_v41 = vld [vmem:[%s829_s0 + $0x108] sm:$0xf]  ;;  %v339_v42 = vld [vmem:[%s829_s0 + $0x140] sm:$0xf]  ;;  %v152_v43 = vmax.bf16 %v283_v36, %v18_v35 }
  0x23   :  { %262 = vst.msk [vmem:[%s830_s1 + $0x1c] sm:$0xf] %vm254_vm0, %v247_v33  ;;  %v380_v44 = vld [vmem:[%s829_s0 + $0x1e4] sm:$0xf]  ;;  %v221_v45 = vmax.bf16 %v193_v34, %v179_v32  ;;  %v353_v46 = vld [vmem:[%s829_s0 + $0x178] sm:$0xf]  ;;  %v166_v48 = vmax.bf16 %v311_v40, %v297_v37  ;;  %v180_v49 = vmax.bf16 %v339_v42, %v325_v41 }
  0x24   :  { %v367_v47 = vld [vmem:[%s829_s0 + $0x1b0] sm:$0xf]  ;;  %v248_v50 = vmax.bf16 %v379_v27, %v234_v38  ;;  %v19_v52 = vld [vmem:[%s829_s0 + $0x2c] sm:$0xf]  ;;  %v284_v53 = vld [vmem:[%s829_s0 + $0x64] sm:$0xf] }
  0x25   :  { %v194_v51 = vmax.bf16 %v367_v47, %v353_v46  ;;  %v298_v54 = vld [vmem:[%s829_s0 + $0x9c] sm:$0xf]  ;;  %v235_v55 = vmax.bf16 %v221_v45, %v207_v39  ;;  %v208_v56 = vmax.bf16 %v166_v48, %v152_v43  ;;  %v312_v57 = vld [vmem:[%s829_s0 + $0xd4] sm:$0xf]  ;;  %v326_v58 = vld [vmem:[%s829_s0 + $0x10c] sm:$0xf]  ;;  %v153_v60 = vmax.bf16 %v284_v53, %v19_v52 }
  0x26   :  { %v340_v59 = vld [vmem:[%s829_s0 + $0x144] sm:$0xf]  ;;  %263 = vst.msk [vmem:[%s830_s1 + $0x20] sm:$0xf] %vm254_vm0, %v248_v50  ;;  %v381_v61 = vld [vmem:[%s829_s0 + $0x1e8] sm:$0xf]  ;;  %v167_v1 = vmax.bf16 %v312_v57, %v298_v54 }
  0x27   :  { %v222_v62 = vmax.bf16 %v194_v51, %v180_v49  ;;  %v354_v63 = vld [vmem:[%s829_s0 + $0x17c] sm:$0xf]  ;;  %v368_v0 = vld [vmem:[%s829_s0 + $0x1b4] sm:$0xf]  ;;  %v181_v2 = vmax.bf16 %v340_v59, %v326_v58  ;;  %v249_v3 = vmax.bf16 %v380_v44, %v235_v55  ;;  %v20_v5 = vld [vmem:[%s829_s0 + $0x30] sm:$0xf] }
  0x28   :  { %v195_v4 = vmax.bf16 %v368_v0, %v354_v63  ;;  %v285_v6 = vld [vmem:[%s829_s0 + $0x68] sm:$0xf]  ;;  %v299_v7 = vld [vmem:[%s829_s0 + $0xa0] sm:$0xf]  ;;  %v209_v9 = vmax.bf16 %v167_v1, %v153_v60  ;;  %v313_v10 = vld [vmem:[%s829_s0 + $0xd8] sm:$0xf] }
  0x29   :  { %v236_v8 = vmax.bf16 %v222_v62, %v208_v56  ;;  %v327_v11 = vld [vmem:[%s829_s0 + $0x110] sm:$0xf]  ;;  %v341_v12 = vld [vmem:[%s829_s0 + $0x148] sm:$0xf]  ;;  %v154_v13 = vmax.bf16 %v285_v6, %v20_v5  ;;  %264 = vst.msk [vmem:[%s830_s1 + $0x24] sm:$0xf] %vm254_vm0, %v249_v3  ;;  %v168_v18 = vmax.bf16 %v313_v10, %v299_v7 }
  0x2a   :  { %v382_v14 = vld [vmem:[%s829_s0 + $0x1ec] sm:$0xf]  ;;  %v223_v15 = vmax.bf16 %v195_v4, %v181_v2  ;;  %v355_v16 = vld [vmem:[%s829_s0 + $0x180] sm:$0xf]  ;;  %v369_v17 = vld [vmem:[%s829_s0 + $0x1b8] sm:$0xf]  ;;  %v182_v19 = vmax.bf16 %v341_v12, %v327_v11 }
  0x2b   :  { %v250_v20 = vmax.bf16 %v381_v61, %v236_v8  ;;  %v196_v21 = vmax.bf16 %v369_v17, %v355_v16  ;;  %v21_v22 = vld [vmem:[%s829_s0 + $0x34] sm:$0xf]  ;;  %v286_v23 = vld [vmem:[%s829_s0 + $0x6c] sm:$0xf]  ;;  %v300_v24 = vld [vmem:[%s829_s0 + $0xa4] sm:$0xf]  ;;  %v210_v26 = vmax.bf16 %v168_v18, %v154_v13 }
  0x2c   :  { %v237_v25 = vmax.bf16 %v223_v15, %v209_v9  ;;  %v314_v27 = vld [vmem:[%s829_s0 + $0xdc] sm:$0xf]  ;;  %v328_v28 = vld [vmem:[%s829_s0 + $0x114] sm:$0xf]  ;;  %v342_v29 = vld [vmem:[%s829_s0 + $0x14c] sm:$0xf]  ;;  %v155_v30 = vmax.bf16 %v286_v23, %v21_v22 }
  0x2d   :  { %265 = vst.msk [vmem:[%s830_s1 + $0x28] sm:$0xf] %vm254_vm0, %v250_v20  ;;  %v224_v31 = vmax.bf16 %v196_v21, %v182_v19  ;;  %v356_v32 = vld [vmem:[%s829_s0 + $0x184] sm:$0xf]  ;;  %v370_v33 = vld [vmem:[%s829_s0 + $0x1bc] sm:$0xf]  ;;  %v169_v34 = vmax.bf16 %v314_v27, %v300_v24  ;;  %v183_v35 = vmax.bf16 %v342_v29, %v328_v28 }
  0x2e   :  { %v251_v36 = vmax.bf16 %v382_v14, %v237_v25  ;;  %v383_v37 = vld [vmem:[%s829_s0 + $0x1f0] sm:$0xf]  ;;  %v197_v38 = vmax.bf16 %v370_v33, %v356_v32  ;;  %v384_v43 = vld [vmem:[%s829_s0 + $0x1f4] sm:$0xf] }
  0x2f   :  { %v238_v39 = vmax.bf16 %v224_v31, %v210_v26  ;;  %v211_v40 = vmax.bf16 %v169_v34, %v155_v30 }
  0x30   :  { %266 = vst.msk [vmem:[%s830_s1 + $0x2c] sm:$0xf] %vm254_vm0, %v251_v36  ;;  %v225_v41 = vmax.bf16 %v197_v38, %v183_v35 }
  0x31   :  { %v252_v42 = vmax.bf16 %v383_v37, %v238_v39 }
  0x32   :  { %v239_v44 = vmax.bf16 %v225_v41, %v211_v40 }
  0x33   :  { %267 = vst.msk [vmem:[%s830_s1 + $0x30] sm:$0xf] %vm254_vm0, %v252_v42 }
  0x34   :  { %v253_v45 = vmax.bf16 %v384_v43, %v239_v44 }
  0x36   :  { %268 = vst.msk [vmem:[%s830_s1 + $0x34] sm:$0xf] %vm254_vm0, %v253_v45 }

// kernel: few_shot_forward.11
= control target key start
LH: loop header
LB: loop body
LE: loop exit
PB: predicated region body
PF: predicated region fallthrough
CT: control target
= control target key end

     0   :  { %vm84_vm0 = vcmask 1043456   ;;  %vm85_vm1 = vcmask 523268   ;;  %s270_s0 = inlined_call_operand.vmem [shape: bf16[9,32,192], index: 0, kind: input, shape index: {}]   ;;  %s271_s1 = inlined_call_operand.vmem [shape: bf16[32,192], index: 1, kind: output, shape index: {}]  }
   0x1   :  { %v8_v0 = vld [vmem:[%s270_s0] sm:$0xff]  ;;  %v9_v12 = vld [vmem:[%s270_s0 + $0x8] sm:$0xff]  ;;  %vm189_vm2 = vmor %vm85_vm1, %vm84_vm0 }
   0x2   :  { %v95_v1 = vld [vmem:[%s270_s0 + $0x20] sm:$0xff]  ;;  %v96_v13 = vld [vmem:[%s270_s0 + $0x28] sm:$0xff]  ;;  %v10_v28 = vld [vmem:[%s270_s0 + $0x10] sm:$0xff] }
   0x3   :  { %v99_v2 = vld [vmem:[%s270_s0 + $0x40] sm:$0xff]  ;;  %v52_v6 = vmax.bf16 %v95_v1, %v8_v0  ;;  %v100_v16 = vld [vmem:[%s270_s0 + $0x48] sm:$0xff]  ;;  %v53_v19 = vmax.bf16 %v96_v13, %v9_v12  ;;  %v97_v29 = vld [vmem:[%s270_s0 + $0x30] sm:$0xff] }
   0x4   :  { %v103_v3 = vld [vmem:[%s270_s0 + $0x60] sm:$0xff]  ;;  %v104_v17 = vld [vmem:[%s270_s0 + $0x68] sm:$0xff]  ;;  %v101_v32 = vld [vmem:[%s270_s0 + $0x50] sm:$0xff]  ;;  %v54_v35 = vmax.bf16 %v97_v29, %v10_v28 }
   0x5   :  { %v107_v4 = vld [vmem:[%s270_s0 + $0x80] sm:$0xff]  ;;  %v56_v9 = vmax.bf16 %v103_v3, %v99_v2  ;;  %v108_v18 = vld [vmem:[%s270_s0 + $0x88] sm:$0xff]  ;;  %v57_v24 = vmax.bf16 %v104_v17, %v100_v16  ;;  %v105_v33 = vld [vmem:[%s270_s0 + $0x70] sm:$0xff] }
   0x6   :  { %v111_v5 = vld [vmem:[%s270_s0 + $0xa0] sm:$0xff]  ;;  %v112_v21 = vld [vmem:[%s270_s0 + $0xa8] sm:$0xff]  ;;  %v109_v34 = vld [vmem:[%s270_s0 + $0x90] sm:$0xff]  ;;  %v58_v40 = vmax.bf16 %v105_v33, %v101_v32 }
   0x7   :  { %v115_v7 = vld [vmem:[%s270_s0 + $0xc0] sm:$0xff]  ;;  %v60_v10 = vmax.bf16 %v111_v5, %v107_v4  ;;  %v68_v15 = vmax.bf16 %v56_v9, %v52_v6  ;;  %v116_v22 = vld [vmem:[%s270_s0 + $0xc8] sm:$0xff]  ;;  %v61_v26 = vmax.bf16 %v112_v21, %v108_v18  ;;  %v69_v31 = vmax.bf16 %v57_v24, %v53_v19  ;;  %v113_v37 = vld [vmem:[%s270_s0 + $0xb0] sm:$0xff] }
   0x8   :  { %v119_v8 = vld [vmem:[%s270_s0 + $0xe0] sm:$0xff]  ;;  %v120_v23 = vld [vmem:[%s270_s0 + $0xe8] sm:$0xff]  ;;  %v117_v38 = vld [vmem:[%s270_s0 + $0xd0] sm:$0xff]  ;;  %v62_v43 = vmax.bf16 %v113_v37, %v109_v34  ;;  %v70_v48 = vmax.bf16 %v58_v40, %v54_v35 }
   0x9   :  { %v64_v11 = vmax.bf16 %v119_v8, %v115_v7  ;;  %v123_v14 = vld [vmem:[%s270_s0 + $0x100] sm:$0xff]  ;;  %v65_v27 = vmax.bf16 %v120_v23, %v116_v22  ;;  %v121_v39 = vld [vmem:[%s270_s0 + $0xf0] sm:$0xff]  ;;  %v124_v42 = vld [vmem:[%s270_s0 + $0x108] sm:$0xff] }
   0xa   :  { %v66_v44 = vmax.bf16 %v121_v39, %v117_v38  ;;  %v11_v45 = vld [vmem:[%s270_s0 + $0x18] sm:$0xff]  ;;  %v125_v59 = vld [vmem:[%s270_s0 + $0x110] sm:$0xff] }
   0xb   :  { %v72_v20 = vmax.bf16 %v64_v11, %v60_v10  ;;  %v73_v36 = vmax.bf16 %v65_v27, %v61_v26  ;;  %v98_v46 = vld [vmem:[%s270_s0 + $0x38] sm:$0xff] }
   0xc   :  { %v102_v49 = vld [vmem:[%s270_s0 + $0x58] sm:$0xff]  ;;  %v55_v52 = vmax.bf16 %v98_v46, %v11_v45  ;;  %v74_v53 = vmax.bf16 %v66_v44, %v62_v43 }
   0xd   :  { %v76_v30 = vmax.bf16 %v72_v20, %v68_v15  ;;  %v77_v47 = vmax.bf16 %v73_v36, %v69_v31  ;;  %v106_v50 = vld [vmem:[%s270_s0 + $0x78] sm:$0xff] }
   0xe   :  { %v110_v51 = vld [vmem:[%s270_s0 + $0x98] sm:$0xff]  ;;  %v59_v57 = vmax.bf16 %v106_v50, %v102_v49  ;;  %v78_v62 = vmax.bf16 %v74_v53, %v70_v48 }
   0xf   :  { %v80_v41 = vmax.bf16 %v123_v14, %v76_v30  ;;  %v114_v54 = vld [vmem:[%s270_s0 + $0xb8] sm:$0xff]  ;;  %v81_v58 = vmax.bf16 %v124_v42, %v77_v47 }
  0x10   :  { %v118_v55 = vld [vmem:[%s270_s0 + $0xd8] sm:$0xff]  ;;  %v63_v60 = vmax.bf16 %v114_v54, %v110_v51  ;;  %v71_v63 = vmax.bf16 %v59_v57, %v55_v52  ;;  %v82_v1 = vmax.bf16 %v125_v59, %v78_v62 }
  0x11   :  { %87 = vst.msk [vmem:[%s271_s1] sm:$0xff] %vm189_vm2, %v80_v41  ;;  %v122_v56 = vld [vmem:[%s270_s0 + $0xf8] sm:$0xff]  ;;  %88 = vst.msk [vmem:[%s271_s1 + $0x8] sm:$0xff] %vm189_vm2, %v81_v58 }
  0x12   :  { %v67_v61 = vmax.bf16 %v122_v56, %v118_v55  ;;  %v126_v2 = vld [vmem:[%s270_s0 + $0x118] sm:$0xff]  ;;  %89 = vst.msk [vmem:[%s271_s1 + $0x10] sm:$0xff] %vm189_vm2, %v82_v1 }
  0x14   :  { %v75_v0 = vmax.bf16 %v67_v61, %v63_v60 }
  0x16   :  { %v79_v3 = vmax.bf16 %v75_v0, %v71_v63 }
  0x18   :  { %v83_v4 = vmax.bf16 %v126_v2, %v79_v3 }
  0x1a   :  { %90 = vst.msk [vmem:[%s271_s1 + $0x18] sm:$0xff] %vm189_vm2, %v83_v4 }

// kernel: few_shot_forward.10
= control target key start
LH: loop header
LB: loop body
LE: loop exit
PB: predicated region body
PF: predicated region fallthrough
CT: control target
= control target key end

     0   :  { %v3854_v34 = vmov 0.0   ;;  %vm3855_vm0 = vmmov 0   ;;  %vm527_vm1 = vcmask 523264   ;;  %s3856_s7 = smov 64   ;;  %vm2597_vm2 = vcmask 1043456   ;;  %s4885_s1 = inlined_call_operand.vmem [shape: bf16[3,576,64], index: 1, kind: input, shape index: {}]   ;;  %s4886_s0 = inlined_call_operand.vmem [shape: bf16[3,112,576], index: 0, kind: input, shape index: {}]   ;;  %s4887_s2 = inlined_call_operand.vmem [shape: f32[3,1,64], index: 2, kind: input, shape index: {}]   ;;  %s4888_s3 = inlined_call_operand.vmem [shape: bf16[112,192], index: 3, kind: output, shape index: {}]  }
   0x1   :  { %v3599_v0 = vld [vmem:[%s4885_s1 + $0x40] sm:$0xff]   ;;  %v3603_v4 = vld [vmem:[%s4885_s1 + $0x48] sm:$0xff]   ;;  %v3607_v8 = vld [vmem:[%s4885_s1 + $0x50] sm:$0xff]   ;;  %vm2598_vm3 = vcmask 523268  }
   0x2   :  { %v3600_v1 = vld [vmem:[%s4885_s1 + $0xc0] sm:$0xff]   ;;  %3099 = vmatprep.subr.bf16.mxu0 %v3599_v0  ;;  %v3604_v5 = vld [vmem:[%s4885_s1 + $0xc8] sm:$0xff]   ;;  %v3608_v9 = vld [vmem:[%s4885_s1 + $0xd0] sm:$0xff]  }
   0x3   :  { %v3601_v2 = vld [vmem:[%s4885_s1] sm:$0xff]   ;;  %3157 = vmatprep.subr.bf16.mxu1 %v3600_v1  ;;  %v3605_v6 = vld [vmem:[%s4885_s1 + $0x8] sm:$0xff]   ;;  %v3609_v10 = vld [vmem:[%s4885_s1 + $0x10] sm:$0xff]  }
   0x4   :  { %v3602_v3 = vld [vmem:[%s4885_s1 + $0x80] sm:$0xff]   ;;  %3100 = vmatpush3.bf16.msra.mxu0 %v3601_v2  ;;  %v3606_v7 = vld [vmem:[%s4885_s1 + $0x88] sm:$0xff]   ;;  %v3610_v11 = vld [vmem:[%s4885_s1 + $0x90] sm:$0xff]  }
   0x5   :  { %3158 = vmatpush3.bf16.msra.mxu1 %v3602_v3  ;;  %3101 = vmatprep.subr.bf16.mxu0 %v3603_v4  ;;  %v3611_v12 = vld [vmem:[%s4885_s1 + $0x58] sm:$0xff]   ;;  %v3615_v16 = vld [vmem:[%s4885_s1 + $0x60] sm:$0xff]   ;;  %v3619_v20 = vld [vmem:[%s4885_s1 + $0x68] sm:$0xff]  }
   0x6   :  { %3159 = vmatprep.subr.bf16.mxu1 %v3604_v5  ;;  %v3612_v13 = vld [vmem:[%s4885_s1 + $0xd8] sm:$0xff]   ;;  %v3616_v17 = vld [vmem:[%s4885_s1 + $0xe0] sm:$0xff]   ;;  %v3620_v21 = vld [vmem:[%s4885_s1 + $0xe8] sm:$0xff]  }
   0x7   :  { %v3613_v14 = vld [vmem:[%s4885_s1 + $0x18] sm:$0xff]   ;;  %v3617_v18 = vld [vmem:[%s4885_s1 + $0x20] sm:$0xff]   ;;  %v3621_v22 = vld [vmem:[%s4885_s1 + $0x28] sm:$0xff]  }
   0x8   :  { %3102 = vmatpush3.bf16.msra.mxu0 %v3605_v6  ;;  %v3614_v15 = vld [vmem:[%s4885_s1 + $0x98] sm:$0xff]   ;;  %v3618_v19 = vld [vmem:[%s4885_s1 + $0xa0] sm:$0xff]   ;;  %v3622_v23 = vld [vmem:[%s4885_s1 + $0xa8] sm:$0xff]  }
   0x9   :  { %3160 = vmatpush3.bf16.msra.mxu1 %v3606_v7  ;;  %3103 = vmatprep.subr.bf16.mxu0 %v3607_v8  ;;  %v3623_v24 = vld [vmem:[%s4885_s1 + $0x70] sm:$0xff]   ;;  %v3627_v28 = vld [vmem:[%s4885_s1 + $0x78] sm:$0xff]   ;;  %v3636_v36 = vld [vmem:[%s4886_s0 + $0xc] ss:$20 sps:$4 sm:$0xff]  }
   0xa   :  { %3161 = vmatprep.subr.bf16.mxu1 %v3608_v9  ;;  %v3624_v25 = vld [vmem:[%s4885_s1 + $0xf0] sm:$0xff]   ;;  %v3628_v29 = vld [vmem:[%s4885_s1 + $0xf8] sm:$0xff]   ;;  %v3637_v37 = vld [vmem:[%s4885_s1 + $0x100] sm:$0xff]   ;;  %670 = vmatprep.mubr.bf16.mxu1 %v3636_v36 }
   0xb   :  { %v3625_v26 = vld [vmem:[%s4885_s1 + $0x30] sm:$0xff]   ;;  %v3629_v30 = vld [vmem:[%s4885_s1 + $0x38] sm:$0xff]   ;;  %v3638_v38 = vld [vmem:[%s4886_s0 + $0x2c] ss:$20 sps:$4 sm:$0xff]  }
   0xc   :  { %3104 = vmatpush3.bf16.msra.mxu0 %v3609_v10  ;;  %v3626_v27 = vld [vmem:[%s4885_s1 + $0xb0] sm:$0xff]   ;;  %v3630_v31 = vld [vmem:[%s4885_s1 + $0xb8] sm:$0xff]   ;;  %v3648_v43 = vld [vmem:[%s4885_s1 + $0x108] sm:$0xff]  }
   0xd   :  { %3162 = vmatpush3.bf16.msra.mxu1 %v3610_v11  ;;  %3105 = vmatprep.subr.bf16.mxu0 %v3611_v12  ;;  %v3631_v32 = vld [vmem:[%s4886_s0] ss:$20 sps:$4 sm:$0xff]   ;;  %v3633_v33 = vld [vmem:[%s4886_s0 + $0x4] ss:$20 sps:$4 sm:$0xff]   ;;  %v3634_v35 = vld [vmem:[%s4886_s0 + $0x8] ss:$20 sps:$4 sm:$0xff]  }
   0xe   :  { %3163 = vmatprep.subr.bf16.mxu1 %v3612_v13  ;;  %581 = vmatprep.mubr.bf16.mxu0 %v3633_v33  ;;  %v3640_v39 = vld [vmem:[%s4886_s0 + $0x34] ss:$20 sps:$4 sm:$0xff]   ;;  %v3643_v41 = vld [vmem:[%s4886_s0 + $0x30] ss:$20 sps:$4 sm:$0xff]   ;;  %v3650_v47 = vld [vmem:[%s4886_s0 + $0x58] ss:$20 sps:$4 sm:$0xff]  }
   0xf   :  { %v3642_v40 = vld [vmem:[%s4886_s0 + $0x28] ss:$20 sps:$4 sm:$0xff]   ;;  %v3657_v45 = vld [vmem:[%s4885_s1 + $0x110] sm:$0xff]   ;;  %v3653_v49 = vld [vmem:[%s4886_s0 + $0x84] ss:$20 sps:$4 sm:$0xff]  }
  0x10   :  { %3106 = vmatpush3.bf16.msra.mxu0 %v3613_v14  ;;  %v3644_v42 = vld [vmem:[%s4886_s0 + $0x54] ss:$20 sps:$4 sm:$0xff]   ;;  %v3646_v44 = vld [vmem:[%s4886_s0 + $0x5c] ss:$20 sps:$4 sm:$0xff]   ;;  %v3655_v51 = vld [vmem:[%s4886_s0 + $0x78] ss:$20 sps:$4 sm:$0xff]  }
  0x11   :  { %3164 = vmatpush3.bf16.msra.mxu1 %v3614_v15  ;;  %3107 = vmatprep.subr.bf16.mxu0 %v3615_v16  ;;  %v3649_v46 = vld [vmem:[%s4886_s0 + $0x50] ss:$20 sps:$4 sm:$0xff]   ;;  %v3670_v50 = vld [vmem:[%s4885_s1 + $0x118] sm:$0xff]   ;;  %v3656_v53 = vld [vmem:[%s4886_s0 + $0x80] ss:$20 sps:$4 sm:$0xff]  }
  0x12   :  { %3165 = vmatprep.subr.bf16.mxu1 %v3616_v17  ;;  %v3651_v48 = vld [vmem:[%s4886_s0 + $0x7c] ss:$20 sps:$4 sm:$0xff]   ;;  %v3677_v52 = vld [vmem:[%s4885_s1 + $0x160] sm:$0xff]   ;;  %v3666_v60 = vld [vmem:[%s4886_s0 + $0xd4] ss:$20 sps:$4 sm:$0xff]  }
  0x13   :  { %v3658_v54 = vld [vmem:[%s4886_s0 + $0xa4] ss:$20 sps:$4 sm:$0xff]   ;;  %v3660_v55 = vld [vmem:[%s4886_s0 + $0xac] ss:$20 sps:$4 sm:$0xff]   ;;  %v3663_v58 = vld [vmem:[%s4886_s0 + $0xa8] ss:$20 sps:$4 sm:$0xff]  }
  0x14   :  { %3108 = vmatpush3.bf16.msra.mxu0 %v3617_v18  ;;  %v3681_v56 = vld [vmem:[%s4885_s1 + $0x1e0] sm:$0xff]   ;;  %v3668_v61 = vld [vmem:[%s4886_s0 + $0xc8] ss:$20 sps:$4 sm:$0xff]   ;;  %v3676_v2 = vld [vmem:[%s4886_s0 + $0xf8] ss:$20 sps:$4 sm:$0xff]  }
  0x15   :  { %3166 = vmatpush3.bf16.msra.mxu1 %v3618_v19  ;;  %3109 = vmatprep.subr.bf16.mxu0 %v3619_v20  ;;  %v3662_v57 = vld [vmem:[%s4886_s0 + $0xa0] ss:$20 sps:$4 sm:$0xff]   ;;  %v3669_v62 = vld [vmem:[%s4886_s0 + $0xd0] ss:$20 sps:$4 sm:$0xff]   ;;  %v3685_v7 = vld [vmem:[%s4885_s1 + $0x1e8] sm:$0xff]  }
  0x16   :  { %3167 = vmatprep.subr.bf16.mxu1 %v3620_v21  ;;  %v3664_v59 = vld [vmem:[%s4886_s0 + $0xcc] ss:$20 sps:$4 sm:$0xff]   ;;  %v3671_v63 = vld [vmem:[%s4886_s0 + $0xf4] ss:$20 sps:$4 sm:$0xff]   ;;  %v3673_v0 = vld [vmem:[%s4886_s0 + $0xfc] ss:$20 sps:$4 sm:$0xff]  }
  0x17   :  { %v3675_v1 = vld [vmem:[%s4886_s0 + $0xf0] ss:$20 sps:$4 sm:$0xff]   ;;  %v3683_v8 = vld [vmem:[%s4885_s1 + $0x168] sm:$0xff]   ;;  %v3695_v17 = vld [vmem:[%s4885_s1 + $0x1f8] sm:$0xff]  }
  0x18   :  { %3110 = vmatpush3.bf16.msra.mxu0 %v3621_v22  ;;  %v3678_v3 = vld [vmem:[%s4886_s0 + $0x10] ss:$20 sps:$4 sm:$0xff]   ;;  %v3684_v9 = vld [vmem:[%s4885_s1 + $0x128] sm:$0xff]   ;;  %v3693_v18 = vld [vmem:[%s4885_s1 + $0x178] sm:$0xff]  }
  0x19   :  { %3168 = vmatpush3.bf16.msra.mxu1 %v3622_v23  ;;  %3111 = vmatprep.subr.bf16.mxu0 %v3623_v24  ;;  %v3679_v4 = vld [vmem:[%s4886_s0 + $0xb0] ss:$20 sps:$4 sm:$0xff]   ;;  %v3686_v10 = vld [vmem:[%s4885_s1 + $0x1a8] sm:$0xff]   ;;  %v3694_v19 = vld [vmem:[%s4885_s1 + $0x138] sm:$0xff]  }
  0x1a   :  { %3169 = vmatprep.subr.bf16.mxu1 %v3624_v25  ;;  %v3680_v5 = vld [vmem:[%s4885_s1 + $0x120] sm:$0xff]   ;;  %v3687_v11 = vld [vmem:[%s4885_s1 + $0x170] sm:$0xff]   ;;  %v3688_v13 = vld [vmem:[%s4886_s0 + $0x38] ss:$20 sps:$4 sm:$0xff]  }
  0x1b   :  { %v3682_v6 = vld [vmem:[%s4885_s1 + $0x1a0] sm:$0xff]   ;;  %v3691_v12 = vld [vmem:[%s4885_s1 + $0x1f0] sm:$0xff]   ;;  %v3689_v14 = vld [vmem:[%s4886_s0 + $0xd8] ss:$20 sps:$4 sm:$0xff]  }
  0x1c   :  { %3112 = vmatpush3.bf16.msra.mxu0 %v3625_v26  ;;  %v3692_v15 = vld [vmem:[%s4885_s1 + $0x1b0] sm:$0xff]   ;;  %v3696_v20 = vld [vmem:[%s4885_s1 + $0x1b8] sm:$0xff]   ;;  %v3701_v21 = vld [vmem:[%s4885_s1 + $0x200] sm:$0xff]  }
  0x1d   :  { %3170 = vmatpush3.bf16.msra.mxu1 %v3626_v27  ;;  %3113 = vmatprep.subr.bf16.mxu0 %v3627_v28  ;;  %v3690_v16 = vld [vmem:[%s4885_s1 + $0x130] sm:$0xff]   ;;  %v3697_v22 = vld [vmem:[%s4885_s1 + $0x180] sm:$0xff]   ;;  %v3705_v27 = vld [vmem:[%s4885_s1 + $0x208] sm:$0xff]  }
  0x1e   :  { %3171 = vmatprep.subr.bf16.mxu1 %v3628_v29  ;;  %v3698_v23 = vld [vmem:[%s4886_s0 + $0x60] ss:$20 sps:$4 sm:$0xff]   ;;  %v3703_v28 = vld [vmem:[%s4885_s1 + $0x188] sm:$0xff]   ;;  %vm4789_vm4 = vmor %vm2598_vm3, %vm2597_vm2 }
  0x1f   :  { %v3699_v24 = vld [vmem:[%s4886_s0 + $0x100] ss:$20 sps:$4 sm:$0xff]   ;;  %v3704_v29 = vld [vmem:[%s4885_s1 + $0x148] sm:$0xff]  }
  0x20   :  { %3114 = vmatpush3.bf16.msra.mxu0 %v3629_v30  ;;  %v3700_v25 = vld [vmem:[%s4885_s1 + $0x140] sm:$0xff]   ;;  %v3717_v30 = vld [vmem:[%s4886_s0 + $0x11c] ss:$20 sps:$4 sm:$0xff]  }
  0x21   :  { %3172 = vmatpush3.bf16.msra.mxu1 %v3630_v31  ;;  %3480 = vmatprep.subr.bf16.mxu0 %v3854_v34  ;;  %v3702_v26 = vld [vmem:[%s4885_s1 + $0x1c0] sm:$0xff]   ;;  %v3706_v31 = vld [vmem:[%s4885_s1 + $0x1c8] sm:$0xff]   ;;  %v3710_v33 = vld [vmem:[%s4885_s1 + $0x210] sm:$0xff]  }
  0x22   :  { %3588 = vmatprep.subr.bf16.mxu1 %v3854_v34  ;;  %v3709_v36 = vld [vmem:[%s4885_s1 + $0x150] sm:$0xff]  }
  0x23   :  { %582 = vmatmul.mubr.bf16.vlgmr.msra.gmra.mrb[0].mxu0 %v3631_v32  ;;  %v3707_v32 = vld [vmem:[%s4885_s1 + $0x190] sm:$0xff]  }
  0x24   :  { %671 = vmatmul.mubr.bf16.vlgmr.msra.gmra.mrb[0].mxu1 %v3634_v35  ;;  %3481 = vmatpush3.bf16.msra.mxu0 %v3637_v37  ;;  %v3708_v35 = vld [vmem:[%s4886_s0 + $0x88] ss:$20 sps:$4 sm:$0xff]  }
  0x25   :  { %3592 = vmatpush3.bf16.msra.mxu1 %v3637_v37  ;;  %589 = vmatprep.mubr.bf16.mxu0 %v3638_v38  ;;  %v3711_v37 = vld [vmem:[%s4885_s1 + $0x1d0] sm:$0xff]   ;;  %v3721_v38 = vld [vmem:[%s4886_s0 + $0x124] ss:$20 sps:$4 sm:$0xff]  }
  0x26   :  { %678 = vmatprep.mubr.bf16.mxu1 %v3640_v39  ;;  %3589 = vmatprep.subr.bf16.mxu1 %v3854_v34  ;;  %v3714_v39 = vld [vmem:[%s4885_s1 + $0x218] sm:$0xff]  }
  0x27   :  { %3482 = vmatprep.subr.bf16.mxu0 %v3854_v34 }
  0x28   :  { %3483 = vmatpush3.bf16.msra.mxu0 %v3648_v43 }
  0x29   :  { %3593 = vmatpush3.bf16.msra.mxu1 %v3648_v43  ;;  %3484 = vmatprep.subr.bf16.mxu0 %v3854_v34  ;;  %v3748_v43 = vld [vmem:[%s4885_s1 + $0x280] sm:$0xff]  }
  0x2a   :  { %3590 = vmatprep.subr.bf16.mxu1 %v3854_v34 }
  0x2b   :  { %590 = vmatmul.mubr.bf16.gmra.mrb[4].mxu0 %v3642_v40  ;;  %v3712_v40 = vld [vmem:[%s4885_s1 + $0x198] sm:$0xff]  }
  0x2c   :  { %679 = vmatmul.mubr.bf16.gmra.mrb[4].mxu1 %v3643_v41  ;;  %597 = vmatprep.mubr.bf16.mxu0 %v3644_v42  ;;  %v3713_v41 = vld [vmem:[%s4885_s1 + $0x158] sm:$0xff]  }
  0x2d   :  { %686 = vmatprep.mubr.bf16.mxu1 %v3646_v44  ;;  %3594 = vmatpush3.bf16.msra.mxu1 %v3657_v45  ;;  %v3718_v42 = vld [vmem:[%s4885_s1 + $0x1d8] sm:$0xff]  }
  0x2e   :  { %3485 = vmatpush3.bf16.msra.mxu0 %v3657_v45  ;;  %3591 = vmatprep.subr.bf16.mxu1 %v3854_v34  ;;  %v3715_v44 = vld [vmem:[%s4886_s0 + $0x118] ss:$20 sps:$4 sm:$0xff]   ;;  %v3719_v45 = vld [vmem:[%s4886_s0 + $0x120] ss:$20 sps:$4 sm:$0xff]  }
  0x2f   :  { %3486 = vmatprep.subr.bf16.mxu0 %v3854_v34 }
  0x31   :  { %3595 = vmatpush3.bf16.msra.mxu1 %v3670_v50 }
  0x32   :  { %3487 = vmatpush3.bf16.msra.mxu0 %v3670_v50  ;;  %3226 = vmatprep.subr.bf16.mxu1 %v3677_v52  ;;  %v3751_v50 = vld [vmem:[%s4885_s1 + $0x288] sm:$0xff]  }
  0x33   :  { %598 = vmatmul.mubr.bf16.gmra.mrb[8].mxu0 %v3649_v46  ;;  %3284 = vmatprep.subr.bf16.mxu0 %v3681_v56  ;;  %v3726_v46 = vld [vmem:[%s4886_s0 + $0x14c] ss:$20 sps:$4 sm:$0xff]   ;;  %v3758_v56 = vld [vmem:[%s4885_s1 + $0x290] sm:$0xff]  }
  0x34   :  { %687 = vmatmul.mubr.bf16.gmra.mrb[8].mxu1 %v3650_v47  ;;  %605 = vmatprep.mubr.bf16.mxu0 %v3651_v48  ;;  %v3722_v47 = vld [vmem:[%s4885_s1 + $0x220] sm:$0xff]   ;;  %v3731_v52 = vld [vmem:[%s4885_s1 + $0x228] sm:$0xff]  }
  0x35   :  { %694 = vmatprep.mubr.bf16.mxu1 %v3653_v49  ;;  %v3723_v48 = vld [vmem:[%s4886_s0 + $0x144] ss:$20 sps:$4 sm:$0xff]  }
  0x36   :  { %v3750_v49 = vld [vmem:[%s4885_s1 + $0x240] sm:$0xff]  }
  0x3b   :  { %606 = vmatmul.mubr.bf16.gmra.mrb[12].mxu0 %v3655_v51  ;;  %v3728_v51 = vld [vmem:[%s4886_s0 + $0x148] ss:$20 sps:$4 sm:$0xff]  }
  0x3c   :  { %695 = vmatmul.mubr.bf16.gmra.mrb[12].mxu1 %v3656_v53  ;;  %613 = vmatprep.mubr.bf16.mxu0 %v3658_v54  ;;  %v3725_v53 = vld [vmem:[%s4886_s0 + $0x140] ss:$20 sps:$4 sm:$0xff]   ;;  %v3752_v54 = vld [vmem:[%s4885_s1 + $0x248] sm:$0xff]  }
  0x3d   :  { %702 = vmatprep.mubr.bf16.mxu1 %v3660_v55  ;;  %v3729_v55 = vld [vmem:[%s4886_s0 + $0x16c] ss:$20 sps:$4 sm:$0xff]  }
  0x43   :  { %614 = vmatmul.mubr.bf16.gmra.mrb[16].mxu0 %v3662_v57  ;;  %v3733_v57 = vld [vmem:[%s4886_s0 + $0x174] ss:$20 sps:$4 sm:$0xff]  }
  0x44   :  { %703 = vmatmul.mubr.bf16.gmra.mrb[16].mxu1 %v3663_v58  ;;  %621 = vmatprep.mubr.bf16.mxu0 %v3664_v59  ;;  %v3742_v58 = vld [vmem:[%s4885_s1 + $0x230] sm:$0xff]  }
  0x45   :  { %710 = vmatprep.mubr.bf16.mxu1 %v3666_v60  ;;  %v3760_v59 = vld [vmem:[%s4885_s1 + $0x250] sm:$0xff]   ;;  %v3762_v60 = vld [vmem:[%s4885_s1 + $0x298] sm:$0xff]  }
  0x4b   :  { %622 = vmatmul.mubr.bf16.gmra.mrb[20].mxu0 %v3668_v61  ;;  %v3761_v61 = vld [vmem:[%s4885_s1 + $0x238] sm:$0xff]  }
  0x4c   :  { %711 = vmatmul.mubr.bf16.gmra.mrb[20].mxu1 %v3669_v62  ;;  %629 = vmatprep.mubr.bf16.mxu0 %v3671_v63  ;;  %v3735_v62 = vld [vmem:[%s4886_s0 + $0x170] ss:$20 sps:$4 sm:$0xff]   ;;  %v3763_v63 = vld [vmem:[%s4885_s1 + $0x258] sm:$0xff]  }
  0x4d   :  { %718 = vmatprep.mubr.bf16.mxu1 %v3673_v0  ;;  %v3769_v0 = vld [vmem:[%s4885_s1 + $0x2a0] sm:$0xff]  }
  0x53   :  { %630 = vmatmul.mubr.bf16.gmra.mrb[24].mxu0 %v3675_v1  ;;  %v3732_v1 = vld [vmem:[%s4886_s0 + $0x168] ss:$20 sps:$4 sm:$0xff]  }
  0x54   :  { %719 = vmatmul.mubr.bf16.gmra.mrb[24].mxu1 %v3676_v2  ;;  %3488 = vmatprep.mubr.msk.bf16.mxu0 %vm3855_vm0, %v3854_v34  ;;  %v3739_v2 = vld [vmem:[%s4886_s0 + $0x19c] ss:$20 sps:$4 sm:$0xff]  }
  0x55   :  { %3504 = vmatprep.mubr.msk.bf16.mxu1 %vm3855_vm0, %v3854_v34 }
  0x5b   :  { %3489 = vmatmul.mubr.msk.bf16.vlgmr.msra.gmra.mrb[28].mxu0 %vm527_vm1, %v3678_v3  ;;  %v3736_v3 = vld [vmem:[%s4886_s0 + $0x194] ss:$20 sps:$4 sm:$0xff]  }
  0x5c   :  { %3505 = vmatmul.mubr.msk.bf16.vlgmr.msra.gmra.mrb[28].mxu1 %vm527_vm1, %v3679_v4  ;;  %3285 = vmatpush3.bf16.msra.mxu0 %v3682_v6  ;;  %v3771_v4 = vld [vmem:[%s4885_s1 + $0x260] sm:$0xff]  }
  0x5d   :  { %3227 = vmatpush3.bf16.msra.mxu1 %v3680_v5  ;;  %3286 = vmatprep.subr.bf16.mxu0 %v3685_v7  ;;  %v3772_v5 = vld [vmem:[%s4885_s1 + $0x2a8] sm:$0xff]   ;;  %v3791_v6 = vld [vmem:[%s4885_s1 + $0x300] sm:$0xff]  }
  0x5e   :  { %3228 = vmatprep.subr.bf16.mxu1 %v3683_v8  ;;  %3492 = vmatprep.mubr.msk.bf16.mxu0 %vm3855_vm0, %v3854_v34  ;;  %v3741_v7 = vld [vmem:[%s4886_s0 + $0x198] ss:$20 sps:$4 sm:$0xff]  }
  0x5f   :  { %3508 = vmatprep.mubr.msk.bf16.mxu1 %vm3855_vm0, %v3854_v34  ;;  %v3773_v8 = vld [vmem:[%s4885_s1 + $0x268] sm:$0xff]  }
  0x60   :  { %3287 = vmatpush3.bf16.msra.mxu0 %v3686_v10  ;;  %v3738_v10 = vld [vmem:[%s4886_s0 + $0x190] ss:$20 sps:$4 sm:$0xff]  }
  0x61   :  { %3229 = vmatpush3.bf16.msra.mxu1 %v3684_v9  ;;  %3288 = vmatprep.subr.bf16.mxu0 %v3691_v12  ;;  %v3775_v9 = vld [vmem:[%s4885_s1 + $0x2b0] sm:$0xff]  }
  0x62   :  { %3230 = vmatprep.subr.bf16.mxu1 %v3687_v11  ;;  %v3746_v11 = vld [vmem:[%s4886_s0 + $0x1c4] ss:$20 sps:$4 sm:$0xff]   ;;  %v3743_v12 = vld [vmem:[%s4886_s0 + $0x1bc] ss:$20 sps:$4 sm:$0xff]  }
  0x63   :  { %3493 = vmatmul.mubr.msk.bf16.gmra.mrb[32].mxu0 %vm527_vm1, %v3688_v13  ;;  %v3776_v13 = vld [vmem:[%s4885_s1 + $0x270] sm:$0xff]  }
  0x64   :  { %3509 = vmatmul.mubr.msk.bf16.gmra.mrb[32].mxu1 %vm527_vm1, %v3689_v14  ;;  %3289 = vmatpush3.bf16.msra.mxu0 %v3692_v15  ;;  %v3777_v14 = vld [vmem:[%s4885_s1 + $0x2b8] sm:$0xff]  }
  0x65   :  { %3231 = vmatpush3.bf16.msra.mxu1 %v3690_v16  ;;  %3290 = vmatprep.subr.bf16.mxu0 %v3695_v17  ;;  %v3745_v15 = vld [vmem:[%s4886_s0 + $0x1b8] ss:$20 sps:$4 sm:$0xff]   ;;  %v3749_v17 = vld [vmem:[%s4886_s0 + $0x1c0] ss:$20 sps:$4 sm:$0xff]  }
  0x66   :  { %3232 = vmatprep.subr.bf16.mxu1 %v3693_v18  ;;  %3496 = vmatprep.mubr.msk.bf16.mxu0 %vm3855_vm0, %v3854_v34  ;;  %v3778_v16 = vld [vmem:[%s4885_s1 + $0x278] sm:$0xff]   ;;  %v3756_v18 = vld [vmem:[%s4886_s0 + $0x1ec] ss:$20 sps:$4 sm:$0xff]  }
  0x67   :  { %3512 = vmatprep.mubr.msk.bf16.mxu1 %vm3855_vm0, %v3854_v34 }
  0x68   :  { %3291 = vmatpush3.bf16.msra.mxu0 %v3696_v20  ;;  %v3755_v20 = vld [vmem:[%s4886_s0 + $0x1e0] ss:$20 sps:$4 sm:$0xff]  }
  0x69   :  { %3233 = vmatpush3.bf16.msra.mxu1 %v3694_v19  ;;  %3292 = vmatprep.subr.bf16.mxu0 %v3701_v21  ;;  %v3753_v19 = vld [vmem:[%s4886_s0 + $0x1e4] ss:$20 sps:$4 sm:$0xff]   ;;  %v3759_v21 = vld [vmem:[%s4886_s0 + $0x1e8] ss:$20 sps:$4 sm:$0xff]  }
  0x6a   :  { %3234 = vmatprep.subr.bf16.mxu1 %v3697_v22  ;;  %v3767_v22 = vld [vmem:[%s4886_s0 + $0x214] ss:$20 sps:$4 sm:$0xff]  }
  0x6b   :  { %3497 = vmatmul.mubr.msk.bf16.gmra.mrb[36].mxu0 %vm527_vm1, %v3698_v23  ;;  %v3764_v23 = vld [vmem:[%s4886_s0 + $0x20c] ss:$20 sps:$4 sm:$0xff]  }
  0x6c   :  { %3513 = vmatmul.mubr.msk.bf16.gmra.mrb[36].mxu1 %vm527_vm1, %v3699_v24  ;;  %3293 = vmatpush3.bf16.msra.mxu0 %v3702_v26  ;;  %v3766_v24 = vld [vmem:[%s4886_s0 + $0x208] ss:$20 sps:$4 sm:$0xff]  }
  0x6d   :  { %3235 = vmatpush3.bf16.msra.mxu1 %v3700_v25  ;;  %3294 = vmatprep.subr.bf16.mxu0 %v3705_v27  ;;  %v3770_v25 = vld [vmem:[%s4886_s0 + $0x210] ss:$20 sps:$4 sm:$0xff]   ;;  %v3782_v26 = vld [vmem:[%s4886_s0 + $0x234] ss:$20 sps:$4 sm:$0xff]  }
  0x6e   :  { %3236 = vmatprep.subr.bf16.mxu1 %v3703_v28  ;;  %3500 = vmatprep.mubr.msk.bf16.mxu0 %vm3855_vm0, %v3854_v34  ;;  %v3774_v27 = vld [vmem:[%s4886_s0 + $0x128] ss:$20 sps:$4 sm:$0xff]   ;;  %v3780_v28 = vld [vmem:[%s4886_s0 + $0x230] ss:$20 sps:$4 sm:$0xff]  }
  0x6f   :  { %1405 = vmatprep.mubr.bf16.mxu1 %v3717_v30  ;;  %v3792_v30 = vld [vmem:[%s4885_s1 + $0x2c0] sm:$0xff]  }
  0x70   :  { %3295 = vmatpush3.bf16.msra.mxu0 %v3706_v31  ;;  %v3796_v31 = vld [vmem:[%s4885_s1 + $0x308] sm:$0xff]  }
  0x71   :  { %3237 = vmatpush3.bf16.msra.mxu1 %v3704_v29  ;;  %3296 = vmatprep.subr.bf16.mxu0 %v3710_v33  ;;  %v3784_v29 = vld [vmem:[%s4886_s0 + $0x25c] ss:$20 sps:$4 sm:$0xff]   ;;  %v3798_v33 = vld [vmem:[%s4885_s1 + $0x2c8] sm:$0xff]  }
  0x72   :  { %3238 = vmatprep.subr.bf16.mxu1 %v3707_v32  ;;  %v3815_v32 = vld [vmem:[%s4885_s1 + $0x340] sm:$0xff]  }
  0x73   :  { %3501 = vmatmul.mubr.msk.bf16.gmra.mrb[40].mxu0 %vm527_vm1, %v3708_v35  ;;  %v3799_v35 = vld [vmem:[%s4885_s1 + $0x310] sm:$0xff]  }
  0x74   :  { %3297 = vmatpush3.bf16.msra.mxu0 %v3711_v37  ;;  %1494 = vmatprep.mubr.bf16.mxu0 %v3721_v38  ;;  %v3786_v37 = vld [vmem:[%s4886_s0 + $0x258] ss:$20 sps:$4 sm:$0xff]   ;;  %v3779_v38 = vld [vmem:[%s4886_s0 + $0x150] ss:$20 sps:$4 sm:$0xff]  }
  0x75   :  { %3239 = vmatpush3.bf16.msra.mxu1 %v3709_v36  ;;  %3298 = vmatprep.subr.bf16.mxu0 %v3714_v39  ;;  %v3818_v36 = vld [vmem:[%s4885_s1 + $0x348] sm:$0xff]   ;;  %v3788_v39 = vld [vmem:[%s4886_s0 + $0x284] ss:$20 sps:$4 sm:$0xff]  }
  0x76   :  { %3240 = vmatprep.subr.bf16.mxu1 %v3712_v40  ;;  %v3800_v40 = vld [vmem:[%s4885_s1 + $0x2d0] sm:$0xff]  }
  0x78   :  { %3299 = vmatpush3.bf16.msra.mxu0 %v3718_v42  ;;  %v3824_v42 = vld [vmem:[%s4885_s1 + $0x350] sm:$0xff]  }
  0x79   :  { %3241 = vmatpush3.bf16.msra.mxu1 %v3713_v41  ;;  %3353 = vmatprep.subr.bf16.mxu0 %v3748_v43  ;;  %v3804_v41 = vld [vmem:[%s4885_s1 + $0x318] sm:$0xff]  }
  0x7a   :  { %3516 = vmatprep.subr.bf16.mxu1 %v3854_v34  ;;  %v3806_v43 = vld [vmem:[%s4885_s1 + $0x2d8] sm:$0xff]  }
  0x7b   :  { %1495 = vmatmul.mubr.bf16.vlgmr.msra.gmra.mrb[44].mxu0 %v3719_v45  ;;  %v3828_v45 = vld [vmem:[%s4885_s1 + $0x358] sm:$0xff]  }
  0x7c   :  { %1406 = vmatmul.mubr.bf16.vlgmr.msra.gmra.mrb[40].mxu1 %v3715_v44  ;;  %1502 = vmatprep.mubr.bf16.mxu0 %v3726_v46  ;;  %v3807_v44 = vld [vmem:[%s4885_s1 + $0x320] sm:$0xff]  }
  0x7d   :  { %3517 = vmatpush3.bf16.msra.mxu1 %v3722_v47  ;;  %1413 = vmatprep.mubr.bf16.mxu1 %v3723_v48  ;;  %v3790_v46 = vld [vmem:[%s4886_s0 + $0x280] ss:$20 sps:$4 sm:$0xff]   ;;  %v3783_v47 = vld [vmem:[%s4886_s0 + $0x178] ss:$20 sps:$4 sm:$0xff]  }
  0x7e   :  { %3518 = vmatprep.subr.bf16.mxu1 %v3854_v34  ;;  %3354 = vmatpush3.bf16.msra.mxu0 %v3750_v49  ;;  %v3794_v48 = vld [vmem:[%s4886_s0 + $0x2ac] ss:$20 sps:$4 sm:$0xff]  }
  0x7f   :  { %3355 = vmatprep.subr.bf16.mxu0 %v3751_v50  ;;  %v3808_v49 = vld [vmem:[%s4885_s1 + $0x2e0] sm:$0xff]   ;;  %v3812_v50 = vld [vmem:[%s4885_s1 + $0x328] sm:$0xff]  }
  0x81   :  { %3519 = vmatpush3.bf16.msra.mxu1 %v3731_v52  ;;  %v3816_v52 = vld [vmem:[%s4885_s1 + $0x330] sm:$0xff]  }
  0x82   :  { %3520 = vmatprep.subr.bf16.mxu1 %v3854_v34  ;;  %3356 = vmatpush3.bf16.msra.mxu0 %v3752_v54  ;;  %v3787_v54 = vld [vmem:[%s4886_s0 + $0x1a0] ss:$20 sps:$4 sm:$0xff]  }
  0x83   :  { %1503 = vmatmul.mubr.bf16.gmra.mrb[48].mxu0 %v3728_v51  ;;  %3357 = vmatprep.subr.bf16.mxu0 %v3758_v56  ;;  %v3814_v51 = vld [vmem:[%s4885_s1 + $0x2e8] sm:$0xff]   ;;  %v3817_v56 = vld [vmem:[%s4885_s1 + $0x2f0] sm:$0xff]  }
  0x84   :  { %1414 = vmatmul.mubr.bf16.gmra.mrb[44].mxu1 %v3725_v53  ;;  %1510 = vmatprep.mubr.bf16.mxu0 %v3733_v57  ;;  %v3797_v53 = vld [vmem:[%s4886_s0 + $0x2a8] ss:$20 sps:$4 sm:$0xff]  }
  0x85   :  { %1421 = vmatprep.mubr.bf16.mxu1 %v3729_v55  ;;  %3521 = vmatpush3.bf16.msra.mxu1 %v3742_v58  ;;  %v3802_v55 = vld [vmem:[%s4886_s0 + $0x2d4] ss:$20 sps:$4 sm:$0xff]   ;;  %v3821_v57 = vld [vmem:[%s4885_s1 + $0x338] sm:$0xff]  }
  0x86   :  { %3522 = vmatprep.subr.bf16.mxu1 %v3854_v34  ;;  %3358 = vmatpush3.bf16.msra.mxu0 %v3760_v59  ;;  %v3823_v58 = vld [vmem:[%s4885_s1 + $0x2f8] sm:$0xff]   ;;  %v3805_v59 = vld [vmem:[%s4886_s0 + $0x2d0] ss:$20 sps:$4 sm:$0xff]  }
  0x87   :  { %3359 = vmatprep.subr.bf16.mxu0 %v3762_v60  ;;  %v3793_v60 = vld [vmem:[%s4886_s0 + $0x1c8] ss:$20 sps:$4 sm:$0xff]  }
  0x89   :  { %3523 = vmatpush3.bf16.msra.mxu1 %v3761_v61  ;;  %v3810_v61 = vld [vmem:[%s4886_s0 + $0x2fc] ss:$20 sps:$4 sm:$0xff]  }
  0x8a   :  { %3360 = vmatpush3.bf16.msra.mxu0 %v3763_v63  ;;  %3411 = vmatprep.subr.bf16.mxu1 %v3791_v6  ;;  %v3801_v63 = vld [vmem:[%s4886_s0 + $0x1f0] ss:$20 sps:$4 sm:$0xff]  }
  0x8b   :  { %1511 = vmatmul.mubr.bf16.gmra.mrb[52].mxu0 %v3735_v62  ;;  %3361 = vmatprep.subr.bf16.mxu0 %v3769_v0  ;;  %v3813_v62 = vld [vmem:[%s4886_s0 + $0x2f8] ss:$20 sps:$4 sm:$0xff]  }
  0x8c   :  { %1422 = vmatmul.mubr.bf16.gmra.mrb[48].mxu1 %v3732_v1  ;;  %1518 = vmatprep.mubr.bf16.mxu0 %v3739_v2  ;;  %v3819_v0 = vld [vmem:[%s4886_s0 + $0x324] ss:$20 sps:$4 sm:$0xff]   ;;  %v3822_v1 = vld [vmem:[%s4886_s0 + $0x320] ss:$20 sps:$4 sm:$0xff]  }
  0x8d   :  { %1429 = vmatprep.mubr.bf16.mxu1 %v3736_v3  ;;  %v3809_v2 = vld [vmem:[%s4886_s0 + $0x218] ss:$20 sps:$4 sm:$0xff]   ;;  %v3827_v3 = vld [vmem:[%s4886_s0 + $0x23c] ss:$20 sps:$4 sm:$0xff]  }
  0x8e   :  { %3362 = vmatpush3.bf16.msra.mxu0 %v3771_v4  ;;  %v3829_v4 = vld [vmem:[%s4886_s0 + $0x240] ss:$20 sps:$4 sm:$0xff]   ;;  %v3830_v6 = vld [vmem:[%s4886_s0 + $0x264] ss:$20 sps:$4 sm:$0xff]  }
  0x8f   :  { %3363 = vmatprep.subr.bf16.mxu0 %v3772_v5  ;;  %v3825_v5 = vld [vmem:[%s4886_s0 + $0x238] ss:$20 sps:$4 sm:$0xff]  }
  0x92   :  { %3364 = vmatpush3.bf16.msra.mxu0 %v3773_v8  ;;  %v3832_v8 = vld [vmem:[%s4886_s0 + $0x260] ss:$20 sps:$4 sm:$0xff]  }
  0x93   :  { %1519 = vmatmul.mubr.bf16.gmra.mrb[56].mxu0 %v3741_v7  ;;  %3365 = vmatprep.subr.bf16.mxu0 %v3775_v9  ;;  %v3833_v7 = vld [vmem:[%s4886_s0 + $0x268] ss:$20 sps:$4 sm:$0xff]   ;;  %v3834_v9 = vld [vmem:[%s4886_s0 + $0x28c] ss:$20 sps:$4 sm:$0xff]  }
  0x94   :  { %1430 = vmatmul.mubr.bf16.gmra.mrb[52].mxu1 %v3738_v10  ;;  %1526 = vmatprep.mubr.bf16.mxu0 %v3746_v11 }
  0x95   :  { %1437 = vmatprep.mubr.bf16.mxu1 %v3743_v12  ;;  %v4543_v12 = vld [vmem:[%s4887_s2] ss:$0 sm:$0xff] }
  0x96   :  { %3366 = vmatpush3.bf16.msra.mxu0 %v3776_v13 }
  0x97   :  { %3367 = vmatprep.subr.bf16.mxu0 %v3777_v14  ;;  %v3837_v14 = vld [vmem:[%s4886_s0 + $0x290] ss:$20 sps:$4 sm:$0xff]  }
  0x9a   :  { %3368 = vmatpush3.bf16.msra.mxu0 %v3778_v16 }
  0x9b   :  { %1527 = vmatmul.mubr.bf16.gmra.mrb[60].mxu0 %v3749_v17  ;;  %3552 = vmatprep.subr.bf16.mxu0 %v3854_v34 }
  0x9c   :  { %1438 = vmatmul.mubr.bf16.gmra.mrb[56].mxu1 %v3745_v15  ;;  %1534 = vmatprep.mubr.bf16.mxu0 %v3756_v18  ;;  %v3836_v18 = vld [vmem:[%s4886_s0 + $0x288] ss:$20 sps:$4 sm:$0xff]  }
  0x9d   :  { %1445 = vmatprep.mubr.bf16.mxu1 %v3753_v19 }
  0xa3   :  { %1535 = vmatmul.mubr.bf16.gmra.mrb[64].mxu0 %v3759_v21 }
  0xa4   :  { %1446 = vmatmul.mubr.bf16.gmra.mrb[60].mxu1 %v3755_v20  ;;  %1542 = vmatprep.mubr.bf16.mxu0 %v3767_v22  ;;  %v3838_v22 = vld [vmem:[%s4886_s0 + $0x2b4] ss:$20 sps:$4 sm:$0xff]  }
  0xa5   :  { %1453 = vmatprep.mubr.bf16.mxu1 %v3764_v23 }
  0xab   :  { %1543 = vmatmul.mubr.bf16.gmra.mrb[68].mxu0 %v3770_v25 }
  0xac   :  { %1454 = vmatmul.mubr.bf16.gmra.mrb[64].mxu1 %v3766_v24  ;;  %2229 = vmatprep.mubr.bf16.mxu0 %v3782_v26 }
  0xad   :  { %3524 = vmatprep.mubr.msk.bf16.mxu1 %vm3855_vm0, %v3854_v34 }
  0xb3   :  { %2230 = vmatmul.mubr.bf16.vlgmr.msra.gmra.mrb[72].mxu0 %v3780_v28 }
  0xb4   :  { %3525 = vmatmul.mubr.msk.bf16.vlgmr.msra.gmra.mrb[68].mxu1 %vm527_vm1, %v3774_v27  ;;  %2237 = vmatprep.mubr.bf16.mxu0 %v3784_v29 }
  0xb5   :  { %3528 = vmatprep.mubr.msk.bf16.mxu1 %vm3855_vm0, %v3854_v34  ;;  %3412 = vmatpush3.bf16.msra.mxu1 %v3792_v30 }
  0xb6   :  { %3413 = vmatprep.subr.bf16.mxu1 %v3796_v31  ;;  %3553 = vmatpush3.bf16.msra.mxu0 %v3815_v32 }
  0xb7   :  { %3554 = vmatprep.subr.bf16.mxu0 %v3854_v34 }
  0xb9   :  { %3414 = vmatpush3.bf16.msra.mxu1 %v3798_v33  ;;  %v3841_v33 = vld [vmem:[%s4886_s0 + $0x2b8] ss:$20 sps:$4 sm:$0xff]  }
  0xba   :  { %3415 = vmatprep.subr.bf16.mxu1 %v3799_v35  ;;  %3555 = vmatpush3.bf16.msra.mxu0 %v3818_v36 }
  0xbb   :  { %2238 = vmatmul.mubr.bf16.gmra.mrb[76].mxu0 %v3786_v37  ;;  %3556 = vmatprep.subr.bf16.mxu0 %v3854_v34 }
  0xbc   :  { %3529 = vmatmul.mubr.msk.bf16.gmra.mrb[72].mxu1 %vm527_vm1, %v3779_v38  ;;  %2245 = vmatprep.mubr.bf16.mxu0 %v3788_v39  ;;  %v3840_v38 = vld [vmem:[%s4886_s0 + $0x2b0] ss:$20 sps:$4 sm:$0xff]  }
  0xbd   :  { %3532 = vmatprep.mubr.msk.bf16.mxu1 %vm3855_vm0, %v3854_v34  ;;  %3416 = vmatpush3.bf16.msra.mxu1 %v3800_v40 }
  0xbe   :  { %3417 = vmatprep.subr.bf16.mxu1 %v3804_v41  ;;  %3557 = vmatpush3.bf16.msra.mxu0 %v3824_v42  ;;  %v3842_v42 = vld [vmem:[%s4886_s0 + $0x2dc] ss:$20 sps:$4 sm:$0xff]  }
  0xbf   :  { %3558 = vmatprep.subr.bf16.mxu0 %v3854_v34 }
  0xc1   :  { %3418 = vmatpush3.bf16.msra.mxu1 %v3806_v43 }
  0xc2   :  { %3419 = vmatprep.subr.bf16.mxu1 %v3807_v44  ;;  %3559 = vmatpush3.bf16.msra.mxu0 %v3828_v45 }
  0xc3   :  { %2246 = vmatmul.mubr.bf16.gmra.mrb[80].mxu0 %v3790_v46 }
  0xc4   :  { %3533 = vmatmul.mubr.msk.bf16.gmra.mrb[76].mxu1 %vm527_vm1, %v3783_v47  ;;  %2253 = vmatprep.mubr.bf16.mxu0 %v3794_v48 }
  0xc5   :  { %3536 = vmatprep.mubr.msk.bf16.mxu1 %vm3855_vm0, %v3854_v34  ;;  %3420 = vmatpush3.bf16.msra.mxu1 %v3808_v49 }
  0xc6   :  { %3421 = vmatprep.subr.bf16.mxu1 %v3812_v50 }
  0xc9   :  { %3422 = vmatpush3.bf16.msra.mxu1 %v3814_v51 }
  0xca   :  { %3423 = vmatprep.subr.bf16.mxu1 %v3816_v52 }
  0xcb   :  { %2254 = vmatmul.mubr.bf16.gmra.mrb[84].mxu0 %v3797_v53  ;;  %v3845_v53 = vld [vmem:[%s4886_s0 + $0x2e0] ss:$20 sps:$4 sm:$0xff]  }
  0xcc   :  { %3537 = vmatmul.mubr.msk.bf16.gmra.mrb[80].mxu1 %vm527_vm1, %v3787_v54  ;;  %2261 = vmatprep.mubr.bf16.mxu0 %v3802_v55 }
  0xcd   :  { %3540 = vmatprep.mubr.msk.bf16.mxu1 %vm3855_vm0, %v3854_v34  ;;  %3424 = vmatpush3.bf16.msra.mxu1 %v3817_v56 }
  0xce   :  { %3425 = vmatprep.subr.bf16.mxu1 %v3821_v57  ;;  %v3844_v57 = vld [vmem:[%s4886_s0 + $0x2d8] ss:$20 sps:$4 sm:$0xff]  }
  0xd1   :  { %3426 = vmatpush3.bf16.msra.mxu1 %v3823_v58 }
  0xd3   :  { %2262 = vmatmul.mubr.bf16.gmra.mrb[88].mxu0 %v3805_v59 }
  0xd4   :  { %3541 = vmatmul.mubr.msk.bf16.gmra.mrb[84].mxu1 %vm527_vm1, %v3793_v60  ;;  %2269 = vmatprep.mubr.bf16.mxu0 %v3810_v61  ;;  %v3846_v61 = vld [vmem:[%s4886_s0 + $0x304] ss:$20 sps:$4 sm:$0xff]  }
  0xd5   :  { %3544 = vmatprep.mubr.msk.bf16.mxu1 %vm3855_vm0, %v3854_v34 }
  0xdb   :  { %2270 = vmatmul.mubr.bf16.gmra.mrb[92].mxu0 %v3813_v62 }
  0xdc   :  { %3545 = vmatmul.mubr.msk.bf16.gmra.mrb[88].mxu1 %vm527_vm1, %v3801_v63  ;;  %2277 = vmatprep.mubr.bf16.mxu0 %v3819_v0 }
  0xdd   :  { %3548 = vmatprep.mubr.msk.bf16.mxu1 %vm3855_vm0, %v3854_v34 }
  0xe3   :  { %2278 = vmatmul.mubr.bf16.gmra.mrb[96].mxu0 %v3822_v1 }
  0xe4   :  { %3549 = vmatmul.mubr.msk.bf16.gmra.mrb[92].mxu1 %vm527_vm1, %v3809_v2  ;;  %3560 = vmatprep.mubr.msk.bf16.mxu0 %vm3855_vm0, %v3854_v34 }
  0xe5   :  { %2318 = vmatprep.mubr.bf16.mxu1 %v3827_v3 }
  0xeb   :  { %3561 = vmatmul.mubr.msk.bf16.vlgmr.msra.gmra.mrb[100].mxu0 %vm527_vm1, %v3829_v4 }
  0xec   :  { %2319 = vmatmul.mubr.bf16.vlgmr.msra.gmra.mrb[96].mxu1 %v3825_v5  ;;  %3564 = vmatprep.mubr.msk.bf16.mxu0 %vm3855_vm0, %v3854_v34 }
  0xed   :  { %2326 = vmatprep.mubr.bf16.mxu1 %v3830_v6 }
  0xf3   :  { %3565 = vmatmul.mubr.msk.bf16.gmra.mrb[104].mxu0 %vm527_vm1, %v3833_v7 }
  0xf4   :  { %2327 = vmatmul.mubr.bf16.gmra.mrb[100].mxu1 %v3832_v8  ;;  %3568 = vmatprep.mubr.msk.bf16.mxu0 %vm3855_vm0, %v3854_v34  ;;  %v3849_v8 = vld [vmem:[%s4886_s0 + $0x308] ss:$20 sps:$4 sm:$0xff]  }
  0xf5   :  { %2334 = vmatprep.mubr.bf16.mxu1 %v3834_v9 }
  0xf6   :  { %v3115_v10 = vpop.f32.mrb[0].mxu0 }
  0xf7   :  { %v3173_v11 = vpop.f32.mrb[0].mxu1  ;;  %v3116_v13 = vpop.f32.mrb[1].mxu0 }
  0xf8   :  { %v3117_v15 = vadd.f32 %v3116_v13, %v3115_v10  ;;  %v3174_v16 = vpop.f32.mrb[1].mxu1  ;;  %v3118_v17 = vpop.f32.mrb[2].mxu0  ;;  %v3848_v13 = vld [vmem:[%s4886_s0 + $0x300] ss:$20 sps:$4 sm:$0xff]  }
  0xf9   :  { %v3175_v19 = vadd.f32 %v3174_v16, %v3173_v11  ;;  %v3176_v20 = vpop.f32.mrb[2].mxu1  ;;  %v3119_v21 = vpop.f32.mrb[3].mxu0 }
  0xfa   :  { %v584_v23 = vadd.f32 %v3117_v15, %v4543_v12  ;;  %v3120_v24 = vadd.f32 %v3119_v21, %v3118_v17  ;;  %v3177_v25 = vpop.f32.mrb[3].mxu1  ;;  %v3850_v17 = vld [vmem:[%s4886_s0 + $0x32c] ss:$20 sps:$4 sm:$0xff]  }
  0xfb   :  { %v3178_v26 = vadd.f32 %v3177_v25, %v3176_v20  ;;  %3569 = vmatmul.mubr.msk.bf16.gmra.mrb[108].mxu0 %vm527_vm1, %v3837_v14 }
  0xfc   :  { %v587_v27 = vadd.f32 %v3120_v24, %v4543_v12  ;;  %2335 = vmatmul.mubr.bf16.gmra.mrb[104].mxu1 %v3836_v18  ;;  %3572 = vmatprep.mubr.msk.bf16.mxu0 %vm3855_vm0, %v3854_v34  ;;  %v4559_v28 = vadd.f32 %v3175_v19, %v584_v23 }
  0xfd   :  { %2342 = vmatprep.mubr.bf16.mxu1 %v3838_v22 }
  0xfe   :  { %v3121_v29 = vpop.f32.mrb[4].mxu0  ;;  %v4561_v30 = vadd.f32 %v3178_v26, %v587_v27 }
  0xff   :  { %v3179_v31 = vpop.f32.mrb[4].mxu1  ;;  %v3122_v32 = vpop.f32.mrb[5].mxu0 }
 0x100   :  { %v3123_v35 = vadd.f32 %v3122_v32, %v3121_v29  ;;  %v3180_v36 = vpop.f32.mrb[5].mxu1  ;;  %v3124_v37 = vpop.f32.mrb[6].mxu0  ;;  %v3853_v29 = vld [vmem:[%s4886_s0 + $0x330] ss:$20 sps:$4 sm:$0xff]  }
 0x101   :  { %v3181_v39 = vadd.f32 %v3180_v36, %v3179_v31  ;;  %v3182_v40 = vpop.f32.mrb[6].mxu1  ;;  %v3125_v41 = vpop.f32.mrb[7].mxu0 }
 0x102   :  { %v592_v43 = vadd.f32 %v3123_v35, %v4543_v12  ;;  %v3126_v44 = vadd.f32 %v3125_v41, %v3124_v37  ;;  %v3183_v45 = vpop.f32.mrb[7].mxu1  ;;  %v3852_v35 = vld [vmem:[%s4886_s0 + $0x328] ss:$20 sps:$4 sm:$0xff]  }
 0x103   :  { %v3184_v46 = vadd.f32 %v3183_v45, %v3182_v40  ;;  %3573 = vmatmul.mubr.msk.bf16.gmra.mrb[112].mxu0 %vm527_vm1, %v3841_v33 }
 0x104   :  { %v595_v47 = vadd.f32 %v3126_v44, %v4543_v12  ;;  %2343 = vmatmul.mubr.bf16.gmra.mrb[108].mxu1 %v3840_v38  ;;  %3576 = vmatprep.mubr.msk.bf16.mxu0 %vm3855_vm0, %v3854_v34  ;;  %v4577_v48 = vadd.f32 %v3181_v39, %v592_v43 }
 0x105   :  { %2350 = vmatprep.mubr.bf16.mxu1 %v3842_v42 }
 0x106   :  { %v3127_v49 = vpop.f32.mrb[8].mxu0  ;;  %v4579_v50 = vadd.f32 %v3184_v46, %v595_v47 }
 0x107   :  { %v3185_v51 = vpop.f32.mrb[8].mxu1  ;;  %v3128_v52 = vpop.f32.mrb[9].mxu0 }
 0x108   :  { %v3129_v54 = vadd.f32 %v3128_v52, %v3127_v49  ;;  %v3186_v55 = vpop.f32.mrb[9].mxu1  ;;  %v3130_v56 = vpop.f32.mrb[10].mxu0 }
 0x109   :  { %v3187_v58 = vadd.f32 %v3186_v55, %v3185_v51  ;;  %v3188_v59 = vpop.f32.mrb[10].mxu1  ;;  %v3131_v60 = vpop.f32.mrb[11].mxu0 }
 0x10a   :  { %v600_v62 = vadd.f32 %v3129_v54, %v4543_v12  ;;  %v3132_v63 = vadd.f32 %v3131_v60, %v3130_v56  ;;  %v3189_v0 = vpop.f32.mrb[11].mxu1 }
 0x10b   :  { %v3190_v1 = vadd.f32 %v3189_v0, %v3188_v59  ;;  %3577 = vmatmul.mubr.msk.bf16.gmra.mrb[116].mxu0 %vm527_vm1, %v3845_v53 }
 0x10c   :  { %v603_v2 = vadd.f32 %v3132_v63, %v4543_v12  ;;  %2351 = vmatmul.mubr.bf16.gmra.mrb[112].mxu1 %v3844_v57  ;;  %3580 = vmatprep.mubr.msk.bf16.mxu0 %vm3855_vm0, %v3854_v34  ;;  %v4595_v3 = vadd.f32 %v3187_v58, %v600_v62 }
 0x10d   :  { %2358 = vmatprep.mubr.bf16.mxu1 %v3846_v61 }
 0x10e   :  { %v3133_v4 = vpop.f32.mrb[12].mxu0  ;;  %v4597_v5 = vadd.f32 %v3190_v1, %v603_v2 }
 0x10f   :  { %v3191_v6 = vpop.f32.mrb[12].mxu1  ;;  %v3134_v7 = vpop.f32.mrb[13].mxu0 }
 0x110   :  { %v3135_v9 = vadd.f32 %v3134_v7, %v3133_v4  ;;  %v3192_v10 = vpop.f32.mrb[13].mxu1  ;;  %v3136_v11 = vpop.f32.mrb[14].mxu0 }
 0x111   :  { %v3193_v14 = vadd.f32 %v3192_v10, %v3191_v6  ;;  %v3194_v15 = vpop.f32.mrb[14].mxu1  ;;  %v3137_v16 = vpop.f32.mrb[15].mxu0 }
 0x112   :  { %v608_v18 = vadd.f32 %v3135_v9, %v4543_v12  ;;  %v3138_v19 = vadd.f32 %v3137_v16, %v3136_v11  ;;  %v3195_v20 = vpop.f32.mrb[15].mxu1 }
 0x113   :  { %v3196_v21 = vadd.f32 %v3195_v20, %v3194_v15  ;;  %3581 = vmatmul.mubr.msk.bf16.gmra.mrb[120].mxu0 %vm527_vm1, %v3849_v8 }
 0x114   :  { %v611_v22 = vadd.f32 %v3138_v19, %v4543_v12  ;;  %2359 = vmatmul.mubr.bf16.gmra.mrb[116].mxu1 %v3848_v13  ;;  %3584 = vmatprep.mubr.msk.bf16.mxu0 %vm3855_vm0, %v3854_v34  ;;  %v4613_v23 = vadd.f32 %v3193_v14, %v608_v18 }
 0x115   :  { %2366 = vmatprep.mubr.bf16.mxu1 %v3850_v17 }
 0x116   :  { %v3139_v24 = vpop.f32.mrb[16].mxu0  ;;  %v4615_v25 = vadd.f32 %v3196_v21, %v611_v22 }
 0x117   :  { %v3197_v26 = vpop.f32.mrb[16].mxu1  ;;  %v3140_v27 = vpop.f32.mrb[17].mxu0 }
 0x118   :  { %v3141_v31 = vadd.f32 %v3140_v27, %v3139_v24  ;;  %v3198_v32 = vpop.f32.mrb[17].mxu1  ;;  %v3142_v33 = vpop.f32.mrb[18].mxu0 }
 0x119   :  { %v3199_v34 = vadd.f32 %v3198_v32, %v3197_v26  ;;  %v3200_v36 = vpop.f32.mrb[18].mxu1  ;;  %v3143_v37 = vpop.f32.mrb[19].mxu0 }
 0x11a   :  { %v616_v38 = vadd.f32 %v3141_v31, %v4543_v12  ;;  %v3144_v39 = vadd.f32 %v3143_v37, %v3142_v33  ;;  %v3201_v40 = vpop.f32.mrb[19].mxu1 }
 0x11b   :  { %v3202_v41 = vadd.f32 %v3201_v40, %v3200_v36  ;;  %3585 = vmatmul.mubr.msk.bf16.gmra.mrb[124].mxu0 %vm527_vm1, %v3853_v29 }
 0x11c   :  { %v619_v42 = vadd.f32 %v3144_v39, %v4543_v12  ;;  %2367 = vmatmul.mubr.bf16.gmra.mrb[120].mxu1 %v3852_v35  ;;  %v705_v43 = vadd.f32 %v3199_v34, %v616_v38 }
 0x11e   :  { %v3145_v44 = vpop.f32.mrb[20].mxu0  ;;  %v708_v45 = vadd.f32 %v3202_v41, %v619_v42 }
 0x11f   :  { %v3203_v46 = vpop.f32.mrb[20].mxu1  ;;  %v3146_v47 = vpop.f32.mrb[21].mxu0 }
 0x120   :  { %v3147_v49 = vadd.f32 %v3146_v47, %v3145_v44  ;;  %v3204_v51 = vpop.f32.mrb[21].mxu1  ;;  %v3148_v52 = vpop.f32.mrb[22].mxu0 }
 0x121   :  { %v3205_v53 = vadd.f32 %v3204_v51, %v3203_v46  ;;  %v3206_v54 = vpop.f32.mrb[22].mxu1  ;;  %v3149_v55 = vpop.f32.mrb[23].mxu0 }
 0x122   :  { %v624_v56 = vadd.f32 %v3147_v49, %v4543_v12  ;;  %v3150_v57 = vadd.f32 %v3149_v55, %v3148_v52  ;;  %v3207_v58 = vpop.f32.mrb[23].mxu1 }
 0x123   :  { %v3208_v59 = vadd.f32 %v3207_v58, %v3206_v54 }
 0x124   :  { %v627_v60 = vadd.f32 %v3150_v57, %v4543_v12  ;;  %v713_v61 = vadd.f32 %v3205_v53, %v624_v56 }
 0x126   :  { %v3151_v62 = vpop.f32.mrb[24].mxu0  ;;  %v716_v63 = vadd.f32 %v3208_v59, %v627_v60 }
 0x127   :  { %v3209_v0 = vpop.f32.mrb[24].mxu1  ;;  %v3152_v1 = vpop.f32.mrb[25].mxu0 }
 0x128   :  { %v3153_v2 = vadd.f32 %v3152_v1, %v3151_v62  ;;  %v3210_v4 = vpop.f32.mrb[25].mxu1  ;;  %v3154_v6 = vpop.f32.mrb[26].mxu0 }
 0x129   :  { %v3211_v7 = vadd.f32 %v3210_v4, %v3209_v0  ;;  %v3212_v8 = vpop.f32.mrb[26].mxu1  ;;  %v3155_v9 = vpop.f32.mrb[27].mxu0 }
 0x12a   :  { %v632_v10 = vadd.f32 %v3153_v2, %v4543_v12  ;;  %v3156_v11 = vadd.f32 %v3155_v9, %v3154_v6  ;;  %v3213_v13 = vpop.f32.mrb[27].mxu1 }
 0x12b   :  { %v3214_v14 = vadd.f32 %v3213_v13, %v3212_v8 }
 0x12c   :  { %v635_v15 = vadd.f32 %v3156_v11, %v4543_v12  ;;  %v721_v16 = vadd.f32 %v3211_v7, %v632_v10 }
 0x12e   :  { %v761_v17 = vpop.f32.mrb[28].mxu0  ;;  %v724_v18 = vadd.f32 %v3214_v14, %v635_v15 }
 0x12f   :  { %v762_v19 = vadd.f32 %v761_v17, %v4559_v28  ;;  %v793_v20 = vpop.f32.mrb[28].mxu1  ;;  %v3490_v21 = vpop.f32.mrb[29].mxu0 }
 0x130   :  { %v794_v22 = vadd.f32 %v793_v20, %v705_v43  ;;  %v3506_v24 = vpop.f32.mrb[29].mxu1  ;;  %v764_v26 = vpop.f32.mrb[30].mxu0 }
 0x131   :  { %v765_v27 = vadd.f32 %v764_v26, %v4561_v30  ;;  %v796_v29 = vpop.f32.mrb[30].mxu1  ;;  %v3491_v31 = vpop.f32.mrb[31].mxu0  ;;  %v816_v35 = vmax.f32 %v762_v19, 0.0 }
 0x132   :  { %v797_v32 = vadd.f32 %v796_v29, %v708_v45  ;;  %v3507_v33 = vpop.f32.mrb[31].mxu1  ;;  %v824_v36 = vmax.f32 %v794_v22, 0.0  ;;  %v4655_v22 = vld [vmem:[%s4887_s2 + $0x1] ss:$0 sm:$0xff] }
 0x133   :  { %v817_v34 = vmax.f32 %v765_v27, 0.0 }
 0x134   :  { %v825_v12 = vmax.f32 %v797_v32, 0.0 }
 0x135   :  { %v4632_v37 = vpack.c.bf16 %v817_v34, %v816_v35 }
 0x136   :  { %v4634_v38 = vpack.c.bf16 %v825_v12, %v824_v36  ;;  %v769_v28 = vpop.f32.mrb[32].mxu0 }
 0x137   :  { %v770_v39 = vadd.f32 %v769_v28, %v4577_v48  ;;  %v801_v40 = vpop.f32.mrb[32].mxu1  ;;  %v3494_v41 = vpop.f32.mrb[33].mxu0 }
 0x138   :  { %v802_v42 = vadd.f32 %v801_v40, %v713_v61  ;;  %v3510_v43 = vpop.f32.mrb[33].mxu1  ;;  %v772_v30 = vpop.f32.mrb[34].mxu0 }
 0x139   :  { %v773_v44 = vadd.f32 %v772_v30, %v4579_v50  ;;  %v804_v45 = vpop.f32.mrb[34].mxu1  ;;  %v3495_v46 = vpop.f32.mrb[35].mxu0  ;;  %v818_v51 = vmax.f32 %v770_v39, 0.0 }
 0x13a   :  { %v805_v47 = vadd.f32 %v804_v45, %v716_v63  ;;  %v3511_v49 = vpop.f32.mrb[35].mxu1  ;;  %v826_v53 = vmax.f32 %v802_v42, 0.0 }
 0x13b   :  { %v819_v52 = vmax.f32 %v773_v44, 0.0 }
 0x13c   :  { %v827_v54 = vmax.f32 %v805_v47, 0.0 }
 0x13d   :  { %v4638_v55 = vpack.c.bf16 %v819_v52, %v818_v51 }
 0x13e   :  { %v4640_v56 = vpack.c.bf16 %v827_v54, %v826_v53  ;;  %v777_v48 = vpop.f32.mrb[36].mxu0 }
 0x13f   :  { %v778_v57 = vadd.f32 %v777_v48, %v4595_v3  ;;  %v809_v58 = vpop.f32.mrb[36].mxu1  ;;  %v3498_v59 = vpop.f32.mrb[37].mxu0 }
 0x140   :  { %v810_v60 = vadd.f32 %v809_v58, %v721_v16  ;;  %v3514_v61 = vpop.f32.mrb[37].mxu1  ;;  %v780_v50 = vpop.f32.mrb[38].mxu0 }
 0x141   :  { %v781_v62 = vadd.f32 %v780_v50, %v4597_v5  ;;  %v812_v63 = vpop.f32.mrb[38].mxu1  ;;  %v3499_v0 = vpop.f32.mrb[39].mxu0  ;;  %v820_v4 = vmax.f32 %v778_v57, 0.0 }
 0x142   :  { %v813_v1 = vadd.f32 %v812_v63, %v724_v18  ;;  %v3515_v2 = vpop.f32.mrb[39].mxu1  ;;  %v828_v7 = vmax.f32 %v810_v60, 0.0 }
 0x143   :  { %v821_v6 = vmax.f32 %v781_v62, 0.0 }
 0x144   :  { %v829_v8 = vmax.f32 %v813_v1, 0.0 }
 0x145   :  { %v4644_v9 = vpack.c.bf16 %v821_v6, %v820_v4 }
 0x146   :  { %v4646_v10 = vpack.c.bf16 %v829_v8, %v828_v7  ;;  %v785_v3 = vpop.f32.mrb[40].mxu0 }
 0x147   :  { %v786_v11 = vadd.f32 %v785_v3, %v4613_v23  ;;  %v3502_v13 = vpop.f32.mrb[41].mxu0 }
 0x148   :  { %v788_v14 = vpop.f32.mrb[42].mxu0 }
 0x149   :  { %v789_v15 = vadd.f32 %v788_v14, %v4615_v25  ;;  %v3503_v5 = vpop.f32.mrb[43].mxu0  ;;  %v822_v16 = vmax.f32 %v786_v11, 0.0 }
 0x14b   :  { %v823_v17 = vmax.f32 %v789_v15, 0.0 }
 0x14d   :  { %v4650_v18 = vpack.c.bf16 %v823_v17, %v822_v16 }
 0x14e   :  { %v3300_v19 = vpop.f32.mrb[44].mxu0 }
 0x14f   :  { %v3242_v20 = vpop.f32.mrb[40].mxu1  ;;  %v3301_v21 = vpop.f32.mrb[45].mxu0 }
 0x150   :  { %v3243_v24 = vpop.f32.mrb[41].mxu1  ;;  %v3302_v26 = vadd.f32 %v3301_v21, %v3300_v19  ;;  %v3303_v23 = vpop.f32.mrb[46].mxu0 }
 0x151   :  { %v3244_v27 = vadd.f32 %v3243_v24, %v3242_v20  ;;  %v3245_v29 = vpop.f32.mrb[42].mxu1  ;;  %v3304_v31 = vpop.f32.mrb[47].mxu0 }
 0x152   :  { %v3246_v25 = vpop.f32.mrb[43].mxu1  ;;  %v3305_v32 = vadd.f32 %v3304_v31, %v3303_v23 }
 0x153   :  { %v1408_v33 = vadd.f32 %v3244_v27, %v4655_v22  ;;  %v3247_v35 = vadd.f32 %v3246_v25, %v3245_v29 }
 0x155   :  { %v1411_v34 = vadd.f32 %v3247_v35, %v4655_v22  ;;  %v4659_v36 = vadd.f32 %v3302_v26, %v1408_v33 }
 0x156   :  { %v3306_v12 = vpop.f32.mrb[48].mxu0 }
 0x157   :  { %v3248_v28 = vpop.f32.mrb[44].mxu1  ;;  %v3307_v39 = vpop.f32.mrb[49].mxu0  ;;  %v4661_v40 = vadd.f32 %v3305_v32, %v1411_v34 }
 0x158   :  { %v3249_v41 = vpop.f32.mrb[45].mxu1  ;;  %v3308_v42 = vadd.f32 %v3307_v39, %v3306_v12  ;;  %v3309_v43 = vpop.f32.mrb[50].mxu0 }
 0x159   :  { %v3250_v30 = vadd.f32 %v3249_v41, %v3248_v28  ;;  %v3251_v44 = vpop.f32.mrb[46].mxu1  ;;  %v3310_v45 = vpop.f32.mrb[51].mxu0 }
 0x15a   :  { %v3252_v46 = vpop.f32.mrb[47].mxu1  ;;  %v3311_v47 = vadd.f32 %v3310_v45, %v3309_v43 }
 0x15b   :  { %v1416_v49 = vadd.f32 %v3250_v30, %v4655_v22  ;;  %v3253_v51 = vadd.f32 %v3252_v46, %v3251_v44 }
 0x15d   :  { %v1419_v52 = vadd.f32 %v3253_v51, %v4655_v22  ;;  %v4665_v53 = vadd.f32 %v3308_v42, %v1416_v49 }
 0x15e   :  { %v3312_v54 = vpop.f32.mrb[52].mxu0 }
 0x15f   :  { %v3254_v48 = vpop.f32.mrb[48].mxu1  ;;  %v3313_v57 = vpop.f32.mrb[53].mxu0  ;;  %v4667_v58 = vadd.f32 %v3311_v47, %v1419_v52 }
 0x160   :  { %v3255_v59 = vpop.f32.mrb[49].mxu1  ;;  %v3314_v60 = vadd.f32 %v3313_v57, %v3312_v54  ;;  %v3315_v61 = vpop.f32.mrb[54].mxu0 }
 0x161   :  { %v3256_v50 = vadd.f32 %v3255_v59, %v3254_v48  ;;  %v3257_v62 = vpop.f32.mrb[50].mxu1  ;;  %v3316_v63 = vpop.f32.mrb[55].mxu0 }
 0x162   :  { %v3258_v0 = vpop.f32.mrb[51].mxu1  ;;  %v3317_v1 = vadd.f32 %v3316_v63, %v3315_v61 }
 0x163   :  { %v1424_v2 = vadd.f32 %v3256_v50, %v4655_v22  ;;  %v3259_v4 = vadd.f32 %v3258_v0, %v3257_v62 }
 0x165   :  { %v1427_v6 = vadd.f32 %v3259_v4, %v4655_v22  ;;  %v4671_v7 = vadd.f32 %v3314_v60, %v1424_v2 }
 0x166   :  { %v3318_v8 = vpop.f32.mrb[56].mxu0 }
 0x167   :  { %v3260_v3 = vpop.f32.mrb[52].mxu1  ;;  %v3319_v11 = vpop.f32.mrb[57].mxu0  ;;  %v4673_v13 = vadd.f32 %v3317_v1, %v1427_v6 }
 0x168   :  { %v3261_v14 = vpop.f32.mrb[53].mxu1  ;;  %v3320_v15 = vadd.f32 %v3319_v11, %v3318_v8  ;;  %v3321_v5 = vpop.f32.mrb[58].mxu0 }
 0x169   :  { %v3262_v16 = vadd.f32 %v3261_v14, %v3260_v3  ;;  %v3263_v17 = vpop.f32.mrb[54].mxu1  ;;  %v3322_v19 = vpop.f32.mrb[59].mxu0 }
 0x16a   :  { %v3264_v20 = vpop.f32.mrb[55].mxu1  ;;  %v3323_v21 = vadd.f32 %v3322_v19, %v3321_v5 }
 0x16b   :  { %v1432_v24 = vadd.f32 %v3262_v16, %v4655_v22  ;;  %v3265_v26 = vadd.f32 %v3264_v20, %v3263_v17 }
 0x16d   :  { %v1435_v23 = vadd.f32 %v3265_v26, %v4655_v22  ;;  %v4677_v27 = vadd.f32 %v3320_v15, %v1432_v24 }
 0x16e   :  { %v3324_v29 = vpop.f32.mrb[60].mxu0 }
 0x16f   :  { %v3266_v31 = vpop.f32.mrb[56].mxu1  ;;  %v3325_v25 = vpop.f32.mrb[61].mxu0  ;;  %v4679_v32 = vadd.f32 %v3323_v21, %v1435_v23 }
 0x170   :  { %v3267_v33 = vpop.f32.mrb[57].mxu1  ;;  %v3326_v35 = vadd.f32 %v3325_v25, %v3324_v29  ;;  %v3327_v34 = vpop.f32.mrb[62].mxu0 }
 0x171   :  { %v3268_v12 = vadd.f32 %v3267_v33, %v3266_v31  ;;  %v3269_v28 = vpop.f32.mrb[58].mxu1  ;;  %v3328_v39 = vpop.f32.mrb[63].mxu0 }
 0x172   :  { %v3270_v41 = vpop.f32.mrb[59].mxu1  ;;  %v3329_v42 = vadd.f32 %v3328_v39, %v3327_v34 }
 0x173   :  { %v1440_v43 = vadd.f32 %v3268_v12, %v4655_v22  ;;  %v3271_v30 = vadd.f32 %v3270_v41, %v3269_v28 }
 0x175   :  { %v1443_v44 = vadd.f32 %v3271_v30, %v4655_v22  ;;  %v4683_v45 = vadd.f32 %v3326_v35, %v1440_v43 }
 0x176   :  { %v3330_v46 = vpop.f32.mrb[64].mxu0 }
 0x177   :  { %v3272_v47 = vpop.f32.mrb[60].mxu1  ;;  %v3331_v49 = vpop.f32.mrb[65].mxu0  ;;  %v4685_v51 = vadd.f32 %v3329_v42, %v1443_v44 }
 0x178   :  { %v3273_v52 = vpop.f32.mrb[61].mxu1  ;;  %v3332_v54 = vadd.f32 %v3331_v49, %v3330_v46  ;;  %v3333_v48 = vpop.f32.mrb[66].mxu0 }
 0x179   :  { %v3274_v57 = vadd.f32 %v3273_v52, %v3272_v47  ;;  %v3275_v59 = vpop.f32.mrb[62].mxu1  ;;  %v3334_v60 = vpop.f32.mrb[67].mxu0 }
 0x17a   :  { %v3276_v61 = vpop.f32.mrb[63].mxu1  ;;  %v3335_v50 = vadd.f32 %v3334_v60, %v3333_v48 }
 0x17b   :  { %v1448_v62 = vadd.f32 %v3274_v57, %v4655_v22  ;;  %v3277_v63 = vadd.f32 %v3276_v61, %v3275_v59 }
 0x17d   :  { %v1451_v0 = vadd.f32 %v3277_v63, %v4655_v22  ;;  %v4689_v1 = vadd.f32 %v3332_v54, %v1448_v62 }
 0x17e   :  { %v3336_v2 = vpop.f32.mrb[68].mxu0 }
 0x17f   :  { %v3278_v4 = vpop.f32.mrb[64].mxu1  ;;  %v3337_v6 = vpop.f32.mrb[69].mxu0  ;;  %v4691_v8 = vadd.f32 %v3335_v50, %v1451_v0 }
 0x180   :  { %v3279_v3 = vpop.f32.mrb[65].mxu1  ;;  %v3338_v11 = vadd.f32 %v3337_v6, %v3336_v2  ;;  %v3339_v14 = vpop.f32.mrb[70].mxu0 }
 0x181   :  { %v3280_v15 = vadd.f32 %v3279_v3, %v3278_v4  ;;  %v3281_v5 = vpop.f32.mrb[66].mxu1  ;;  %v3340_v16 = vpop.f32.mrb[71].mxu0 }
 0x182   :  { %v3282_v17 = vpop.f32.mrb[67].mxu1  ;;  %v3341_v19 = vadd.f32 %v3340_v16, %v3339_v14 }
 0x183   :  { %v1456_v20 = vadd.f32 %v3280_v15, %v4655_v22  ;;  %v3283_v21 = vadd.f32 %v3282_v17, %v3281_v5 }
 0x185   :  { %v1459_v24 = vadd.f32 %v3283_v21, %v4655_v22  ;;  %v4695_v26 = vadd.f32 %v3338_v11, %v1456_v20 }
 0x186   :  { %v3369_v23 = vpop.f32.mrb[72].mxu0 }
 0x187   :  { %v1585_v29 = vpop.f32.mrb[68].mxu1  ;;  %v3370_v31 = vpop.f32.mrb[73].mxu0  ;;  %v4697_v25 = vadd.f32 %v3341_v19, %v1459_v24 }
 0x188   :  { %v1586_v33 = vadd.f32 %v1585_v29, %v4659_v36  ;;  %v3526_v35 = vpop.f32.mrb[69].mxu1  ;;  %v4700_v34 = vadd.f32 %v3370_v31, %v3369_v23  ;;  %v3372_v12 = vpop.f32.mrb[74].mxu0 }
 0x189   :  { %v1588_v28 = vpop.f32.mrb[70].mxu1  ;;  %v3373_v39 = vpop.f32.mrb[75].mxu0 }
 0x18a   :  { %v1589_v41 = vadd.f32 %v1588_v28, %v4661_v40  ;;  %v3527_v42 = vpop.f32.mrb[71].mxu1  ;;  %v4703_v43 = vadd.f32 %v3373_v39, %v3372_v12  ;;  %v1640_v22 = vmax.f32 %v1586_v33, 0.0 }
 0x18c   :  { %v1641_v30 = vmax.f32 %v1589_v41, 0.0 }
 0x18e   :  { %v1654_v44 = vpack.c.bf16 %v1641_v30, %v1640_v22  ;;  %v3375_v46 = vpop.f32.mrb[76].mxu0 }
 0x18f   :  { %v1593_v47 = vpop.f32.mrb[72].mxu1  ;;  %v3376_v49 = vpop.f32.mrb[77].mxu0 }
 0x190   :  { %v1594_v52 = vadd.f32 %v1593_v47, %v4665_v53  ;;  %v3530_v36 = vpop.f32.mrb[73].mxu1  ;;  %2492 = vrot.lane.b32.xlu0 %v1654_v44, %s3856_s7  ;;  %v4707_v54 = vadd.f32 %v3376_v49, %v3375_v46  ;;  %v3378_v48 = vpop.f32.mrb[78].mxu0 }
 0x191   :  { %v1596_v57 = vpop.f32.mrb[74].mxu1  ;;  %v3379_v40 = vpop.f32.mrb[79].mxu0 }
 0x192   :  { %v1597_v59 = vadd.f32 %v1596_v57, %v4667_v58  ;;  %v3531_v60 = vpop.f32.mrb[75].mxu1  ;;  %v4710_v61 = vadd.f32 %v3379_v40, %v3378_v48  ;;  %v1642_v50 = vmax.f32 %v1594_v52, 0.0 }
 0x194   :  { %v1643_v62 = vmax.f32 %v1597_v59, 0.0 }
 0x196   :  { %v1655_v63 = vpack.c.bf16 %v1643_v62, %v1642_v50  ;;  %v3381_v0 = vpop.f32.mrb[80].mxu0 }
 0x197   :  { %v1601_v2 = vpop.f32.mrb[76].mxu1  ;;  %v3382_v53 = vpop.f32.mrb[81].mxu0 }
 0x198   :  { %v1602_v4 = vadd.f32 %v1601_v2, %v4671_v7  ;;  %v3534_v6 = vpop.f32.mrb[77].mxu1  ;;  %2494 = vrot.lane.b32.xlu0 %v1655_v63, %s3856_s7  ;;  %v4714_v3 = vadd.f32 %v3382_v53, %v3381_v0  ;;  %v3384_v11 = vpop.f32.mrb[82].mxu0 }
 0x199   :  { %v1604_v14 = vpop.f32.mrb[78].mxu1  ;;  %v3385_v15 = vpop.f32.mrb[83].mxu0 }
 0x19a   :  { %v1605_v58 = vadd.f32 %v1604_v14, %v4673_v13  ;;  %v3535_v5 = vpop.f32.mrb[79].mxu1  ;;  %v4717_v16 = vadd.f32 %v3385_v15, %v3384_v11  ;;  %v1644_v17 = vmax.f32 %v1602_v4, 0.0 }
 0x19c   :  { %v1645_v19 = vmax.f32 %v1605_v58, 0.0 }
 0x19e   :  { %v1656_v20 = vpack.c.bf16 %v1645_v19, %v1644_v17  ;;  %v3387_v21 = vpop.f32.mrb[84].mxu0 }
 0x19f   :  { %v1609_v24 = vpop.f32.mrb[80].mxu1  ;;  %v3388_v23 = vpop.f32.mrb[85].mxu0 }
 0x1a0   :  { %v1610_v7 = vadd.f32 %v1609_v24, %v4677_v27  ;;  %v3538_v29 = vpop.f32.mrb[81].mxu1  ;;  %2496 = vrot.lane.b32.xlu1 %v1656_v20, %s3856_s7  ;;  %v4721_v31 = vadd.f32 %v3388_v23, %v3387_v21  ;;  %v3390_v33 = vpop.f32.mrb[86].mxu0 }
 0x1a1   :  { %v1612_v35 = vpop.f32.mrb[82].mxu1  ;;  %v3391_v12 = vpop.f32.mrb[87].mxu0 }
 0x1a2   :  { %v1613_v13 = vadd.f32 %v1612_v35, %v4679_v32  ;;  %v3539_v28 = vpop.f32.mrb[83].mxu1  ;;  %v4724_v39 = vadd.f32 %v3391_v12, %v3390_v33  ;;  %v1646_v41 = vmax.f32 %v1610_v7, 0.0 }
 0x1a4   :  { %v1647_v42 = vmax.f32 %v1613_v13, 0.0  ;;  %v4750_v13 = vld [vmem:[%s4887_s2 + $0x2] ss:$0 sm:$0xff] }
 0x1a6   :  { %v1657_v22 = vpack.c.bf16 %v1647_v42, %v1646_v41  ;;  %v3393_v30 = vpop.f32.mrb[88].mxu0 }
 0x1a7   :  { %v1617_v44 = vpop.f32.mrb[84].mxu1  ;;  %v3394_v46 = vpop.f32.mrb[89].mxu0 }
 0x1a8   :  { %v1618_v27 = vadd.f32 %v1617_v44, %v4683_v45  ;;  %v3542_v47 = vpop.f32.mrb[85].mxu1  ;;  %2498 = vrot.lane.b32.xlu1 %v1657_v22, %s3856_s7  ;;  %v4728_v49 = vadd.f32 %v3394_v46, %v3393_v30  ;;  %v3396_v52 = vpop.f32.mrb[90].mxu0  ;;  %v2232_v22 = vadd.f32 %v4700_v34, %v4750_v13  ;;  %v2240_v34 = vadd.f32 %v4707_v54, %v4750_v13 }
 0x1a9   :  { %v1620_v36 = vpop.f32.mrb[86].mxu1  ;;  %v3397_v48 = vpop.f32.mrb[91].mxu0 }
 0x1aa   :  { %v1621_v32 = vadd.f32 %v1620_v36, %v4685_v51  ;;  %v3543_v57 = vpop.f32.mrb[87].mxu1  ;;  %v4731_v40 = vadd.f32 %v3397_v48, %v3396_v52  ;;  %v1648_v59 = vmax.f32 %v1618_v27, 0.0  ;;  %v2235_v27 = vadd.f32 %v4703_v43, %v4750_v13 }
 0x1ab   :  { %v2243_v43 = vadd.f32 %v4710_v61, %v4750_v13 }
 0x1ac   :  { %v1649_v60 = vmax.f32 %v1621_v32, 0.0 }
 0x1ae   :  { %v1658_v50 = vpack.c.bf16 %v1649_v60, %v1648_v59  ;;  %v3399_v62 = vpop.f32.mrb[92].mxu0 }
 0x1af   :  { %v1625_v63 = vpop.f32.mrb[88].mxu1  ;;  %v3400_v0 = vpop.f32.mrb[93].mxu0 }
 0x1b0   :  { %v1626_v45 = vadd.f32 %v1625_v63, %v4689_v1  ;;  %v3546_v2 = vpop.f32.mrb[89].mxu1  ;;  %2500 = vrot.lane.b32.xlu0 %v1658_v50, %s3856_s7  ;;  %v4735_v53 = vadd.f32 %v3400_v0, %v3399_v62  ;;  %v3402_v4 = vpop.f32.mrb[94].mxu0 }
 0x1b1   :  { %v1628_v6 = vpop.f32.mrb[90].mxu1  ;;  %v3403_v11 = vpop.f32.mrb[95].mxu0 }
 0x1b2   :  { %v1629_v51 = vadd.f32 %v1628_v6, %v4691_v8  ;;  %v3547_v14 = vpop.f32.mrb[91].mxu1  ;;  %v4738_v15 = vadd.f32 %v3403_v11, %v3402_v4  ;;  %v1650_v58 = vmax.f32 %v1626_v45, 0.0 }
 0x1b4   :  { %v1651_v5 = vmax.f32 %v1629_v51, 0.0 }
 0x1b6   :  { %v1659_v17 = vpack.c.bf16 %v1651_v5, %v1650_v58  ;;  %v3405_v19 = vpop.f32.mrb[96].mxu0 }
 0x1b7   :  { %v1633_v20 = vpop.f32.mrb[92].mxu1  ;;  %v3406_v21 = vpop.f32.mrb[97].mxu0 }
 0x1b8   :  { %v1634_v1 = vadd.f32 %v1633_v20, %v4695_v26  ;;  %v3550_v24 = vpop.f32.mrb[93].mxu1  ;;  %2502 = vrot.lane.b32.xlu1 %v1659_v17, %s3856_s7  ;;  %v4742_v23 = vadd.f32 %v3406_v21, %v3405_v19  ;;  %v3408_v7 = vpop.f32.mrb[98].mxu0 }
 0x1b9   :  { %v1636_v29 = vpop.f32.mrb[94].mxu1  ;;  %v3409_v33 = vpop.f32.mrb[99].mxu0 }
 0x1ba   :  { %v1637_v8 = vadd.f32 %v1636_v29, %v4697_v25  ;;  %v3551_v35 = vpop.f32.mrb[95].mxu1  ;;  %v4745_v12 = vadd.f32 %v3409_v33, %v3408_v7  ;;  %v1652_v28 = vmax.f32 %v1634_v1, 0.0  ;;  %v2248_v1 = vadd.f32 %v4714_v3, %v4750_v13 }
 0x1bb   :  { %v2251_v35 = vadd.f32 %v4717_v16, %v4750_v13 }
 0x1bc   :  { %v1653_v26 = vmax.f32 %v1637_v8, 0.0 }
 0x1be   :  { %v1660_v41 = vpack.c.bf16 %v1653_v26, %v1652_v28  ;;  %v2409_v42 = vpop.f32.mrb[100].mxu0 }
 0x1bf   :  { %v3427_v30 = vpop.f32.mrb[96].mxu1  ;;  %v3562_v44 = vpop.f32.mrb[101].mxu0 }
 0x1c0   :  { %2504 = vrot.lane.b32.xlu0 %v1660_v41, %s3856_s7  ;;  %v3428_v25 = vpop.f32.mrb[97].mxu1  ;;  %v2412_v46 = vpop.f32.mrb[102].mxu0 }
 0x1c1   :  { %v3429_v47 = vadd.f32 %v3428_v25, %v3427_v30  ;;  %v3430_v52 = vpop.f32.mrb[98].mxu1  ;;  %v3563_v36 = vpop.f32.mrb[103].mxu0 }
 0x1c2   :  { %v3431_v48 = vpop.f32.mrb[99].mxu1 }
 0x1c3   :  { %v3432_v32 = vadd.f32 %v3431_v48, %v3430_v52  ;;  %v2321_v57 = vadd.f32 %v3429_v47, %v2232_v22  ;;  %v2256_v47 = vadd.f32 %v4721_v31, %v4750_v13 }
 0x1c5   :  { %v2410_v59 = vadd.f32 %v2409_v42, %v2321_v57  ;;  %v2324_v60 = vadd.f32 %v3432_v32, %v2235_v27 }
 0x1c6   :  { %v2417_v50 = vpop.f32.mrb[104].mxu0 }
 0x1c7   :  { %v2464_v62 = vmax.f32 %v2410_v59, 0.0  ;;  %v2413_v63 = vadd.f32 %v2412_v46, %v2324_v60  ;;  %v3433_v0 = vpop.f32.mrb[100].mxu1  ;;  %v3566_v45 = vpop.f32.mrb[105].mxu0  ;;  %v2259_v59 = vadd.f32 %v4724_v39, %v4750_v13 }
 0x1c8   :  { %v3434_v2 = vpop.f32.mrb[101].mxu1  ;;  %v2420_v4 = vpop.f32.mrb[106].mxu0 }
 0x1c9   :  { %v2465_v6 = vmax.f32 %v2413_v63, 0.0  ;;  %v3435_v11 = vadd.f32 %v3434_v2, %v3433_v0  ;;  %v3436_v51 = vpop.f32.mrb[102].mxu1  ;;  %v3567_v14 = vpop.f32.mrb[107].mxu0 }
 0x1ca   :  { %v3437_v58 = vpop.f32.mrb[103].mxu1 }
 0x1cb   :  { %v4761_v5 = vpack.c.bf16 %v2465_v6, %v2464_v62  ;;  %v3438_v17 = vadd.f32 %v3437_v58, %v3436_v51  ;;  %v2329_v19 = vadd.f32 %v3435_v11, %v2240_v34  ;;  %v2264_v6 = vadd.f32 %v4728_v49, %v4750_v13 }
 0x1cd   :  { %v2418_v20 = vadd.f32 %v2417_v50, %v2329_v19  ;;  %v2332_v54 = vadd.f32 %v3438_v17, %v2243_v43  ;;  %v2267_v19 = vadd.f32 %v4731_v40, %v4750_v13 }
 0x1ce   :  { %v2425_v21 = vpop.f32.mrb[108].mxu0 }
 0x1cf   :  { %v2466_v24 = vmax.f32 %v2418_v20, 0.0  ;;  %v2421_v7 = vadd.f32 %v2420_v4, %v2332_v54  ;;  %v3439_v29 = vpop.f32.mrb[104].mxu1  ;;  %v3570_v33 = vpop.f32.mrb[109].mxu0 }
 0x1d0   :  { %v3440_v61 = vpop.f32.mrb[105].mxu1  ;;  %v2428_v8 = vpop.f32.mrb[110].mxu0 }
 0x1d1   :  { %v2467_v28 = vmax.f32 %v2421_v7, 0.0  ;;  %v3441_v26 = vadd.f32 %v3440_v61, %v3439_v29  ;;  %v3442_v41 = vpop.f32.mrb[106].mxu1  ;;  %v3571_v42 = vpop.f32.mrb[111].mxu0 }
 0x1d2   :  { %v3443_v22 = vpop.f32.mrb[107].mxu1 }
 0x1d3   :  { %v4767_v30 = vpack.c.bf16 %v2467_v28, %v2466_v24  ;;  %v3444_v44 = vadd.f32 %v3443_v22, %v3442_v41  ;;  %v2337_v25 = vadd.f32 %v3441_v26, %v2248_v1 }
 0x1d5   :  { %v2426_v46 = vadd.f32 %v2425_v21, %v2337_v25  ;;  %v2340_v3 = vadd.f32 %v3444_v44, %v2251_v35  ;;  %v2272_v35 = vadd.f32 %v4735_v53, %v4750_v13  ;;  %v2275_v44 = vadd.f32 %v4738_v15, %v4750_v13 }
 0x1d6   :  { %v2433_v27 = vpop.f32.mrb[112].mxu0 }
 0x1d7   :  { %v2468_v52 = vmax.f32 %v2426_v46, 0.0  ;;  %v2429_v36 = vadd.f32 %v2428_v8, %v2340_v3  ;;  %v3445_v48 = vpop.f32.mrb[108].mxu1  ;;  %v3574_v32 = vpop.f32.mrb[113].mxu0 }
 0x1d8   :  { %v3446_v16 = vpop.f32.mrb[109].mxu1  ;;  %v2436_v57 = vpop.f32.mrb[114].mxu0 }
 0x1d9   :  { %v2469_v60 = vmax.f32 %v2429_v36, 0.0  ;;  %v3447_v50 = vadd.f32 %v3446_v16, %v3445_v48  ;;  %v3448_v34 = vpop.f32.mrb[110].mxu1  ;;  %v3575_v62 = vpop.f32.mrb[115].mxu0 }
 0x1da   :  { %v3449_v63 = vpop.f32.mrb[111].mxu1 }
 0x1db   :  { %v4773_v0 = vpack.c.bf16 %v2469_v60, %v2468_v52  ;;  %v3450_v45 = vadd.f32 %v3449_v63, %v3448_v34  ;;  %v2345_v2 = vadd.f32 %v3447_v50, %v2256_v47  ;;  %v2283_v63 = vadd.f32 %v4745_v12, %v4750_v13 }
 0x1dd   :  { %v2434_v4 = vadd.f32 %v2433_v27, %v2345_v2  ;;  %v2348_v31 = vadd.f32 %v3450_v45, %v2259_v59 }
 0x1de   :  { %v2441_v43 = vpop.f32.mrb[116].mxu0 }
 0x1df   :  { %v2470_v11 = vmax.f32 %v2434_v4, 0.0  ;;  %v2437_v51 = vadd.f32 %v2436_v57, %v2348_v31  ;;  %v3451_v14 = vpop.f32.mrb[112].mxu1  ;;  %v3578_v58 = vpop.f32.mrb[117].mxu0  ;;  %v2280_v57 = vadd.f32 %v4742_v23, %v4750_v13 }
 0x1e0   :  { %v3452_v39 = vpop.f32.mrb[113].mxu1  ;;  %v2444_v17 = vpop.f32.mrb[118].mxu0 }
 0x1e1   :  { %v2471_v20 = vmax.f32 %v2437_v51, 0.0  ;;  %v3453_v54 = vadd.f32 %v3452_v39, %v3451_v14  ;;  %v3454_v21 = vpop.f32.mrb[114].mxu1  ;;  %v3579_v1 = vpop.f32.mrb[119].mxu0 }
 0x1e2   :  { %v3455_v24 = vpop.f32.mrb[115].mxu1 }
 0x1e3   :  { %v4779_v7 = vpack.c.bf16 %v2471_v20, %v2470_v11  ;;  %v3456_v29 = vadd.f32 %v3455_v24, %v3454_v21  ;;  %v2353_v33 = vadd.f32 %v3453_v54, %v2264_v6 }
 0x1e5   :  { %v2442_v61 = vadd.f32 %v2441_v43, %v2353_v33  ;;  %v2356_v49 = vadd.f32 %v3456_v29, %v2267_v19 }
 0x1e6   :  { %v2449_v8 = vpop.f32.mrb[120].mxu0 }
 0x1e7   :  { %v2472_v28 = vmax.f32 %v2442_v61, 0.0  ;;  %v2445_v26 = vadd.f32 %v2444_v17, %v2356_v49  ;;  %v3457_v41 = vpop.f32.mrb[116].mxu1  ;;  %v3582_v42 = vpop.f32.mrb[121].mxu0 }
 0x1e8   :  { %v3458_v40 = vpop.f32.mrb[117].mxu1  ;;  %v2452_v22 = vpop.f32.mrb[122].mxu0 }
 0x1e9   :  { %v2473_v25 = vmax.f32 %v2445_v26, 0.0  ;;  %v3459_v46 = vadd.f32 %v3458_v40, %v3457_v41  ;;  %v3460_v3 = vpop.f32.mrb[118].mxu1  ;;  %v3583_v27 = vpop.f32.mrb[123].mxu0 }
 0x1ea   :  { %v3461_v47 = vpop.f32.mrb[119].mxu1 }
 0x1eb   :  { %v2482_v52 = vpack.c.bf16 %v2473_v25, %v2472_v28  ;;  %v3462_v36 = vadd.f32 %v3461_v47, %v3460_v3  ;;  %v2361_v48 = vadd.f32 %v3459_v46, %v2272_v35 }
 0x1ed   :  { %v2450_v32 = vadd.f32 %v2449_v8, %v2361_v48  ;;  %v2364_v16 = vadd.f32 %v3462_v36, %v2275_v44 }
 0x1ee   :  { %v2457_v53 = vpop.f32.mrb[124].mxu0 }
 0x1ef   :  { %v2474_v59 = vmax.f32 %v2450_v32, 0.0  ;;  %v2453_v60 = vadd.f32 %v2452_v22, %v2364_v16  ;;  %v3463_v50 = vpop.f32.mrb[120].mxu1  ;;  %v3586_v34 = vpop.f32.mrb[125].mxu0 }
 0x1f0   :  { %v3464_v62 = vpop.f32.mrb[121].mxu1  ;;  %v2460_v15 = vpop.f32.mrb[126].mxu0 }
 0x1f1   :  { %v2475_v45 = vmax.f32 %v2453_v60, 0.0  ;;  %v3465_v2 = vadd.f32 %v3464_v62, %v3463_v50  ;;  %v3466_v4 = vpop.f32.mrb[122].mxu1  ;;  %v3587_v31 = vpop.f32.mrb[127].mxu0 }
 0x1f2   :  { %v3467_v43 = vpop.f32.mrb[123].mxu1 }
 0x1f3   :  { %v2483_v6 = vpack.c.bf16 %v2475_v45, %v2474_v59  ;;  %v3468_v11 = vadd.f32 %v3467_v43, %v3466_v4  ;;  %v2369_v51 = vadd.f32 %v3465_v2, %v2280_v57 }
 0x1f5   :  { %v2458_v14 = vadd.f32 %v2457_v53, %v2369_v51  ;;  %v2372_v58 = vadd.f32 %v3468_v11, %v2283_v63 }
 0x1f7   :  { %v2476_v23 = vmax.f32 %v2458_v14, 0.0  ;;  %v2461_v39 = vadd.f32 %v2460_v15, %v2372_v58 }
 0x1f9   :  { %v2477_v17 = vmax.f32 %v2461_v39, 0.0 }
 0x1fb   :  { %v2484_v19 = vpack.c.bf16 %v2477_v17, %v2476_v23 }
 0x202   :  { %v2493_v20 = vpop.permute.xlu0 %2492 }
 0x203   :  { %v2508_v12 = vsel %vm527_vm1, %v4632_v37, %v2493_v20 }
 0x204   :  { %v3085_v13 = vcombine.low %v2508_v12, %v4761_v5  ;;  %v3086_v21 = vcombine.high %v2508_v12, %v4761_v5 }
 0x206   :  { %2600 = vst.msk [vmem:[%s4888_s3] sm:$0xff] %vm4789_vm4, %v3085_v13  ;;  %2601 = vst.msk [vmem:[%s4888_s3 + $0x8] sm:$0xff] %vm4789_vm4, %v3086_v21 }
 0x20a   :  { %v2495_v1 = vpop.permute.xlu0 %2494 }
 0x20b   :  { %v2511_v37 = vsel %vm527_vm1, %v4638_v55, %v2495_v1 }
 0x20c   :  { %v3087_v24 = vcombine.low %v2511_v37, %v4767_v30  ;;  %v3088_v5 = vcombine.high %v2511_v37, %v4767_v30 }
 0x20e   :  { %2602 = vst.msk [vmem:[%s4888_s3 + $0x10] sm:$0xff] %vm4789_vm4, %v3087_v24  ;;  %2603 = vst.msk [vmem:[%s4888_s3 + $0x18] sm:$0xff] %vm4789_vm4, %v3088_v5 }
 0x212   :  { %v2497_v29 = vpop.permute.xlu1 %2496 }
 0x213   :  { %v2514_v55 = vsel %vm527_vm1, %v4644_v9, %v2497_v29 }
 0x214   :  { %v3089_v33 = vcombine.low %v2514_v55, %v4773_v0  ;;  %v3090_v30 = vcombine.high %v2514_v55, %v4773_v0 }
 0x216   :  { %2604 = vst.msk [vmem:[%s4888_s3 + $0x20] sm:$0xff] %vm4789_vm4, %v3089_v33  ;;  %2605 = vst.msk [vmem:[%s4888_s3 + $0x28] sm:$0xff] %vm4789_vm4, %v3090_v30 }
 0x21a   :  { %v2499_v61 = vpop.permute.xlu1 %2498 }
 0x21b   :  { %v2517_v9 = vsel %vm527_vm1, %v4650_v18, %v2499_v61 }
 0x21c   :  { %v3091_v49 = vcombine.low %v2517_v9, %v4779_v7  ;;  %v3092_v0 = vcombine.high %v2517_v9, %v4779_v7 }
 0x21e   :  { %2606 = vst.msk [vmem:[%s4888_s3 + $0x30] sm:$0xff] %vm4789_vm4, %v3091_v49  ;;  %2607 = vst.msk [vmem:[%s4888_s3 + $0x38] sm:$0xff] %vm4789_vm4, %v3092_v0 }
 0x222   :  { %v2501_v8 = vpop.permute.xlu0 %2500 }
 0x223   :  { %v2520_v18 = vsel %vm527_vm1, %v4634_v38, %v2501_v8 }
 0x224   :  { %v3093_v35 = vcombine.low %v2520_v18, %v2482_v52  ;;  %v3094_v28 = vcombine.high %v2520_v18, %v2482_v52 }
 0x226   :  { %2608 = vst.msk [vmem:[%s4888_s3 + $0x40] sm:$0xff] %vm4789_vm4, %v3093_v35  ;;  %2609 = vst.msk [vmem:[%s4888_s3 + $0x48] sm:$0xff] %vm4789_vm4, %v3094_v28 }
 0x22a   :  { %v2503_v7 = vpop.permute.xlu1 %2502 }
 0x22b   :  { %v2523_v26 = vsel %vm527_vm1, %v4640_v56, %v2503_v7 }
 0x22c   :  { %v3095_v41 = vcombine.low %v2523_v26, %v2483_v6  ;;  %v3096_v38 = vcombine.high %v2523_v26, %v2483_v6 }
 0x22e   :  { %2610 = vst.msk [vmem:[%s4888_s3 + $0x50] sm:$0xff] %vm4789_vm4, %v3095_v41  ;;  %2611 = vst.msk [vmem:[%s4888_s3 + $0x58] sm:$0xff] %vm4789_vm4, %v3096_v38 }
 0x232   :  { %v2505_v42 = vpop.permute.xlu0 %2504 }
 0x233   :  { %v2526_v40 = vsel %vm527_vm1, %v4646_v10, %v2505_v42 }
 0x234   :  { %v3097_v22 = vcombine.low %v2526_v40, %v2484_v19  ;;  %v3098_v56 = vcombine.high %v2526_v40, %v2484_v19 }
 0x236   :  { %2612 = vst.msk [vmem:[%s4888_s3 + $0x60] sm:$0xff] %vm4789_vm4, %v3097_v22  ;;  %2613 = vst.msk [vmem:[%s4888_s3 + $0x68] sm:$0xff] %vm4789_vm4, %v3098_v56 }

// kernel: few_shot_forward.12
= control target key start
LH: loop header
LB: loop body
LE: loop exit
PB: predicated region body
PF: predicated region fallthrough
CT: control target
= control target key end

     0   :  { %vm1052_vm0 = vcmask 523264   ;;  %s7496_s1 = inlined_call_operand.vmem [shape: bf16[3,1728,128], index: 1, kind: input, shape index: {}]   ;;  %s7497_s0 = inlined_call_operand.vmem [shape: bf16[3,32,1728], index: 0, kind: input, shape index: {}]   ;;  %s7498_s2 = inlined_call_operand.vmem [shape: f32[3,1,128], index: 2, kind: input, shape index: {}]   ;;  %s7499_s3 = inlined_call_operand.vmem [shape: bf16[32,384], index: 3, kind: output, shape index: {}]  }
   0x1   :  { %v5672_v0 = vld [vmem:[%s7496_s1 + $0x40] sm:$0xff]   ;;  %v5676_v4 = vld [vmem:[%s7496_s1 + $0x48] sm:$0xff]   ;;  %v5680_v8 = vld [vmem:[%s7496_s1 + $0x50] sm:$0xff]  }
   0x2   :  { %v5673_v1 = vld [vmem:[%s7496_s1 + $0xc0] sm:$0xff]   ;;  %5167 = vmatprep.subr.bf16.mxu0 %v5672_v0  ;;  %v5677_v5 = vld [vmem:[%s7496_s1 + $0xc8] sm:$0xff]   ;;  %v5681_v9 = vld [vmem:[%s7496_s1 + $0xd0] sm:$0xff]  }
   0x3   :  { %v5674_v2 = vld [vmem:[%s7496_s1] sm:$0xff]   ;;  %5195 = vmatprep.subr.bf16.mxu1 %v5673_v1  ;;  %v5678_v6 = vld [vmem:[%s7496_s1 + $0x8] sm:$0xff]   ;;  %v5682_v10 = vld [vmem:[%s7496_s1 + $0x10] sm:$0xff]  }
   0x4   :  { %v5675_v3 = vld [vmem:[%s7496_s1 + $0x80] sm:$0xff]   ;;  %5168 = vmatpush3.bf16.msra.mxu0 %v5674_v2  ;;  %v5679_v7 = vld [vmem:[%s7496_s1 + $0x88] sm:$0xff]   ;;  %v5683_v11 = vld [vmem:[%s7496_s1 + $0x90] sm:$0xff]  }
   0x5   :  { %5196 = vmatpush3.bf16.msra.mxu1 %v5675_v3  ;;  %5169 = vmatprep.subr.bf16.mxu0 %v5676_v4  ;;  %v5684_v12 = vld [vmem:[%s7496_s1 + $0x58] sm:$0xff]   ;;  %v5688_v16 = vld [vmem:[%s7496_s1 + $0x60] sm:$0xff]   ;;  %v5692_v20 = vld [vmem:[%s7496_s1 + $0x68] sm:$0xff]  }
   0x6   :  { %5197 = vmatprep.subr.bf16.mxu1 %v5677_v5  ;;  %v5685_v13 = vld [vmem:[%s7496_s1 + $0xd8] sm:$0xff]   ;;  %v5689_v17 = vld [vmem:[%s7496_s1 + $0xe0] sm:$0xff]   ;;  %v5693_v21 = vld [vmem:[%s7496_s1 + $0xe8] sm:$0xff]  }
   0x7   :  { %v5686_v14 = vld [vmem:[%s7496_s1 + $0x18] sm:$0xff]   ;;  %v5690_v18 = vld [vmem:[%s7496_s1 + $0x20] sm:$0xff]   ;;  %v5694_v22 = vld [vmem:[%s7496_s1 + $0x28] sm:$0xff]  }
   0x8   :  { %5170 = vmatpush3.bf16.msra.mxu0 %v5678_v6  ;;  %v5687_v15 = vld [vmem:[%s7496_s1 + $0x98] sm:$0xff]   ;;  %v5691_v19 = vld [vmem:[%s7496_s1 + $0xa0] sm:$0xff]   ;;  %v5695_v23 = vld [vmem:[%s7496_s1 + $0xa8] sm:$0xff]  }
   0x9   :  { %5198 = vmatpush3.bf16.msra.mxu1 %v5679_v7  ;;  %5171 = vmatprep.subr.bf16.mxu0 %v5680_v8  ;;  %v5696_v24 = vld [vmem:[%s7496_s1 + $0x70] sm:$0xff]   ;;  %v5700_v28 = vld [vmem:[%s7496_s1 + $0x78] sm:$0xff]   ;;  %v5707_v34 = vld [vmem:[%s7497_s0 + $0x8] ss:$56 sps:$4 sm:$0xff]  }
   0xa   :  { %5199 = vmatprep.subr.bf16.mxu1 %v5681_v9  ;;  %v5697_v25 = vld [vmem:[%s7496_s1 + $0xf0] sm:$0xff]   ;;  %v5701_v29 = vld [vmem:[%s7496_s1 + $0xf8] sm:$0xff]   ;;  %v5709_v35 = vld [vmem:[%s7497_s0 + $0xc] ss:$56 sps:$4 sm:$0xff]  }
   0xb   :  { %v5698_v26 = vld [vmem:[%s7496_s1 + $0x30] sm:$0xff]   ;;  %v5702_v30 = vld [vmem:[%s7496_s1 + $0x38] sm:$0xff]   ;;  %v5710_v36 = vld [vmem:[%s7496_s1 + $0x140] sm:$0xff]   ;;  %1140 = vmatprep.mubr.bf16.mxu1 %v5709_v35 }
   0xc   :  { %5172 = vmatpush3.bf16.msra.mxu0 %v5682_v10  ;;  %v5699_v27 = vld [vmem:[%s7496_s1 + $0xb0] sm:$0xff]   ;;  %v5703_v31 = vld [vmem:[%s7496_s1 + $0xb8] sm:$0xff]   ;;  %v5711_v37 = vld [vmem:[%s7496_s1 + $0x1c0] sm:$0xff]  }
   0xd   :  { %5200 = vmatpush3.bf16.msra.mxu1 %v5683_v11  ;;  %5173 = vmatprep.subr.bf16.mxu0 %v5684_v12  ;;  %v5704_v32 = vld [vmem:[%s7497_s0] ss:$56 sps:$4 sm:$0xff]   ;;  %v5706_v33 = vld [vmem:[%s7497_s0 + $0x4] ss:$56 sps:$4 sm:$0xff]   ;;  %v5714_v40 = vld [vmem:[%s7496_s1 + $0x148] sm:$0xff]  }
   0xe   :  { %5201 = vmatprep.subr.bf16.mxu1 %v5685_v13  ;;  %1091 = vmatprep.mubr.bf16.mxu0 %v5706_v33  ;;  %v5712_v38 = vld [vmem:[%s7496_s1 + $0x100] sm:$0xff]   ;;  %v5715_v41 = vld [vmem:[%s7496_s1 + $0x1c8] sm:$0xff]   ;;  %v5718_v44 = vld [vmem:[%s7496_s1 + $0x150] sm:$0xff]  }
   0xf   :  { %v5713_v39 = vld [vmem:[%s7496_s1 + $0x180] sm:$0xff]   ;;  %v5716_v42 = vld [vmem:[%s7496_s1 + $0x108] sm:$0xff]   ;;  %v5719_v45 = vld [vmem:[%s7496_s1 + $0x1d0] sm:$0xff]  }
  0x10   :  { %5174 = vmatpush3.bf16.msra.mxu0 %v5686_v14  ;;  %v5717_v43 = vld [vmem:[%s7496_s1 + $0x188] sm:$0xff]   ;;  %v5720_v46 = vld [vmem:[%s7496_s1 + $0x110] sm:$0xff]   ;;  %v5722_v48 = vld [vmem:[%s7496_s1 + $0x158] sm:$0xff]  }
  0x11   :  { %5202 = vmatpush3.bf16.msra.mxu1 %v5687_v15  ;;  %5175 = vmatprep.subr.bf16.mxu0 %v5688_v16  ;;  %v5721_v47 = vld [vmem:[%s7496_s1 + $0x190] sm:$0xff]   ;;  %v5723_v49 = vld [vmem:[%s7496_s1 + $0x1d8] sm:$0xff]   ;;  %v5726_v52 = vld [vmem:[%s7496_s1 + $0x160] sm:$0xff]  }
  0x12   :  { %5203 = vmatprep.subr.bf16.mxu1 %v5689_v17  ;;  %v5724_v50 = vld [vmem:[%s7496_s1 + $0x118] sm:$0xff]   ;;  %v5727_v53 = vld [vmem:[%s7496_s1 + $0x1e0] sm:$0xff]   ;;  %v5730_v56 = vld [vmem:[%s7497_s0 + $0x74] ss:$56 sps:$4 sm:$0xff]  }
  0x13   :  { %v5725_v51 = vld [vmem:[%s7496_s1 + $0x198] sm:$0xff]   ;;  %v5728_v54 = vld [vmem:[%s7496_s1 + $0x120] sm:$0xff]   ;;  %v5732_v57 = vld [vmem:[%s7497_s0 + $0x70] ss:$56 sps:$4 sm:$0xff]  }
  0x14   :  { %5176 = vmatpush3.bf16.msra.mxu0 %v5690_v18  ;;  %v5729_v55 = vld [vmem:[%s7496_s1 + $0x1a0] sm:$0xff]   ;;  %v5733_v58 = vld [vmem:[%s7496_s1 + $0x168] sm:$0xff]   ;;  %v5735_v60 = vld [vmem:[%s7497_s0 + $0x7c] ss:$56 sps:$4 sm:$0xff]  }
  0x15   :  { %5204 = vmatpush3.bf16.msra.mxu1 %v5691_v19  ;;  %5177 = vmatprep.subr.bf16.mxu0 %v5692_v20  ;;  %v5734_v59 = vld [vmem:[%s7496_s1 + $0x1e8] sm:$0xff]   ;;  %v5739_v63 = vld [vmem:[%s7497_s0 + $0x78] ss:$56 sps:$4 sm:$0xff]   ;;  %v5753_v11 = vld [vmem:[%s7497_s0 + $0x1c] ss:$56 sps:$4 sm:$0xff]  }
  0x16   :  { %5205 = vmatprep.subr.bf16.mxu1 %v5693_v21  ;;  %v5737_v61 = vld [vmem:[%s7496_s1 + $0x128] sm:$0xff]   ;;  %v5740_v0 = vld [vmem:[%s7496_s1 + $0x170] sm:$0xff]   ;;  %v5744_v4 = vld [vmem:[%s7496_s1 + $0x178] sm:$0xff]  }
  0x17   :  { %v5738_v62 = vld [vmem:[%s7496_s1 + $0x1a8] sm:$0xff]   ;;  %v5741_v1 = vld [vmem:[%s7496_s1 + $0x1f0] sm:$0xff]   ;;  %v5745_v5 = vld [vmem:[%s7496_s1 + $0x1f8] sm:$0xff]  }
  0x18   :  { %5178 = vmatpush3.bf16.msra.mxu0 %v5694_v22  ;;  %v5742_v2 = vld [vmem:[%s7496_s1 + $0x130] sm:$0xff]   ;;  %v5746_v6 = vld [vmem:[%s7496_s1 + $0x138] sm:$0xff]   ;;  %v5754_v12 = vld [vmem:[%s7496_s1 + $0x240] sm:$0xff]  }
  0x19   :  { %5206 = vmatpush3.bf16.msra.mxu1 %v5695_v23  ;;  %5179 = vmatprep.subr.bf16.mxu0 %v5696_v24  ;;  %v5743_v3 = vld [vmem:[%s7496_s1 + $0x1b0] sm:$0xff]   ;;  %v5747_v7 = vld [vmem:[%s7496_s1 + $0x1b8] sm:$0xff]   ;;  %v5755_v13 = vld [vmem:[%s7496_s1 + $0x2c0] sm:$0xff]  }
  0x1a   :  { %5207 = vmatprep.subr.bf16.mxu1 %v5697_v25  ;;  %v5748_v8 = vld [vmem:[%s7497_s0 + $0x10] ss:$56 sps:$4 sm:$0xff]   ;;  %v5750_v9 = vld [vmem:[%s7497_s0 + $0x14] ss:$56 sps:$4 sm:$0xff]   ;;  %v5756_v14 = vld [vmem:[%s7496_s1 + $0x200] sm:$0xff]  }
  0x1b   :  { %v5751_v10 = vld [vmem:[%s7497_s0 + $0x18] ss:$56 sps:$4 sm:$0xff]   ;;  %v5757_v15 = vld [vmem:[%s7496_s1 + $0x280] sm:$0xff]   ;;  %v5758_v16 = vld [vmem:[%s7496_s1 + $0x248] sm:$0xff]  }
  0x1c   :  { %5180 = vmatpush3.bf16.msra.mxu0 %v5698_v26  ;;  %v5759_v17 = vld [vmem:[%s7496_s1 + $0x2c8] sm:$0xff]   ;;  %v5762_v20 = vld [vmem:[%s7497_s0 + $0x84] ss:$56 sps:$4 sm:$0xff]   ;;  %v5764_v21 = vld [vmem:[%s7497_s0 + $0x80] ss:$56 sps:$4 sm:$0xff]  }
  0x1d   :  { %5208 = vmatpush3.bf16.msra.mxu1 %v5699_v27  ;;  %5181 = vmatprep.subr.bf16.mxu0 %v5700_v28  ;;  %v5760_v18 = vld [vmem:[%s7496_s1 + $0x208] sm:$0xff]   ;;  %v5765_v22 = vld [vmem:[%s7496_s1 + $0x250] sm:$0xff]   ;;  %v5772_v28 = vld [vmem:[%s7496_s1 + $0x258] sm:$0xff]  }
  0x1e   :  { %5209 = vmatprep.subr.bf16.mxu1 %v5701_v29  ;;  %v5761_v19 = vld [vmem:[%s7496_s1 + $0x288] sm:$0xff]   ;;  %v5766_v23 = vld [vmem:[%s7496_s1 + $0x2d0] sm:$0xff]   ;;  %v5773_v29 = vld [vmem:[%s7496_s1 + $0x2d8] sm:$0xff]  }
  0x1f   :  { %v5767_v24 = vld [vmem:[%s7497_s0 + $0x8c] ss:$56 sps:$4 sm:$0xff]   ;;  %v5769_v25 = vld [vmem:[%s7496_s1 + $0x210] sm:$0xff]   ;;  %v5771_v27 = vld [vmem:[%s7497_s0 + $0x88] ss:$56 sps:$4 sm:$0xff]  }
  0x20   :  { %5182 = vmatpush3.bf16.msra.mxu0 %v5702_v30  ;;  %v5770_v26 = vld [vmem:[%s7496_s1 + $0x290] sm:$0xff]   ;;  %v5774_v30 = vld [vmem:[%s7496_s1 + $0x218] sm:$0xff]   ;;  %v5777_v33 = vld [vmem:[%s7496_s1 + $0x2e0] sm:$0xff]  }
  0x21   :  { %5210 = vmatpush3.bf16.msra.mxu1 %v5703_v31  ;;  %5223 = vmatprep.subr.bf16.mxu0 %v5710_v36  ;;  %v5775_v31 = vld [vmem:[%s7496_s1 + $0x298] sm:$0xff]   ;;  %v5779_v35 = vld [vmem:[%s7496_s1 + $0x2a0] sm:$0xff]   ;;  %v5780_v36 = vld [vmem:[%s7496_s1 + $0x268] sm:$0xff]  }
  0x22   :  { %5251 = vmatprep.subr.bf16.mxu1 %v5711_v37  ;;  %v5781_v37 = vld [vmem:[%s7496_s1 + $0x2e8] sm:$0xff]  }
  0x23   :  { %1092 = vmatmul.mubr.bf16.vlgmr.msra.gmra.mrb[0].mxu0 %v5704_v32  ;;  %v5776_v32 = vld [vmem:[%s7496_s1 + $0x260] sm:$0xff]  }
  0x24   :  { %1141 = vmatmul.mubr.bf16.vlgmr.msra.gmra.mrb[0].mxu1 %v5707_v34  ;;  %5224 = vmatpush3.bf16.msra.mxu0 %v5712_v38  ;;  %v5778_v34 = vld [vmem:[%s7496_s1 + $0x220] sm:$0xff]   ;;  %v5782_v38 = vld [vmem:[%s7496_s1 + $0x228] sm:$0xff]  }
  0x25   :  { %5252 = vmatpush3.bf16.msra.mxu1 %v5713_v39  ;;  %5225 = vmatprep.subr.bf16.mxu0 %v5714_v40  ;;  %v5783_v39 = vld [vmem:[%s7496_s1 + $0x2a8] sm:$0xff]   ;;  %v5784_v40 = vld [vmem:[%s7496_s1 + $0x270] sm:$0xff]  }
  0x26   :  { %5253 = vmatprep.subr.bf16.mxu1 %v5715_v41  ;;  %1099 = vmatprep.mubr.bf16.mxu0 %v5730_v56  ;;  %v5785_v41 = vld [vmem:[%s7496_s1 + $0x2f0] sm:$0xff]   ;;  %v5801_v56 = vld [vmem:[%s7496_s1 + $0x3a8] sm:$0xff]  }
  0x27   :  { %1148 = vmatprep.mubr.bf16.mxu1 %v5735_v60  ;;  %v5806_v60 = vld [vmem:[%s7497_s0 + $0x90] ss:$56 sps:$4 sm:$0xff]  }
  0x28   :  { %5226 = vmatpush3.bf16.msra.mxu0 %v5716_v42  ;;  %v5786_v42 = vld [vmem:[%s7496_s1 + $0x230] sm:$0xff]  }
  0x29   :  { %5254 = vmatpush3.bf16.msra.mxu1 %v5717_v43  ;;  %5227 = vmatprep.subr.bf16.mxu0 %v5718_v44  ;;  %v5787_v43 = vld [vmem:[%s7496_s1 + $0x2b0] sm:$0xff]   ;;  %v5788_v44 = vld [vmem:[%s7496_s1 + $0x278] sm:$0xff]  }
  0x2a   :  { %5255 = vmatprep.subr.bf16.mxu1 %v5719_v45  ;;  %v5789_v45 = vld [vmem:[%s7496_s1 + $0x2f8] sm:$0xff]  }
  0x2b   :  { %1100 = vmatmul.mubr.bf16.gmra.mrb[4].mxu0 %v5732_v57  ;;  %v5802_v57 = vld [vmem:[%s7496_s1 + $0x308] sm:$0xff]  }
  0x2c   :  { %5228 = vmatpush3.bf16.msra.mxu0 %v5720_v46  ;;  %1149 = vmatmul.mubr.bf16.gmra.mrb[4].mxu1 %v5739_v63  ;;  %v5790_v46 = vld [vmem:[%s7496_s1 + $0x238] sm:$0xff]   ;;  %v5810_v63 = vld [vmem:[%s7496_s1 + $0x310] sm:$0xff]  }
  0x2d   :  { %5256 = vmatpush3.bf16.msra.mxu1 %v5721_v47  ;;  %5229 = vmatprep.subr.bf16.mxu0 %v5722_v48  ;;  %v5791_v47 = vld [vmem:[%s7496_s1 + $0x2b8] sm:$0xff]  }
  0x2e   :  { %5257 = vmatprep.subr.bf16.mxu1 %v5723_v49  ;;  %1189 = vmatprep.mubr.bf16.mxu0 %v5750_v9  ;;  %v5792_v48 = vld [vmem:[%s7497_s0 + $0x20] ss:$56 sps:$4 sm:$0xff]   ;;  %v5794_v49 = vld [vmem:[%s7497_s0 + $0x24] ss:$56 sps:$4 sm:$0xff]   ;;  %v5820_v9 = vld [vmem:[%s7496_s1 + $0x328] sm:$0xff]  }
  0x2f   :  { %1238 = vmatprep.mubr.bf16.mxu1 %v5753_v11  ;;  %v5822_v11 = vld [vmem:[%s7496_s1 + $0x3d0] sm:$0xff]  }
  0x30   :  { %5230 = vmatpush3.bf16.msra.mxu0 %v5724_v50  ;;  %v5795_v50 = vld [vmem:[%s7497_s0 + $0x28] ss:$56 sps:$4 sm:$0xff]  }
  0x31   :  { %5258 = vmatpush3.bf16.msra.mxu1 %v5725_v51  ;;  %5231 = vmatprep.subr.bf16.mxu0 %v5726_v52  ;;  %v6122_v51 = vmov 0   ;;  %v5797_v52 = vld [vmem:[%s7497_s0 + $0x2c] ss:$56 sps:$4 sm:$0xff]  }
  0x32   :  { %5259 = vmatprep.subr.bf16.mxu1 %v5727_v53  ;;  %v5798_v53 = vld [vmem:[%s7496_s1 + $0x3a0] sm:$0xff]  }
  0x34   :  { %5232 = vmatpush3.bf16.msra.mxu0 %v5728_v54  ;;  %v5799_v54 = vld [vmem:[%s7496_s1 + $0x300] sm:$0xff]  }
  0x35   :  { %5260 = vmatpush3.bf16.msra.mxu1 %v5729_v55  ;;  %5233 = vmatprep.subr.bf16.mxu0 %v5733_v58  ;;  %v5800_v55 = vld [vmem:[%s7496_s1 + $0x360] sm:$0xff]   ;;  %v5803_v58 = vld [vmem:[%s7496_s1 + $0x368] sm:$0xff]  }
  0x36   :  { %5261 = vmatprep.subr.bf16.mxu1 %v5734_v59  ;;  %v5804_v59 = vld [vmem:[%s7497_s0 + $0x94] ss:$56 sps:$4 sm:$0xff]  }
  0x38   :  { %5234 = vmatpush3.bf16.msra.mxu0 %v5737_v61  ;;  %v5807_v61 = vld [vmem:[%s7496_s1 + $0x3b0] sm:$0xff]  }
  0x39   :  { %5262 = vmatpush3.bf16.msra.mxu1 %v5738_v62  ;;  %5235 = vmatprep.subr.bf16.mxu0 %v5740_v0  ;;  %v5808_v62 = vld [vmem:[%s7497_s0 + $0x9c] ss:$56 sps:$4 sm:$0xff]  }
  0x3a   :  { %5263 = vmatprep.subr.bf16.mxu1 %v5741_v1  ;;  %v5811_v0 = vld [vmem:[%s7496_s1 + $0x370] sm:$0xff]  }
  0x3b   :  { %v5812_v1 = vld [vmem:[%s7497_s0 + $0x98] ss:$56 sps:$4 sm:$0xff]  }
  0x3c   :  { %5236 = vmatpush3.bf16.msra.mxu0 %v5742_v2  ;;  %v5813_v2 = vld [vmem:[%s7496_s1 + $0x3b8] sm:$0xff]  }
  0x3d   :  { %5264 = vmatpush3.bf16.msra.mxu1 %v5743_v3  ;;  %5237 = vmatprep.subr.bf16.mxu0 %v5744_v4  ;;  %v5814_v3 = vld [vmem:[%s7496_s1 + $0x318] sm:$0xff]  }
  0x3e   :  { %5265 = vmatprep.subr.bf16.mxu1 %v5745_v5  ;;  %v5815_v4 = vld [vmem:[%s7496_s1 + $0x378] sm:$0xff]   ;;  %v5816_v5 = vld [vmem:[%s7496_s1 + $0x3c0] sm:$0xff]  }
  0x40   :  { %5238 = vmatpush3.bf16.msra.mxu0 %v5746_v6  ;;  %v5817_v6 = vld [vmem:[%s7496_s1 + $0x320] sm:$0xff]  }
  0x41   :  { %5266 = vmatpush3.bf16.msra.mxu1 %v5747_v7  ;;  %5279 = vmatprep.subr.bf16.mxu0 %v5754_v12  ;;  %v5818_v7 = vld [vmem:[%s7496_s1 + $0x380] sm:$0xff]   ;;  %v5823_v12 = vld [vmem:[%s7496_s1 + $0x330] sm:$0xff]  }
  0x42   :  { %5307 = vmatprep.subr.bf16.mxu1 %v5755_v13  ;;  %v5824_v13 = vld [vmem:[%s7496_s1 + $0x390] sm:$0xff]  }
  0x43   :  { %1190 = vmatmul.mubr.bf16.vlgmr.msra.gmra.mrb[8].mxu0 %v5748_v8  ;;  %v5819_v8 = vld [vmem:[%s7496_s1 + $0x3c8] sm:$0xff]  }
  0x44   :  { %1239 = vmatmul.mubr.bf16.vlgmr.msra.gmra.mrb[8].mxu1 %v5751_v10  ;;  %5280 = vmatpush3.bf16.msra.mxu0 %v5756_v14  ;;  %v5821_v10 = vld [vmem:[%s7496_s1 + $0x388] sm:$0xff]   ;;  %v5825_v14 = vld [vmem:[%s7496_s1 + $0x3d8] sm:$0xff]  }
  0x45   :  { %5308 = vmatpush3.bf16.msra.mxu1 %v5757_v15  ;;  %5281 = vmatprep.subr.bf16.mxu0 %v5758_v16  ;;  %v5826_v15 = vld [vmem:[%s7496_s1 + $0x338] sm:$0xff]  }
  0x46   :  { %5309 = vmatprep.subr.bf16.mxu1 %v5759_v17  ;;  %1197 = vmatprep.mubr.bf16.mxu0 %v5762_v20  ;;  %v5830_v16 = vld [vmem:[%s7497_s0 + $0xe4] ss:$56 sps:$4 sm:$0xff]  }
  0x47   :  { %1246 = vmatprep.mubr.bf16.mxu1 %v5767_v24  ;;  %v5827_v17 = vld [vmem:[%s7496_s1 + $0x398] sm:$0xff]   ;;  %v5832_v20 = vld [vmem:[%s7496_s1 + $0x340] sm:$0xff]   ;;  %v5836_v24 = vld [vmem:[%s7496_s1 + $0x3e8] sm:$0xff]  }
  0x48   :  { %5282 = vmatpush3.bf16.msra.mxu0 %v5760_v18  ;;  %v5831_v18 = vld [vmem:[%s7496_s1 + $0x420] sm:$0xff]  }
  0x49   :  { %5310 = vmatpush3.bf16.msra.mxu1 %v5761_v19  ;;  %5283 = vmatprep.subr.bf16.mxu0 %v5765_v22  ;;  %v5828_v19 = vld [vmem:[%s7497_s0 + $0xe0] ss:$56 sps:$4 sm:$0xff]   ;;  %v5834_v22 = vld [vmem:[%s7496_s1 + $0x428] sm:$0xff]  }
  0x4a   :  { %5311 = vmatprep.subr.bf16.mxu1 %v5766_v23  ;;  %v5835_v23 = vld [vmem:[%s7496_s1 + $0x348] sm:$0xff]  }
  0x4b   :  { %1198 = vmatmul.mubr.bf16.gmra.mrb[12].mxu0 %v5764_v21  ;;  %v5833_v21 = vld [vmem:[%s7496_s1 + $0x3e0] sm:$0xff]  }
  0x4c   :  { %5284 = vmatpush3.bf16.msra.mxu0 %v5769_v25  ;;  %1247 = vmatmul.mubr.bf16.gmra.mrb[12].mxu1 %v5771_v27  ;;  %v5837_v25 = vld [vmem:[%s7496_s1 + $0x430] sm:$0xff]  }
  0x4d   :  { %5312 = vmatpush3.bf16.msra.mxu1 %v5770_v26  ;;  %5285 = vmatprep.subr.bf16.mxu0 %v5772_v28  ;;  %v5838_v26 = vld [vmem:[%s7496_s1 + $0x350] sm:$0xff]  }
  0x4e   :  { %5313 = vmatprep.subr.bf16.mxu1 %v5773_v29  ;;  %1287 = vmatprep.mubr.bf16.mxu0 %v5794_v49  ;;  %v5839_v27 = vld [vmem:[%s7496_s1 + $0x3f0] sm:$0xff]   ;;  %v5840_v29 = vld [vmem:[%s7496_s1 + $0x438] sm:$0xff]  }
  0x4f   :  { %1336 = vmatprep.mubr.bf16.mxu1 %v5797_v52  ;;  %v5845_v28 = vld [vmem:[%s7497_s0 + $0x34] ss:$56 sps:$4 sm:$0xff]   ;;  %v5864_v49 = vld [vmem:[%s7496_s1 + $0x458] sm:$0xff]  }
  0x50   :  { %5286 = vmatpush3.bf16.msra.mxu0 %v5774_v30  ;;  %v5841_v30 = vld [vmem:[%s7496_s1 + $0x358] sm:$0xff]  }
  0x51   :  { %5314 = vmatpush3.bf16.msra.mxu1 %v5775_v31  ;;  %5287 = vmatprep.subr.bf16.mxu0 %v5776_v32  ;;  %v5842_v31 = vld [vmem:[%s7496_s1 + $0x3f8] sm:$0xff]   ;;  %v5843_v32 = vld [vmem:[%s7497_s0 + $0x30] ss:$56 sps:$4 sm:$0xff]  }
  0x52   :  { %5315 = vmatprep.subr.bf16.mxu1 %v5777_v33  ;;  %v5847_v33 = vld [vmem:[%s7496_s1 + $0x4a0] sm:$0xff]   ;;  %v5867_v52 = vld [vmem:[%s7496_s1 + $0x478] sm:$0xff]  }
  0x54   :  { %5288 = vmatpush3.bf16.msra.mxu0 %v5778_v34  ;;  %v5846_v34 = vld [vmem:[%s7496_s1 + $0x440] sm:$0xff]  }
  0x55   :  { %5316 = vmatpush3.bf16.msra.mxu1 %v5779_v35  ;;  %5289 = vmatprep.subr.bf16.mxu0 %v5780_v36  ;;  %v5848_v35 = vld [vmem:[%s7496_s1 + $0x400] sm:$0xff]  }
  0x56   :  { %5317 = vmatprep.subr.bf16.mxu1 %v5781_v37  ;;  %v5849_v36 = vld [vmem:[%s7496_s1 + $0x460] sm:$0xff]   ;;  %v5852_v37 = vld [vmem:[%s7497_s0 + $0x154] ss:$56 sps:$4 sm:$0xff]  }
  0x58   :  { %5290 = vmatpush3.bf16.msra.mxu0 %v5782_v38  ;;  %v5851_v38 = vld [vmem:[%s7496_s1 + $0x4a8] sm:$0xff]  }
  0x59   :  { %5318 = vmatpush3.bf16.msra.mxu1 %v5783_v39  ;;  %5291 = vmatprep.subr.bf16.mxu0 %v5784_v40  ;;  %v5850_v39 = vld [vmem:[%s7496_s1 + $0x448] sm:$0xff]  }
  0x5a   :  { %5319 = vmatprep.subr.bf16.mxu1 %v5785_v41  ;;  %v5856_v40 = vld [vmem:[%s7497_s0 + $0x150] ss:$56 sps:$4 sm:$0xff]  }
  0x5b   :  { %v5854_v41 = vld [vmem:[%s7496_s1 + $0x408] sm:$0xff]  }
  0x5c   :  { %5292 = vmatpush3.bf16.msra.mxu0 %v5786_v42  ;;  %v5857_v42 = vld [vmem:[%s7497_s0 + $0xa4] ss:$56 sps:$4 sm:$0xff]  }
  0x5d   :  { %5320 = vmatpush3.bf16.msra.mxu1 %v5787_v43  ;;  %5293 = vmatprep.subr.bf16.mxu0 %v5788_v44  ;;  %v5855_v43 = vld [vmem:[%s7496_s1 + $0x468] sm:$0xff]   ;;  %v5859_v44 = vld [vmem:[%s7497_s0 + $0xa0] ss:$56 sps:$4 sm:$0xff]  }
  0x5e   :  { %5321 = vmatprep.subr.bf16.mxu1 %v5789_v45  ;;  %v5860_v45 = vld [vmem:[%s7496_s1 + $0x450] sm:$0xff]  }
  0x60   :  { %5294 = vmatpush3.bf16.msra.mxu0 %v5790_v46  ;;  %v5861_v46 = vld [vmem:[%s7496_s1 + $0x4b0] sm:$0xff]  }
  0x61   :  { %5322 = vmatpush3.bf16.msra.mxu1 %v5791_v47  ;;  %1353 = vmatprep.subr.bf16.mxu0 %v6122_v51  ;;  %v5862_v47 = vld [vmem:[%s7496_s1 + $0x410] sm:$0xff]  }
  0x62   :  { %5335 = vmatprep.subr.bf16.mxu1 %v5798_v53  ;;  %v5866_v53 = vld [vmem:[%s7496_s1 + $0x418] sm:$0xff]  }
  0x63   :  { %1288 = vmatmul.mubr.bf16.vlgmr.msra.gmra.mrb[16].mxu0 %v5792_v48  ;;  %v5863_v48 = vld [vmem:[%s7496_s1 + $0x470] sm:$0xff]  }
  0x64   :  { %1337 = vmatmul.mubr.bf16.vlgmr.msra.gmra.mrb[16].mxu1 %v5795_v50  ;;  %1354 = vmatpush1.bf16.msra.mxu0 %v5799_v54  ;;  %v5865_v50 = vld [vmem:[%s7496_s1 + $0x4b8] sm:$0xff]   ;;  %v5870_v54 = vld [vmem:[%s7497_s0 + $0xec] ss:$56 sps:$4 sm:$0xff]  }
  0x65   :  { %5336 = vmatpush3.bf16.msra.mxu1 %v5800_v55  ;;  %1355 = vmatprep.subr.bf16.mxu0 %v6122_v51  ;;  %v5868_v55 = vld [vmem:[%s7497_s0 + $0xe8] ss:$56 sps:$4 sm:$0xff]  }
  0x66   :  { %5337 = vmatprep.subr.bf16.mxu1 %v5801_v56  ;;  %1295 = vmatprep.mubr.bf16.mxu0 %v5804_v59  ;;  %v5871_v56 = vld [vmem:[%s7496_s1 + $0x4c0] sm:$0xff]  }
  0x67   :  { %1344 = vmatprep.mubr.bf16.mxu1 %v5808_v62  ;;  %v5874_v59 = vld [vmem:[%s7496_s1 + $0x4e0] sm:$0xff]   ;;  %v5877_v62 = vld [vmem:[%s7496_s1 + $0x488] sm:$0xff]  }
  0x68   :  { %1356 = vmatpush1.bf16.msra.mxu0 %v5802_v57  ;;  %v5872_v57 = vld [vmem:[%s7496_s1 + $0x520] sm:$0xff]  }
  0x69   :  { %5338 = vmatpush3.bf16.msra.mxu1 %v5803_v58  ;;  %1357 = vmatprep.subr.bf16.mxu0 %v6122_v51  ;;  %v5873_v58 = vld [vmem:[%s7496_s1 + $0x480] sm:$0xff]  }
  0x6a   :  { %5339 = vmatprep.subr.bf16.mxu1 %v5807_v61  ;;  %v5876_v61 = vld [vmem:[%s7496_s1 + $0x528] sm:$0xff]  }
  0x6b   :  { %1296 = vmatmul.mubr.bf16.gmra.mrb[20].mxu0 %v5806_v60  ;;  %v5875_v60 = vld [vmem:[%s7496_s1 + $0x4c8] sm:$0xff]  }
  0x6c   :  { %1358 = vmatpush1.bf16.msra.mxu0 %v5810_v63  ;;  %1345 = vmatmul.mubr.bf16.gmra.mrb[20].mxu1 %v5812_v1  ;;  %v5878_v63 = vld [vmem:[%s7496_s1 + $0x4e8] sm:$0xff]   ;;  %v5881_v1 = vld [vmem:[%s7497_s0 + $0x158] ss:$56 sps:$4 sm:$0xff]  }
  0x6d   :  { %5340 = vmatpush3.bf16.msra.mxu1 %v5811_v0  ;;  %1359 = vmatprep.subr.bf16.mxu0 %v6122_v51  ;;  %v5879_v0 = vld [vmem:[%s7497_s0 + $0x15c] ss:$56 sps:$4 sm:$0xff]  }
  0x6e   :  { %5341 = vmatprep.subr.bf16.mxu1 %v5813_v2  ;;  %2486 = vmatprep.mubr.bf16.mxu1 %v5830_v16  ;;  %v5882_v2 = vld [vmem:[%s7496_s1 + $0x4d0] sm:$0xff]   ;;  %v5897_v16 = vld [vmem:[%s7496_s1 + $0x548] sm:$0xff]  }
  0x6f   :  { %4381 = vmatprep.mubr.msk.bf16.mxu0 %vm1052_vm0, %v5845_v28  ;;  %v5910_v28 = vld [vmem:[%s7496_s1 + $0x518] sm:$0xff]  }
  0x70   :  { %1360 = vmatpush1.bf16.msra.mxu0 %v5814_v3  ;;  %v5883_v3 = vld [vmem:[%s7496_s1 + $0x530] sm:$0xff]  }
  0x71   :  { %5342 = vmatpush3.bf16.msra.mxu1 %v5815_v4  ;;  %1361 = vmatprep.subr.bf16.mxu0 %v6122_v51  ;;  %v5884_v4 = vld [vmem:[%s7496_s1 + $0x490] sm:$0xff]  }
  0x72   :  { %5343 = vmatprep.subr.bf16.mxu1 %v5816_v5  ;;  %v5885_v5 = vld [vmem:[%s7496_s1 + $0x4f0] sm:$0xff]  }
  0x74   :  { %1362 = vmatpush1.bf16.msra.mxu0 %v5817_v6  ;;  %v5886_v6 = vld [vmem:[%s7496_s1 + $0x4d8] sm:$0xff]  }
  0x75   :  { %5344 = vmatpush3.bf16.msra.mxu1 %v5818_v7  ;;  %1363 = vmatprep.subr.bf16.mxu0 %v6122_v51  ;;  %v5887_v7 = vld [vmem:[%s7496_s1 + $0x538] sm:$0xff]  }
  0x76   :  { %5345 = vmatprep.subr.bf16.mxu1 %v5819_v8  ;;  %v5888_v8 = vld [vmem:[%s7496_s1 + $0x498] sm:$0xff]  }
  0x78   :  { %1364 = vmatpush1.bf16.msra.mxu0 %v5820_v9  ;;  %v5889_v9 = vld [vmem:[%s7496_s1 + $0x4f8] sm:$0xff]  }
  0x79   :  { %5346 = vmatpush3.bf16.msra.mxu1 %v5821_v10  ;;  %1365 = vmatprep.subr.bf16.mxu0 %v6122_v51  ;;  %v5890_v10 = vld [vmem:[%s7497_s0 + $0xf0] ss:$56 sps:$4 sm:$0xff]  }
  0x7a   :  { %5347 = vmatprep.subr.bf16.mxu1 %v5822_v11  ;;  %v5892_v11 = vld [vmem:[%s7497_s0 + $0xf4] ss:$56 sps:$4 sm:$0xff]  }
  0x7c   :  { %1366 = vmatpush1.bf16.msra.mxu0 %v5823_v12  ;;  %v5893_v12 = vld [vmem:[%s7496_s1 + $0x540] sm:$0xff]  }
  0x7d   :  { %5348 = vmatpush3.bf16.msra.mxu1 %v5824_v13  ;;  %1367 = vmatprep.subr.bf16.mxu0 %v6122_v51  ;;  %v5894_v13 = vld [vmem:[%s7496_s1 + $0x5a0] sm:$0xff]  }
  0x7e   :  { %5349 = vmatprep.subr.bf16.mxu1 %v5825_v14  ;;  %v5895_v14 = vld [vmem:[%s7496_s1 + $0x500] sm:$0xff]  }
  0x80   :  { %1368 = vmatpush1.bf16.msra.mxu0 %v5826_v15  ;;  %v5896_v15 = vld [vmem:[%s7496_s1 + $0x560] sm:$0xff]  }
  0x81   :  { %5350 = vmatpush3.bf16.msra.mxu1 %v5827_v17  ;;  %1369 = vmatprep.subr.bf16.mxu0 %v6122_v51  ;;  %v5898_v17 = vld [vmem:[%s7496_s1 + $0x5a8] sm:$0xff]  }
  0x82   :  { %5363 = vmatprep.subr.bf16.mxu1 %v5831_v18  ;;  %v5899_v18 = vld [vmem:[%s7496_s1 + $0x508] sm:$0xff]  }
  0x84   :  { %2487 = vmatmul.mubr.bf16.vlgmr.msra.gmra.mrb[24].mxu1 %v5828_v19  ;;  %1370 = vmatpush1.bf16.msra.mxu0 %v5832_v20  ;;  %v5900_v19 = vld [vmem:[%s7496_s1 + $0x568] sm:$0xff]   ;;  %v5901_v20 = vld [vmem:[%s7497_s0 + $0x164] ss:$56 sps:$4 sm:$0xff]  }
  0x85   :  { %5364 = vmatpush3.bf16.msra.mxu1 %v5833_v21  ;;  %1371 = vmatprep.subr.bf16.mxu0 %v6122_v51  ;;  %v5903_v21 = vld [vmem:[%s7497_s0 + $0x160] ss:$56 sps:$4 sm:$0xff]  }
  0x86   :  { %5365 = vmatprep.subr.bf16.mxu1 %v5834_v22  ;;  %2494 = vmatprep.mubr.bf16.mxu1 %v5852_v37  ;;  %v5904_v22 = vld [vmem:[%s7496_s1 + $0x550] sm:$0xff]   ;;  %v5920_v37 = vld [vmem:[%s7496_s1 + $0x628] sm:$0xff]  }
  0x88   :  { %1372 = vmatpush1.bf16.msra.mxu0 %v5835_v23  ;;  %v5905_v23 = vld [vmem:[%s7496_s1 + $0x5b0] sm:$0xff]  }
  0x89   :  { %5366 = vmatpush3.bf16.msra.mxu1 %v5836_v24  ;;  %1373 = vmatprep.subr.bf16.mxu0 %v6122_v51  ;;  %v5906_v24 = vld [vmem:[%s7496_s1 + $0x510] sm:$0xff]  }
  0x8a   :  { %5367 = vmatprep.subr.bf16.mxu1 %v5837_v25  ;;  %v5907_v25 = vld [vmem:[%s7496_s1 + $0x570] sm:$0xff]  }
  0x8c   :  { %1374 = vmatpush1.bf16.msra.mxu0 %v5838_v26  ;;  %2495 = vmatmul.mubr.bf16.gmra.mrb[28].mxu1 %v5856_v40  ;;  %v5908_v26 = vld [vmem:[%s7496_s1 + $0x558] sm:$0xff]   ;;  %v5923_v40 = vld [vmem:[%s7497_s0 + $0x16c] ss:$56 sps:$4 sm:$0xff]  }
  0x8d   :  { %5368 = vmatpush3.bf16.msra.mxu1 %v5839_v27  ;;  %1375 = vmatprep.subr.bf16.mxu0 %v6122_v51  ;;  %v5909_v27 = vld [vmem:[%s7496_s1 + $0x5b8] sm:$0xff]  }
  0x8e   :  { %5369 = vmatprep.subr.bf16.mxu1 %v5840_v29  ;;  %2535 = vmatprep.mubr.bf16.mxu1 %v5870_v54  ;;  %v5911_v29 = vld [vmem:[%s7496_s1 + $0x578] sm:$0xff]   ;;  %v5938_v54 = vld [vmem:[%s7496_s1 + $0x600] sm:$0xff]  }
  0x90   :  { %1376 = vmatpush1.bf16.msra.mxu0 %v5841_v30  ;;  %v5912_v30 = vld [vmem:[%s7497_s0 + $0xf8] ss:$56 sps:$4 sm:$0xff]  }
  0x91   :  { %5370 = vmatpush3.bf16.msra.mxu1 %v5842_v31  ;;  %5391 = vmatprep.subr.bf16.mxu0 %v5847_v33  ;;  %v5914_v31 = vld [vmem:[%s7497_s0 + $0xfc] ss:$56 sps:$4 sm:$0xff]   ;;  %v5916_v33 = vld [vmem:[%s7496_s1 + $0x620] sm:$0xff]  }
  0x92   :  { %5371 = vmatprep.subr.bf16.mxu1 %v5846_v34  ;;  %v5917_v34 = vld [vmem:[%s7496_s1 + $0x580] sm:$0xff]  }
  0x93   :  { %1386 = vmatmul.mubr.bf16.vlgmr.msra.gmra.mrb[24].mxu0 %v5843_v32  ;;  %v5915_v32 = vld [vmem:[%s7496_s1 + $0x5c0] sm:$0xff]  }
  0x94   :  { %5392 = vmatpush3.bf16.msra.mxu0 %v5849_v36  ;;  %4382 = vmatprep.mubr.msk.bf16.mxu0 %vm1052_vm0, %v5857_v42  ;;  %v5919_v36 = vld [vmem:[%s7496_s1 + $0x5c8] sm:$0xff]   ;;  %v5926_v42 = vld [vmem:[%s7496_s1 + $0x5d0] sm:$0xff]  }
  0x95   :  { %5372 = vmatpush3.bf16.msra.mxu1 %v5848_v35  ;;  %5393 = vmatprep.subr.bf16.mxu0 %v5851_v38  ;;  %v5918_v35 = vld [vmem:[%s7496_s1 + $0x5e0] sm:$0xff]   ;;  %v5921_v38 = vld [vmem:[%s7496_s1 + $0x588] sm:$0xff]  }
  0x96   :  { %5373 = vmatprep.subr.bf16.mxu1 %v5850_v39  ;;  %v5922_v39 = vld [vmem:[%s7496_s1 + $0x5e8] sm:$0xff]  }
  0x98   :  { %5394 = vmatpush3.bf16.msra.mxu0 %v5855_v43  ;;  %v5927_v43 = vld [vmem:[%s7496_s1 + $0x630] sm:$0xff]  }
  0x99   :  { %5374 = vmatpush3.bf16.msra.mxu1 %v5854_v41  ;;  %5395 = vmatprep.subr.bf16.mxu0 %v5861_v46  ;;  %v5925_v41 = vld [vmem:[%s7497_s0 + $0x168] ss:$56 sps:$4 sm:$0xff]   ;;  %v5930_v46 = vld [vmem:[%s7496_s1 + $0x5d8] sm:$0xff]  }
  0x9a   :  { %5375 = vmatprep.subr.bf16.mxu1 %v5860_v45  ;;  %v5929_v45 = vld [vmem:[%s7496_s1 + $0x5f0] sm:$0xff]  }
  0x9b   :  { %1394 = vmatmul.mubr.bf16.gmra.mrb[28].mxu0 %v5859_v44  ;;  %v5928_v44 = vld [vmem:[%s7496_s1 + $0x590] sm:$0xff]  }
  0x9c   :  { %5396 = vmatpush3.bf16.msra.mxu0 %v5863_v48  ;;  %2584 = vmatprep.mubr.bf16.mxu0 %v5892_v11  ;;  %v5932_v48 = vld [vmem:[%s7496_s1 + $0x598] sm:$0xff]  }
  0x9d   :  { %5376 = vmatpush3.bf16.msra.mxu1 %v5862_v47  ;;  %5397 = vmatprep.subr.bf16.mxu0 %v5865_v50  ;;  %v5931_v47 = vld [vmem:[%s7496_s1 + $0x638] sm:$0xff]  }
  0x9e   :  { %5377 = vmatprep.subr.bf16.mxu1 %v5864_v49  ;;  %v5933_v49 = vld [vmem:[%s7496_s1 + $0x5f8] sm:$0xff]  }
  0x9f   :  { %v5934_v50 = vld [vmem:[%s7497_s0 + $0x100] ss:$56 sps:$4 sm:$0xff]  }
  0xa0   :  { %5398 = vmatpush3.bf16.msra.mxu0 %v5867_v52  ;;  %v5936_v52 = vld [vmem:[%s7497_s0 + $0x104] ss:$56 sps:$4 sm:$0xff]  }
  0xa1   :  { %5378 = vmatpush3.bf16.msra.mxu1 %v5866_v53  ;;  %5399 = vmatprep.subr.bf16.mxu0 %v5871_v56  ;;  %v5937_v53 = vld [vmem:[%s7496_s1 + $0x640] sm:$0xff]   ;;  %v5940_v56 = vld [vmem:[%s7496_s1 + $0x648] sm:$0xff]  }
  0xa2   :  { %5419 = vmatprep.subr.bf16.mxu1 %v5872_v57  ;;  %v5941_v57 = vld [vmem:[%s7496_s1 + $0x608] sm:$0xff]  }
  0xa4   :  { %2536 = vmatmul.mubr.bf16.vlgmr.msra.gmra.mrb[32].mxu1 %v5868_v55  ;;  %5400 = vmatpush3.bf16.msra.mxu0 %v5873_v58  ;;  %v5939_v55 = vld [vmem:[%s7496_s1 + $0x660] sm:$0xff]   ;;  %v5942_v58 = vld [vmem:[%s7496_s1 + $0x668] sm:$0xff]  }
  0xa5   :  { %5420 = vmatpush3.bf16.msra.mxu1 %v5874_v59  ;;  %5401 = vmatprep.subr.bf16.mxu0 %v5875_v60  ;;  %v5943_v59 = vld [vmem:[%s7497_s0 + $0x174] ss:$56 sps:$4 sm:$0xff]   ;;  %v5945_v60 = vld [vmem:[%s7497_s0 + $0x170] ss:$56 sps:$4 sm:$0xff]  }
  0xa6   :  { %5421 = vmatprep.subr.bf16.mxu1 %v5876_v61  ;;  %2543 = vmatprep.mubr.bf16.mxu1 %v5879_v0  ;;  %v5946_v61 = vld [vmem:[%s7496_s1 + $0x650] sm:$0xff]   ;;  %v5949_v0 = vld [vmem:[%s7496_s1 + $0x658] sm:$0xff]  }
  0xa8   :  { %5402 = vmatpush3.bf16.msra.mxu0 %v5877_v62  ;;  %v5947_v62 = vld [vmem:[%s7496_s1 + $0x610] sm:$0xff]  }
  0xa9   :  { %5422 = vmatpush3.bf16.msra.mxu1 %v5878_v63  ;;  %5403 = vmatprep.subr.bf16.mxu0 %v5882_v2  ;;  %v5948_v63 = vld [vmem:[%s7496_s1 + $0x670] sm:$0xff]   ;;  %v5951_v2 = vld [vmem:[%s7496_s1 + $0x678] sm:$0xff]  }
  0xaa   :  { %5423 = vmatprep.subr.bf16.mxu1 %v5883_v3  ;;  %v5952_v3 = vld [vmem:[%s7497_s0 + $0x108] ss:$56 sps:$4 sm:$0xff]  }
  0xac   :  { %2544 = vmatmul.mubr.bf16.gmra.mrb[36].mxu1 %v5881_v1  ;;  %5404 = vmatpush3.bf16.msra.mxu0 %v5884_v4  ;;  %v5950_v1 = vld [vmem:[%s7496_s1 + $0x618] sm:$0xff]   ;;  %v5954_v4 = vld [vmem:[%s7497_s0 + $0x10c] ss:$56 sps:$4 sm:$0xff]  }
  0xad   :  { %5424 = vmatpush3.bf16.msra.mxu1 %v5885_v5  ;;  %5405 = vmatprep.subr.bf16.mxu0 %v5886_v6  ;;  %v5955_v5 = vld [vmem:[%s7496_s1 + $0x700] sm:$0xff]  }
  0xae   :  { %5425 = vmatprep.subr.bf16.mxu1 %v5887_v7  ;;  %2633 = vmatprep.mubr.bf16.mxu1 %v5914_v31  ;;  %v5956_v6 = vld [vmem:[%s7496_s1 + $0x680] sm:$0xff]  }
  0xaf   :  { %v5957_v7 = vld [vmem:[%s7496_s1 + $0x6c0] sm:$0xff]  }
  0xb0   :  { %5406 = vmatpush3.bf16.msra.mxu0 %v5888_v8  ;;  %v5958_v8 = vld [vmem:[%s7496_s1 + $0x708] sm:$0xff]  }
  0xb1   :  { %5426 = vmatpush3.bf16.msra.mxu1 %v5889_v9  ;;  %5447 = vmatprep.subr.bf16.mxu0 %v5894_v13  ;;  %v5959_v9 = vld [vmem:[%s7496_s1 + $0x688] sm:$0xff]   ;;  %v5963_v13 = vld [vmem:[%s7497_s0 + $0x178] ss:$56 sps:$4 sm:$0xff]  }
  0xb2   :  { %5427 = vmatprep.subr.bf16.mxu1 %v5893_v12  ;;  %v5961_v12 = vld [vmem:[%s7497_s0 + $0x17c] ss:$56 sps:$4 sm:$0xff]  }
  0xb3   :  { %2585 = vmatmul.mubr.bf16.vlgmr.msra.gmra.mrb[32].mxu0 %v5890_v10  ;;  %v5960_v10 = vld [vmem:[%s7496_s1 + $0x6c8] sm:$0xff]  }
  0xb4   :  { %5448 = vmatpush3.bf16.msra.mxu0 %v5896_v15  ;;  %2592 = vmatprep.mubr.bf16.mxu0 %v5901_v20 }
  0xb5   :  { %5428 = vmatpush3.bf16.msra.mxu1 %v5895_v14  ;;  %5449 = vmatprep.subr.bf16.mxu0 %v5898_v17  ;;  %v5964_v14 = vld [vmem:[%s7496_s1 + $0x710] sm:$0xff]  }
  0xb6   :  { %5429 = vmatprep.subr.bf16.mxu1 %v5897_v16  ;;  %v5965_v16 = vld [vmem:[%s7496_s1 + $0x690] sm:$0xff]  }
  0xb8   :  { %5450 = vmatpush3.bf16.msra.mxu0 %v5900_v19 }
  0xb9   :  { %5430 = vmatpush3.bf16.msra.mxu1 %v5899_v18  ;;  %5451 = vmatprep.subr.bf16.mxu0 %v5905_v23  ;;  %v5966_v18 = vld [vmem:[%s7496_s1 + $0x6d0] sm:$0xff]  }
  0xba   :  { %5431 = vmatprep.subr.bf16.mxu1 %v5904_v22 }
  0xbb   :  { %2593 = vmatmul.mubr.bf16.gmra.mrb[36].mxu0 %v5903_v21  ;;  %v5967_v21 = vld [vmem:[%s7496_s1 + $0x718] sm:$0xff]  }
  0xbc   :  { %5452 = vmatpush3.bf16.msra.mxu0 %v5907_v25  ;;  %2682 = vmatprep.mubr.bf16.mxu0 %v5936_v52  ;;  %v5968_v25 = vld [vmem:[%s7496_s1 + $0x698] sm:$0xff]   ;;  %v5988_v52 = vld [vmem:[%s7496_s1 + $0x780] sm:$0xff]  }
  0xbd   :  { %5432 = vmatpush3.bf16.msra.mxu1 %v5906_v24  ;;  %5453 = vmatprep.subr.bf16.mxu0 %v5909_v27  ;;  %v5969_v27 = vld [vmem:[%s7496_s1 + $0x6d8] sm:$0xff]  }
  0xbe   :  { %5433 = vmatprep.subr.bf16.mxu1 %v5908_v26 }
  0xc0   :  { %5454 = vmatpush3.bf16.msra.mxu0 %v5911_v29 }
  0xc1   :  { %5434 = vmatpush3.bf16.msra.mxu1 %v5910_v28  ;;  %5455 = vmatprep.subr.bf16.mxu0 %v5915_v32  ;;  %v4244_v32 = vld [vmem:[%s7498_s2] ss:$0 sm:$0xff] }
  0xc2   :  { %5475 = vmatprep.subr.bf16.mxu1 %v5916_v33  ;;  %v5971_v33 = vld [vmem:[%s7496_s1 + $0x6a0] sm:$0xff]  }
  0xc4   :  { %2634 = vmatmul.mubr.bf16.vlgmr.msra.gmra.mrb[40].mxu1 %v5912_v30  ;;  %5456 = vmatpush3.bf16.msra.mxu0 %v5917_v34  ;;  %v5970_v30 = vld [vmem:[%s7496_s1 + $0x720] sm:$0xff]  }
  0xc5   :  { %5476 = vmatpush3.bf16.msra.mxu1 %v5918_v35  ;;  %5457 = vmatprep.subr.bf16.mxu0 %v5919_v36  ;;  %v5972_v36 = vld [vmem:[%s7496_s1 + $0x6e0] sm:$0xff]  }
  0xc6   :  { %5477 = vmatprep.subr.bf16.mxu1 %v5920_v37  ;;  %2641 = vmatprep.mubr.bf16.mxu1 %v5923_v40  ;;  %v5974_v40 = vld [vmem:[%s7496_s1 + $0x6a8] sm:$0xff]  }
  0xc8   :  { %5458 = vmatpush3.bf16.msra.mxu0 %v5921_v38  ;;  %v5973_v38 = vld [vmem:[%s7496_s1 + $0x728] sm:$0xff]  }
  0xc9   :  { %5478 = vmatpush3.bf16.msra.mxu1 %v5922_v39  ;;  %5459 = vmatprep.subr.bf16.mxu0 %v5926_v42  ;;  %v5976_v42 = vld [vmem:[%s7496_s1 + $0x730] sm:$0xff]  }
  0xca   :  { %5479 = vmatprep.subr.bf16.mxu1 %v5927_v43  ;;  %v5977_v43 = vld [vmem:[%s7496_s1 + $0x6b0] sm:$0xff]  }
  0xcc   :  { %2642 = vmatmul.mubr.bf16.gmra.mrb[44].mxu1 %v5925_v41  ;;  %5460 = vmatpush3.bf16.msra.mxu0 %v5928_v44  ;;  %v5975_v41 = vld [vmem:[%s7496_s1 + $0x6e8] sm:$0xff]   ;;  %v5978_v44 = vld [vmem:[%s7496_s1 + $0x6f0] sm:$0xff]  }
  0xcd   :  { %5480 = vmatpush3.bf16.msra.mxu1 %v5929_v45  ;;  %5461 = vmatprep.subr.bf16.mxu0 %v5930_v46  ;;  %v5979_v45 = vld [vmem:[%s7496_s1 + $0x738] sm:$0xff]   ;;  %v5984_v46 = vld [vmem:[%s7497_s0 + $0x114] ss:$56 sps:$4 sm:$0xff]  }
  0xce   :  { %5481 = vmatprep.subr.bf16.mxu1 %v5931_v47  ;;  %2731 = vmatprep.mubr.bf16.mxu1 %v5954_v4  ;;  %v5980_v47 = vld [vmem:[%s7496_s1 + $0x6b8] sm:$0xff]  }
  0xd0   :  { %5462 = vmatpush3.bf16.msra.mxu0 %v5932_v48  ;;  %v5987_v48 = vld [vmem:[%s7497_s0 + $0x1c4] ss:$56 sps:$4 sm:$0xff]  }
  0xd1   :  { %5482 = vmatpush3.bf16.msra.mxu1 %v5933_v49  ;;  %2748 = vmatprep.subr.bf16.mxu0 %v6122_v51  ;;  %v5981_v49 = vld [vmem:[%s7496_s1 + $0x6f8] sm:$0xff]  }
  0xd2   :  { %5483 = vmatprep.subr.bf16.mxu1 %v5937_v53 }
  0xd3   :  { %2683 = vmatmul.mubr.bf16.vlgmr.msra.gmra.mrb[40].mxu0 %v5934_v50 }
  0xd4   :  { %2749 = vmatpush1.bf16.msra.mxu0 %v5939_v55  ;;  %2690 = vmatprep.mubr.bf16.mxu0 %v5943_v59  ;;  %v5985_v55 = vld [vmem:[%s7497_s0 + $0x1c0] ss:$56 sps:$4 sm:$0xff]  }
  0xd5   :  { %5484 = vmatpush3.bf16.msra.mxu1 %v5938_v54  ;;  %2750 = vmatprep.subr.bf16.mxu0 %v6122_v51  ;;  %v5982_v54 = vld [vmem:[%s7497_s0 + $0x110] ss:$56 sps:$4 sm:$0xff]   ;;  %v5990_v59 = vld [vmem:[%s7496_s1 + $0x740] sm:$0xff]  }
  0xd6   :  { %5485 = vmatprep.subr.bf16.mxu1 %v5940_v56  ;;  %v5989_v56 = vld [vmem:[%s7496_s1 + $0x800] sm:$0xff]  }
  0xd8   :  { %2751 = vmatpush1.bf16.msra.mxu0 %v5942_v58 }
  0xd9   :  { %5486 = vmatpush3.bf16.msra.mxu1 %v5941_v57  ;;  %2752 = vmatprep.subr.bf16.mxu0 %v6122_v51 }
  0xda   :  { %5487 = vmatprep.subr.bf16.mxu1 %v5946_v61  ;;  %v5991_v61 = vld [vmem:[%s7496_s1 + $0x7c0] sm:$0xff]  }
  0xdb   :  { %2691 = vmatmul.mubr.bf16.gmra.mrb[44].mxu0 %v5945_v60 }
  0xdc   :  { %2753 = vmatpush1.bf16.msra.mxu0 %v5948_v63  ;;  %4765 = vmatprep.mubr.msk.bf16.mxu0 %vm1052_vm0, %v5984_v46  ;;  %v6015_v46 = vld [vmem:[%s7496_s1 + $0x768] sm:$0xff]  }
  0xdd   :  { %5488 = vmatpush3.bf16.msra.mxu1 %v5947_v62  ;;  %2754 = vmatprep.subr.bf16.mxu0 %v6122_v51 }
  0xde   :  { %5489 = vmatprep.subr.bf16.mxu1 %v5949_v0 }
  0xe0   :  { %2755 = vmatpush1.bf16.msra.mxu0 %v5951_v2 }
  0xe1   :  { %5490 = vmatpush3.bf16.msra.mxu1 %v5950_v1  ;;  %2756 = vmatprep.subr.bf16.mxu0 %v6122_v51  ;;  %v5992_v1 = vld [vmem:[%s7496_s1 + $0x788] sm:$0xff]  }
  0xe2   :  { %5503 = vmatprep.subr.bf16.mxu1 %v5955_v5 }
  0xe4   :  { %2732 = vmatmul.mubr.bf16.vlgmr.msra.gmra.mrb[48].mxu1 %v5952_v3  ;;  %2757 = vmatpush1.bf16.msra.mxu0 %v5956_v6  ;;  %v5993_v3 = vld [vmem:[%s7496_s1 + $0x808] sm:$0xff]  }
  0xe5   :  { %5504 = vmatpush3.bf16.msra.mxu1 %v5957_v7  ;;  %2758 = vmatprep.subr.bf16.mxu0 %v6122_v51  ;;  %v5994_v7 = vld [vmem:[%s7496_s1 + $0x748] sm:$0xff]  }
  0xe6   :  { %5505 = vmatprep.subr.bf16.mxu1 %v5958_v8  ;;  %2739 = vmatprep.mubr.bf16.mxu1 %v5961_v12 }
  0xe8   :  { %2759 = vmatpush1.bf16.msra.mxu0 %v5959_v9  ;;  %v5995_v9 = vld [vmem:[%s7496_s1 + $0x7c8] sm:$0xff]  }
  0xe9   :  { %5506 = vmatpush3.bf16.msra.mxu1 %v5960_v10  ;;  %2760 = vmatprep.subr.bf16.mxu0 %v6122_v51  ;;  %v5996_v10 = vld [vmem:[%s7497_s0 + $0x184] ss:$56 sps:$4 sm:$0xff]  }
  0xea   :  { %5507 = vmatprep.subr.bf16.mxu1 %v5964_v14  ;;  %v5998_v14 = vld [vmem:[%s7497_s0 + $0x180] ss:$56 sps:$4 sm:$0xff]  }
  0xec   :  { %2740 = vmatmul.mubr.bf16.gmra.mrb[52].mxu1 %v5963_v13  ;;  %2761 = vmatpush1.bf16.msra.mxu0 %v5965_v16  ;;  %v5999_v13 = vld [vmem:[%s7496_s1 + $0x790] sm:$0xff]  }
  0xed   :  { %5508 = vmatpush3.bf16.msra.mxu1 %v5966_v18  ;;  %2762 = vmatprep.subr.bf16.mxu0 %v6122_v51  ;;  %v6002_v18 = vld [vmem:[%s7496_s1 + $0x7d0] sm:$0xff]  }
  0xee   :  { %5509 = vmatprep.subr.bf16.mxu1 %v5967_v21  ;;  %3881 = vmatprep.mubr.bf16.mxu1 %v5987_v48  ;;  %v6016_v48 = vld [vmem:[%s7496_s1 + $0x7e8] sm:$0xff]  }
  0xf0   :  { %2763 = vmatpush1.bf16.msra.mxu0 %v5968_v25 }
  0xf1   :  { %5510 = vmatpush3.bf16.msra.mxu1 %v5969_v27  ;;  %2764 = vmatprep.subr.bf16.mxu0 %v6122_v51 }
  0xf2   :  { %5511 = vmatprep.subr.bf16.mxu1 %v5970_v30 }
  0xf4   :  { %2765 = vmatpush1.bf16.msra.mxu0 %v5971_v33 }
  0xf5   :  { %5512 = vmatpush3.bf16.msra.mxu1 %v5972_v36  ;;  %2766 = vmatprep.subr.bf16.mxu0 %v6122_v51 }
  0xf6   :  { %v5183_v11 = vpop.f32.mrb[0].mxu0  ;;  %5513 = vmatprep.subr.bf16.mxu1 %v5973_v38 }
  0xf7   :  { %v5211_v15 = vpop.f32.mrb[0].mxu1  ;;  %v5184_v17 = vpop.f32.mrb[1].mxu0 }
  0xf8   :  { %v5185_v19 = vadd.f32 %v5184_v17, %v5183_v11  ;;  %v5212_v20 = vpop.f32.mrb[1].mxu1  ;;  %v5186_v23 = vpop.f32.mrb[2].mxu0  ;;  %2767 = vmatpush1.bf16.msra.mxu0 %v5974_v40  ;;  %v6001_v17 = vld [vmem:[%s7496_s1 + $0x750] sm:$0xff]   ;;  %v6011_v40 = vld [vmem:[%s7496_s1 + $0x7a8] sm:$0xff]  }
  0xf9   :  { %v5213_v22 = vadd.f32 %v5212_v20, %v5211_v15  ;;  %v5214_v24 = vpop.f32.mrb[2].mxu1  ;;  %v5187_v26 = vpop.f32.mrb[3].mxu0  ;;  %5514 = vmatpush3.bf16.msra.mxu1 %v5975_v41  ;;  %2768 = vmatprep.subr.bf16.mxu0 %v6122_v51  ;;  %v6000_v15 = vld [vmem:[%s7496_s1 + $0x810] sm:$0xff]   ;;  %v6004_v20 = vld [vmem:[%s7496_s1 + $0x818] sm:$0xff]  }
  0xfa   :  { %v5188_v28 = vadd.f32 %v5187_v26, %v5186_v23  ;;  %v5215_v29 = vpop.f32.mrb[3].mxu1  ;;  %v1094_v34 = vadd.f32 %v5185_v19, %v4244_v32  ;;  %5515 = vmatprep.subr.bf16.mxu1 %v5976_v42  ;;  %v6003_v19 = vld [vmem:[%s7496_s1 + $0x798] sm:$0xff]   ;;  %v6007_v26 = vld [vmem:[%s7496_s1 + $0x7a0] sm:$0xff]  }
  0xfb   :  { %v5216_v31 = vadd.f32 %v5215_v29, %v5214_v24  ;;  %v6006_v24 = vld [vmem:[%s7496_s1 + $0x7d8] sm:$0xff]   ;;  %v6008_v29 = vld [vmem:[%s7496_s1 + $0x820] sm:$0xff]  }
  0xfc   :  { %v1097_v35 = vadd.f32 %v5188_v28, %v4244_v32  ;;  %v6994_v37 = vadd.f32 %v5213_v22, %v1094_v34  ;;  %2769 = vmatpush1.bf16.msra.mxu0 %v5977_v43  ;;  %v6005_v22 = vld [vmem:[%s7496_s1 + $0x758] sm:$0xff]  }
  0xfd   :  { %5516 = vmatpush3.bf16.msra.mxu1 %v5978_v44  ;;  %2770 = vmatprep.subr.bf16.mxu0 %v6122_v51  ;;  %v6013_v44 = vld [vmem:[%s7497_s0 + $0x234] ss:$56 sps:$4 sm:$0xff]  }
  0xfe   :  { %v6999_v39 = vadd.f32 %v5216_v31, %v1097_v35  ;;  %v5189_v50 = vpop.f32.mrb[4].mxu0  ;;  %5517 = vmatprep.subr.bf16.mxu1 %v5979_v45  ;;  %v6010_v35 = vld [vmem:[%s7496_s1 + $0x7e0] sm:$0xff]  }
  0xff   :  { %v5190_v53 = vpop.f32.mrb[5].mxu0  ;;  %v5217_v63 = vpop.f32.mrb[4].mxu1 }
 0x100   :  { %v5191_v57 = vadd.f32 %v5190_v53, %v5189_v50  ;;  %v5192_v58 = vpop.f32.mrb[6].mxu0  ;;  %2771 = vmatpush1.bf16.msra.mxu0 %v5980_v47  ;;  %v5218_v2 = vpop.f32.mrb[5].mxu1  ;;  %v6018_v53 = vld [vmem:[%s7496_s1 + $0x7b0] sm:$0xff]  }
 0x101   :  { %v5193_v60 = vpop.f32.mrb[7].mxu0  ;;  %5518 = vmatpush3.bf16.msra.mxu1 %v5981_v49  ;;  %5531 = vmatprep.subr.bf16.mxu0 %v5988_v52  ;;  %v5219_v5 = vadd.f32 %v5218_v2, %v5217_v63  ;;  %v5220_v6 = vpop.f32.mrb[6].mxu1 }
 0x102   :  { %v1102_v62 = vadd.f32 %v5191_v57, %v4244_v32  ;;  %v5194_v0 = vadd.f32 %v5193_v60, %v5192_v58  ;;  %5559 = vmatprep.subr.bf16.mxu1 %v5989_v56  ;;  %v5221_v8 = vpop.f32.mrb[7].mxu1  ;;  %v6020_v58 = vld [vmem:[%s7496_s1 + $0x770] sm:$0xff]  }
 0x103   :  { %2781 = vmatmul.mubr.bf16.vlgmr.msra.gmra.mrb[48].mxu0 %v5982_v54  ;;  %v5222_v12 = vadd.f32 %v5221_v8, %v5220_v6  ;;  %v6021_v60 = vld [vmem:[%s7496_s1 + $0x7f0] sm:$0xff]   ;;  %v6025_v6 = vld [vmem:[%s7496_s1 + $0x7f8] sm:$0xff]  }
 0x104   :  { %v1105_v4 = vadd.f32 %v5194_v0, %v4244_v32  ;;  %3882 = vmatmul.mubr.bf16.vlgmr.msra.gmra.mrb[56].mxu1 %v5985_v55  ;;  %v7068_v11 = vadd.f32 %v5219_v5, %v1102_v62  ;;  %5532 = vmatpush3.bf16.msra.mxu0 %v5990_v59  ;;  %v6009_v32 = vld [vmem:[%s7496_s1 + $0x760] sm:$0xff]   ;;  %v6019_v55 = vld [vmem:[%s7496_s1 + $0x830] sm:$0xff]   ;;  %v6022_v62 = vld [vmem:[%s7496_s1 + $0x7b8] sm:$0xff]  }
 0x105   :  { %5560 = vmatpush3.bf16.msra.mxu1 %v5991_v61  ;;  %5533 = vmatprep.subr.bf16.mxu0 %v5992_v1  ;;  %v6023_v1 = vld [vmem:[%s7496_s1 + $0x838] sm:$0xff]  }
 0x106   :  { %5561 = vmatprep.subr.bf16.mxu1 %v5993_v3  ;;  %v7079_v16 = vadd.f32 %v5222_v12, %v1105_v4  ;;  %4766 = vmatprep.mubr.msk.bf16.mxu0 %vm1052_vm0, %v5996_v10  ;;  %v6024_v4 = vld [vmem:[%s7496_s1 + $0x778] sm:$0xff]   ;;  %v6028_v10 = vld [vmem:[%s7497_s0 + $0x1cc] ss:$56 sps:$4 sm:$0xff]  }
 0x107   :  { %3889 = vmatprep.mubr.bf16.mxu1 %v6013_v44  ;;  %v6031_v12 = vld [vmem:[%s7497_s0 + $0x1d4] ss:$56 sps:$4 sm:$0xff]   ;;  %v6054_v44 = vld [vmem:[%s7496_s1 + $0x8a0] sm:$0xff]  }
 0x108   :  { %5534 = vmatpush3.bf16.msra.mxu0 %v5994_v7 }
 0x109   :  { %5562 = vmatpush3.bf16.msra.mxu1 %v5995_v9  ;;  %5535 = vmatprep.subr.bf16.mxu0 %v5999_v13  ;;  %v6026_v9 = vld [vmem:[%s7497_s0 + $0x1c8] ss:$56 sps:$4 sm:$0xff]  }
 0x10a   :  { %5563 = vmatprep.subr.bf16.mxu1 %v6000_v15  ;;  %v6033_v15 = vld [vmem:[%s7496_s1 + $0x900] sm:$0xff]  }
 0x10b   :  { %2789 = vmatmul.mubr.bf16.gmra.mrb[52].mxu0 %v5998_v14  ;;  %v6032_v14 = vld [vmem:[%s7496_s1 + $0x880] sm:$0xff]  }
 0x10c   :  { %5536 = vmatpush3.bf16.msra.mxu0 %v6001_v17  ;;  %3930 = vmatprep.mubr.bf16.mxu0 %v6028_v10  ;;  %v6035_v17 = vld [vmem:[%s7496_s1 + $0x8c0] sm:$0xff]  }
 0x10d   :  { %5564 = vmatpush3.bf16.msra.mxu1 %v6002_v18  ;;  %5537 = vmatprep.subr.bf16.mxu0 %v6003_v19  ;;  %v6036_v18 = vld [vmem:[%s7496_s1 + $0x888] sm:$0xff]  }
 0x10e   :  { %5565 = vmatprep.subr.bf16.mxu1 %v6004_v20  ;;  %v6037_v19 = vld [vmem:[%s7496_s1 + $0x908] sm:$0xff]  }
 0x10f   :  { %v6038_v20 = vld [vmem:[%s7496_s1 + $0x848] sm:$0xff]  }
 0x110   :  { %5538 = vmatpush3.bf16.msra.mxu0 %v6005_v22  ;;  %v6040_v22 = vld [vmem:[%s7497_s0 + $0x23c] ss:$56 sps:$4 sm:$0xff]  }
 0x111   :  { %5566 = vmatpush3.bf16.msra.mxu1 %v6006_v24  ;;  %5539 = vmatprep.subr.bf16.mxu0 %v6007_v26  ;;  %v6043_v24 = vld [vmem:[%s7496_s1 + $0x890] sm:$0xff]   ;;  %v6045_v26 = vld [vmem:[%s7497_s0 + $0x244] ss:$56 sps:$4 sm:$0xff]  }
 0x112   :  { %5567 = vmatprep.subr.bf16.mxu1 %v6008_v29  ;;  %v6049_v29 = vld [vmem:[%s7497_s0 + $0x240] ss:$56 sps:$4 sm:$0xff]  }
 0x114   :  { %5540 = vmatpush3.bf16.msra.mxu0 %v6009_v32 }
 0x115   :  { %5568 = vmatpush3.bf16.msra.mxu1 %v6010_v35  ;;  %5541 = vmatprep.subr.bf16.mxu0 %v6011_v40 }
 0x116   :  { %v5239_v21 = vpop.f32.mrb[8].mxu0 }
 0x117   :  { %v5267_v23 = vpop.f32.mrb[8].mxu1  ;;  %v5240_v25 = vpop.f32.mrb[9].mxu0 }
 0x118   :  { %v5241_v27 = vadd.f32 %v5240_v25, %v5239_v21  ;;  %v5268_v28 = vpop.f32.mrb[9].mxu1  ;;  %v5242_v31 = vpop.f32.mrb[10].mxu0  ;;  %5542 = vmatpush3.bf16.msra.mxu0 %v6015_v46  ;;  %v6039_v21 = vld [vmem:[%s7496_s1 + $0x8c8] sm:$0xff]   ;;  %v6044_v25 = vld [vmem:[%s7496_s1 + $0x910] sm:$0xff]   ;;  %v6055_v46 = vld [vmem:[%s7496_s1 + $0x920] sm:$0xff]  }
 0x119   :  { %v5269_v30 = vadd.f32 %v5268_v28, %v5267_v23  ;;  %v5270_v34 = vpop.f32.mrb[10].mxu1  ;;  %v5243_v36 = vpop.f32.mrb[11].mxu0  ;;  %5543 = vmatprep.subr.bf16.mxu0 %v6018_v53  ;;  %v6042_v23 = vld [vmem:[%s7497_s0 + $0x238] ss:$56 sps:$4 sm:$0xff]  }
 0x11a   :  { %v1192_v33 = vadd.f32 %v5241_v27, %v6994_v37  ;;  %v5244_v41 = vadd.f32 %v5243_v36, %v5242_v31  ;;  %v5271_v42 = vpop.f32.mrb[11].mxu1  ;;  %v6012_v37 = vld [vmem:[%s7496_s1 + $0x828] sm:$0xff]   ;;  %v6047_v27 = vld [vmem:[%s7496_s1 + $0x850] sm:$0xff]   ;;  %v6050_v31 = vld [vmem:[%s7496_s1 + $0x898] sm:$0xff]  }
 0x11b   :  { %v5272_v43 = vadd.f32 %v5271_v42, %v5270_v34  ;;  %5569 = vmatprep.subr.bf16.mxu1 %v6012_v37  ;;  %v6048_v28 = vld [vmem:[%s7496_s1 + $0x8d0] sm:$0xff]   ;;  %v6052_v36 = vld [vmem:[%s7496_s1 + $0x858] sm:$0xff]  }
 0x11c   :  { %v7113_v38 = vadd.f32 %v5269_v30, %v1192_v33  ;;  %v1195_v45 = vadd.f32 %v5244_v41, %v6999_v39  ;;  %v6017_v39 = vld [vmem:[%s7497_s0 + $0x230] ss:$56 sps:$4 sm:$0xff]   ;;  %5570 = vmatpush3.bf16.msra.mxu1 %v6016_v48  ;;  %5544 = vmatpush3.bf16.msra.mxu0 %v6020_v58  ;;  %v6051_v33 = vld [vmem:[%s7496_s1 + $0x918] sm:$0xff]  }
 0x11d   :  { %3890 = vmatmul.mubr.bf16.gmra.mrb[60].mxu1 %v6017_v39  ;;  %5571 = vmatprep.subr.bf16.mxu1 %v6019_v55  ;;  %v6053_v41 = vld [vmem:[%s7496_s1 + $0x8d8] sm:$0xff]  }
 0x11e   :  { %v5245_v47 = vpop.f32.mrb[12].mxu0  ;;  %v7131_v49 = vadd.f32 %v5272_v43, %v1195_v45  ;;  %5545 = vmatprep.subr.bf16.mxu0 %v6022_v62  ;;  %3979 = vmatprep.mubr.bf16.mxu1 %v6031_v12  ;;  %v6066_v12 = vld [vmem:[%s7496_s1 + $0x8b8] sm:$0xff]  }
 0x11f   :  { %v5246_v50 = vpop.f32.mrb[13].mxu0  ;;  %v5273_v61 = vpop.f32.mrb[12].mxu1 }
 0x120   :  { %v5247_v52 = vadd.f32 %v5246_v50, %v5245_v47  ;;  %v5248_v54 = vpop.f32.mrb[14].mxu0  ;;  %v5274_v0 = vpop.f32.mrb[13].mxu1  ;;  %5572 = vmatpush3.bf16.msra.mxu1 %v6021_v60  ;;  %5546 = vmatpush3.bf16.msra.mxu0 %v6024_v4  ;;  %v6063_v4 = vld [vmem:[%s7496_s1 + $0x930] sm:$0xff]  }
 0x121   :  { %v5249_v57 = vpop.f32.mrb[15].mxu0  ;;  %v5275_v2 = vadd.f32 %v5274_v0, %v5273_v61  ;;  %v5276_v3 = vpop.f32.mrb[14].mxu1  ;;  %5573 = vmatprep.subr.bf16.mxu1 %v6023_v1  ;;  %5587 = vmatprep.subr.bf16.mxu0 %v6032_v14  ;;  %v6062_v0 = vld [vmem:[%s7496_s1 + $0x8b0] sm:$0xff]  }
 0x122   :  { %v1200_v56 = vadd.f32 %v5247_v52, %v7068_v11  ;;  %v5250_v59 = vadd.f32 %v5249_v57, %v5248_v54  ;;  %v5277_v5 = vpop.f32.mrb[15].mxu1  ;;  %v6029_v11 = vld [vmem:[%s7497_s0 + $0x1d0] ss:$56 sps:$4 sm:$0xff]   ;;  %v6057_v52 = vld [vmem:[%s7496_s1 + $0x8e0] sm:$0xff]  }
 0x123   :  { %v5278_v8 = vadd.f32 %v5277_v5, %v5276_v3  ;;  %3931 = vmatmul.mubr.bf16.vlgmr.msra.gmra.mrb[56].mxu0 %v6026_v9  ;;  %v6058_v54 = vld [vmem:[%s7496_s1 + $0x8a8] sm:$0xff]  }
 0x124   :  { %v1203_v63 = vadd.f32 %v5250_v59, %v7079_v16  ;;  %v7162_v7 = vadd.f32 %v5275_v2, %v1200_v56  ;;  %5574 = vmatpush3.bf16.msra.mxu1 %v6025_v6  ;;  %v6034_v16 = vld [vmem:[%s7496_s1 + $0x840] sm:$0xff]   ;;  %3938 = vmatprep.mubr.bf16.mxu0 %v6040_v22  ;;  %v6059_v57 = vld [vmem:[%s7496_s1 + $0x928] sm:$0xff]   ;;  %v6064_v6 = vld [vmem:[%s7496_s1 + $0x870] sm:$0xff]  }
 0x125   :  { %5615 = vmatprep.subr.bf16.mxu1 %v6033_v15  ;;  %5588 = vmatpush3.bf16.msra.mxu0 %v6034_v16  ;;  %v6060_v59 = vld [vmem:[%s7496_s1 + $0x868] sm:$0xff]   ;;  %v6068_v16 = vld [vmem:[%s7496_s1 + $0x878] sm:$0xff]  }
 0x126   :  { %v7176_v13 = vadd.f32 %v5278_v8, %v1203_v63  ;;  %5589 = vmatprep.subr.bf16.mxu0 %v6036_v18  ;;  %v6069_v18 = vld [vmem:[%s7496_s1 + $0x8f8] sm:$0xff]  }
 0x127   :  { %3980 = vmatmul.mubr.bf16.vlgmr.msra.gmra.mrb[64].mxu1 %v6029_v11  ;;  %v6075_v22 = vld [vmem:[%s7497_s0 + $0x1e4] ss:$56 sps:$4 sm:$0xff]  }
 0x128   :  { %5616 = vmatpush3.bf16.msra.mxu1 %v6035_v17  ;;  %3987 = vmatprep.mubr.bf16.mxu1 %v6045_v26  ;;  %v6079_v26 = vld [vmem:[%s7496_s1 + $0x988] sm:$0xff]  }
 0x129   :  { %5617 = vmatprep.subr.bf16.mxu1 %v6037_v19  ;;  %5590 = vmatpush3.bf16.msra.mxu0 %v6038_v20  ;;  %v6070_v19 = vld [vmem:[%s7497_s0 + $0x1d8] ss:$56 sps:$4 sm:$0xff]   ;;  %v6072_v20 = vld [vmem:[%s7497_s0 + $0x1dc] ss:$56 sps:$4 sm:$0xff]  }
 0x12a   :  { %5591 = vmatprep.subr.bf16.mxu0 %v6043_v24  ;;  %v6077_v24 = vld [vmem:[%s7496_s1 + $0x940] sm:$0xff]  }
 0x12b   :  { %3939 = vmatmul.mubr.bf16.gmra.mrb[60].mxu0 %v6042_v23  ;;  %v6076_v23 = vld [vmem:[%s7496_s1 + $0x980] sm:$0xff]  }
 0x12c   :  { %5618 = vmatpush3.bf16.msra.mxu1 %v6039_v21  ;;  %v6073_v21 = vld [vmem:[%s7497_s0 + $0x1e0] ss:$56 sps:$4 sm:$0xff]   ;;  %4028 = vmatprep.mubr.bf16.mxu0 %v6072_v20  ;;  %v6114_v20 = vld [vmem:[%s7496_s1 + $0xa10] sm:$0xff]  }
 0x12d   :  { %5619 = vmatprep.subr.bf16.mxu1 %v6044_v25  ;;  %5592 = vmatpush3.bf16.msra.mxu0 %v6047_v27  ;;  %v6078_v25 = vld [vmem:[%s7496_s1 + $0x9c0] sm:$0xff]   ;;  %v6080_v27 = vld [vmem:[%s7496_s1 + $0x948] sm:$0xff]  }
 0x12e   :  { %5593 = vmatprep.subr.bf16.mxu0 %v6050_v31  ;;  %v6085_v31 = vld [vmem:[%s7496_s1 + $0x990] sm:$0xff]  }
 0x12f   :  { %3988 = vmatmul.mubr.bf16.gmra.mrb[68].mxu1 %v6049_v29  ;;  %v6082_v29 = vld [vmem:[%s7497_s0 + $0x24c] ss:$56 sps:$4 sm:$0xff]  }
 0x130   :  { %5620 = vmatpush3.bf16.msra.mxu1 %v6048_v28  ;;  %4077 = vmatprep.mubr.bf16.mxu1 %v6075_v22  ;;  %v6081_v28 = vld [vmem:[%s7496_s1 + $0x9c8] sm:$0xff]  }
 0x131   :  { %5621 = vmatprep.subr.bf16.mxu1 %v6051_v33  ;;  %5594 = vmatpush3.bf16.msra.mxu0 %v6052_v36  ;;  %v6088_v33 = vld [vmem:[%s7496_s1 + $0x950] sm:$0xff]   ;;  %v6091_v36 = vld [vmem:[%s7496_s1 + $0x998] sm:$0xff]  }
 0x132   :  { %5595 = vmatprep.subr.bf16.mxu0 %v6054_v44 }
 0x134   :  { %5622 = vmatpush3.bf16.msra.mxu1 %v6053_v41  ;;  %v6092_v41 = vld [vmem:[%s7496_s1 + $0x958] sm:$0xff]  }
 0x135   :  { %5623 = vmatprep.subr.bf16.mxu1 %v6055_v46 }
 0x136   :  { %v5295_v30 = vpop.f32.mrb[16].mxu0 }
 0x137   :  { %v5296_v32 = vpop.f32.mrb[17].mxu0  ;;  %v5323_v34 = vpop.f32.mrb[16].mxu1 }
 0x138   :  { %v5297_v35 = vadd.f32 %v5296_v32, %v5295_v30  ;;  %v5324_v40 = vpop.f32.mrb[17].mxu1  ;;  %v5298_v43 = vpop.f32.mrb[18].mxu0  ;;  %5624 = vmatpush3.bf16.msra.mxu1 %v6057_v52  ;;  %v6084_v30 = vld [vmem:[%s7497_s0 + $0x248] ss:$56 sps:$4 sm:$0xff]   ;;  %v6086_v32 = vld [vmem:[%s7497_s0 + $0x254] ss:$56 sps:$4 sm:$0xff]  }
 0x139   :  { %v5325_v37 = vadd.f32 %v5324_v40, %v5323_v34  ;;  %v5326_v45 = vpop.f32.mrb[18].mxu1  ;;  %v5299_v47 = vpop.f32.mrb[19].mxu0  ;;  %5625 = vmatprep.subr.bf16.mxu1 %v6059_v57  ;;  %v6089_v34 = vld [vmem:[%s7496_s1 + $0x9d0] sm:$0xff]   ;;  %v6098_v52 = vld [vmem:[%s7496_s1 + $0x968] sm:$0xff]   ;;  %v6103_v57 = vld [vmem:[%s7496_s1 + $0x9b8] sm:$0xff]  }
 0x13a   :  { %v1290_v42 = vadd.f32 %v5297_v35, %v7113_v38  ;;  %v6056_v38 = vld [vmem:[%s7496_s1 + $0x860] sm:$0xff]   ;;  %v5300_v50 = vadd.f32 %v5299_v47, %v5298_v43  ;;  %v5327_v39 = vpop.f32.mrb[19].mxu1  ;;  %v6090_v35 = vld [vmem:[%s7497_s0 + $0x250] ss:$56 sps:$4 sm:$0xff]  }
 0x13b   :  { %v5328_v53 = vadd.f32 %v5327_v39, %v5326_v45  ;;  %5596 = vmatpush3.bf16.msra.mxu0 %v6056_v38  ;;  %v6094_v45 = vld [vmem:[%s7496_s1 + $0x9a0] sm:$0xff]   ;;  %v6097_v39 = vld [vmem:[%s7496_s1 + $0x9a8] sm:$0xff]  }
 0x13c   :  { %v7245_v48 = vadd.f32 %v5325_v37, %v1290_v42  ;;  %v1293_v55 = vadd.f32 %v5300_v50, %v7131_v49  ;;  %5597 = vmatprep.subr.bf16.mxu0 %v6058_v54  ;;  %v6061_v49 = vld [vmem:[%s7496_s1 + $0x8e8] sm:$0xff]   ;;  %v6093_v37 = vld [vmem:[%s7496_s1 + $0x9d8] sm:$0xff]   ;;  %v6095_v47 = vld [vmem:[%s7496_s1 + $0x960] sm:$0xff]  }
 0x13d   :  { %5626 = vmatpush3.bf16.msra.mxu1 %v6061_v49  ;;  %v6096_v50 = vld [vmem:[%s7496_s1 + $0x9e0] sm:$0xff]   ;;  %v6100_v54 = vld [vmem:[%s7496_s1 + $0x9b0] sm:$0xff]   ;;  %v6105_v49 = vld [vmem:[%s7496_s1 + $0x9f8] sm:$0xff]  }
 0x13e   :  { %v5301_v56 = vpop.f32.mrb[20].mxu0  ;;  %v7263_v62 = vadd.f32 %v5328_v53, %v1293_v55  ;;  %5627 = vmatprep.subr.bf16.mxu1 %v6063_v4  ;;  %v6099_v53 = vld [vmem:[%s7496_s1 + $0x9e8] sm:$0xff]   ;;  %v6101_v55 = vld [vmem:[%s7496_s1 + $0x970] sm:$0xff]  }
 0x13f   :  { %v5302_v58 = vpop.f32.mrb[21].mxu0  ;;  %5598 = vmatpush3.bf16.msra.mxu0 %v6060_v59  ;;  %v5329_v2 = vpop.f32.mrb[20].mxu1  ;;  %v6104_v59 = vld [vmem:[%s7496_s1 + $0x978] sm:$0xff]  }
 0x140   :  { %v5303_v60 = vadd.f32 %v5302_v58, %v5301_v56  ;;  %v5304_v61 = vpop.f32.mrb[22].mxu0  ;;  %v5330_v5 = vpop.f32.mrb[21].mxu1  ;;  %5599 = vmatprep.subr.bf16.mxu0 %v6062_v0  ;;  %v6102_v56 = vld [vmem:[%s7496_s1 + $0x9f0] sm:$0xff]  }
 0x141   :  { %v5305_v63 = vpop.f32.mrb[23].mxu0  ;;  %v5331_v9 = vadd.f32 %v5330_v5, %v5329_v2  ;;  %v5332_v10 = vpop.f32.mrb[22].mxu1  ;;  %v6109_v5 = vld [vmem:[%s7496_s1 + $0xa00] sm:$0xff]  }
 0x142   :  { %v1298_v1 = vadd.f32 %v5303_v60, %v7162_v7  ;;  %v5306_v3 = vadd.f32 %v5305_v63, %v5304_v61  ;;  %v6065_v7 = vld [vmem:[%s7496_s1 + $0x8f0] sm:$0xff]   ;;  %v5333_v11 = vpop.f32.mrb[23].mxu1  ;;  %v6108_v60 = vld [vmem:[%s7497_s0 + $0x1ec] ss:$56 sps:$4 sm:$0xff]  }
 0x143   :  { %5600 = vmatpush3.bf16.msra.mxu0 %v6064_v6  ;;  %v5334_v14 = vadd.f32 %v5333_v11, %v5332_v10  ;;  %5628 = vmatpush3.bf16.msra.mxu1 %v6065_v7  ;;  %v6118_v7 = vld [vmem:[%s7497_s0 + $0x1f4] ss:$56 sps:$4 sm:$0xff]  }
 0x144   :  { %v1301_v8 = vadd.f32 %v5306_v3, %v7176_v13  ;;  %v7285_v15 = vadd.f32 %v5331_v9, %v1298_v1  ;;  %v6067_v13 = vld [vmem:[%s7496_s1 + $0x938] sm:$0xff]   ;;  %5601 = vmatprep.subr.bf16.mxu0 %v6066_v12  ;;  %v6106_v1 = vld [vmem:[%s7497_s0 + $0x1e8] ss:$56 sps:$4 sm:$0xff]  }
 0x145   :  { %5629 = vmatprep.subr.bf16.mxu1 %v6067_v13  ;;  %v6110_v13 = vld [vmem:[%s7496_s1 + $0xa08] sm:$0xff]  }
 0x146   :  { %v7293_v17 = vadd.f32 %v5334_v14, %v1301_v8 }
 0x147   :  { %5602 = vmatpush3.bf16.msra.mxu0 %v6068_v16  ;;  %5630 = vmatpush3.bf16.msra.mxu1 %v6069_v18 }
 0x148   :  { %4143 = vmatprep.subr.bf16.mxu1 %v6122_v51  ;;  %5643 = vmatprep.subr.bf16.mxu0 %v6076_v23 }
 0x14a   :  { %4029 = vmatmul.mubr.bf16.vlgmr.msra.gmra.mrb[64].mxu0 %v6070_v19  ;;  %4078 = vmatmul.mubr.bf16.vlgmr.msra.gmra.mrb[72].mxu1 %v6073_v21  ;;  %v4628_v21 = vld [vmem:[%s7498_s2 + $0x1] ss:$0 sm:$0xff] }
 0x14b   :  { %5644 = vmatpush3.bf16.msra.mxu0 %v6077_v24  ;;  %4144 = vmatpush1.bf16.msra.mxu1 %v6078_v25 }
 0x14c   :  { %5645 = vmatprep.subr.bf16.mxu0 %v6079_v26  ;;  %4145 = vmatprep.subr.bf16.mxu1 %v6122_v51 }
 0x14d   :  { %4036 = vmatprep.mubr.bf16.mxu0 %v6082_v29  ;;  %4085 = vmatprep.mubr.bf16.mxu1 %v6086_v32  ;;  %v6116_v29 = vld [vmem:[%s7497_s0 + $0x1f0] ss:$56 sps:$4 sm:$0xff]   ;;  %v6119_v32 = vld [vmem:[%s7497_s0 + $0x264] ss:$56 sps:$4 sm:$0xff]  }
 0x14f   :  { %5646 = vmatpush3.bf16.msra.mxu0 %v6080_v27  ;;  %4146 = vmatpush1.bf16.msra.mxu1 %v6081_v28 }
 0x150   :  { %5647 = vmatprep.subr.bf16.mxu0 %v6085_v31  ;;  %4147 = vmatprep.subr.bf16.mxu1 %v6122_v51 }
 0x152   :  { %4037 = vmatmul.mubr.bf16.gmra.mrb[68].mxu0 %v6084_v30  ;;  %4086 = vmatmul.mubr.bf16.gmra.mrb[76].mxu1 %v6090_v35 }
 0x153   :  { %5648 = vmatpush3.bf16.msra.mxu0 %v6088_v33  ;;  %4148 = vmatpush1.bf16.msra.mxu1 %v6089_v34 }
 0x154   :  { %5649 = vmatprep.subr.bf16.mxu0 %v6091_v36  ;;  %4149 = vmatprep.subr.bf16.mxu1 %v6122_v51 }
 0x155   :  { %4126 = vmatprep.mubr.bf16.mxu0 %v6108_v60  ;;  %5149 = vmatprep.mubr.msk.bf16.mxu1 %vm1052_vm0, %v6118_v7 }
 0x157   :  { %v5351_v40 = vpop.f32.mrb[24].mxu1  ;;  %5650 = vmatpush3.bf16.msra.mxu0 %v6092_v41  ;;  %4150 = vmatpush1.bf16.msra.mxu1 %v6093_v37  ;;  %v6121_v37 = vld [vmem:[%s7497_s0 + $0x260] ss:$56 sps:$4 sm:$0xff]  }
 0x158   :  { %v5352_v42 = vpop.f32.mrb[25].mxu1  ;;  %5651 = vmatprep.subr.bf16.mxu0 %v6094_v45  ;;  %4151 = vmatprep.subr.bf16.mxu1 %v6122_v51 }
 0x159   :  { %v7361_v43 = vadd.f32 %v5352_v42, %v5351_v40  ;;  %v5354_v44 = vpop.f32.mrb[26].mxu1 }
 0x15a   :  { %v5355_v46 = vpop.f32.mrb[27].mxu1 }
 0x15b   :  { %v7370_v38 = vadd.f32 %v5355_v46, %v5354_v44  ;;  %5652 = vmatpush3.bf16.msra.mxu0 %v6095_v47  ;;  %4152 = vmatpush1.bf16.msra.mxu1 %v6096_v50  ;;  %v2489_v24 = vadd.f32 %v7361_v43, %v4628_v21 }
 0x15c   :  { %5653 = vmatprep.subr.bf16.mxu0 %v6097_v39  ;;  %4153 = vmatprep.subr.bf16.mxu1 %v6122_v51 }
 0x15d   :  { %v2492_v28 = vadd.f32 %v7370_v38, %v4628_v21 }
 0x15f   :  { %5654 = vmatpush3.bf16.msra.mxu0 %v6098_v52  ;;  %4154 = vmatpush1.bf16.msra.mxu1 %v6099_v53  ;;  %v5357_v3 = vpop.f32.mrb[28].mxu1 }
 0x160   :  { %5655 = vmatprep.subr.bf16.mxu0 %v6100_v54  ;;  %4155 = vmatprep.subr.bf16.mxu1 %v6122_v51  ;;  %v5358_v6 = vpop.f32.mrb[29].mxu1 }
 0x161   :  { %v5359_v8 = vadd.f32 %v5358_v6, %v5357_v3  ;;  %v5360_v9 = vpop.f32.mrb[30].mxu1 }
 0x162   :  { %v5361_v10 = vpop.f32.mrb[31].mxu1 }
 0x163   :  { %5656 = vmatpush3.bf16.msra.mxu0 %v6101_v55  ;;  %4156 = vmatpush1.bf16.msra.mxu1 %v6102_v56  ;;  %v5362_v14 = vadd.f32 %v5361_v10, %v5360_v9  ;;  %v2497_v35 = vadd.f32 %v5359_v8, %v4628_v21 }
 0x164   :  { %5657 = vmatprep.subr.bf16.mxu0 %v6103_v57  ;;  %4157 = vmatprep.subr.bf16.mxu1 %v6122_v51 }
 0x165   :  { %v2500_v42 = vadd.f32 %v5362_v14, %v4628_v21 }
 0x166   :  { %v1387_v58 = vpop.f32.mrb[24].mxu0 }
 0x167   :  { %v7406_v61 = vadd.f32 %v1387_v58, %v7245_v48  ;;  %v1389_v63 = vpop.f32.mrb[25].mxu0  ;;  %v6111_v48 = vld [vmem:[%s7497_s0 + $0x25c] ss:$56 sps:$4 sm:$0xff]   ;;  %5658 = vmatpush3.bf16.msra.mxu0 %v6104_v59  ;;  %4158 = vmatpush1.bf16.msra.mxu1 %v6105_v49 }
 0x168   :  { %v1390_v0 = vpop.f32.mrb[26].mxu0  ;;  %4159 = vmatprep.subr.bf16.mxu1 %v6122_v51 }
 0x169   :  { %v7416_v2 = vadd.f32 %v1390_v0, %v7263_v62  ;;  %v1392_v4 = vpop.f32.mrb[27].mxu0 }
 0x16a   :  { %4127 = vmatmul.mubr.bf16.vlgmr.msra.gmra.mrb[72].mxu0 %v6106_v1 }
 0x16b   :  { %4134 = vmatprep.mubr.bf16.mxu0 %v6111_v48  ;;  %4160 = vmatpush1.bf16.msra.mxu1 %v6109_v5 }
 0x16c   :  { %4161 = vmatprep.subr.bf16.mxu1 %v6122_v51 }
 0x16e   :  { %v1395_v62 = vpop.f32.mrb[28].mxu0 }
 0x16f   :  { %v7429_v11 = vadd.f32 %v1395_v62, %v7285_v15  ;;  %v1397_v12 = vpop.f32.mrb[29].mxu0  ;;  %v6113_v15 = vld [vmem:[%s7497_s0 + $0x258] ss:$56 sps:$4 sm:$0xff]   ;;  %4162 = vmatpush1.bf16.msra.mxu1 %v6110_v13 }
 0x170   :  { %v1398_v16 = vpop.f32.mrb[30].mxu0  ;;  %4163 = vmatprep.subr.bf16.mxu1 %v6122_v51 }
 0x171   :  { %v7437_v18 = vadd.f32 %v1398_v16, %v7293_v17  ;;  %v1400_v19 = vpop.f32.mrb[31].mxu0  ;;  %v6115_v17 = vld [vmem:[%s7496_s1 + $0xa18] sm:$0xff]  }
 0x172   :  { %4135 = vmatmul.mubr.bf16.gmra.mrb[76].mxu0 %v6113_v15 }
 0x173   :  { %4164 = vmatpush1.bf16.msra.mxu1 %v6114_v20 }
 0x174   :  { %4165 = vmatprep.subr.bf16.mxu1 %v6122_v51 }
 0x177   :  { %v5379_v22 = vpop.f32.mrb[32].mxu1  ;;  %4166 = vmatpush1.bf16.msra.mxu1 %v6115_v17 }
 0x178   :  { %v5380_v23 = vpop.f32.mrb[33].mxu1 }
 0x179   :  { %v5381_v25 = vadd.f32 %v5380_v23, %v5379_v22  ;;  %v5382_v26 = vpop.f32.mrb[34].mxu1 }
 0x17a   :  { %v5383_v27 = vpop.f32.mrb[35].mxu1  ;;  %4176 = vmatmul.mubr.bf16.vlgmr.msra.gmra.mrb[80].mxu1 %v6116_v29 }
 0x17b   :  { %v2538_v30 = vadd.f32 %v5381_v25, %v2489_v24  ;;  %v5384_v31 = vadd.f32 %v5383_v27, %v5382_v26  ;;  %5150 = vmatprep.mubr.msk.bf16.mxu1 %vm1052_vm0, %v6119_v32 }
 0x17d   :  { %v2541_v33 = vadd.f32 %v5384_v31, %v2492_v28 }
 0x17f   :  { %v5385_v34 = vpop.f32.mrb[36].mxu1 }
 0x180   :  { %v5386_v51 = vpop.f32.mrb[37].mxu1 }
 0x181   :  { %v5387_v36 = vadd.f32 %v5386_v51, %v5385_v34  ;;  %v5388_v40 = vpop.f32.mrb[38].mxu1 }
 0x182   :  { %v5389_v41 = vpop.f32.mrb[39].mxu1  ;;  %4184 = vmatmul.mubr.bf16.gmra.mrb[84].mxu1 %v6121_v37 }
 0x183   :  { %v2546_v43 = vadd.f32 %v5387_v36, %v2497_v35  ;;  %v5390_v44 = vadd.f32 %v5389_v41, %v5388_v40 }
 0x185   :  { %v2549_v45 = vadd.f32 %v5390_v44, %v2500_v42 }
 0x186   :  { %v5407_v46 = vpop.f32.mrb[32].mxu0 }
 0x187   :  { %v5408_v47 = vpop.f32.mrb[33].mxu0 }
 0x188   :  { %v5409_v38 = vadd.f32 %v5408_v47, %v5407_v46  ;;  %v5410_v50 = vpop.f32.mrb[34].mxu0 }
 0x189   :  { %v5411_v39 = vpop.f32.mrb[35].mxu0 }
 0x18a   :  { %v2587_v52 = vadd.f32 %v5409_v38, %v2538_v30  ;;  %v5412_v53 = vadd.f32 %v5411_v39, %v5410_v50 }
 0x18c   :  { %v2590_v54 = vadd.f32 %v5412_v53, %v2541_v33 }
 0x18e   :  { %v5413_v55 = vpop.f32.mrb[36].mxu0 }
 0x18f   :  { %v5414_v56 = vpop.f32.mrb[37].mxu0 }
 0x190   :  { %v5415_v57 = vadd.f32 %v5414_v56, %v5413_v55  ;;  %v5416_v58 = vpop.f32.mrb[38].mxu0 }
 0x191   :  { %v5417_v59 = vpop.f32.mrb[39].mxu0 }
 0x192   :  { %v2595_v60 = vadd.f32 %v5415_v57, %v2546_v43  ;;  %v5418_v49 = vadd.f32 %v5417_v59, %v5416_v58  ;;  %v1402_v59 = vmax.f32 %v7406_v61, 0.0 }
 0x194   :  { %v2598_v63 = vadd.f32 %v5418_v49, %v2549_v45 }
 0x197   :  { %v5435_v0 = vpop.f32.mrb[40].mxu1 }
 0x198   :  { %v5436_v1 = vpop.f32.mrb[41].mxu1 }
 0x199   :  { %v5437_v48 = vadd.f32 %v5436_v1, %v5435_v0  ;;  %v5438_v3 = vpop.f32.mrb[42].mxu1 }
 0x19a   :  { %v5439_v4 = vpop.f32.mrb[43].mxu1 }
 0x19b   :  { %v2636_v5 = vadd.f32 %v5437_v48, %v2587_v52  ;;  %v5440_v6 = vadd.f32 %v5439_v4, %v5438_v3  ;;  %v1403_v48 = vmax.f32 %v7416_v2, 0.0 }
 0x19d   :  { %v2639_v8 = vadd.f32 %v5440_v6, %v2590_v54 }
 0x19f   :  { %v5441_v9 = vpop.f32.mrb[44].mxu1 }
 0x1a0   :  { %v5442_v62 = vpop.f32.mrb[45].mxu1 }
 0x1a1   :  { %v5443_v10 = vadd.f32 %v5442_v62, %v5441_v9  ;;  %v5444_v7 = vpop.f32.mrb[46].mxu1  ;;  %v1404_v62 = vmax.f32 %v7429_v11, 0.0 }
 0x1a2   :  { %v5445_v12 = vpop.f32.mrb[47].mxu1 }
 0x1a3   :  { %v2644_v14 = vadd.f32 %v5443_v10, %v2595_v60  ;;  %v5446_v13 = vadd.f32 %v5445_v12, %v5444_v7  ;;  %v1405_v12 = vmax.f32 %v7437_v18, 0.0  ;;  %v5012_v18 = vld [vmem:[%s7498_s2 + $0x2] ss:$0 sm:$0xff] }
 0x1a5   :  { %v2647_v16 = vadd.f32 %v5446_v13, %v2598_v63 }
 0x1a6   :  { %v5463_v19 = vpop.f32.mrb[40].mxu0 }
 0x1a7   :  { %v5464_v15 = vpop.f32.mrb[41].mxu0 }
 0x1a8   :  { %v5465_v20 = vadd.f32 %v5464_v15, %v5463_v19  ;;  %v5466_v21 = vpop.f32.mrb[42].mxu0 }
 0x1a9   :  { %v5467_v22 = vpop.f32.mrb[43].mxu0 }
 0x1aa   :  { %v2685_v17 = vadd.f32 %v5465_v20, %v2636_v5  ;;  %v5468_v23 = vadd.f32 %v5467_v22, %v5466_v21 }
 0x1ac   :  { %v2688_v24 = vadd.f32 %v5468_v23, %v2639_v8 }
 0x1ae   :  { %v5469_v25 = vpop.f32.mrb[44].mxu0 }
 0x1af   :  { %v5470_v26 = vpop.f32.mrb[45].mxu0 }
 0x1b0   :  { %v5471_v27 = vadd.f32 %v5470_v26, %v5469_v25  ;;  %v5472_v28 = vpop.f32.mrb[46].mxu0 }
 0x1b1   :  { %v5473_v29 = vpop.f32.mrb[47].mxu0 }
 0x1b2   :  { %v2693_v30 = vadd.f32 %v5471_v27, %v2644_v14  ;;  %v5474_v31 = vadd.f32 %v5473_v29, %v5472_v28 }
 0x1b4   :  { %v2696_v32 = vadd.f32 %v5474_v31, %v2647_v16 }
 0x1b7   :  { %v5491_v33 = vpop.f32.mrb[48].mxu1 }
 0x1b8   :  { %v5492_v34 = vpop.f32.mrb[49].mxu1 }
 0x1b9   :  { %v5493_v51 = vadd.f32 %v5492_v34, %v5491_v33  ;;  %v5494_v35 = vpop.f32.mrb[50].mxu1 }
 0x1ba   :  { %v5495_v36 = vpop.f32.mrb[51].mxu1 }
 0x1bb   :  { %v5496_v40 = vadd.f32 %v5495_v36, %v5494_v35  ;;  %v2734_v41 = vadd.f32 %v5493_v51, %v2685_v17 }
 0x1bd   :  { %v2737_v42 = vadd.f32 %v5496_v40, %v2688_v24 }
 0x1bf   :  { %v5497_v37 = vpop.f32.mrb[52].mxu1 }
 0x1c0   :  { %v5498_v43 = vpop.f32.mrb[53].mxu1 }
 0x1c1   :  { %v5499_v44 = vadd.f32 %v5498_v43, %v5497_v37  ;;  %v5500_v45 = vpop.f32.mrb[54].mxu1 }
 0x1c2   :  { %v5501_v46 = vpop.f32.mrb[55].mxu1 }
 0x1c3   :  { %v5502_v47 = vadd.f32 %v5501_v46, %v5500_v45  ;;  %v2742_v38 = vadd.f32 %v5499_v44, %v2693_v30 }
 0x1c5   :  { %v2745_v50 = vadd.f32 %v5502_v47, %v2696_v32 }
 0x1d6   :  { %v2782_v39 = vpop.f32.mrb[48].mxu0 }
 0x1d7   :  { %v5519_v52 = vpop.f32.mrb[56].mxu1  ;;  %v2783_v53 = vadd.f32 %v2782_v39, %v2734_v41  ;;  %v2784_v54 = vpop.f32.mrb[49].mxu0 }
 0x1d8   :  { %v5520_v55 = vpop.f32.mrb[57].mxu1  ;;  %v2785_v57 = vpop.f32.mrb[50].mxu0 }
 0x1d9   :  { %v5521_v56 = vadd.f32 %v5520_v55, %v5519_v52  ;;  %v5522_v58 = vpop.f32.mrb[58].mxu1  ;;  %v2797_v60 = vmax.f32 %v2783_v53, 0.0  ;;  %v2786_v49 = vadd.f32 %v2785_v57, %v2737_v42  ;;  %v2787_v0 = vpop.f32.mrb[51].mxu0 }
 0x1da   :  { %v5523_v63 = vpop.f32.mrb[59].mxu1 }
 0x1db   :  { %v5524_v1 = vadd.f32 %v5523_v63, %v5522_v58  ;;  %v5159_v3 = vpack.c.bf16 %v2797_v60, %v1402_v59  ;;  %v2798_v4 = vmax.f32 %v2786_v49, 0.0  ;;  %v3884_v26 = vadd.f32 %v5521_v56, %v5012_v18 }
 0x1dd   :  { %4232 = vst [vmem:[%s7499_s3] sm:$0xff] %v5159_v3  ;;  %v5161_v5 = vpack.c.bf16 %v2798_v4, %v1403_v48  ;;  %v3887_v33 = vadd.f32 %v5524_v1, %v5012_v18 }
 0x1de   :  { %v2790_v6 = vpop.f32.mrb[52].mxu0 }
 0x1df   :  { %4234 = vst [vmem:[%s7499_s3 + $0xc] sm:$0xff] %v5161_v5  ;;  %v2791_v61 = vadd.f32 %v2790_v6, %v2742_v38  ;;  %v2792_v8 = vpop.f32.mrb[53].mxu0 }
 0x1e0   :  { %v2793_v9 = vpop.f32.mrb[54].mxu0 }
 0x1e1   :  { %v2799_v10 = vmax.f32 %v2791_v61, 0.0  ;;  %v2794_v7 = vadd.f32 %v2793_v9, %v2745_v50  ;;  %v2795_v2 = vpop.f32.mrb[55].mxu0 }
 0x1e3   :  { %v5163_v14 = vpack.c.bf16 %v2799_v10, %v1404_v62  ;;  %v2800_v13 = vmax.f32 %v2794_v7, 0.0 }
 0x1e5   :  { %4236 = vst [vmem:[%s7499_s3 + $0x18] sm:$0xff] %v5163_v14  ;;  %v5165_v16 = vpack.c.bf16 %v2800_v13, %v1405_v12 }
 0x1e7   :  { %4238 = vst [vmem:[%s7499_s3 + $0x24] sm:$0xff] %v5165_v16 }
 0x1f0   :  { %v5525_v19 = vpop.f32.mrb[60].mxu1 }
 0x1f1   :  { %v5526_v15 = vpop.f32.mrb[61].mxu1 }
 0x1f2   :  { %v5527_v20 = vadd.f32 %v5526_v15, %v5525_v19  ;;  %v5528_v11 = vpop.f32.mrb[62].mxu1 }
 0x1f3   :  { %v5529_v21 = vpop.f32.mrb[63].mxu1 }
 0x1f4   :  { %v5530_v22 = vadd.f32 %v5529_v21, %v5528_v11  ;;  %v3892_v43 = vadd.f32 %v5527_v20, %v5012_v18 }
 0x1f6   :  { %v5547_v17 = vpop.f32.mrb[56].mxu0  ;;  %v3895_v47 = vadd.f32 %v5530_v22, %v5012_v18 }
 0x1f7   :  { %v5548_v24 = vpop.f32.mrb[57].mxu0 }
 0x1f8   :  { %v5549_v27 = vadd.f32 %v5548_v24, %v5547_v17  ;;  %v5550_v29 = vpop.f32.mrb[58].mxu0 }
 0x1f9   :  { %v5551_v31 = vpop.f32.mrb[59].mxu0 }
 0x1fa   :  { %v5575_v23 = vpop.f32.mrb[64].mxu1  ;;  %v3933_v34 = vadd.f32 %v5549_v27, %v3884_v26  ;;  %v5552_v51 = vadd.f32 %v5551_v31, %v5550_v29 }
 0x1fb   :  { %v5576_v25 = vpop.f32.mrb[65].mxu1 }
 0x1fc   :  { %v5577_v28 = vadd.f32 %v5576_v25, %v5575_v23  ;;  %v5578_v30 = vpop.f32.mrb[66].mxu1  ;;  %v3936_v40 = vadd.f32 %v5552_v51, %v3887_v33 }
 0x1fd   :  { %v5579_v32 = vpop.f32.mrb[67].mxu1 }
 0x1fe   :  { %v5580_v35 = vadd.f32 %v5579_v32, %v5578_v30  ;;  %v3982_v36 = vadd.f32 %v5577_v28, %v3933_v34  ;;  %v5553_v42 = vpop.f32.mrb[60].mxu0 }
 0x1ff   :  { %v5554_v37 = vpop.f32.mrb[61].mxu0 }
 0x200   :  { %v3985_v41 = vadd.f32 %v5580_v35, %v3936_v40  ;;  %v5555_v44 = vadd.f32 %v5554_v37, %v5553_v42  ;;  %v5556_v45 = vpop.f32.mrb[62].mxu0 }
 0x201   :  { %v5557_v46 = vpop.f32.mrb[63].mxu0 }
 0x202   :  { %v3941_v38 = vadd.f32 %v5555_v44, %v3892_v43  ;;  %v5558_v50 = vadd.f32 %v5557_v46, %v5556_v45  ;;  %v5581_v39 = vpop.f32.mrb[68].mxu1 }
 0x203   :  { %v5582_v53 = vpop.f32.mrb[69].mxu1 }
 0x204   :  { %v3944_v52 = vadd.f32 %v5558_v50, %v3895_v47  ;;  %v5583_v54 = vadd.f32 %v5582_v53, %v5581_v39  ;;  %v5584_v55 = vpop.f32.mrb[70].mxu1 }
 0x205   :  { %v5585_v56 = vpop.f32.mrb[71].mxu1 }
 0x206   :  { %v3990_v57 = vadd.f32 %v5583_v54, %v3941_v38  ;;  %v5586_v58 = vadd.f32 %v5585_v56, %v5584_v55 }
 0x208   :  { %v3993_v59 = vadd.f32 %v5586_v58, %v3944_v52 }
 0x21d   :  { %v5603_v60 = vpop.f32.mrb[64].mxu0  ;;  %v5631_v63 = vpop.f32.mrb[72].mxu1 }
 0x21e   :  { %v5604_v49 = vpop.f32.mrb[65].mxu0  ;;  %v5632_v48 = vpop.f32.mrb[73].mxu1 }
 0x21f   :  { %v5605_v0 = vadd.f32 %v5604_v49, %v5603_v60  ;;  %v5606_v1 = vpop.f32.mrb[66].mxu0  ;;  %v5633_v5 = vadd.f32 %v5632_v48, %v5631_v63  ;;  %v5634_v6 = vpop.f32.mrb[74].mxu1 }
 0x220   :  { %v5607_v3 = vpop.f32.mrb[67].mxu0  ;;  %v5635_v8 = vpop.f32.mrb[75].mxu1 }
 0x221   :  { %v4031_v4 = vadd.f32 %v5605_v0, %v3982_v36  ;;  %v5608_v61 = vadd.f32 %v5607_v3, %v5606_v1  ;;  %v5636_v10 = vadd.f32 %v5635_v8, %v5634_v6 }
 0x223   :  { %v4080_v9 = vadd.f32 %v5633_v5, %v4031_v4  ;;  %v4034_v62 = vadd.f32 %v5608_v61, %v3985_v41 }
 0x225   :  { %v4083_v7 = vadd.f32 %v5636_v10, %v4034_v62  ;;  %v5609_v2 = vpop.f32.mrb[68].mxu0  ;;  %v5637_v15 = vpop.f32.mrb[76].mxu1 }
 0x226   :  { %v5610_v12 = vpop.f32.mrb[69].mxu0  ;;  %v5638_v11 = vpop.f32.mrb[77].mxu1 }
 0x227   :  { %v5611_v14 = vadd.f32 %v5610_v12, %v5609_v2  ;;  %v5612_v13 = vpop.f32.mrb[70].mxu0  ;;  %v5639_v22 = vadd.f32 %v5638_v11, %v5637_v15  ;;  %v5640_v18 = vpop.f32.mrb[78].mxu1 }
 0x228   :  { %v5613_v16 = vpop.f32.mrb[71].mxu0  ;;  %v5641_v17 = vpop.f32.mrb[79].mxu1 }
 0x229   :  { %v4039_v19 = vadd.f32 %v5611_v14, %v3990_v57  ;;  %v5614_v20 = vadd.f32 %v5613_v16, %v5612_v13  ;;  %v5642_v24 = vadd.f32 %v5641_v17, %v5640_v18 }
 0x22b   :  { %v4042_v21 = vadd.f32 %v5614_v20, %v3993_v59  ;;  %v4088_v23 = vadd.f32 %v5639_v22, %v4039_v19 }
 0x22d   :  { %v4091_v25 = vadd.f32 %v5642_v24, %v4042_v21 }
 0x23d   :  { %v5659_v26 = vpop.f32.mrb[72].mxu0 }
 0x23e   :  { %v5660_v27 = vpop.f32.mrb[73].mxu0 }
 0x23f   :  { %v5661_v28 = vadd.f32 %v5660_v27, %v5659_v26  ;;  %v5662_v29 = vpop.f32.mrb[74].mxu0 }
 0x240   :  { %v5663_v30 = vpop.f32.mrb[75].mxu0 }
 0x241   :  { %v5664_v31 = vadd.f32 %v5663_v30, %v5662_v29  ;;  %v4129_v32 = vadd.f32 %v5661_v28, %v4080_v9 }
 0x243   :  { %v4132_v33 = vadd.f32 %v5664_v31, %v4083_v7 }
 0x245   :  { %v5665_v34 = vpop.f32.mrb[76].mxu0 }
 0x246   :  { %v5666_v51 = vpop.f32.mrb[77].mxu0 }
 0x247   :  { %v5667_v35 = vadd.f32 %v5666_v51, %v5665_v34  ;;  %v5668_v36 = vpop.f32.mrb[78].mxu0 }
 0x248   :  { %v5669_v40 = vpop.f32.mrb[79].mxu0 }
 0x249   :  { %v5670_v41 = vadd.f32 %v5669_v40, %v5668_v36  ;;  %v4137_v42 = vadd.f32 %v5667_v35, %v4088_v23 }
 0x24b   :  { %v4140_v37 = vadd.f32 %v5670_v41, %v4091_v25 }
 0x24d   :  { %v4177_v43 = vpop.f32.mrb[80].mxu1 }
 0x24e   :  { %v4178_v44 = vadd.f32 %v4177_v43, %v4129_v32  ;;  %v4179_v45 = vpop.f32.mrb[81].mxu1 }
 0x24f   :  { %v4180_v46 = vpop.f32.mrb[82].mxu1 }
 0x250   :  { %v4192_v47 = vmax.f32 %v4178_v44, 0.0  ;;  %v4181_v38 = vadd.f32 %v4180_v46, %v4132_v33  ;;  %v4182_v50 = vpop.f32.mrb[83].mxu1 }
 0x252   :  { %v5160_v39 = vpack.c.bf16 %v4192_v47, %v4192_v47  ;;  %v4193_v52 = vmax.f32 %v4181_v38, 0.0 }
 0x254   :  { %4233 = vst [vmem:[%s7499_s3 + $0x8] sm:$0xf] %v5160_v39  ;;  %v5162_v53 = vpack.c.bf16 %v4193_v52, %v4193_v52 }
 0x255   :  { %v4185_v54 = vpop.f32.mrb[84].mxu1 }
 0x256   :  { %4235 = vst [vmem:[%s7499_s3 + $0x14] sm:$0xf] %v5162_v53  ;;  %v4186_v55 = vadd.f32 %v4185_v54, %v4137_v42  ;;  %v4187_v56 = vpop.f32.mrb[85].mxu1 }
 0x257   :  { %v4188_v57 = vpop.f32.mrb[86].mxu1 }
 0x258   :  { %v4194_v58 = vmax.f32 %v4186_v55, 0.0  ;;  %v4189_v59 = vadd.f32 %v4188_v57, %v4140_v37  ;;  %v4190_v60 = vpop.f32.mrb[87].mxu1 }
 0x25a   :  { %v5164_v49 = vpack.c.bf16 %v4194_v58, %v4194_v58  ;;  %v4195_v63 = vmax.f32 %v4189_v59, 0.0 }
 0x25c   :  { %4237 = vst [vmem:[%s7499_s3 + $0x20] sm:$0xf] %v5164_v49  ;;  %v5166_v0 = vpack.c.bf16 %v4195_v63, %v4195_v63 }
 0x25e   :  { %4239 = vst [vmem:[%s7499_s3 + $0x2c] sm:$0xf] %v5166_v0 }

// kernel: few_shot_forward.15
= control target key start
LH: loop header
LB: loop body
LE: loop exit
PB: predicated region body
PF: predicated region fallthrough
CT: control target
= control target key end

     0   :  { %s142_s0 = inlined_call_operand.vmem [shape: bf16[9,16,256], index: 0, kind: input, shape index: {}]   ;;  %s143_s1 = inlined_call_operand.vmem [shape: bf16[16,256], index: 1, kind: output, shape index: {}]  }
   0x1   :  { %v8_v0 = vld [vmem:[%s142_s0] sm:$0xff]  ;;  %v56_v1 = vld [vmem:[%s142_s0 + $0x10] sm:$0xff]  ;;  %v9_v12 = vld [vmem:[%s142_s0 + $0x8] sm:$0xff] }
   0x2   :  { %v58_v2 = vld [vmem:[%s142_s0 + $0x20] sm:$0xff]  ;;  %v60_v3 = vld [vmem:[%s142_s0 + $0x30] sm:$0xff]  ;;  %v34_v6 = vmax.bf16 %v56_v1, %v8_v0  ;;  %v57_v13 = vld [vmem:[%s142_s0 + $0x18] sm:$0xff] }
   0x3   :  { %v62_v4 = vld [vmem:[%s142_s0 + $0x40] sm:$0xff]  ;;  %v64_v5 = vld [vmem:[%s142_s0 + $0x50] sm:$0xff]  ;;  %v36_v9 = vmax.bf16 %v60_v3, %v58_v2  ;;  %v59_v14 = vld [vmem:[%s142_s0 + $0x28] sm:$0xff]  ;;  %v35_v19 = vmax.bf16 %v57_v13, %v9_v12 }
   0x4   :  { %v66_v7 = vld [vmem:[%s142_s0 + $0x60] sm:$0xff]  ;;  %v68_v8 = vld [vmem:[%s142_s0 + $0x70] sm:$0xff]  ;;  %v38_v10 = vmax.bf16 %v64_v5, %v62_v4  ;;  %v61_v16 = vld [vmem:[%s142_s0 + $0x38] sm:$0xff] }
   0x5   :  { %v40_v11 = vmax.bf16 %v68_v8, %v66_v7  ;;  %v42_v15 = vmax.bf16 %v36_v9, %v34_v6  ;;  %v63_v17 = vld [vmem:[%s142_s0 + $0x48] sm:$0xff]  ;;  %v65_v18 = vld [vmem:[%s142_s0 + $0x58] sm:$0xff]  ;;  %v37_v23 = vmax.bf16 %v61_v16, %v59_v14  ;;  %v70_v25 = vld [vmem:[%s142_s0 + $0x80] sm:$0xff] }
   0x6   :  { %v67_v21 = vld [vmem:[%s142_s0 + $0x68] sm:$0xff]  ;;  %v69_v22 = vld [vmem:[%s142_s0 + $0x78] sm:$0xff]  ;;  %v39_v24 = vmax.bf16 %v65_v18, %v63_v17 }
   0x7   :  { %v44_v20 = vmax.bf16 %v40_v11, %v38_v10  ;;  %v41_v26 = vmax.bf16 %v69_v22, %v67_v21  ;;  %v43_v28 = vmax.bf16 %v37_v23, %v35_v19  ;;  %v71_v31 = vld [vmem:[%s142_s0 + $0x88] sm:$0xff] }
   0x9   :  { %v46_v27 = vmax.bf16 %v44_v20, %v42_v15  ;;  %v45_v29 = vmax.bf16 %v41_v26, %v39_v24 }
   0xb   :  { %v48_v30 = vmax.bf16 %v70_v25, %v46_v27  ;;  %v47_v32 = vmax.bf16 %v45_v29, %v43_v28 }
   0xd   :  { %50 = vst [vmem:[%s143_s1] sm:$0xff] %v48_v30  ;;  %v49_v33 = vmax.bf16 %v71_v31, %v47_v32 }
   0xf   :  { %51 = vst [vmem:[%s143_s1 + $0x8] sm:$0xff] %v49_v33 }

// kernel: few_shot_forward.14
= control target key start
LH: loop header
LB: loop body
LE: loop exit
PB: predicated region body
PF: predicated region fallthrough
CT: control target
= control target key end

     0   :  { %s6558_s1 = inlined_call_operand.vmem [shape: bf16[3456,256], index: 1, kind: input, shape index: {}]   ;;  %s6559_s0 = inlined_call_operand.vmem [shape: bf16[32,3456], index: 0, kind: input, shape index: {}]   ;;  %s6560_s2 = inlined_call_operand.vmem [shape: f32[1,256], index: 2, kind: input, shape index: {}]   ;;  %s6561_s3 = inlined_call_operand.vmem [shape: bf16[32,256], index: 3, kind: output, shape index: {}]  }
   0x1   :  { %v4336_v0 = vld [vmem:[%s6558_s1 + $0x4] ss:$8 sps:$4 sm:$0xff]   ;;  %v4340_v2 = vld [vmem:[%s6558_s1] ss:$8 sps:$4 sm:$0xff]   ;;  %v4342_v4 = vld [vmem:[%s6558_s1 + $0x14] ss:$8 sps:$4 sm:$0xff]  }
   0x2   :  { %v4338_v1 = vld [vmem:[%s6558_s1 + $0x704] ss:$8 sps:$4 sm:$0xff]   ;;  %2947 = vmatprep.subr.bf16.mxu1 %v4336_v0  ;;  %v4341_v3 = vld [vmem:[%s6558_s1 + $0x700] ss:$8 sps:$4 sm:$0xff]   ;;  %v4344_v5 = vld [vmem:[%s6558_s1 + $0x714] ss:$8 sps:$4 sm:$0xff]  }
   0x3   :  { %3318 = vmatprep.subr.bf16.mxu0 %v4338_v1  ;;  %2948 = vmatpush1.bf16.msra.mxu1 %v4340_v2  ;;  %v4346_v6 = vld [vmem:[%s6558_s1 + $0x10] ss:$8 sps:$4 sm:$0xff]   ;;  %v4348_v8 = vld [vmem:[%s6558_s1 + $0x24] ss:$8 sps:$4 sm:$0xff]   ;;  %v4352_v10 = vld [vmem:[%s6558_s1 + $0x20] ss:$8 sps:$4 sm:$0xff]  }
   0x4   :  { %3319 = vmatpush1.bf16.msra.mxu0 %v4341_v3  ;;  %2949 = vmatprep.subr.bf16.mxu1 %v4342_v4  ;;  %v4347_v7 = vld [vmem:[%s6558_s1 + $0x710] ss:$8 sps:$4 sm:$0xff]   ;;  %v4350_v9 = vld [vmem:[%s6558_s1 + $0x724] ss:$8 sps:$4 sm:$0xff]   ;;  %v4353_v11 = vld [vmem:[%s6558_s1 + $0x720] ss:$8 sps:$4 sm:$0xff]  }
   0x5   :  { %3320 = vmatprep.subr.bf16.mxu0 %v4344_v5  ;;  %v4354_v12 = vld [vmem:[%s6558_s1 + $0x34] ss:$8 sps:$4 sm:$0xff]   ;;  %v4358_v14 = vld [vmem:[%s6558_s1 + $0x30] ss:$8 sps:$4 sm:$0xff]   ;;  %v4360_v16 = vld [vmem:[%s6558_s1 + $0x44] ss:$8 sps:$4 sm:$0xff]  }
   0x6   :  { %v4356_v13 = vld [vmem:[%s6558_s1 + $0x734] ss:$8 sps:$4 sm:$0xff]   ;;  %v4359_v15 = vld [vmem:[%s6558_s1 + $0x730] ss:$8 sps:$4 sm:$0xff]   ;;  %v4362_v17 = vld [vmem:[%s6558_s1 + $0x744] ss:$8 sps:$4 sm:$0xff]  }
   0x7   :  { %2950 = vmatpush1.bf16.msra.mxu1 %v4346_v6  ;;  %v4364_v18 = vld [vmem:[%s6558_s1 + $0x40] ss:$8 sps:$4 sm:$0xff]   ;;  %v4366_v20 = vld [vmem:[%s6558_s1 + $0x54] ss:$8 sps:$4 sm:$0xff]   ;;  %v4370_v22 = vld [vmem:[%s6558_s1 + $0x50] ss:$8 sps:$4 sm:$0xff]  }
   0x8   :  { %3321 = vmatpush1.bf16.msra.mxu0 %v4347_v7  ;;  %2951 = vmatprep.subr.bf16.mxu1 %v4348_v8  ;;  %v4365_v19 = vld [vmem:[%s6558_s1 + $0x740] ss:$8 sps:$4 sm:$0xff]   ;;  %v4368_v21 = vld [vmem:[%s6558_s1 + $0x754] ss:$8 sps:$4 sm:$0xff]   ;;  %v4371_v23 = vld [vmem:[%s6558_s1 + $0x750] ss:$8 sps:$4 sm:$0xff]  }
   0x9   :  { %3322 = vmatprep.subr.bf16.mxu0 %v4350_v9  ;;  %v4372_v24 = vld [vmem:[%s6558_s1 + $0x64] ss:$8 sps:$4 sm:$0xff]   ;;  %v4376_v26 = vld [vmem:[%s6558_s1 + $0x60] ss:$8 sps:$4 sm:$0xff]   ;;  %v4378_v28 = vld [vmem:[%s6558_s1 + $0x74] ss:$8 sps:$4 sm:$0xff]  }
   0xa   :  { %v4374_v25 = vld [vmem:[%s6558_s1 + $0x764] ss:$8 sps:$4 sm:$0xff]   ;;  %v4377_v27 = vld [vmem:[%s6558_s1 + $0x760] ss:$8 sps:$4 sm:$0xff]   ;;  %v4380_v29 = vld [vmem:[%s6558_s1 + $0x774] ss:$8 sps:$4 sm:$0xff]  }
   0xb   :  { %2952 = vmatpush1.bf16.msra.mxu1 %v4352_v10  ;;  %v4382_v30 = vld [vmem:[%s6558_s1 + $0x70] ss:$8 sps:$4 sm:$0xff]   ;;  %v4384_v32 = vld [vmem:[%s6558_s1 + $0x84] ss:$8 sps:$4 sm:$0xff]   ;;  %v4388_v34 = vld [vmem:[%s6558_s1 + $0x80] ss:$8 sps:$4 sm:$0xff]  }
   0xc   :  { %3323 = vmatpush1.bf16.msra.mxu0 %v4353_v11  ;;  %2953 = vmatprep.subr.bf16.mxu1 %v4354_v12  ;;  %v4383_v31 = vld [vmem:[%s6558_s1 + $0x770] ss:$8 sps:$4 sm:$0xff]   ;;  %v4386_v33 = vld [vmem:[%s6558_s1 + $0x784] ss:$8 sps:$4 sm:$0xff]   ;;  %v4389_v35 = vld [vmem:[%s6558_s1 + $0x780] ss:$8 sps:$4 sm:$0xff]  }
   0xd   :  { %3324 = vmatprep.subr.bf16.mxu0 %v4356_v13  ;;  %v4390_v36 = vld [vmem:[%s6558_s1 + $0x94] ss:$8 sps:$4 sm:$0xff]   ;;  %v4394_v38 = vld [vmem:[%s6558_s1 + $0x90] ss:$8 sps:$4 sm:$0xff]   ;;  %v4396_v40 = vld [vmem:[%s6558_s1 + $0xa4] ss:$8 sps:$4 sm:$0xff]  }
   0xe   :  { %v4392_v37 = vld [vmem:[%s6558_s1 + $0x794] ss:$8 sps:$4 sm:$0xff]   ;;  %v4395_v39 = vld [vmem:[%s6558_s1 + $0x790] ss:$8 sps:$4 sm:$0xff]   ;;  %v4398_v41 = vld [vmem:[%s6558_s1 + $0x7a4] ss:$8 sps:$4 sm:$0xff]  }
   0xf   :  { %2954 = vmatpush1.bf16.msra.mxu1 %v4358_v14  ;;  %v4400_v42 = vld [vmem:[%s6558_s1 + $0xa0] ss:$8 sps:$4 sm:$0xff]   ;;  %v4402_v44 = vld [vmem:[%s6558_s1 + $0xb4] ss:$8 sps:$4 sm:$0xff]   ;;  %v4406_v46 = vld [vmem:[%s6558_s1 + $0xb0] ss:$8 sps:$4 sm:$0xff]  }
  0x10   :  { %3325 = vmatpush1.bf16.msra.mxu0 %v4359_v15  ;;  %2955 = vmatprep.subr.bf16.mxu1 %v4360_v16  ;;  %v4401_v43 = vld [vmem:[%s6558_s1 + $0x7a0] ss:$8 sps:$4 sm:$0xff]   ;;  %v4404_v45 = vld [vmem:[%s6558_s1 + $0x7b4] ss:$8 sps:$4 sm:$0xff]   ;;  %v4407_v47 = vld [vmem:[%s6558_s1 + $0x7b0] ss:$8 sps:$4 sm:$0xff]  }
  0x11   :  { %3326 = vmatprep.subr.bf16.mxu0 %v4362_v17  ;;  %v4434_v48 = vld [vmem:[%s6559_s0 + $0x4] ss:$108 sps:$4 sm:$0xff]   ;;  %v4440_v51 = vld [vmem:[%s6559_s0 + $0x3c] ss:$108 sps:$4 sm:$0xff]   ;;  %v4432_v4 = vld [vmem:[%s6559_s0] ss:$108 sps:$4 sm:$0xff]  }
  0x12   :  { %v4408_v49 = vld [vmem:[%s6558_s1 + $0xc4] ss:$8 sps:$4 sm:$0xff]   ;;  %2979 = vmatprep.mubr.bf16.mxu1 %v4434_v48  ;;  %v4412_v52 = vld [vmem:[%s6558_s1 + $0xc0] ss:$8 sps:$4 sm:$0xff]   ;;  %v4414_v54 = vld [vmem:[%s6558_s1 + $0xd4] ss:$8 sps:$4 sm:$0xff]   ;;  %3350 = vmatprep.mubr.bf16.mxu0 %v4440_v51 }
  0x13   :  { %2956 = vmatpush1.bf16.msra.mxu1 %v4364_v18  ;;  %v4410_v50 = vld [vmem:[%s6558_s1 + $0x7c4] ss:$8 sps:$4 sm:$0xff]   ;;  %v4413_v53 = vld [vmem:[%s6558_s1 + $0x7c0] ss:$8 sps:$4 sm:$0xff]   ;;  %v4416_v55 = vld [vmem:[%s6558_s1 + $0x7d4] ss:$8 sps:$4 sm:$0xff]  }
  0x14   :  { %3327 = vmatpush1.bf16.msra.mxu0 %v4365_v19  ;;  %2957 = vmatprep.subr.bf16.mxu1 %v4366_v20  ;;  %v4418_v56 = vld [vmem:[%s6558_s1 + $0xd0] ss:$8 sps:$4 sm:$0xff]   ;;  %v4420_v58 = vld [vmem:[%s6558_s1 + $0xe4] ss:$8 sps:$4 sm:$0xff]   ;;  %v4424_v60 = vld [vmem:[%s6558_s1 + $0xe0] ss:$8 sps:$4 sm:$0xff]  }
  0x15   :  { %3328 = vmatprep.subr.bf16.mxu0 %v4368_v21  ;;  %v4419_v57 = vld [vmem:[%s6558_s1 + $0x7d0] ss:$8 sps:$4 sm:$0xff]   ;;  %v4422_v59 = vld [vmem:[%s6558_s1 + $0x7e4] ss:$8 sps:$4 sm:$0xff]   ;;  %v4425_v61 = vld [vmem:[%s6558_s1 + $0x7e0] ss:$8 sps:$4 sm:$0xff]  }
  0x16   :  { %v4426_v62 = vld [vmem:[%s6558_s1 + $0xf4] ss:$8 sps:$4 sm:$0xff]   ;;  %v4430_v0 = vld [vmem:[%s6558_s1 + $0xf0] ss:$8 sps:$4 sm:$0xff]   ;;  %v4437_v2 = vld [vmem:[%s6558_s1 + $0x104] ss:$8 sps:$4 sm:$0xff]  }
  0x17   :  { %2958 = vmatpush1.bf16.msra.mxu1 %v4370_v22  ;;  %v4428_v63 = vld [vmem:[%s6558_s1 + $0x7f4] ss:$8 sps:$4 sm:$0xff]   ;;  %v4431_v1 = vld [vmem:[%s6558_s1 + $0x7f0] ss:$8 sps:$4 sm:$0xff]   ;;  %v4443_v3 = vld [vmem:[%s6558_s1 + $0x804] ss:$8 sps:$4 sm:$0xff]  }
  0x18   :  { %3329 = vmatpush1.bf16.msra.mxu0 %v4371_v23  ;;  %2959 = vmatprep.subr.bf16.mxu1 %v4372_v24  ;;  %v4435_v5 = vld [vmem:[%s6558_s1 + $0x100] ss:$8 sps:$4 sm:$0xff]   ;;  %v4438_v6 = vld [vmem:[%s6559_s0 + $0x38] ss:$108 sps:$4 sm:$0xff]   ;;  %v4446_v8 = vld [vmem:[%s6558_s1 + $0x114] ss:$8 sps:$4 sm:$0xff]  }
  0x19   :  { %3330 = vmatprep.subr.bf16.mxu0 %v4374_v25  ;;  %v4441_v7 = vld [vmem:[%s6558_s1 + $0x800] ss:$8 sps:$4 sm:$0xff]   ;;  %v4449_v9 = vld [vmem:[%s6558_s1 + $0x814] ss:$8 sps:$4 sm:$0xff]   ;;  %v4444_v10 = vld [vmem:[%s6558_s1 + $0x110] ss:$8 sps:$4 sm:$0xff]  }
  0x1a   :  { %v4447_v11 = vld [vmem:[%s6558_s1 + $0x810] ss:$8 sps:$4 sm:$0xff]   ;;  %v4452_v12 = vld [vmem:[%s6558_s1 + $0x124] ss:$8 sps:$4 sm:$0xff]   ;;  %v4450_v14 = vld [vmem:[%s6558_s1 + $0x120] ss:$8 sps:$4 sm:$0xff]  }
  0x1b   :  { %2960 = vmatpush1.bf16.msra.mxu1 %v4376_v26  ;;  %v4455_v13 = vld [vmem:[%s6558_s1 + $0x824] ss:$8 sps:$4 sm:$0xff]   ;;  %v4453_v15 = vld [vmem:[%s6558_s1 + $0x820] ss:$8 sps:$4 sm:$0xff]   ;;  %v4458_v16 = vld [vmem:[%s6558_s1 + $0x134] ss:$8 sps:$4 sm:$0xff]  }
  0x1c   :  { %3331 = vmatpush1.bf16.msra.mxu0 %v4377_v27  ;;  %2961 = vmatprep.subr.bf16.mxu1 %v4378_v28  ;;  %v4461_v17 = vld [vmem:[%s6558_s1 + $0x834] ss:$8 sps:$4 sm:$0xff]   ;;  %v4456_v18 = vld [vmem:[%s6558_s1 + $0x130] ss:$8 sps:$4 sm:$0xff]   ;;  %v4464_v20 = vld [vmem:[%s6558_s1 + $0x144] ss:$8 sps:$4 sm:$0xff]  }
  0x1d   :  { %3332 = vmatprep.subr.bf16.mxu0 %v4380_v29  ;;  %v4459_v19 = vld [vmem:[%s6558_s1 + $0x830] ss:$8 sps:$4 sm:$0xff]   ;;  %v4467_v21 = vld [vmem:[%s6558_s1 + $0x844] ss:$8 sps:$4 sm:$0xff]   ;;  %v4462_v22 = vld [vmem:[%s6558_s1 + $0x140] ss:$8 sps:$4 sm:$0xff]  }
  0x1e   :  { %v4465_v23 = vld [vmem:[%s6558_s1 + $0x840] ss:$8 sps:$4 sm:$0xff]   ;;  %v4470_v24 = vld [vmem:[%s6558_s1 + $0x154] ss:$8 sps:$4 sm:$0xff]   ;;  %v4468_v26 = vld [vmem:[%s6558_s1 + $0x150] ss:$8 sps:$4 sm:$0xff]  }
  0x1f   :  { %2962 = vmatpush1.bf16.msra.mxu1 %v4382_v30  ;;  %v4473_v25 = vld [vmem:[%s6558_s1 + $0x854] ss:$8 sps:$4 sm:$0xff]   ;;  %v4471_v27 = vld [vmem:[%s6558_s1 + $0x850] ss:$8 sps:$4 sm:$0xff]   ;;  %v4476_v29 = vld [vmem:[%s6558_s1 + $0x164] ss:$8 sps:$4 sm:$0xff]  }
  0x20   :  { %3333 = vmatpush1.bf16.msra.mxu0 %v4383_v31  ;;  %2963 = vmatprep.subr.bf16.mxu1 %v4384_v32  ;;  %v4522_v28 = vld [vmem:[%s6559_s0 + $0xdc] ss:$108 sps:$4 sm:$0xff]   ;;  %v4479_v30 = vld [vmem:[%s6558_s1 + $0x864] ss:$8 sps:$4 sm:$0xff]   ;;  %v4527_v31 = vld [vmem:[%s6559_s0 + $0x114] ss:$108 sps:$4 sm:$0xff]  }
  0x21   :  { %3334 = vmatprep.subr.bf16.mxu0 %v4386_v33  ;;  %v4474_v32 = vld [vmem:[%s6558_s1 + $0x160] ss:$8 sps:$4 sm:$0xff]   ;;  %v4492_v48 = vld [vmem:[%s6558_s1 + $0x190] ss:$8 sps:$4 sm:$0xff]   ;;  %v4503_v51 = vld [vmem:[%s6558_s1 + $0x8a4] ss:$8 sps:$4 sm:$0xff]  }
  0x22   :  { %v4477_v33 = vld [vmem:[%s6558_s1 + $0x860] ss:$8 sps:$4 sm:$0xff]  }
  0x23   :  { %2964 = vmatpush1.bf16.msra.mxu1 %v4388_v34  ;;  %v4532_v34 = vld [vmem:[%s6559_s0 + $0xd8] ss:$108 sps:$4 sm:$0xff]  }
  0x24   :  { %3335 = vmatpush1.bf16.msra.mxu0 %v4389_v35  ;;  %2965 = vmatprep.subr.bf16.mxu1 %v4390_v36  ;;  %v4533_v35 = vld [vmem:[%s6559_s0 + $0x110] ss:$108 sps:$4 sm:$0xff]  }
  0x25   :  { %3336 = vmatprep.subr.bf16.mxu0 %v4392_v37  ;;  %v4482_v36 = vld [vmem:[%s6558_s1 + $0x174] ss:$8 sps:$4 sm:$0xff]  }
  0x26   :  { %v4485_v37 = vld [vmem:[%s6558_s1 + $0x874] ss:$8 sps:$4 sm:$0xff]  }
  0x27   :  { %2966 = vmatpush1.bf16.msra.mxu1 %v4394_v38  ;;  %v4480_v38 = vld [vmem:[%s6558_s1 + $0x170] ss:$8 sps:$4 sm:$0xff]  }
  0x28   :  { %3337 = vmatpush1.bf16.msra.mxu0 %v4395_v39  ;;  %2967 = vmatprep.subr.bf16.mxu1 %v4396_v40  ;;  %v4483_v39 = vld [vmem:[%s6558_s1 + $0x870] ss:$8 sps:$4 sm:$0xff]  }
  0x29   :  { %3338 = vmatprep.subr.bf16.mxu0 %v4398_v41  ;;  %v4542_v40 = vld [vmem:[%s6559_s0 + $0xc] ss:$108 sps:$4 sm:$0xff]  }
  0x2a   :  { %v4488_v41 = vld [vmem:[%s6558_s1 + $0x184] ss:$8 sps:$4 sm:$0xff]  }
  0x2b   :  { %2968 = vmatpush1.bf16.msra.mxu1 %v4400_v42  ;;  %v4491_v42 = vld [vmem:[%s6558_s1 + $0x884] ss:$8 sps:$4 sm:$0xff]  }
  0x2c   :  { %3339 = vmatpush1.bf16.msra.mxu0 %v4401_v43  ;;  %2969 = vmatprep.subr.bf16.mxu1 %v4402_v44  ;;  %v4548_v43 = vld [vmem:[%s6559_s0 + $0x44] ss:$108 sps:$4 sm:$0xff]   ;;  %v4486_v44 = vld [vmem:[%s6558_s1 + $0x180] ss:$8 sps:$4 sm:$0xff]  }
  0x2d   :  { %3340 = vmatprep.subr.bf16.mxu0 %v4404_v45  ;;  %v4489_v45 = vld [vmem:[%s6558_s1 + $0x880] ss:$8 sps:$4 sm:$0xff]  }
  0x2f   :  { %2970 = vmatpush1.bf16.msra.mxu1 %v4406_v46  ;;  %v4494_v46 = vld [vmem:[%s6558_s1 + $0x194] ss:$8 sps:$4 sm:$0xff]  }
  0x30   :  { %3341 = vmatpush1.bf16.msra.mxu0 %v4407_v47  ;;  %2971 = vmatprep.subr.bf16.mxu1 %v4408_v49  ;;  %v4497_v47 = vld [vmem:[%s6558_s1 + $0x894] ss:$8 sps:$4 sm:$0xff]   ;;  %v4495_v49 = vld [vmem:[%s6558_s1 + $0x890] ss:$8 sps:$4 sm:$0xff]  }
  0x31   :  { %3342 = vmatprep.subr.bf16.mxu0 %v4410_v50  ;;  %v4500_v50 = vld [vmem:[%s6558_s1 + $0x1a4] ss:$8 sps:$4 sm:$0xff]  }
  0x33   :  { %2972 = vmatpush1.bf16.msra.mxu1 %v4412_v52  ;;  %v4498_v52 = vld [vmem:[%s6558_s1 + $0x1a0] ss:$8 sps:$4 sm:$0xff]  }
  0x34   :  { %3343 = vmatpush1.bf16.msra.mxu0 %v4413_v53  ;;  %2973 = vmatprep.subr.bf16.mxu1 %v4414_v54  ;;  %v4501_v53 = vld [vmem:[%s6558_s1 + $0x8a0] ss:$8 sps:$4 sm:$0xff]   ;;  %v4506_v54 = vld [vmem:[%s6558_s1 + $0x1b4] ss:$8 sps:$4 sm:$0xff]  }
  0x35   :  { %3344 = vmatprep.subr.bf16.mxu0 %v4416_v55  ;;  %v4509_v55 = vld [vmem:[%s6558_s1 + $0x8b4] ss:$8 sps:$4 sm:$0xff]  }
  0x37   :  { %2974 = vmatpush1.bf16.msra.mxu1 %v4418_v56  ;;  %v4504_v56 = vld [vmem:[%s6558_s1 + $0x1b0] ss:$8 sps:$4 sm:$0xff]  }
  0x38   :  { %3345 = vmatpush1.bf16.msra.mxu0 %v4419_v57  ;;  %2975 = vmatprep.subr.bf16.mxu1 %v4420_v58  ;;  %v4507_v57 = vld [vmem:[%s6558_s1 + $0x8b0] ss:$8 sps:$4 sm:$0xff]   ;;  %v4512_v58 = vld [vmem:[%s6558_s1 + $0x1c4] ss:$8 sps:$4 sm:$0xff]  }
  0x39   :  { %3346 = vmatprep.subr.bf16.mxu0 %v4422_v59  ;;  %v4515_v59 = vld [vmem:[%s6558_s1 + $0x8c4] ss:$8 sps:$4 sm:$0xff]  }
  0x3b   :  { %2976 = vmatpush1.bf16.msra.mxu1 %v4424_v60  ;;  %v4510_v60 = vld [vmem:[%s6558_s1 + $0x1c0] ss:$8 sps:$4 sm:$0xff]  }
  0x3c   :  { %3347 = vmatpush1.bf16.msra.mxu0 %v4425_v61  ;;  %2977 = vmatprep.subr.bf16.mxu1 %v4426_v62  ;;  %v4513_v61 = vld [vmem:[%s6558_s1 + $0x8c0] ss:$8 sps:$4 sm:$0xff]   ;;  %v4518_v62 = vld [vmem:[%s6558_s1 + $0x1d4] ss:$8 sps:$4 sm:$0xff]  }
  0x3d   :  { %3348 = vmatprep.subr.bf16.mxu0 %v4428_v63  ;;  %v4521_v63 = vld [vmem:[%s6558_s1 + $0x8d4] ss:$8 sps:$4 sm:$0xff]  }
  0x3f   :  { %2978 = vmatpush1.bf16.msra.mxu1 %v4430_v0  ;;  %v4516_v0 = vld [vmem:[%s6558_s1 + $0x1d0] ss:$8 sps:$4 sm:$0xff]  }
  0x40   :  { %3349 = vmatpush1.bf16.msra.mxu0 %v4431_v1  ;;  %3000 = vmatprep.subr.bf16.mxu1 %v4437_v2  ;;  %v4519_v1 = vld [vmem:[%s6558_s1 + $0x8d0] ss:$8 sps:$4 sm:$0xff]   ;;  %v4526_v2 = vld [vmem:[%s6558_s1 + $0x1e4] ss:$8 sps:$4 sm:$0xff]  }
  0x41   :  { %3371 = vmatprep.subr.bf16.mxu0 %v4443_v3  ;;  %v4531_v3 = vld [vmem:[%s6558_s1 + $0x8e4] ss:$8 sps:$4 sm:$0xff]  }
  0x42   :  { %2980 = vmatmul.mubr.bf16.vlgmr.msra.gmra.mrb[0].mxu1 %v4432_v4  ;;  %v4524_v4 = vld [vmem:[%s6558_s1 + $0x1e0] ss:$8 sps:$4 sm:$0xff]  }
  0x43   :  { %3351 = vmatmul.mubr.bf16.vlgmr.msra.gmra.mrb[0].mxu0 %v4438_v6  ;;  %3001 = vmatpush1.bf16.msra.mxu1 %v4435_v5  ;;  %v4529_v5 = vld [vmem:[%s6558_s1 + $0x8e0] ss:$8 sps:$4 sm:$0xff]   ;;  %v4536_v6 = vld [vmem:[%s6558_s1 + $0x1f4] ss:$8 sps:$4 sm:$0xff]  }
  0x44   :  { %3372 = vmatpush1.bf16.msra.mxu0 %v4441_v7  ;;  %3002 = vmatprep.subr.bf16.mxu1 %v4446_v8  ;;  %v4539_v7 = vld [vmem:[%s6558_s1 + $0x8f4] ss:$8 sps:$4 sm:$0xff]   ;;  %v4534_v8 = vld [vmem:[%s6558_s1 + $0x1f0] ss:$8 sps:$4 sm:$0xff]  }
  0x45   :  { %3373 = vmatprep.subr.bf16.mxu0 %v4449_v9  ;;  %2989 = vmatprep.mubr.bf16.mxu1 %v4522_v28  ;;  %v4537_v9 = vld [vmem:[%s6558_s1 + $0x8f0] ss:$8 sps:$4 sm:$0xff]   ;;  %v4566_v28 = vld [vmem:[%s6558_s1 + $0x234] ss:$8 sps:$4 sm:$0xff]  }
  0x46   :  { %3360 = vmatprep.mubr.bf16.mxu0 %v4527_v31  ;;  %v4567_v31 = vld [vmem:[%s6558_s1 + $0x930] ss:$8 sps:$4 sm:$0xff]  }
  0x47   :  { %3003 = vmatpush1.bf16.msra.mxu1 %v4444_v10  ;;  %v4545_v10 = vld [vmem:[%s6558_s1 + $0x204] ss:$8 sps:$4 sm:$0xff]  }
  0x48   :  { %3374 = vmatpush1.bf16.msra.mxu0 %v4447_v11  ;;  %3004 = vmatprep.subr.bf16.mxu1 %v4452_v12  ;;  %v4551_v11 = vld [vmem:[%s6558_s1 + $0x904] ss:$8 sps:$4 sm:$0xff]   ;;  %v4540_v12 = vld [vmem:[%s6559_s0 + $0x8] ss:$108 sps:$4 sm:$0xff]  }
  0x49   :  { %3375 = vmatprep.subr.bf16.mxu0 %v4455_v13  ;;  %v4543_v13 = vld [vmem:[%s6558_s1 + $0x200] ss:$8 sps:$4 sm:$0xff]  }
  0x4a   :  { %2990 = vmatmul.mubr.bf16.gmra.mrb[4].mxu1 %v4532_v34  ;;  %v4575_v34 = vld [vmem:[%s6558_s1 + $0x944] ss:$8 sps:$4 sm:$0xff]  }
  0x4b   :  { %3005 = vmatpush1.bf16.msra.mxu1 %v4450_v14  ;;  %3361 = vmatmul.mubr.bf16.gmra.mrb[4].mxu0 %v4533_v35  ;;  %v4546_v14 = vld [vmem:[%s6559_s0 + $0x40] ss:$108 sps:$4 sm:$0xff]  }
  0x4c   :  { %3376 = vmatpush1.bf16.msra.mxu0 %v4453_v15  ;;  %3006 = vmatprep.subr.bf16.mxu1 %v4458_v16  ;;  %v4549_v15 = vld [vmem:[%s6558_s1 + $0x900] ss:$8 sps:$4 sm:$0xff]   ;;  %v4554_v16 = vld [vmem:[%s6558_s1 + $0x214] ss:$8 sps:$4 sm:$0xff]   ;;  %v4656_v35 = vld [vmem:[%s6559_s0 + $0x4c] ss:$108 sps:$4 sm:$0xff]  }
  0x4d   :  { %3377 = vmatprep.subr.bf16.mxu0 %v4461_v17  ;;  %3032 = vmatprep.mubr.bf16.mxu1 %v4542_v40  ;;  %v4557_v17 = vld [vmem:[%s6558_s1 + $0x914] ss:$8 sps:$4 sm:$0xff]   ;;  %v4576_v40 = vld [vmem:[%s6558_s1 + $0x250] ss:$8 sps:$4 sm:$0xff]  }
  0x4e   :  { %3403 = vmatprep.mubr.bf16.mxu0 %v4548_v43  ;;  %v4587_v43 = vld [vmem:[%s6558_s1 + $0x964] ss:$8 sps:$4 sm:$0xff]  }
  0x4f   :  { %3007 = vmatpush1.bf16.msra.mxu1 %v4456_v18  ;;  %v4552_v18 = vld [vmem:[%s6558_s1 + $0x210] ss:$8 sps:$4 sm:$0xff]  }
  0x50   :  { %3378 = vmatpush1.bf16.msra.mxu0 %v4459_v19  ;;  %3008 = vmatprep.subr.bf16.mxu1 %v4464_v20  ;;  %v4555_v19 = vld [vmem:[%s6558_s1 + $0x910] ss:$8 sps:$4 sm:$0xff]  }
  0x51   :  { %3379 = vmatprep.subr.bf16.mxu0 %v4467_v21  ;;  %v4630_v20 = vld [vmem:[%s6559_s0 + $0xe4] ss:$108 sps:$4 sm:$0xff]  }
  0x52   :  { %v4560_v21 = vld [vmem:[%s6558_s1 + $0x224] ss:$8 sps:$4 sm:$0xff]  }
  0x53   :  { %3009 = vmatpush1.bf16.msra.mxu1 %v4462_v22  ;;  %v4563_v22 = vld [vmem:[%s6558_s1 + $0x924] ss:$8 sps:$4 sm:$0xff]  }
  0x54   :  { %3380 = vmatpush1.bf16.msra.mxu0 %v4465_v23  ;;  %3010 = vmatprep.subr.bf16.mxu1 %v4470_v24  ;;  %v4635_v23 = vld [vmem:[%s6559_s0 + $0x11c] ss:$108 sps:$4 sm:$0xff]  }
  0x55   :  { %3381 = vmatprep.subr.bf16.mxu0 %v4473_v25  ;;  %v4558_v24 = vld [vmem:[%s6558_s1 + $0x220] ss:$8 sps:$4 sm:$0xff]  }
  0x56   :  { %v4561_v25 = vld [vmem:[%s6558_s1 + $0x920] ss:$8 sps:$4 sm:$0xff]  }
  0x57   :  { %3011 = vmatpush1.bf16.msra.mxu1 %v4468_v26  ;;  %v4640_v26 = vld [vmem:[%s6559_s0 + $0xe0] ss:$108 sps:$4 sm:$0xff]  }
  0x58   :  { %3382 = vmatpush1.bf16.msra.mxu0 %v4471_v27  ;;  %3012 = vmatprep.subr.bf16.mxu1 %v4476_v29  ;;  %v4641_v27 = vld [vmem:[%s6559_s0 + $0x118] ss:$108 sps:$4 sm:$0xff]   ;;  %v4569_v29 = vld [vmem:[%s6558_s1 + $0x934] ss:$8 sps:$4 sm:$0xff]  }
  0x59   :  { %3383 = vmatprep.subr.bf16.mxu0 %v4479_v30  ;;  %v4564_v30 = vld [vmem:[%s6558_s1 + $0x230] ss:$8 sps:$4 sm:$0xff]  }
  0x5b   :  { %3013 = vmatpush1.bf16.msra.mxu1 %v4474_v32  ;;  %v4650_v32 = vld [vmem:[%s6559_s0 + $0x14] ss:$108 sps:$4 sm:$0xff]  }
  0x5c   :  { %3384 = vmatpush1.bf16.msra.mxu0 %v4477_v33  ;;  %3014 = vmatprep.subr.bf16.mxu1 %v4482_v36  ;;  %v4572_v33 = vld [vmem:[%s6558_s1 + $0x244] ss:$8 sps:$4 sm:$0xff]   ;;  %v4570_v36 = vld [vmem:[%s6558_s1 + $0x240] ss:$8 sps:$4 sm:$0xff]  }
  0x5d   :  { %3385 = vmatprep.subr.bf16.mxu0 %v4485_v37  ;;  %v4573_v37 = vld [vmem:[%s6558_s1 + $0x940] ss:$8 sps:$4 sm:$0xff]  }
  0x5f   :  { %3015 = vmatpush1.bf16.msra.mxu1 %v4480_v38  ;;  %v4578_v38 = vld [vmem:[%s6558_s1 + $0x254] ss:$8 sps:$4 sm:$0xff]  }
  0x60   :  { %3386 = vmatpush1.bf16.msra.mxu0 %v4483_v39  ;;  %3016 = vmatprep.subr.bf16.mxu1 %v4488_v41  ;;  %v4581_v39 = vld [vmem:[%s6558_s1 + $0x954] ss:$8 sps:$4 sm:$0xff]   ;;  %v4579_v41 = vld [vmem:[%s6558_s1 + $0x950] ss:$8 sps:$4 sm:$0xff]  }
  0x61   :  { %3387 = vmatprep.subr.bf16.mxu0 %v4491_v42  ;;  %v4584_v42 = vld [vmem:[%s6558_s1 + $0x264] ss:$8 sps:$4 sm:$0xff]  }
  0x63   :  { %3017 = vmatpush1.bf16.msra.mxu1 %v4486_v44  ;;  %v4582_v44 = vld [vmem:[%s6558_s1 + $0x260] ss:$8 sps:$4 sm:$0xff]  }
  0x64   :  { %3388 = vmatpush1.bf16.msra.mxu0 %v4489_v45  ;;  %3018 = vmatprep.subr.bf16.mxu1 %v4494_v46  ;;  %v4585_v45 = vld [vmem:[%s6558_s1 + $0x960] ss:$8 sps:$4 sm:$0xff]   ;;  %v4590_v46 = vld [vmem:[%s6558_s1 + $0x274] ss:$8 sps:$4 sm:$0xff]  }
  0x65   :  { %3389 = vmatprep.subr.bf16.mxu0 %v4497_v47  ;;  %v4593_v47 = vld [vmem:[%s6558_s1 + $0x974] ss:$8 sps:$4 sm:$0xff]  }
  0x67   :  { %3019 = vmatpush1.bf16.msra.mxu1 %v4492_v48  ;;  %v4588_v48 = vld [vmem:[%s6558_s1 + $0x270] ss:$8 sps:$4 sm:$0xff]  }
  0x68   :  { %3390 = vmatpush1.bf16.msra.mxu0 %v4495_v49  ;;  %3020 = vmatprep.subr.bf16.mxu1 %v4500_v50  ;;  %v4591_v49 = vld [vmem:[%s6558_s1 + $0x970] ss:$8 sps:$4 sm:$0xff]   ;;  %v4596_v50 = vld [vmem:[%s6558_s1 + $0x284] ss:$8 sps:$4 sm:$0xff]  }
  0x69   :  { %3391 = vmatprep.subr.bf16.mxu0 %v4503_v51  ;;  %v4599_v51 = vld [vmem:[%s6558_s1 + $0x984] ss:$8 sps:$4 sm:$0xff]  }
  0x6b   :  { %3021 = vmatpush1.bf16.msra.mxu1 %v4498_v52  ;;  %v4594_v52 = vld [vmem:[%s6558_s1 + $0x280] ss:$8 sps:$4 sm:$0xff]  }
  0x6c   :  { %3392 = vmatpush1.bf16.msra.mxu0 %v4501_v53  ;;  %3022 = vmatprep.subr.bf16.mxu1 %v4506_v54  ;;  %v4597_v53 = vld [vmem:[%s6558_s1 + $0x980] ss:$8 sps:$4 sm:$0xff]   ;;  %v4602_v54 = vld [vmem:[%s6558_s1 + $0x294] ss:$8 sps:$4 sm:$0xff]  }
  0x6d   :  { %3393 = vmatprep.subr.bf16.mxu0 %v4509_v55  ;;  %v4605_v55 = vld [vmem:[%s6558_s1 + $0x994] ss:$8 sps:$4 sm:$0xff]  }
  0x6f   :  { %3023 = vmatpush1.bf16.msra.mxu1 %v4504_v56  ;;  %v4600_v56 = vld [vmem:[%s6558_s1 + $0x290] ss:$8 sps:$4 sm:$0xff]  }
  0x70   :  { %3394 = vmatpush1.bf16.msra.mxu0 %v4507_v57  ;;  %3024 = vmatprep.subr.bf16.mxu1 %v4512_v58  ;;  %v4603_v57 = vld [vmem:[%s6558_s1 + $0x990] ss:$8 sps:$4 sm:$0xff]   ;;  %v4608_v58 = vld [vmem:[%s6558_s1 + $0x2a4] ss:$8 sps:$4 sm:$0xff]  }
  0x71   :  { %3395 = vmatprep.subr.bf16.mxu0 %v4515_v59  ;;  %v4611_v59 = vld [vmem:[%s6558_s1 + $0x9a4] ss:$8 sps:$4 sm:$0xff]  }
  0x73   :  { %3025 = vmatpush1.bf16.msra.mxu1 %v4510_v60  ;;  %v4606_v60 = vld [vmem:[%s6558_s1 + $0x2a0] ss:$8 sps:$4 sm:$0xff]  }
  0x74   :  { %3396 = vmatpush1.bf16.msra.mxu0 %v4513_v61  ;;  %3026 = vmatprep.subr.bf16.mxu1 %v4518_v62  ;;  %v4609_v61 = vld [vmem:[%s6558_s1 + $0x9a0] ss:$8 sps:$4 sm:$0xff]   ;;  %v4614_v62 = vld [vmem:[%s6558_s1 + $0x2b4] ss:$8 sps:$4 sm:$0xff]  }
  0x75   :  { %3397 = vmatprep.subr.bf16.mxu0 %v4521_v63  ;;  %v4617_v63 = vld [vmem:[%s6558_s1 + $0x9b4] ss:$8 sps:$4 sm:$0xff]  }
  0x77   :  { %3027 = vmatpush1.bf16.msra.mxu1 %v4516_v0  ;;  %v4612_v0 = vld [vmem:[%s6558_s1 + $0x2b0] ss:$8 sps:$4 sm:$0xff]  }
  0x78   :  { %3398 = vmatpush1.bf16.msra.mxu0 %v4519_v1  ;;  %3028 = vmatprep.subr.bf16.mxu1 %v4526_v2  ;;  %v4615_v1 = vld [vmem:[%s6558_s1 + $0x9b0] ss:$8 sps:$4 sm:$0xff]   ;;  %v4620_v2 = vld [vmem:[%s6558_s1 + $0x2c4] ss:$8 sps:$4 sm:$0xff]  }
  0x79   :  { %3399 = vmatprep.subr.bf16.mxu0 %v4531_v3  ;;  %v4623_v3 = vld [vmem:[%s6558_s1 + $0x9c4] ss:$8 sps:$4 sm:$0xff]  }
  0x7b   :  { %3029 = vmatpush1.bf16.msra.mxu1 %v4524_v4  ;;  %v4618_v4 = vld [vmem:[%s6558_s1 + $0x2c0] ss:$8 sps:$4 sm:$0xff]  }
  0x7c   :  { %3400 = vmatpush1.bf16.msra.mxu0 %v4529_v5  ;;  %3030 = vmatprep.subr.bf16.mxu1 %v4536_v6  ;;  %v4621_v5 = vld [vmem:[%s6558_s1 + $0x9c0] ss:$8 sps:$4 sm:$0xff]   ;;  %v4626_v6 = vld [vmem:[%s6558_s1 + $0x2d4] ss:$8 sps:$4 sm:$0xff]  }
  0x7d   :  { %3401 = vmatprep.subr.bf16.mxu0 %v4539_v7  ;;  %v4629_v7 = vld [vmem:[%s6558_s1 + $0x9d4] ss:$8 sps:$4 sm:$0xff]  }
  0x7f   :  { %3031 = vmatpush1.bf16.msra.mxu1 %v4534_v8  ;;  %v4624_v8 = vld [vmem:[%s6558_s1 + $0x2d0] ss:$8 sps:$4 sm:$0xff]  }
  0x80   :  { %3402 = vmatpush1.bf16.msra.mxu0 %v4537_v9  ;;  %3053 = vmatprep.subr.bf16.mxu1 %v4545_v10  ;;  %v4627_v9 = vld [vmem:[%s6558_s1 + $0x9d0] ss:$8 sps:$4 sm:$0xff]   ;;  %v4634_v10 = vld [vmem:[%s6558_s1 + $0x2e4] ss:$8 sps:$4 sm:$0xff]  }
  0x81   :  { %3424 = vmatprep.subr.bf16.mxu0 %v4551_v11  ;;  %v4639_v11 = vld [vmem:[%s6558_s1 + $0x9e4] ss:$8 sps:$4 sm:$0xff]  }
  0x82   :  { %3033 = vmatmul.mubr.bf16.vlgmr.msra.gmra.mrb[0].mxu1 %v4540_v12  ;;  %v4632_v12 = vld [vmem:[%s6558_s1 + $0x2e0] ss:$8 sps:$4 sm:$0xff]  }
  0x83   :  { %3404 = vmatmul.mubr.bf16.vlgmr.msra.gmra.mrb[0].mxu0 %v4546_v14  ;;  %3054 = vmatpush1.bf16.msra.mxu1 %v4543_v13  ;;  %v4637_v13 = vld [vmem:[%s6558_s1 + $0x9e0] ss:$8 sps:$4 sm:$0xff]   ;;  %v4644_v14 = vld [vmem:[%s6558_s1 + $0x2f4] ss:$8 sps:$4 sm:$0xff]  }
  0x84   :  { %3425 = vmatpush1.bf16.msra.mxu0 %v4549_v15  ;;  %3055 = vmatprep.subr.bf16.mxu1 %v4554_v16  ;;  %v4647_v15 = vld [vmem:[%s6558_s1 + $0x9f4] ss:$8 sps:$4 sm:$0xff]   ;;  %v4642_v16 = vld [vmem:[%s6558_s1 + $0x2f0] ss:$8 sps:$4 sm:$0xff]  }
  0x85   :  { %3426 = vmatprep.subr.bf16.mxu0 %v4557_v17  ;;  %3042 = vmatprep.mubr.bf16.mxu1 %v4630_v20  ;;  %v4645_v17 = vld [vmem:[%s6558_s1 + $0x9f0] ss:$8 sps:$4 sm:$0xff]  }
  0x86   :  { %3413 = vmatprep.mubr.bf16.mxu0 %v4635_v23  ;;  %v4648_v20 = vld [vmem:[%s6559_s0 + $0x10] ss:$108 sps:$4 sm:$0xff]   ;;  %v4657_v23 = vld [vmem:[%s6558_s1 + $0xa00] ss:$8 sps:$4 sm:$0xff]  }
  0x87   :  { %3056 = vmatpush1.bf16.msra.mxu1 %v4552_v18  ;;  %v4653_v18 = vld [vmem:[%s6558_s1 + $0x304] ss:$8 sps:$4 sm:$0xff]  }
  0x88   :  { %3427 = vmatpush1.bf16.msra.mxu0 %v4555_v19  ;;  %3057 = vmatprep.subr.bf16.mxu1 %v4560_v21  ;;  %v4659_v19 = vld [vmem:[%s6558_s1 + $0xa04] ss:$8 sps:$4 sm:$0xff]   ;;  %v4651_v21 = vld [vmem:[%s6558_s1 + $0x300] ss:$8 sps:$4 sm:$0xff]  }
  0x89   :  { %3428 = vmatprep.subr.bf16.mxu0 %v4563_v22  ;;  %v4654_v22 = vld [vmem:[%s6559_s0 + $0x48] ss:$108 sps:$4 sm:$0xff]  }
  0x8a   :  { %3043 = vmatmul.mubr.bf16.gmra.mrb[4].mxu1 %v4640_v26  ;;  %v4738_v26 = vld [vmem:[%s6559_s0 + $0xec] ss:$108 sps:$4 sm:$0xff]  }
  0x8b   :  { %3414 = vmatmul.mubr.bf16.gmra.mrb[4].mxu0 %v4641_v27  ;;  %3058 = vmatpush1.bf16.msra.mxu1 %v4558_v24  ;;  %v4662_v24 = vld [vmem:[%s6558_s1 + $0x314] ss:$8 sps:$4 sm:$0xff]   ;;  %v4743_v27 = vld [vmem:[%s6559_s0 + $0x124] ss:$108 sps:$4 sm:$0xff]  }
  0x8c   :  { %3429 = vmatpush1.bf16.msra.mxu0 %v4561_v25  ;;  %3059 = vmatprep.subr.bf16.mxu1 %v4566_v28  ;;  %v4665_v25 = vld [vmem:[%s6558_s1 + $0xa14] ss:$8 sps:$4 sm:$0xff]   ;;  %v4660_v28 = vld [vmem:[%s6558_s1 + $0x310] ss:$8 sps:$4 sm:$0xff]  }
  0x8d   :  { %3430 = vmatprep.subr.bf16.mxu0 %v4569_v29  ;;  %3085 = vmatprep.mubr.bf16.mxu1 %v4650_v32  ;;  %v4663_v29 = vld [vmem:[%s6558_s1 + $0xa10] ss:$8 sps:$4 sm:$0xff]   ;;  %v4666_v32 = vld [vmem:[%s6558_s1 + $0x320] ss:$8 sps:$4 sm:$0xff]  }
  0x8e   :  { %3456 = vmatprep.mubr.bf16.mxu0 %v4656_v35  ;;  %v4749_v35 = vld [vmem:[%s6559_s0 + $0x120] ss:$108 sps:$4 sm:$0xff]  }
  0x8f   :  { %3060 = vmatpush1.bf16.msra.mxu1 %v4564_v30  ;;  %v4668_v30 = vld [vmem:[%s6558_s1 + $0x324] ss:$8 sps:$4 sm:$0xff]  }
  0x90   :  { %3431 = vmatpush1.bf16.msra.mxu0 %v4567_v31  ;;  %3061 = vmatprep.subr.bf16.mxu1 %v4572_v33  ;;  %v4671_v31 = vld [vmem:[%s6558_s1 + $0xa24] ss:$8 sps:$4 sm:$0xff]   ;;  %v4669_v33 = vld [vmem:[%s6558_s1 + $0xa20] ss:$8 sps:$4 sm:$0xff]  }
  0x91   :  { %3432 = vmatprep.subr.bf16.mxu0 %v4575_v34  ;;  %v4748_v34 = vld [vmem:[%s6559_s0 + $0xe8] ss:$108 sps:$4 sm:$0xff]  }
  0x93   :  { %3062 = vmatpush1.bf16.msra.mxu1 %v4570_v36  ;;  %v4674_v36 = vld [vmem:[%s6558_s1 + $0x334] ss:$8 sps:$4 sm:$0xff]  }
  0x94   :  { %3433 = vmatpush1.bf16.msra.mxu0 %v4573_v37  ;;  %3063 = vmatprep.subr.bf16.mxu1 %v4578_v38  ;;  %v4677_v37 = vld [vmem:[%s6558_s1 + $0xa34] ss:$8 sps:$4 sm:$0xff]  }
  0x95   :  { %3434 = vmatprep.subr.bf16.mxu0 %v4581_v39  ;;  %v4758_v38 = vld [vmem:[%s6559_s0 + $0x1c] ss:$108 sps:$4 sm:$0xff]   ;;  %v4764_v39 = vld [vmem:[%s6559_s0 + $0x54] ss:$108 sps:$4 sm:$0xff]  }
  0x97   :  { %3064 = vmatpush1.bf16.msra.mxu1 %v4576_v40  ;;  %v4672_v40 = vld [vmem:[%s6558_s1 + $0x330] ss:$8 sps:$4 sm:$0xff]  }
  0x98   :  { %3435 = vmatpush1.bf16.msra.mxu0 %v4579_v41  ;;  %3065 = vmatprep.subr.bf16.mxu1 %v4584_v42  ;;  %v4675_v41 = vld [vmem:[%s6558_s1 + $0xa30] ss:$8 sps:$4 sm:$0xff]   ;;  %v4680_v42 = vld [vmem:[%s6558_s1 + $0x344] ss:$8 sps:$4 sm:$0xff]  }
  0x99   :  { %3436 = vmatprep.subr.bf16.mxu0 %v4587_v43  ;;  %v4683_v43 = vld [vmem:[%s6558_s1 + $0xa44] ss:$8 sps:$4 sm:$0xff]  }
  0x9b   :  { %3066 = vmatpush1.bf16.msra.mxu1 %v4582_v44  ;;  %v4678_v44 = vld [vmem:[%s6558_s1 + $0x340] ss:$8 sps:$4 sm:$0xff]  }
  0x9c   :  { %3437 = vmatpush1.bf16.msra.mxu0 %v4585_v45  ;;  %3067 = vmatprep.subr.bf16.mxu1 %v4590_v46  ;;  %v4681_v45 = vld [vmem:[%s6558_s1 + $0xa40] ss:$8 sps:$4 sm:$0xff]   ;;  %v4686_v46 = vld [vmem:[%s6558_s1 + $0x354] ss:$8 sps:$4 sm:$0xff]  }
  0x9d   :  { %3438 = vmatprep.subr.bf16.mxu0 %v4593_v47  ;;  %v4689_v47 = vld [vmem:[%s6558_s1 + $0xa54] ss:$8 sps:$4 sm:$0xff]  }
  0x9f   :  { %3068 = vmatpush1.bf16.msra.mxu1 %v4588_v48  ;;  %v4684_v48 = vld [vmem:[%s6558_s1 + $0x350] ss:$8 sps:$4 sm:$0xff]  }
  0xa0   :  { %3439 = vmatpush1.bf16.msra.mxu0 %v4591_v49  ;;  %3069 = vmatprep.subr.bf16.mxu1 %v4596_v50  ;;  %v4687_v49 = vld [vmem:[%s6558_s1 + $0xa50] ss:$8 sps:$4 sm:$0xff]   ;;  %v4692_v50 = vld [vmem:[%s6558_s1 + $0x364] ss:$8 sps:$4 sm:$0xff]  }
  0xa1   :  { %3440 = vmatprep.subr.bf16.mxu0 %v4599_v51  ;;  %v4695_v51 = vld [vmem:[%s6558_s1 + $0xa64] ss:$8 sps:$4 sm:$0xff]  }
  0xa3   :  { %3070 = vmatpush1.bf16.msra.mxu1 %v4594_v52  ;;  %v4690_v52 = vld [vmem:[%s6558_s1 + $0x360] ss:$8 sps:$4 sm:$0xff]  }
  0xa4   :  { %3441 = vmatpush1.bf16.msra.mxu0 %v4597_v53  ;;  %3071 = vmatprep.subr.bf16.mxu1 %v4602_v54  ;;  %v4693_v53 = vld [vmem:[%s6558_s1 + $0xa60] ss:$8 sps:$4 sm:$0xff]   ;;  %v4698_v54 = vld [vmem:[%s6558_s1 + $0x374] ss:$8 sps:$4 sm:$0xff]  }
  0xa5   :  { %3442 = vmatprep.subr.bf16.mxu0 %v4605_v55  ;;  %v4701_v55 = vld [vmem:[%s6558_s1 + $0xa74] ss:$8 sps:$4 sm:$0xff]  }
  0xa7   :  { %3072 = vmatpush1.bf16.msra.mxu1 %v4600_v56  ;;  %v4696_v56 = vld [vmem:[%s6558_s1 + $0x370] ss:$8 sps:$4 sm:$0xff]  }
  0xa8   :  { %3443 = vmatpush1.bf16.msra.mxu0 %v4603_v57  ;;  %3073 = vmatprep.subr.bf16.mxu1 %v4608_v58  ;;  %v4699_v57 = vld [vmem:[%s6558_s1 + $0xa70] ss:$8 sps:$4 sm:$0xff]   ;;  %v4704_v58 = vld [vmem:[%s6558_s1 + $0x384] ss:$8 sps:$4 sm:$0xff]  }
  0xa9   :  { %3444 = vmatprep.subr.bf16.mxu0 %v4611_v59  ;;  %v4707_v59 = vld [vmem:[%s6558_s1 + $0xa84] ss:$8 sps:$4 sm:$0xff]  }
  0xab   :  { %3074 = vmatpush1.bf16.msra.mxu1 %v4606_v60  ;;  %v4702_v60 = vld [vmem:[%s6558_s1 + $0x380] ss:$8 sps:$4 sm:$0xff]  }
  0xac   :  { %3445 = vmatpush1.bf16.msra.mxu0 %v4609_v61  ;;  %3075 = vmatprep.subr.bf16.mxu1 %v4614_v62  ;;  %v4705_v61 = vld [vmem:[%s6558_s1 + $0xa80] ss:$8 sps:$4 sm:$0xff]   ;;  %v4710_v62 = vld [vmem:[%s6558_s1 + $0x394] ss:$8 sps:$4 sm:$0xff]  }
  0xad   :  { %3446 = vmatprep.subr.bf16.mxu0 %v4617_v63  ;;  %v4713_v63 = vld [vmem:[%s6558_s1 + $0xa94] ss:$8 sps:$4 sm:$0xff]  }
  0xaf   :  { %3076 = vmatpush1.bf16.msra.mxu1 %v4612_v0  ;;  %v4708_v0 = vld [vmem:[%s6558_s1 + $0x390] ss:$8 sps:$4 sm:$0xff]  }
  0xb0   :  { %3447 = vmatpush1.bf16.msra.mxu0 %v4615_v1  ;;  %3077 = vmatprep.subr.bf16.mxu1 %v4620_v2  ;;  %v4711_v1 = vld [vmem:[%s6558_s1 + $0xa90] ss:$8 sps:$4 sm:$0xff]   ;;  %v4716_v2 = vld [vmem:[%s6558_s1 + $0x3a4] ss:$8 sps:$4 sm:$0xff]  }
  0xb1   :  { %3448 = vmatprep.subr.bf16.mxu0 %v4623_v3  ;;  %v4719_v3 = vld [vmem:[%s6558_s1 + $0xaa4] ss:$8 sps:$4 sm:$0xff]  }
  0xb3   :  { %3078 = vmatpush1.bf16.msra.mxu1 %v4618_v4  ;;  %v4714_v4 = vld [vmem:[%s6558_s1 + $0x3a0] ss:$8 sps:$4 sm:$0xff]  }
  0xb4   :  { %3449 = vmatpush1.bf16.msra.mxu0 %v4621_v5  ;;  %3079 = vmatprep.subr.bf16.mxu1 %v4626_v6  ;;  %v4717_v5 = vld [vmem:[%s6558_s1 + $0xaa0] ss:$8 sps:$4 sm:$0xff]   ;;  %v4722_v6 = vld [vmem:[%s6558_s1 + $0x3b4] ss:$8 sps:$4 sm:$0xff]  }
  0xb5   :  { %3450 = vmatprep.subr.bf16.mxu0 %v4629_v7  ;;  %v4725_v7 = vld [vmem:[%s6558_s1 + $0xab4] ss:$8 sps:$4 sm:$0xff]  }
  0xb7   :  { %3080 = vmatpush1.bf16.msra.mxu1 %v4624_v8  ;;  %v4720_v8 = vld [vmem:[%s6558_s1 + $0x3b0] ss:$8 sps:$4 sm:$0xff]  }
  0xb8   :  { %3451 = vmatpush1.bf16.msra.mxu0 %v4627_v9  ;;  %3081 = vmatprep.subr.bf16.mxu1 %v4634_v10  ;;  %v4723_v9 = vld [vmem:[%s6558_s1 + $0xab0] ss:$8 sps:$4 sm:$0xff]   ;;  %v4728_v10 = vld [vmem:[%s6558_s1 + $0x3c4] ss:$8 sps:$4 sm:$0xff]  }
  0xb9   :  { %3452 = vmatprep.subr.bf16.mxu0 %v4639_v11  ;;  %v4731_v11 = vld [vmem:[%s6558_s1 + $0xac4] ss:$8 sps:$4 sm:$0xff]  }
  0xbb   :  { %3082 = vmatpush1.bf16.msra.mxu1 %v4632_v12  ;;  %v4726_v12 = vld [vmem:[%s6558_s1 + $0x3c0] ss:$8 sps:$4 sm:$0xff]  }
  0xbc   :  { %3453 = vmatpush1.bf16.msra.mxu0 %v4637_v13  ;;  %3083 = vmatprep.subr.bf16.mxu1 %v4644_v14  ;;  %v4729_v13 = vld [vmem:[%s6558_s1 + $0xac0] ss:$8 sps:$4 sm:$0xff]   ;;  %v4734_v14 = vld [vmem:[%s6558_s1 + $0x3d4] ss:$8 sps:$4 sm:$0xff]  }
  0xbd   :  { %3454 = vmatprep.subr.bf16.mxu0 %v4647_v15  ;;  %v4737_v15 = vld [vmem:[%s6558_s1 + $0xad4] ss:$8 sps:$4 sm:$0xff]  }
  0xbf   :  { %3084 = vmatpush1.bf16.msra.mxu1 %v4642_v16  ;;  %v4732_v16 = vld [vmem:[%s6558_s1 + $0x3d0] ss:$8 sps:$4 sm:$0xff]  }
  0xc0   :  { %3455 = vmatpush1.bf16.msra.mxu0 %v4645_v17  ;;  %3106 = vmatprep.subr.bf16.mxu1 %v4653_v18  ;;  %v4735_v17 = vld [vmem:[%s6558_s1 + $0xad0] ss:$8 sps:$4 sm:$0xff]   ;;  %v4742_v18 = vld [vmem:[%s6558_s1 + $0x3e4] ss:$8 sps:$4 sm:$0xff]  }
  0xc1   :  { %3477 = vmatprep.subr.bf16.mxu0 %v4659_v19  ;;  %v4747_v19 = vld [vmem:[%s6558_s1 + $0xae4] ss:$8 sps:$4 sm:$0xff]  }
  0xc2   :  { %3086 = vmatmul.mubr.bf16.vlgmr.msra.gmra.mrb[0].mxu1 %v4648_v20  ;;  %v4740_v20 = vld [vmem:[%s6558_s1 + $0x3e0] ss:$8 sps:$4 sm:$0xff]  }
  0xc3   :  { %3457 = vmatmul.mubr.bf16.vlgmr.msra.gmra.mrb[0].mxu0 %v4654_v22  ;;  %3107 = vmatpush1.bf16.msra.mxu1 %v4651_v21  ;;  %v4745_v21 = vld [vmem:[%s6558_s1 + $0xae0] ss:$8 sps:$4 sm:$0xff]   ;;  %v4752_v22 = vld [vmem:[%s6558_s1 + $0x3f4] ss:$8 sps:$4 sm:$0xff]  }
  0xc4   :  { %3478 = vmatpush1.bf16.msra.mxu0 %v4657_v23  ;;  %3108 = vmatprep.subr.bf16.mxu1 %v4662_v24  ;;  %v4755_v23 = vld [vmem:[%s6558_s1 + $0xaf4] ss:$8 sps:$4 sm:$0xff]   ;;  %v4750_v24 = vld [vmem:[%s6558_s1 + $0x3f0] ss:$8 sps:$4 sm:$0xff]  }
  0xc5   :  { %3479 = vmatprep.subr.bf16.mxu0 %v4665_v25  ;;  %3095 = vmatprep.mubr.bf16.mxu1 %v4738_v26  ;;  %v4753_v25 = vld [vmem:[%s6558_s1 + $0xaf0] ss:$8 sps:$4 sm:$0xff]   ;;  %v4761_v26 = vld [vmem:[%s6558_s1 + $0x404] ss:$8 sps:$4 sm:$0xff]  }
  0xc6   :  { %3466 = vmatprep.mubr.bf16.mxu0 %v4743_v27  ;;  %v4767_v27 = vld [vmem:[%s6558_s1 + $0xb04] ss:$8 sps:$4 sm:$0xff]  }
  0xc7   :  { %3109 = vmatpush1.bf16.msra.mxu1 %v4660_v28  ;;  %v4756_v28 = vld [vmem:[%s6559_s0 + $0x18] ss:$108 sps:$4 sm:$0xff]  }
  0xc8   :  { %3480 = vmatpush1.bf16.msra.mxu0 %v4663_v29  ;;  %3110 = vmatprep.subr.bf16.mxu1 %v4668_v30  ;;  %v4759_v29 = vld [vmem:[%s6558_s1 + $0x400] ss:$8 sps:$4 sm:$0xff]   ;;  %v4762_v30 = vld [vmem:[%s6559_s0 + $0x50] ss:$108 sps:$4 sm:$0xff]  }
  0xc9   :  { %3481 = vmatprep.subr.bf16.mxu0 %v4671_v31  ;;  %v4765_v31 = vld [vmem:[%s6558_s1 + $0xb00] ss:$8 sps:$4 sm:$0xff]  }
  0xca   :  { %3096 = vmatmul.mubr.bf16.gmra.mrb[4].mxu1 %v4748_v34  ;;  %v4846_v34 = vld [vmem:[%s6559_s0 + $0xf4] ss:$108 sps:$4 sm:$0xff]  }
  0xcb   :  { %3467 = vmatmul.mubr.bf16.gmra.mrb[4].mxu0 %v4749_v35  ;;  %3111 = vmatpush1.bf16.msra.mxu1 %v4666_v32  ;;  %v4770_v32 = vld [vmem:[%s6558_s1 + $0x414] ss:$8 sps:$4 sm:$0xff]   ;;  %v4851_v35 = vld [vmem:[%s6559_s0 + $0x12c] ss:$108 sps:$4 sm:$0xff]  }
  0xcc   :  { %3482 = vmatpush1.bf16.msra.mxu0 %v4669_v33  ;;  %3112 = vmatprep.subr.bf16.mxu1 %v4674_v36  ;;  %v4773_v33 = vld [vmem:[%s6558_s1 + $0xb14] ss:$8 sps:$4 sm:$0xff]   ;;  %v4768_v36 = vld [vmem:[%s6558_s1 + $0x410] ss:$8 sps:$4 sm:$0xff]  }
  0xcd   :  { %3483 = vmatprep.subr.bf16.mxu0 %v4677_v37  ;;  %3138 = vmatprep.mubr.bf16.mxu1 %v4758_v38  ;;  %v4771_v37 = vld [vmem:[%s6558_s1 + $0xb10] ss:$8 sps:$4 sm:$0xff]   ;;  %v4776_v38 = vld [vmem:[%s6558_s1 + $0x424] ss:$8 sps:$4 sm:$0xff]  }
  0xce   :  { %3509 = vmatprep.mubr.bf16.mxu0 %v4764_v39  ;;  %v4779_v39 = vld [vmem:[%s6558_s1 + $0xb24] ss:$8 sps:$4 sm:$0xff]  }
  0xcf   :  { %3113 = vmatpush1.bf16.msra.mxu1 %v4672_v40  ;;  %v4774_v40 = vld [vmem:[%s6558_s1 + $0x420] ss:$8 sps:$4 sm:$0xff]  }
  0xd0   :  { %3484 = vmatpush1.bf16.msra.mxu0 %v4675_v41  ;;  %3114 = vmatprep.subr.bf16.mxu1 %v4680_v42  ;;  %v4777_v41 = vld [vmem:[%s6558_s1 + $0xb20] ss:$8 sps:$4 sm:$0xff]   ;;  %v4856_v42 = vld [vmem:[%s6559_s0 + $0xf0] ss:$108 sps:$4 sm:$0xff]  }
  0xd1   :  { %3485 = vmatprep.subr.bf16.mxu0 %v4683_v43  ;;  %v4857_v43 = vld [vmem:[%s6559_s0 + $0x128] ss:$108 sps:$4 sm:$0xff]  }
  0xd3   :  { %3115 = vmatpush1.bf16.msra.mxu1 %v4678_v44  ;;  %v4782_v44 = vld [vmem:[%s6558_s1 + $0x434] ss:$8 sps:$4 sm:$0xff]  }
  0xd4   :  { %3486 = vmatpush1.bf16.msra.mxu0 %v4681_v45  ;;  %3116 = vmatprep.subr.bf16.mxu1 %v4686_v46  ;;  %v4785_v45 = vld [vmem:[%s6558_s1 + $0xb34] ss:$8 sps:$4 sm:$0xff]   ;;  %v4866_v46 = vld [vmem:[%s6559_s0 + $0x24] ss:$108 sps:$4 sm:$0xff]  }
  0xd5   :  { %3487 = vmatprep.subr.bf16.mxu0 %v4689_v47  ;;  %v4872_v47 = vld [vmem:[%s6559_s0 + $0x5c] ss:$108 sps:$4 sm:$0xff]  }
  0xd7   :  { %3117 = vmatpush1.bf16.msra.mxu1 %v4684_v48  ;;  %v4780_v48 = vld [vmem:[%s6558_s1 + $0x430] ss:$8 sps:$4 sm:$0xff]  }
  0xd8   :  { %3488 = vmatpush1.bf16.msra.mxu0 %v4687_v49  ;;  %3118 = vmatprep.subr.bf16.mxu1 %v4692_v50  ;;  %v4783_v49 = vld [vmem:[%s6558_s1 + $0xb30] ss:$8 sps:$4 sm:$0xff]   ;;  %v4788_v50 = vld [vmem:[%s6558_s1 + $0x444] ss:$8 sps:$4 sm:$0xff]  }
  0xd9   :  { %3489 = vmatprep.subr.bf16.mxu0 %v4695_v51  ;;  %v4791_v51 = vld [vmem:[%s6558_s1 + $0xb44] ss:$8 sps:$4 sm:$0xff]  }
  0xdb   :  { %3119 = vmatpush1.bf16.msra.mxu1 %v4690_v52  ;;  %v4786_v52 = vld [vmem:[%s6558_s1 + $0x440] ss:$8 sps:$4 sm:$0xff]  }
  0xdc   :  { %3490 = vmatpush1.bf16.msra.mxu0 %v4693_v53  ;;  %3120 = vmatprep.subr.bf16.mxu1 %v4698_v54  ;;  %v4789_v53 = vld [vmem:[%s6558_s1 + $0xb40] ss:$8 sps:$4 sm:$0xff]   ;;  %v4794_v54 = vld [vmem:[%s6558_s1 + $0x454] ss:$8 sps:$4 sm:$0xff]  }
  0xdd   :  { %3491 = vmatprep.subr.bf16.mxu0 %v4701_v55  ;;  %v4797_v55 = vld [vmem:[%s6558_s1 + $0xb54] ss:$8 sps:$4 sm:$0xff]  }
  0xdf   :  { %3121 = vmatpush1.bf16.msra.mxu1 %v4696_v56  ;;  %v4792_v56 = vld [vmem:[%s6558_s1 + $0x450] ss:$8 sps:$4 sm:$0xff]  }
  0xe0   :  { %3492 = vmatpush1.bf16.msra.mxu0 %v4699_v57  ;;  %3122 = vmatprep.subr.bf16.mxu1 %v4704_v58  ;;  %v4795_v57 = vld [vmem:[%s6558_s1 + $0xb50] ss:$8 sps:$4 sm:$0xff]   ;;  %v4800_v58 = vld [vmem:[%s6558_s1 + $0x464] ss:$8 sps:$4 sm:$0xff]  }
  0xe1   :  { %3493 = vmatprep.subr.bf16.mxu0 %v4707_v59  ;;  %v4803_v59 = vld [vmem:[%s6558_s1 + $0xb64] ss:$8 sps:$4 sm:$0xff]  }
  0xe3   :  { %3123 = vmatpush1.bf16.msra.mxu1 %v4702_v60  ;;  %v4798_v60 = vld [vmem:[%s6558_s1 + $0x460] ss:$8 sps:$4 sm:$0xff]  }
  0xe4   :  { %3494 = vmatpush1.bf16.msra.mxu0 %v4705_v61  ;;  %3124 = vmatprep.subr.bf16.mxu1 %v4710_v62  ;;  %v4801_v61 = vld [vmem:[%s6558_s1 + $0xb60] ss:$8 sps:$4 sm:$0xff]   ;;  %v4806_v62 = vld [vmem:[%s6558_s1 + $0x474] ss:$8 sps:$4 sm:$0xff]  }
  0xe5   :  { %3495 = vmatprep.subr.bf16.mxu0 %v4713_v63  ;;  %v4809_v63 = vld [vmem:[%s6558_s1 + $0xb74] ss:$8 sps:$4 sm:$0xff]  }
  0xe7   :  { %3125 = vmatpush1.bf16.msra.mxu1 %v4708_v0  ;;  %v4804_v0 = vld [vmem:[%s6558_s1 + $0x470] ss:$8 sps:$4 sm:$0xff]  }
  0xe8   :  { %3496 = vmatpush1.bf16.msra.mxu0 %v4711_v1  ;;  %3126 = vmatprep.subr.bf16.mxu1 %v4716_v2  ;;  %v4807_v1 = vld [vmem:[%s6558_s1 + $0xb70] ss:$8 sps:$4 sm:$0xff]   ;;  %v4812_v2 = vld [vmem:[%s6558_s1 + $0x484] ss:$8 sps:$4 sm:$0xff]  }
  0xe9   :  { %3497 = vmatprep.subr.bf16.mxu0 %v4719_v3  ;;  %v4815_v3 = vld [vmem:[%s6558_s1 + $0xb84] ss:$8 sps:$4 sm:$0xff]  }
  0xeb   :  { %3127 = vmatpush1.bf16.msra.mxu1 %v4714_v4  ;;  %v4810_v4 = vld [vmem:[%s6558_s1 + $0x480] ss:$8 sps:$4 sm:$0xff]  }
  0xec   :  { %3498 = vmatpush1.bf16.msra.mxu0 %v4717_v5  ;;  %3128 = vmatprep.subr.bf16.mxu1 %v4722_v6  ;;  %v4813_v5 = vld [vmem:[%s6558_s1 + $0xb80] ss:$8 sps:$4 sm:$0xff]   ;;  %v4818_v6 = vld [vmem:[%s6558_s1 + $0x494] ss:$8 sps:$4 sm:$0xff]  }
  0xed   :  { %3499 = vmatprep.subr.bf16.mxu0 %v4725_v7  ;;  %v4821_v7 = vld [vmem:[%s6558_s1 + $0xb94] ss:$8 sps:$4 sm:$0xff]  }
  0xef   :  { %3129 = vmatpush1.bf16.msra.mxu1 %v4720_v8  ;;  %v4816_v8 = vld [vmem:[%s6558_s1 + $0x490] ss:$8 sps:$4 sm:$0xff]  }
  0xf0   :  { %3500 = vmatpush1.bf16.msra.mxu0 %v4723_v9  ;;  %3130 = vmatprep.subr.bf16.mxu1 %v4728_v10  ;;  %v4819_v9 = vld [vmem:[%s6558_s1 + $0xb90] ss:$8 sps:$4 sm:$0xff]   ;;  %v4824_v10 = vld [vmem:[%s6558_s1 + $0x4a4] ss:$8 sps:$4 sm:$0xff]  }
  0xf1   :  { %3501 = vmatprep.subr.bf16.mxu0 %v4731_v11  ;;  %v4827_v11 = vld [vmem:[%s6558_s1 + $0xba4] ss:$8 sps:$4 sm:$0xff]  }
  0xf3   :  { %3131 = vmatpush1.bf16.msra.mxu1 %v4726_v12  ;;  %v4822_v12 = vld [vmem:[%s6558_s1 + $0x4a0] ss:$8 sps:$4 sm:$0xff]  }
  0xf4   :  { %3502 = vmatpush1.bf16.msra.mxu0 %v4729_v13  ;;  %3132 = vmatprep.subr.bf16.mxu1 %v4734_v14  ;;  %v4825_v13 = vld [vmem:[%s6558_s1 + $0xba0] ss:$8 sps:$4 sm:$0xff]   ;;  %v4830_v14 = vld [vmem:[%s6558_s1 + $0x4b4] ss:$8 sps:$4 sm:$0xff]  }
  0xf5   :  { %3503 = vmatprep.subr.bf16.mxu0 %v4737_v15  ;;  %v4833_v15 = vld [vmem:[%s6558_s1 + $0xbb4] ss:$8 sps:$4 sm:$0xff]  }
  0xf7   :  { %3133 = vmatpush1.bf16.msra.mxu1 %v4732_v16  ;;  %v4828_v16 = vld [vmem:[%s6558_s1 + $0x4b0] ss:$8 sps:$4 sm:$0xff]  }
  0xf8   :  { %3504 = vmatpush1.bf16.msra.mxu0 %v4735_v17  ;;  %3134 = vmatprep.subr.bf16.mxu1 %v4742_v18  ;;  %v4831_v17 = vld [vmem:[%s6558_s1 + $0xbb0] ss:$8 sps:$4 sm:$0xff]   ;;  %v4836_v18 = vld [vmem:[%s6558_s1 + $0x4c4] ss:$8 sps:$4 sm:$0xff]  }
  0xf9   :  { %3505 = vmatprep.subr.bf16.mxu0 %v4747_v19  ;;  %v4839_v19 = vld [vmem:[%s6558_s1 + $0xbc4] ss:$8 sps:$4 sm:$0xff]  }
  0xfb   :  { %3135 = vmatpush1.bf16.msra.mxu1 %v4740_v20  ;;  %v4834_v20 = vld [vmem:[%s6558_s1 + $0x4c0] ss:$8 sps:$4 sm:$0xff]  }
  0xfc   :  { %3506 = vmatpush1.bf16.msra.mxu0 %v4745_v21  ;;  %3136 = vmatprep.subr.bf16.mxu1 %v4752_v22  ;;  %v4837_v21 = vld [vmem:[%s6558_s1 + $0xbc0] ss:$8 sps:$4 sm:$0xff]   ;;  %v4842_v22 = vld [vmem:[%s6558_s1 + $0x4d4] ss:$8 sps:$4 sm:$0xff]  }
  0xfd   :  { %3507 = vmatprep.subr.bf16.mxu0 %v4755_v23  ;;  %v4845_v23 = vld [vmem:[%s6558_s1 + $0xbd4] ss:$8 sps:$4 sm:$0xff]  }
  0xff   :  { %3137 = vmatpush1.bf16.msra.mxu1 %v4750_v24  ;;  %v4840_v24 = vld [vmem:[%s6558_s1 + $0x4d0] ss:$8 sps:$4 sm:$0xff]  }
 0x100   :  { %3508 = vmatpush1.bf16.msra.mxu0 %v4753_v25  ;;  %3159 = vmatprep.subr.bf16.mxu1 %v4761_v26  ;;  %v4843_v25 = vld [vmem:[%s6558_s1 + $0xbd0] ss:$8 sps:$4 sm:$0xff]   ;;  %v4850_v26 = vld [vmem:[%s6558_s1 + $0x4e4] ss:$8 sps:$4 sm:$0xff]  }
 0x101   :  { %3530 = vmatprep.subr.bf16.mxu0 %v4767_v27  ;;  %v4855_v27 = vld [vmem:[%s6558_s1 + $0xbe4] ss:$8 sps:$4 sm:$0xff]  }
 0x102   :  { %3139 = vmatmul.mubr.bf16.vlgmr.msra.gmra.mrb[0].mxu1 %v4756_v28  ;;  %v4848_v28 = vld [vmem:[%s6558_s1 + $0x4e0] ss:$8 sps:$4 sm:$0xff]  }
 0x103   :  { %3510 = vmatmul.mubr.bf16.vlgmr.msra.gmra.mrb[0].mxu0 %v4762_v30  ;;  %3160 = vmatpush1.bf16.msra.mxu1 %v4759_v29  ;;  %v4853_v29 = vld [vmem:[%s6558_s1 + $0xbe0] ss:$8 sps:$4 sm:$0xff]   ;;  %v4860_v30 = vld [vmem:[%s6558_s1 + $0x4f4] ss:$8 sps:$4 sm:$0xff]  }
 0x104   :  { %3531 = vmatpush1.bf16.msra.mxu0 %v4765_v31  ;;  %3161 = vmatprep.subr.bf16.mxu1 %v4770_v32  ;;  %v4863_v31 = vld [vmem:[%s6558_s1 + $0xbf4] ss:$8 sps:$4 sm:$0xff]   ;;  %v4858_v32 = vld [vmem:[%s6558_s1 + $0x4f0] ss:$8 sps:$4 sm:$0xff]  }
 0x105   :  { %3532 = vmatprep.subr.bf16.mxu0 %v4773_v33  ;;  %3148 = vmatprep.mubr.bf16.mxu1 %v4846_v34  ;;  %v4861_v33 = vld [vmem:[%s6558_s1 + $0xbf0] ss:$8 sps:$4 sm:$0xff]   ;;  %v4864_v34 = vld [vmem:[%s6559_s0 + $0x20] ss:$108 sps:$4 sm:$0xff]  }
 0x106   :  { %3519 = vmatprep.mubr.bf16.mxu0 %v4851_v35  ;;  %v4869_v35 = vld [vmem:[%s6558_s1 + $0x504] ss:$8 sps:$4 sm:$0xff]  }
 0x107   :  { %3162 = vmatpush1.bf16.msra.mxu1 %v4768_v36  ;;  %v4875_v36 = vld [vmem:[%s6558_s1 + $0xc04] ss:$8 sps:$4 sm:$0xff]  }
 0x108   :  { %3533 = vmatpush1.bf16.msra.mxu0 %v4771_v37  ;;  %3163 = vmatprep.subr.bf16.mxu1 %v4776_v38  ;;  %v4867_v37 = vld [vmem:[%s6558_s1 + $0x500] ss:$8 sps:$4 sm:$0xff]   ;;  %v4870_v38 = vld [vmem:[%s6559_s0 + $0x58] ss:$108 sps:$4 sm:$0xff]  }
 0x109   :  { %3534 = vmatprep.subr.bf16.mxu0 %v4779_v39  ;;  %v4873_v39 = vld [vmem:[%s6558_s1 + $0xc00] ss:$8 sps:$4 sm:$0xff]  }
 0x10a   :  { %3149 = vmatmul.mubr.bf16.gmra.mrb[4].mxu1 %v4856_v42  ;;  %v4954_v42 = vld [vmem:[%s6559_s0 + $0xfc] ss:$108 sps:$4 sm:$0xff]  }
 0x10b   :  { %3520 = vmatmul.mubr.bf16.gmra.mrb[4].mxu0 %v4857_v43  ;;  %3164 = vmatpush1.bf16.msra.mxu1 %v4774_v40  ;;  %v4878_v40 = vld [vmem:[%s6558_s1 + $0x514] ss:$8 sps:$4 sm:$0xff]  }
 0x10c   :  { %3535 = vmatpush1.bf16.msra.mxu0 %v4777_v41  ;;  %3165 = vmatprep.subr.bf16.mxu1 %v4782_v44  ;;  %v4881_v41 = vld [vmem:[%s6558_s1 + $0xc14] ss:$8 sps:$4 sm:$0xff]   ;;  %v4876_v44 = vld [vmem:[%s6558_s1 + $0x510] ss:$8 sps:$4 sm:$0xff]  }
 0x10d   :  { %3536 = vmatprep.subr.bf16.mxu0 %v4785_v45  ;;  %3191 = vmatprep.mubr.bf16.mxu1 %v4866_v46  ;;  %v4959_v43 = vld [vmem:[%s6559_s0 + $0x134] ss:$108 sps:$4 sm:$0xff]   ;;  %v4879_v45 = vld [vmem:[%s6558_s1 + $0xc10] ss:$8 sps:$4 sm:$0xff]   ;;  %v4884_v46 = vld [vmem:[%s6558_s1 + $0x524] ss:$8 sps:$4 sm:$0xff]  }
 0x10e   :  { %3562 = vmatprep.mubr.bf16.mxu0 %v4872_v47  ;;  %v4887_v47 = vld [vmem:[%s6558_s1 + $0xc24] ss:$8 sps:$4 sm:$0xff]  }
 0x10f   :  { %3166 = vmatpush1.bf16.msra.mxu1 %v4780_v48  ;;  %v4964_v48 = vld [vmem:[%s6559_s0 + $0xf8] ss:$108 sps:$4 sm:$0xff]  }
 0x110   :  { %3537 = vmatpush1.bf16.msra.mxu0 %v4783_v49  ;;  %3167 = vmatprep.subr.bf16.mxu1 %v4788_v50  ;;  %v4965_v49 = vld [vmem:[%s6559_s0 + $0x130] ss:$108 sps:$4 sm:$0xff]   ;;  %v4882_v50 = vld [vmem:[%s6558_s1 + $0x520] ss:$8 sps:$4 sm:$0xff]  }
 0x111   :  { %3538 = vmatprep.subr.bf16.mxu0 %v4791_v51  ;;  %v4885_v51 = vld [vmem:[%s6558_s1 + $0xc20] ss:$8 sps:$4 sm:$0xff]  }
 0x113   :  { %3168 = vmatpush1.bf16.msra.mxu1 %v4786_v52  ;;  %v4890_v52 = vld [vmem:[%s6558_s1 + $0x534] ss:$8 sps:$4 sm:$0xff]  }
 0x114   :  { %3539 = vmatpush1.bf16.msra.mxu0 %v4789_v53  ;;  %3169 = vmatprep.subr.bf16.mxu1 %v4794_v54  ;;  %v4893_v53 = vld [vmem:[%s6558_s1 + $0xc34] ss:$8 sps:$4 sm:$0xff]   ;;  %v4974_v54 = vld [vmem:[%s6559_s0 + $0x2c] ss:$108 sps:$4 sm:$0xff]  }
 0x115   :  { %3540 = vmatprep.subr.bf16.mxu0 %v4797_v55  ;;  %v4980_v55 = vld [vmem:[%s6559_s0 + $0x64] ss:$108 sps:$4 sm:$0xff]  }
 0x117   :  { %3170 = vmatpush1.bf16.msra.mxu1 %v4792_v56  ;;  %v4888_v56 = vld [vmem:[%s6558_s1 + $0x530] ss:$8 sps:$4 sm:$0xff]  }
 0x118   :  { %3541 = vmatpush1.bf16.msra.mxu0 %v4795_v57  ;;  %3171 = vmatprep.subr.bf16.mxu1 %v4800_v58  ;;  %v4891_v57 = vld [vmem:[%s6558_s1 + $0xc30] ss:$8 sps:$4 sm:$0xff]   ;;  %v4896_v58 = vld [vmem:[%s6558_s1 + $0x544] ss:$8 sps:$4 sm:$0xff]  }
 0x119   :  { %3542 = vmatprep.subr.bf16.mxu0 %v4803_v59  ;;  %v4899_v59 = vld [vmem:[%s6558_s1 + $0xc44] ss:$8 sps:$4 sm:$0xff]  }
 0x11b   :  { %3172 = vmatpush1.bf16.msra.mxu1 %v4798_v60  ;;  %v4894_v60 = vld [vmem:[%s6558_s1 + $0x540] ss:$8 sps:$4 sm:$0xff]  }
 0x11c   :  { %3543 = vmatpush1.bf16.msra.mxu0 %v4801_v61  ;;  %3173 = vmatprep.subr.bf16.mxu1 %v4806_v62  ;;  %v4897_v61 = vld [vmem:[%s6558_s1 + $0xc40] ss:$8 sps:$4 sm:$0xff]   ;;  %v4902_v62 = vld [vmem:[%s6558_s1 + $0x554] ss:$8 sps:$4 sm:$0xff]  }
 0x11d   :  { %3544 = vmatprep.subr.bf16.mxu0 %v4809_v63  ;;  %v4905_v63 = vld [vmem:[%s6558_s1 + $0xc54] ss:$8 sps:$4 sm:$0xff]  }
 0x11f   :  { %3174 = vmatpush1.bf16.msra.mxu1 %v4804_v0  ;;  %v4900_v0 = vld [vmem:[%s6558_s1 + $0x550] ss:$8 sps:$4 sm:$0xff]  }
 0x120   :  { %3545 = vmatpush1.bf16.msra.mxu0 %v4807_v1  ;;  %3175 = vmatprep.subr.bf16.mxu1 %v4812_v2  ;;  %v4903_v1 = vld [vmem:[%s6558_s1 + $0xc50] ss:$8 sps:$4 sm:$0xff]   ;;  %v4908_v2 = vld [vmem:[%s6558_s1 + $0x564] ss:$8 sps:$4 sm:$0xff]  }
 0x121   :  { %3546 = vmatprep.subr.bf16.mxu0 %v4815_v3  ;;  %v4911_v3 = vld [vmem:[%s6558_s1 + $0xc64] ss:$8 sps:$4 sm:$0xff]  }
 0x123   :  { %3176 = vmatpush1.bf16.msra.mxu1 %v4810_v4  ;;  %v4906_v4 = vld [vmem:[%s6558_s1 + $0x560] ss:$8 sps:$4 sm:$0xff]  }
 0x124   :  { %3547 = vmatpush1.bf16.msra.mxu0 %v4813_v5  ;;  %3177 = vmatprep.subr.bf16.mxu1 %v4818_v6  ;;  %v4909_v5 = vld [vmem:[%s6558_s1 + $0xc60] ss:$8 sps:$4 sm:$0xff]   ;;  %v4914_v6 = vld [vmem:[%s6558_s1 + $0x574] ss:$8 sps:$4 sm:$0xff]  }
 0x125   :  { %3548 = vmatprep.subr.bf16.mxu0 %v4821_v7  ;;  %v4917_v7 = vld [vmem:[%s6558_s1 + $0xc74] ss:$8 sps:$4 sm:$0xff]  }
 0x127   :  { %3178 = vmatpush1.bf16.msra.mxu1 %v4816_v8  ;;  %v4912_v8 = vld [vmem:[%s6558_s1 + $0x570] ss:$8 sps:$4 sm:$0xff]  }
 0x128   :  { %3549 = vmatpush1.bf16.msra.mxu0 %v4819_v9  ;;  %3179 = vmatprep.subr.bf16.mxu1 %v4824_v10  ;;  %v4915_v9 = vld [vmem:[%s6558_s1 + $0xc70] ss:$8 sps:$4 sm:$0xff]   ;;  %v4920_v10 = vld [vmem:[%s6558_s1 + $0x584] ss:$8 sps:$4 sm:$0xff]  }
 0x129   :  { %3550 = vmatprep.subr.bf16.mxu0 %v4827_v11  ;;  %v4923_v11 = vld [vmem:[%s6558_s1 + $0xc84] ss:$8 sps:$4 sm:$0xff]  }
 0x12b   :  { %3180 = vmatpush1.bf16.msra.mxu1 %v4822_v12  ;;  %v4918_v12 = vld [vmem:[%s6558_s1 + $0x580] ss:$8 sps:$4 sm:$0xff]  }
 0x12c   :  { %3551 = vmatpush1.bf16.msra.mxu0 %v4825_v13  ;;  %3181 = vmatprep.subr.bf16.mxu1 %v4830_v14  ;;  %v4921_v13 = vld [vmem:[%s6558_s1 + $0xc80] ss:$8 sps:$4 sm:$0xff]   ;;  %v4926_v14 = vld [vmem:[%s6558_s1 + $0x594] ss:$8 sps:$4 sm:$0xff]  }
 0x12d   :  { %3552 = vmatprep.subr.bf16.mxu0 %v4833_v15  ;;  %v4929_v15 = vld [vmem:[%s6558_s1 + $0xc94] ss:$8 sps:$4 sm:$0xff]  }
 0x12f   :  { %3182 = vmatpush1.bf16.msra.mxu1 %v4828_v16  ;;  %v4924_v16 = vld [vmem:[%s6558_s1 + $0x590] ss:$8 sps:$4 sm:$0xff]  }
 0x130   :  { %3553 = vmatpush1.bf16.msra.mxu0 %v4831_v17  ;;  %3183 = vmatprep.subr.bf16.mxu1 %v4836_v18  ;;  %v4927_v17 = vld [vmem:[%s6558_s1 + $0xc90] ss:$8 sps:$4 sm:$0xff]   ;;  %v4932_v18 = vld [vmem:[%s6558_s1 + $0x5a4] ss:$8 sps:$4 sm:$0xff]  }
 0x131   :  { %3554 = vmatprep.subr.bf16.mxu0 %v4839_v19  ;;  %v4935_v19 = vld [vmem:[%s6558_s1 + $0xca4] ss:$8 sps:$4 sm:$0xff]  }
 0x133   :  { %3184 = vmatpush1.bf16.msra.mxu1 %v4834_v20  ;;  %v4930_v20 = vld [vmem:[%s6558_s1 + $0x5a0] ss:$8 sps:$4 sm:$0xff]  }
 0x134   :  { %3555 = vmatpush1.bf16.msra.mxu0 %v4837_v21  ;;  %3185 = vmatprep.subr.bf16.mxu1 %v4842_v22  ;;  %v4933_v21 = vld [vmem:[%s6558_s1 + $0xca0] ss:$8 sps:$4 sm:$0xff]   ;;  %v4938_v22 = vld [vmem:[%s6558_s1 + $0x5b4] ss:$8 sps:$4 sm:$0xff]  }
 0x135   :  { %3556 = vmatprep.subr.bf16.mxu0 %v4845_v23  ;;  %v4941_v23 = vld [vmem:[%s6558_s1 + $0xcb4] ss:$8 sps:$4 sm:$0xff]  }
 0x137   :  { %3186 = vmatpush1.bf16.msra.mxu1 %v4840_v24  ;;  %v4936_v24 = vld [vmem:[%s6558_s1 + $0x5b0] ss:$8 sps:$4 sm:$0xff]  }
 0x138   :  { %3557 = vmatpush1.bf16.msra.mxu0 %v4843_v25  ;;  %3187 = vmatprep.subr.bf16.mxu1 %v4850_v26  ;;  %v4939_v25 = vld [vmem:[%s6558_s1 + $0xcb0] ss:$8 sps:$4 sm:$0xff]   ;;  %v4944_v26 = vld [vmem:[%s6558_s1 + $0x5c4] ss:$8 sps:$4 sm:$0xff]  }
 0x139   :  { %3558 = vmatprep.subr.bf16.mxu0 %v4855_v27  ;;  %v4947_v27 = vld [vmem:[%s6558_s1 + $0xcc4] ss:$8 sps:$4 sm:$0xff]  }
 0x13b   :  { %3188 = vmatpush1.bf16.msra.mxu1 %v4848_v28  ;;  %v4942_v28 = vld [vmem:[%s6558_s1 + $0x5c0] ss:$8 sps:$4 sm:$0xff]  }
 0x13c   :  { %3559 = vmatpush1.bf16.msra.mxu0 %v4853_v29  ;;  %3189 = vmatprep.subr.bf16.mxu1 %v4860_v30  ;;  %v4945_v29 = vld [vmem:[%s6558_s1 + $0xcc0] ss:$8 sps:$4 sm:$0xff]   ;;  %v4950_v30 = vld [vmem:[%s6558_s1 + $0x5d4] ss:$8 sps:$4 sm:$0xff]  }
 0x13d   :  { %3560 = vmatprep.subr.bf16.mxu0 %v4863_v31  ;;  %v4953_v31 = vld [vmem:[%s6558_s1 + $0xcd4] ss:$8 sps:$4 sm:$0xff]  }
 0x13f   :  { %3190 = vmatpush1.bf16.msra.mxu1 %v4858_v32  ;;  %v4948_v32 = vld [vmem:[%s6558_s1 + $0x5d0] ss:$8 sps:$4 sm:$0xff]  }
 0x140   :  { %3561 = vmatpush1.bf16.msra.mxu0 %v4861_v33  ;;  %3212 = vmatprep.subr.bf16.mxu1 %v4869_v35  ;;  %v4951_v33 = vld [vmem:[%s6558_s1 + $0xcd0] ss:$8 sps:$4 sm:$0xff]   ;;  %v4963_v35 = vld [vmem:[%s6558_s1 + $0xce4] ss:$8 sps:$4 sm:$0xff]  }
 0x141   :  { %3583 = vmatprep.subr.bf16.mxu0 %v4875_v36  ;;  %v4956_v36 = vld [vmem:[%s6558_s1 + $0x5e0] ss:$8 sps:$4 sm:$0xff]  }
 0x142   :  { %3192 = vmatmul.mubr.bf16.vlgmr.msra.gmra.mrb[0].mxu1 %v4864_v34  ;;  %v4958_v34 = vld [vmem:[%s6558_s1 + $0x5e4] ss:$8 sps:$4 sm:$0xff]  }
 0x143   :  { %3563 = vmatmul.mubr.bf16.vlgmr.msra.gmra.mrb[0].mxu0 %v4870_v38  ;;  %3213 = vmatpush1.bf16.msra.mxu1 %v4867_v37  ;;  %v4961_v37 = vld [vmem:[%s6558_s1 + $0xce0] ss:$8 sps:$4 sm:$0xff]   ;;  %v4968_v38 = vld [vmem:[%s6558_s1 + $0x5f4] ss:$8 sps:$4 sm:$0xff]  }
 0x144   :  { %3584 = vmatpush1.bf16.msra.mxu0 %v4873_v39  ;;  %3214 = vmatprep.subr.bf16.mxu1 %v4878_v40  ;;  %v4971_v39 = vld [vmem:[%s6558_s1 + $0xcf4] ss:$8 sps:$4 sm:$0xff]   ;;  %v4966_v40 = vld [vmem:[%s6558_s1 + $0x5f0] ss:$8 sps:$4 sm:$0xff]  }
 0x145   :  { %3585 = vmatprep.subr.bf16.mxu0 %v4881_v41  ;;  %3201 = vmatprep.mubr.bf16.mxu1 %v4954_v42  ;;  %v4969_v41 = vld [vmem:[%s6558_s1 + $0xcf0] ss:$8 sps:$4 sm:$0xff]   ;;  %v4977_v42 = vld [vmem:[%s6558_s1 + $0x604] ss:$8 sps:$4 sm:$0xff]  }
 0x146   :  { %3572 = vmatprep.mubr.bf16.mxu0 %v4959_v43  ;;  %v4983_v43 = vld [vmem:[%s6558_s1 + $0xd04] ss:$8 sps:$4 sm:$0xff]  }
 0x147   :  { %3215 = vmatpush1.bf16.msra.mxu1 %v4876_v44  ;;  %v4972_v44 = vld [vmem:[%s6559_s0 + $0x28] ss:$108 sps:$4 sm:$0xff]  }
 0x148   :  { %3586 = vmatpush1.bf16.msra.mxu0 %v4879_v45  ;;  %3216 = vmatprep.subr.bf16.mxu1 %v4884_v46  ;;  %v4978_v45 = vld [vmem:[%s6559_s0 + $0x60] ss:$108 sps:$4 sm:$0xff]  }
 0x149   :  { %3587 = vmatprep.subr.bf16.mxu0 %v4887_v47  ;;  %v4975_v46 = vld [vmem:[%s6558_s1 + $0x600] ss:$8 sps:$4 sm:$0xff]  }
 0x14a   :  { %3202 = vmatmul.mubr.bf16.gmra.mrb[4].mxu1 %v4964_v48  ;;  %v4981_v47 = vld [vmem:[%s6558_s1 + $0xd00] ss:$8 sps:$4 sm:$0xff]   ;;  %v4986_v48 = vld [vmem:[%s6558_s1 + $0x614] ss:$8 sps:$4 sm:$0xff]  }
 0x14b   :  { %3573 = vmatmul.mubr.bf16.gmra.mrb[4].mxu0 %v4965_v49  ;;  %3217 = vmatpush1.bf16.msra.mxu1 %v4882_v50  ;;  %v4989_v49 = vld [vmem:[%s6558_s1 + $0xd14] ss:$8 sps:$4 sm:$0xff]  }
 0x14c   :  { %3588 = vmatpush1.bf16.msra.mxu0 %v4885_v51  ;;  %3218 = vmatprep.subr.bf16.mxu1 %v4890_v52  ;;  %v5014_v50 = vld [vmem:[%s6559_s0 + $0x13c] ss:$108 sps:$4 sm:$0xff]   ;;  %v5049_v51 = vld [vmem:[%s6559_s0 + $0x104] ss:$108 sps:$4 sm:$0xff]  }
 0x14d   :  { %3589 = vmatprep.subr.bf16.mxu0 %v4893_v53  ;;  %3244 = vmatprep.mubr.bf16.mxu1 %v4974_v54  ;;  %v4984_v52 = vld [vmem:[%s6558_s1 + $0x610] ss:$8 sps:$4 sm:$0xff]   ;;  %v4992_v54 = vld [vmem:[%s6558_s1 + $0x624] ss:$8 sps:$4 sm:$0xff]  }
 0x14e   :  { %3615 = vmatprep.mubr.bf16.mxu0 %v4980_v55  ;;  %v4987_v53 = vld [vmem:[%s6558_s1 + $0xd10] ss:$8 sps:$4 sm:$0xff]   ;;  %v4995_v55 = vld [vmem:[%s6558_s1 + $0xd24] ss:$8 sps:$4 sm:$0xff]  }
 0x14f   :  { %3219 = vmatpush1.bf16.msra.mxu1 %v4888_v56  ;;  %v5019_v56 = vld [vmem:[%s6559_s0 + $0x138] ss:$108 sps:$4 sm:$0xff]  }
 0x150   :  { %3590 = vmatpush1.bf16.msra.mxu0 %v4891_v57  ;;  %3220 = vmatprep.subr.bf16.mxu1 %v4896_v58  ;;  %v5051_v57 = vld [vmem:[%s6559_s0 + $0x100] ss:$108 sps:$4 sm:$0xff]  }
 0x151   :  { %3591 = vmatprep.subr.bf16.mxu0 %v4899_v59  ;;  %v4990_v58 = vld [vmem:[%s6558_s1 + $0x620] ss:$8 sps:$4 sm:$0xff]  }
 0x152   :  { %v4993_v59 = vld [vmem:[%s6558_s1 + $0xd20] ss:$8 sps:$4 sm:$0xff]  }
 0x153   :  { %3221 = vmatpush1.bf16.msra.mxu1 %v4894_v60  ;;  %v4998_v60 = vld [vmem:[%s6558_s1 + $0x634] ss:$8 sps:$4 sm:$0xff]  }
 0x154   :  { %3592 = vmatpush1.bf16.msra.mxu0 %v4897_v61  ;;  %3222 = vmatprep.subr.bf16.mxu1 %v4902_v62  ;;  %v5001_v61 = vld [vmem:[%s6558_s1 + $0xd34] ss:$8 sps:$4 sm:$0xff]  }
 0x155   :  { %3593 = vmatprep.subr.bf16.mxu0 %v4905_v63  ;;  %v5060_v62 = vld [vmem:[%s6559_s0 + $0x34] ss:$108 sps:$4 sm:$0xff]   ;;  %v4996_v63 = vld [vmem:[%s6558_s1 + $0x630] ss:$8 sps:$4 sm:$0xff]  }
 0x157   :  { %3223 = vmatpush1.bf16.msra.mxu1 %v4900_v0  ;;  %v4999_v0 = vld [vmem:[%s6558_s1 + $0xd30] ss:$8 sps:$4 sm:$0xff]  }
 0x158   :  { %3594 = vmatpush1.bf16.msra.mxu0 %v4903_v1  ;;  %3224 = vmatprep.subr.bf16.mxu1 %v4908_v2  ;;  %v5004_v1 = vld [vmem:[%s6558_s1 + $0x644] ss:$8 sps:$4 sm:$0xff]  }
 0x159   :  { %3595 = vmatprep.subr.bf16.mxu0 %v4911_v3  ;;  %v5007_v2 = vld [vmem:[%s6558_s1 + $0xd44] ss:$8 sps:$4 sm:$0xff]   ;;  %v5064_v3 = vmov 0  }
 0x15b   :  { %3225 = vmatpush1.bf16.msra.mxu1 %v4906_v4  ;;  %v5002_v4 = vld [vmem:[%s6558_s1 + $0x640] ss:$8 sps:$4 sm:$0xff]  }
 0x15c   :  { %3596 = vmatpush1.bf16.msra.mxu0 %v4909_v5  ;;  %3226 = vmatprep.subr.bf16.mxu1 %v4914_v6  ;;  %v5005_v5 = vld [vmem:[%s6558_s1 + $0xd40] ss:$8 sps:$4 sm:$0xff]   ;;  %v5010_v6 = vld [vmem:[%s6558_s1 + $0x654] ss:$8 sps:$4 sm:$0xff]  }
 0x15d   :  { %3597 = vmatprep.subr.bf16.mxu0 %v4917_v7  ;;  %v5013_v7 = vld [vmem:[%s6558_s1 + $0xd54] ss:$8 sps:$4 sm:$0xff]  }
 0x15f   :  { %3227 = vmatpush1.bf16.msra.mxu1 %v4912_v8  ;;  %v5008_v8 = vld [vmem:[%s6558_s1 + $0x650] ss:$8 sps:$4 sm:$0xff]  }
 0x160   :  { %3598 = vmatpush1.bf16.msra.mxu0 %v4915_v9  ;;  %3228 = vmatprep.subr.bf16.mxu1 %v4920_v10  ;;  %v5011_v9 = vld [vmem:[%s6558_s1 + $0xd50] ss:$8 sps:$4 sm:$0xff]   ;;  %v5018_v10 = vld [vmem:[%s6558_s1 + $0x664] ss:$8 sps:$4 sm:$0xff]  }
 0x161   :  { %3599 = vmatprep.subr.bf16.mxu0 %v4923_v11  ;;  %v5022_v11 = vld [vmem:[%s6558_s1 + $0xd64] ss:$8 sps:$4 sm:$0xff]  }
 0x163   :  { %3229 = vmatpush1.bf16.msra.mxu1 %v4918_v12  ;;  %v5016_v12 = vld [vmem:[%s6558_s1 + $0x660] ss:$8 sps:$4 sm:$0xff]  }
 0x164   :  { %3600 = vmatpush1.bf16.msra.mxu0 %v4921_v13  ;;  %3230 = vmatprep.subr.bf16.mxu1 %v4926_v14  ;;  %v5020_v13 = vld [vmem:[%s6558_s1 + $0xd60] ss:$8 sps:$4 sm:$0xff]   ;;  %v5025_v14 = vld [vmem:[%s6558_s1 + $0x674] ss:$8 sps:$4 sm:$0xff]  }
 0x165   :  { %3601 = vmatprep.subr.bf16.mxu0 %v4929_v15  ;;  %v5028_v15 = vld [vmem:[%s6558_s1 + $0xd74] ss:$8 sps:$4 sm:$0xff]  }
 0x167   :  { %3231 = vmatpush1.bf16.msra.mxu1 %v4924_v16  ;;  %v5023_v16 = vld [vmem:[%s6558_s1 + $0x670] ss:$8 sps:$4 sm:$0xff]  }
 0x168   :  { %3602 = vmatpush1.bf16.msra.mxu0 %v4927_v17  ;;  %3232 = vmatprep.subr.bf16.mxu1 %v4932_v18  ;;  %v5026_v17 = vld [vmem:[%s6558_s1 + $0xd70] ss:$8 sps:$4 sm:$0xff]   ;;  %v5031_v18 = vld [vmem:[%s6558_s1 + $0x684] ss:$8 sps:$4 sm:$0xff]  }
 0x169   :  { %3603 = vmatprep.subr.bf16.mxu0 %v4935_v19  ;;  %v5032_v19 = vld [vmem:[%s6559_s0 + $0x68] ss:$108 sps:$4 sm:$0xff]  }
 0x16b   :  { %3233 = vmatpush1.bf16.msra.mxu1 %v4930_v20  ;;  %v5029_v20 = vld [vmem:[%s6558_s1 + $0x680] ss:$8 sps:$4 sm:$0xff]  }
 0x16c   :  { %3604 = vmatpush1.bf16.msra.mxu0 %v4933_v21  ;;  %3234 = vmatprep.subr.bf16.mxu1 %v4938_v22  ;;  %v5035_v21 = vld [vmem:[%s6558_s1 + $0x694] ss:$8 sps:$4 sm:$0xff]   ;;  %v5033_v22 = vld [vmem:[%s6558_s1 + $0x690] ss:$8 sps:$4 sm:$0xff]  }
 0x16d   :  { %3605 = vmatprep.subr.bf16.mxu0 %v4941_v23  ;;  %v5038_v23 = vld [vmem:[%s6558_s1 + $0x6a4] ss:$8 sps:$4 sm:$0xff]  }
 0x16f   :  { %3235 = vmatpush1.bf16.msra.mxu1 %v4936_v24  ;;  %v5039_v24 = vld [vmem:[%s6559_s0 + $0x140] ss:$108 sps:$4 sm:$0xff]  }
 0x170   :  { %3606 = vmatpush1.bf16.msra.mxu0 %v4939_v25  ;;  %3236 = vmatprep.subr.bf16.mxu1 %v4944_v26  ;;  %v5036_v25 = vld [vmem:[%s6558_s1 + $0x6a0] ss:$8 sps:$4 sm:$0xff]   ;;  %v5042_v26 = vld [vmem:[%s6558_s1 + $0x6b4] ss:$8 sps:$4 sm:$0xff]  }
 0x171   :  { %3607 = vmatprep.subr.bf16.mxu0 %v4947_v27  ;;  %v5040_v27 = vld [vmem:[%s6558_s1 + $0x6b0] ss:$8 sps:$4 sm:$0xff]  }
 0x173   :  { %3237 = vmatpush1.bf16.msra.mxu1 %v4942_v28  ;;  %v5045_v28 = vld [vmem:[%s6558_s1 + $0x6c4] ss:$8 sps:$4 sm:$0xff]  }
 0x174   :  { %3608 = vmatpush1.bf16.msra.mxu0 %v4945_v29  ;;  %3238 = vmatprep.subr.bf16.mxu1 %v4950_v30  ;;  %v5043_v29 = vld [vmem:[%s6558_s1 + $0x6c0] ss:$8 sps:$4 sm:$0xff]   ;;  %v5048_v30 = vld [vmem:[%s6558_s1 + $0x6d4] ss:$8 sps:$4 sm:$0xff]  }
 0x175   :  { %3609 = vmatprep.subr.bf16.mxu0 %v4953_v31  ;;  %v5046_v31 = vld [vmem:[%s6558_s1 + $0x6d0] ss:$8 sps:$4 sm:$0xff]  }
 0x177   :  { %3239 = vmatpush1.bf16.msra.mxu1 %v4948_v32  ;;  %v5054_v32 = vld [vmem:[%s6558_s1 + $0x6e4] ss:$8 sps:$4 sm:$0xff]  }
 0x178   :  { %3610 = vmatpush1.bf16.msra.mxu0 %v4951_v33  ;;  %3240 = vmatprep.subr.bf16.mxu1 %v4958_v34  ;;  %v5052_v33 = vld [vmem:[%s6558_s1 + $0x6e0] ss:$8 sps:$4 sm:$0xff]   ;;  %v5057_v34 = vld [vmem:[%s6558_s1 + $0x6f4] ss:$8 sps:$4 sm:$0xff]  }
 0x179   :  { %3611 = vmatprep.subr.bf16.mxu0 %v4963_v35  ;;  %v5055_v35 = vld [vmem:[%s6558_s1 + $0x6f0] ss:$8 sps:$4 sm:$0xff]  }
 0x17b   :  { %3241 = vmatpush1.bf16.msra.mxu1 %v4956_v36  ;;  %v5058_v36 = vld [vmem:[%s6559_s0 + $0x30] ss:$108 sps:$4 sm:$0xff]  }
 0x17c   :  { %3612 = vmatpush1.bf16.msra.mxu0 %v4961_v37  ;;  %3242 = vmatprep.subr.bf16.mxu1 %v4968_v38  ;;  %v5061_v37 = vld [vmem:[%s6559_s0 + $0x10c] ss:$108 sps:$4 sm:$0xff]   ;;  %v5063_v38 = vld [vmem:[%s6559_s0 + $0x108] ss:$108 sps:$4 sm:$0xff]  }
 0x17d   :  { %3613 = vmatprep.subr.bf16.mxu0 %v4971_v39 }
 0x17f   :  { %3243 = vmatpush1.bf16.msra.mxu1 %v4966_v40 }
 0x180   :  { %3614 = vmatpush1.bf16.msra.mxu0 %v4969_v41  ;;  %3265 = vmatprep.subr.bf16.mxu1 %v4977_v42 }
 0x181   :  { %3636 = vmatprep.subr.bf16.mxu0 %v4983_v43 }
 0x182   :  { %3245 = vmatmul.mubr.bf16.vlgmr.msra.gmra.mrb[0].mxu1 %v4972_v44 }
 0x183   :  { %3616 = vmatmul.mubr.bf16.vlgmr.msra.gmra.mrb[0].mxu0 %v4978_v45  ;;  %3266 = vmatpush1.bf16.msra.mxu1 %v4975_v46 }
 0x184   :  { %3637 = vmatpush1.bf16.msra.mxu0 %v4981_v47  ;;  %3267 = vmatprep.subr.bf16.mxu1 %v4986_v48  ;;  %v505_v47 = vlaneseq }
 0x185   :  { %3638 = vmatprep.subr.bf16.mxu0 %v4989_v49  ;;  %3625 = vmatprep.mubr.bf16.mxu0 %v5014_v50  ;;  %v503_v50 = vld [vmem:[%s6560_s2] sm:$0x3] }
 0x186   :  { %3254 = vmatprep.mubr.bf16.mxu1 %v5049_v51  ;;  %v506_v48 = vshrl.u32 %v505_v47, 7 }
 0x187   :  { %3268 = vmatpush1.bf16.msra.mxu1 %v4984_v52 }
 0x188   :  { %3639 = vmatpush1.bf16.msra.mxu0 %v4987_v53  ;;  %3269 = vmatprep.subr.bf16.mxu1 %v4992_v54  ;;  %v507_v49 = vsub.s32 0, %v506_v48  ;;  %v511_v51 = vsub.s32 1, %v506_v48 }
 0x189   :  { %3640 = vmatprep.subr.bf16.mxu0 %v4995_v55 }
 0x18a   :  { %3255 = vmatmul.mubr.bf16.gmra.mrb[4].mxu1 %v5051_v57  ;;  %v508_v52 = vrot.slane %v503_v50, %v507_v49  ;;  %v512_v53 = vrot.slane %v503_v50, %v511_v51 }
 0x18b   :  { %3626 = vmatmul.mubr.bf16.gmra.mrb[4].mxu0 %v5019_v56  ;;  %3270 = vmatpush1.bf16.msra.mxu1 %v4990_v58 }
 0x18c   :  { %3641 = vmatpush1.bf16.msra.mxu0 %v4993_v59  ;;  %3271 = vmatprep.subr.bf16.mxu1 %v4998_v60 }
 0x18d   :  { %3642 = vmatprep.subr.bf16.mxu0 %v5001_v61  ;;  %3668 = vmatprep.mubr.bf16.mxu0 %v5064_v3 }
 0x18e   :  { %3297 = vmatprep.mubr.bf16.mxu1 %v5060_v62 }
 0x18f   :  { %3272 = vmatpush1.bf16.msra.mxu1 %v4996_v63 }
 0x190   :  { %3643 = vmatpush1.bf16.msra.mxu0 %v4999_v0  ;;  %3273 = vmatprep.subr.bf16.mxu1 %v5004_v1 }
 0x191   :  { %3644 = vmatprep.subr.bf16.mxu0 %v5007_v2 }
 0x193   :  { %3274 = vmatpush1.bf16.msra.mxu1 %v5002_v4 }
 0x194   :  { %3645 = vmatpush1.bf16.msra.mxu0 %v5005_v5  ;;  %3275 = vmatprep.subr.bf16.mxu1 %v5010_v6 }
 0x195   :  { %3646 = vmatprep.subr.bf16.mxu0 %v5013_v7 }
 0x197   :  { %3276 = vmatpush1.bf16.msra.mxu1 %v5008_v8 }
 0x198   :  { %3647 = vmatpush1.bf16.msra.mxu0 %v5011_v9  ;;  %3277 = vmatprep.subr.bf16.mxu1 %v5018_v10 }
 0x199   :  { %3648 = vmatprep.subr.bf16.mxu0 %v5022_v11 }
 0x19b   :  { %3278 = vmatpush1.bf16.msra.mxu1 %v5016_v12 }
 0x19c   :  { %3649 = vmatpush1.bf16.msra.mxu0 %v5020_v13  ;;  %3279 = vmatprep.subr.bf16.mxu1 %v5025_v14 }
 0x19d   :  { %3650 = vmatprep.subr.bf16.mxu0 %v5028_v15 }
 0x19f   :  { %3280 = vmatpush1.bf16.msra.mxu1 %v5023_v16 }
 0x1a0   :  { %3651 = vmatpush1.bf16.msra.mxu0 %v5026_v17  ;;  %3281 = vmatprep.subr.bf16.mxu1 %v5031_v18 }
 0x1a3   :  { %3669 = vmatmul.mubr.bf16.vlgmr.msra.gmra.mrb[0].mxu0 %v5032_v19  ;;  %3282 = vmatpush1.bf16.msra.mxu1 %v5029_v20 }
 0x1a4   :  { %3678 = vmatprep.mubr.bf16.mxu0 %v5064_v3  ;;  %3283 = vmatprep.subr.bf16.mxu1 %v5035_v21 }
 0x1a7   :  { %3284 = vmatpush1.bf16.msra.mxu1 %v5033_v22 }
 0x1a8   :  { %3285 = vmatprep.subr.bf16.mxu1 %v5038_v23 }
 0x1ab   :  { %3679 = vmatmul.mubr.bf16.gmra.mrb[4].mxu0 %v5039_v24  ;;  %3286 = vmatpush1.bf16.msra.mxu1 %v5036_v25 }
 0x1ac   :  { %3287 = vmatprep.subr.bf16.mxu1 %v5042_v26 }
 0x1af   :  { %3288 = vmatpush1.bf16.msra.mxu1 %v5040_v27 }
 0x1b0   :  { %3289 = vmatprep.subr.bf16.mxu1 %v5045_v28 }
 0x1b3   :  { %3290 = vmatpush1.bf16.msra.mxu1 %v5043_v29 }
 0x1b4   :  { %3291 = vmatprep.subr.bf16.mxu1 %v5048_v30 }
 0x1b7   :  { %3292 = vmatpush1.bf16.msra.mxu1 %v5046_v31 }
 0x1b8   :  { %3293 = vmatprep.subr.bf16.mxu1 %v5054_v32 }
 0x1bb   :  { %3294 = vmatpush1.bf16.msra.mxu1 %v5052_v33 }
 0x1bc   :  { %3295 = vmatprep.subr.bf16.mxu1 %v5057_v34 }
 0x1bf   :  { %3296 = vmatpush1.bf16.msra.mxu1 %v5055_v35 }
 0x1c2   :  { %3298 = vmatmul.mubr.bf16.vlgmr.msra.gmra.mrb[0].mxu1 %v5058_v36 }
 0x1c3   :  { %3307 = vmatprep.mubr.bf16.mxu1 %v5061_v37 }
 0x1ca   :  { %3308 = vmatmul.mubr.bf16.gmra.mrb[4].mxu1 %v5063_v38 }
 0x276   :  { %v3670_v39 = vpop.f32.mrb[0].mxu0 }
 0x277   :  { %v3672_v40 = vpop.f32.mrb[1].mxu0 }
 0x278   :  { %v3674_v41 = vpop.f32.mrb[2].mxu0 }
 0x279   :  { %v3676_v42 = vpop.f32.mrb[3].mxu0 }
 0x27e   :  { %v3680_v43 = vpop.f32.mrb[4].mxu0 }
 0x27f   :  { %v3682_v44 = vpop.f32.mrb[5].mxu0 }
 0x280   :  { %v3684_v45 = vpop.f32.mrb[6].mxu0 }
 0x281   :  { %v3686_v46 = vpop.f32.mrb[7].mxu0 }
 0x295   :  { %v3299_v54 = vpop.f32.mrb[0].mxu1 }
 0x296   :  { %v4223_v55 = vadd.f32 %v3299_v54, %v508_v52  ;;  %v3301_v56 = vpop.f32.mrb[1].mxu1 }
 0x297   :  { %v4225_v57 = vadd.f32 %v3301_v56, %v512_v53  ;;  %v3303_v58 = vpop.f32.mrb[2].mxu1 }
 0x298   :  { %v4224_v59 = vadd.f32 %v4223_v55, %v3670_v39  ;;  %v4227_v60 = vadd.f32 %v3303_v58, %v508_v52  ;;  %v3305_v61 = vpop.f32.mrb[3].mxu1 }
 0x299   :  { %v4226_v62 = vadd.f32 %v4225_v57, %v3672_v40  ;;  %v4229_v63 = vadd.f32 %v3305_v61, %v512_v53 }
 0x29a   :  { %v3689_v0 = vmax.f32 %v4224_v59, 0.0  ;;  %v4228_v1 = vadd.f32 %v4227_v60, %v3674_v41 }
 0x29b   :  { %v3690_v2 = vmax.f32 %v4226_v62, 0.0  ;;  %v4230_v3 = vadd.f32 %v4229_v63, %v3676_v42 }
 0x29c   :  { %v3691_v4 = vmax.f32 %v4228_v1, 0.0 }
 0x29d   :  { %v4219_v5 = vpack.c.bf16 %v3690_v2, %v3689_v0  ;;  %v3692_v6 = vmax.f32 %v4230_v3, 0.0  ;;  %v3309_v7 = vpop.f32.mrb[4].mxu1 }
 0x29e   :  { %v4231_v8 = vadd.f32 %v3309_v7, %v508_v52  ;;  %v3311_v9 = vpop.f32.mrb[5].mxu1 }
 0x29f   :  { %3721 = vst [vmem:[%s6561_s3] sm:$0xff] %v4219_v5  ;;  %v4220_v10 = vpack.c.bf16 %v3692_v6, %v3691_v4  ;;  %v4233_v11 = vadd.f32 %v3311_v9, %v512_v53  ;;  %v3313_v12 = vpop.f32.mrb[6].mxu1 }
 0x2a0   :  { %v4232_v13 = vadd.f32 %v4231_v8, %v3680_v43  ;;  %v4235_v14 = vadd.f32 %v3313_v12, %v508_v52  ;;  %v3315_v15 = vpop.f32.mrb[7].mxu1 }
 0x2a1   :  { %3722 = vst [vmem:[%s6561_s3 + $0x8] sm:$0xff] %v4220_v10  ;;  %v4234_v16 = vadd.f32 %v4233_v11, %v3682_v44  ;;  %v4237_v17 = vadd.f32 %v3315_v15, %v512_v53 }
 0x2a2   :  { %v3693_v18 = vmax.f32 %v4232_v13, 0.0  ;;  %v4236_v19 = vadd.f32 %v4235_v14, %v3684_v45 }
 0x2a3   :  { %v3694_v20 = vmax.f32 %v4234_v16, 0.0  ;;  %v4238_v21 = vadd.f32 %v4237_v17, %v3686_v46 }
 0x2a4   :  { %v3695_v22 = vmax.f32 %v4236_v19, 0.0 }
 0x2a5   :  { %v4221_v23 = vpack.c.bf16 %v3694_v20, %v3693_v18  ;;  %v3696_v24 = vmax.f32 %v4238_v21, 0.0 }
 0x2a7   :  { %3723 = vst [vmem:[%s6561_s3 + $0x10] sm:$0xff] %v4221_v23  ;;  %v4222_v25 = vpack.c.bf16 %v3696_v24, %v3695_v22 }
 0x2a9   :  { %3724 = vst [vmem:[%s6561_s3 + $0x18] sm:$0xff] %v4222_v25 }

// kernel: few_shot_forward.13
= control target key start
LH: loop header
LB: loop body
LE: loop exit
PB: predicated region body
PF: predicated region fallthrough
CT: control target
= control target key end

     0   :  { %s14842_s1 = inlined_call_operand.vmem [shape: bf16[3,3456,128], index: 1, kind: input, shape index: {}]   ;;  %s14843_s0 = inlined_call_operand.vmem [shape: bf16[3,32,3456], index: 0, kind: input, shape index: {}]   ;;  %s14844_s2 = inlined_call_operand.vmem [shape: f32[3,1,128], index: 2, kind: input, shape index: {}]   ;;  %s14845_s3 = inlined_call_operand.vmem [shape: bf16[32,384], index: 3, kind: output, shape index: {}]  }
   0x1   :  { %v11321_v0 = vld [vmem:[%s14842_s1 + $0x40] sm:$0xff]   ;;  %v11325_v4 = vld [vmem:[%s14842_s1 + $0x48] sm:$0xff]   ;;  %v11329_v8 = vld [vmem:[%s14842_s1 + $0x50] sm:$0xff]  }
   0x2   :  { %v11322_v1 = vld [vmem:[%s14842_s1] sm:$0xff]   ;;  %10139 = vmatprep.subr.bf16.mxu0 %v11321_v0  ;;  %v11326_v5 = vld [vmem:[%s14842_s1 + $0x8] sm:$0xff]   ;;  %v11330_v9 = vld [vmem:[%s14842_s1 + $0x10] sm:$0xff]  }
   0x3   :  { %v11323_v2 = vld [vmem:[%s14842_s1 + $0xc0] sm:$0xff]   ;;  %10140 = vmatpush3.bf16.msra.mxu0 %v11322_v1  ;;  %v11327_v6 = vld [vmem:[%s14842_s1 + $0xc8] sm:$0xff]   ;;  %v11331_v10 = vld [vmem:[%s14842_s1 + $0xd0] sm:$0xff]  }
   0x4   :  { %v11324_v3 = vld [vmem:[%s14842_s1 + $0x80] sm:$0xff]   ;;  %10167 = vmatprep.subr.bf16.mxu1 %v11323_v2  ;;  %10141 = vmatprep.subr.bf16.mxu0 %v11325_v4  ;;  %v11328_v7 = vld [vmem:[%s14842_s1 + $0x88] sm:$0xff]   ;;  %v11332_v11 = vld [vmem:[%s14842_s1 + $0x90] sm:$0xff]  }
   0x5   :  { %10168 = vmatpush3.bf16.msra.mxu1 %v11324_v3  ;;  %v11333_v12 = vld [vmem:[%s14842_s1 + $0x58] sm:$0xff]   ;;  %v11337_v16 = vld [vmem:[%s14842_s1 + $0x60] sm:$0xff]   ;;  %v11341_v20 = vld [vmem:[%s14842_s1 + $0x68] sm:$0xff]  }
   0x6   :  { %10169 = vmatprep.subr.bf16.mxu1 %v11327_v6  ;;  %v11334_v13 = vld [vmem:[%s14842_s1 + $0x18] sm:$0xff]   ;;  %v11338_v17 = vld [vmem:[%s14842_s1 + $0x20] sm:$0xff]   ;;  %v11342_v21 = vld [vmem:[%s14842_s1 + $0x28] sm:$0xff]  }
   0x7   :  { %10142 = vmatpush3.bf16.msra.mxu0 %v11326_v5  ;;  %v11335_v14 = vld [vmem:[%s14842_s1 + $0xd8] sm:$0xff]   ;;  %v11339_v18 = vld [vmem:[%s14842_s1 + $0xe0] sm:$0xff]   ;;  %v11343_v22 = vld [vmem:[%s14842_s1 + $0xe8] sm:$0xff]  }
   0x8   :  { %10143 = vmatprep.subr.bf16.mxu0 %v11329_v8  ;;  %v11336_v15 = vld [vmem:[%s14842_s1 + $0x98] sm:$0xff]   ;;  %v11340_v19 = vld [vmem:[%s14842_s1 + $0xa0] sm:$0xff]   ;;  %v11344_v23 = vld [vmem:[%s14842_s1 + $0xa8] sm:$0xff]  }
   0x9   :  { %10170 = vmatpush3.bf16.msra.mxu1 %v11328_v7  ;;  %v11345_v24 = vld [vmem:[%s14842_s1 + $0x70] sm:$0xff]   ;;  %v11349_v28 = vld [vmem:[%s14842_s1 + $0x78] sm:$0xff]   ;;  %v11352_v31 = vld [vmem:[%s14843_s0] ss:$108 sps:$4 sm:$0xff]  }
   0xa   :  { %10171 = vmatprep.subr.bf16.mxu1 %v11331_v10  ;;  %v11346_v25 = vld [vmem:[%s14842_s1 + $0x30] sm:$0xff]   ;;  %v11350_v29 = vld [vmem:[%s14842_s1 + $0x38] sm:$0xff]   ;;  %v11356_v34 = vld [vmem:[%s14842_s1 + $0x140] sm:$0xff]  }
   0xb   :  { %10144 = vmatpush3.bf16.msra.mxu0 %v11330_v9  ;;  %v11347_v26 = vld [vmem:[%s14842_s1 + $0xf0] sm:$0xff]   ;;  %v11351_v30 = vld [vmem:[%s14842_s1 + $0xf8] sm:$0xff]   ;;  %v11360_v37 = vld [vmem:[%s14842_s1 + $0x100] sm:$0xff]  }
   0xc   :  { %10145 = vmatprep.subr.bf16.mxu0 %v11333_v12  ;;  %v11348_v27 = vld [vmem:[%s14842_s1 + $0xb0] sm:$0xff]   ;;  %v11355_v33 = vld [vmem:[%s14842_s1 + $0xb8] sm:$0xff]   ;;  %v11361_v38 = vld [vmem:[%s14842_s1 + $0x1c0] sm:$0xff]  }
   0xd   :  { %10172 = vmatpush3.bf16.msra.mxu1 %v11332_v11  ;;  %v11354_v32 = vld [vmem:[%s14843_s0 + $0x4] ss:$108 sps:$4 sm:$0xff]   ;;  %v11357_v35 = vld [vmem:[%s14843_s0 + $0x8] ss:$108 sps:$4 sm:$0xff]   ;;  %v11359_v36 = vld [vmem:[%s14843_s0 + $0xc] ss:$108 sps:$4 sm:$0xff]  }
   0xe   :  { %10173 = vmatprep.subr.bf16.mxu1 %v11335_v14  ;;  %2110 = vmatprep.mubr.bf16.mxu0 %v11354_v32  ;;  %v11362_v39 = vld [vmem:[%s14842_s1 + $0x180] sm:$0xff]   ;;  %v11363_v40 = vld [vmem:[%s14842_s1 + $0x148] sm:$0xff]   ;;  %v11367_v44 = vld [vmem:[%s14842_s1 + $0x150] sm:$0xff]  }
   0xf   :  { %10146 = vmatpush3.bf16.msra.mxu0 %v11334_v13  ;;  %2159 = vmatprep.mubr.bf16.mxu1 %v11359_v36  ;;  %v11364_v41 = vld [vmem:[%s14842_s1 + $0x108] sm:$0xff]   ;;  %v11368_v45 = vld [vmem:[%s14842_s1 + $0x110] sm:$0xff]   ;;  %v11371_v48 = vld [vmem:[%s14842_s1 + $0x158] sm:$0xff]  }
  0x10   :  { %10147 = vmatprep.subr.bf16.mxu0 %v11337_v16  ;;  %v11365_v42 = vld [vmem:[%s14842_s1 + $0x1c8] sm:$0xff]   ;;  %v11369_v46 = vld [vmem:[%s14842_s1 + $0x1d0] sm:$0xff]   ;;  %v11372_v49 = vld [vmem:[%s14842_s1 + $0x118] sm:$0xff]  }
  0x11   :  { %10174 = vmatpush3.bf16.msra.mxu1 %v11336_v15  ;;  %v11366_v43 = vld [vmem:[%s14842_s1 + $0x188] sm:$0xff]   ;;  %v11370_v47 = vld [vmem:[%s14842_s1 + $0x190] sm:$0xff]   ;;  %v11373_v50 = vld [vmem:[%s14842_s1 + $0x1d8] sm:$0xff]  }
  0x12   :  { %10175 = vmatprep.subr.bf16.mxu1 %v11339_v18  ;;  %v11374_v51 = vld [vmem:[%s14842_s1 + $0x198] sm:$0xff]   ;;  %v11375_v52 = vld [vmem:[%s14842_s1 + $0x160] sm:$0xff]   ;;  %v11379_v56 = vld [vmem:[%s14842_s1 + $0x168] sm:$0xff]  }
  0x13   :  { %10148 = vmatpush3.bf16.msra.mxu0 %v11338_v17  ;;  %v11376_v53 = vld [vmem:[%s14842_s1 + $0x120] sm:$0xff]   ;;  %v11380_v57 = vld [vmem:[%s14843_s0 + $0xdc] ss:$108 sps:$4 sm:$0xff]   ;;  %v11389_v0 = vld [vmem:[%s14842_s1 + $0x170] sm:$0xff]  }
  0x14   :  { %10149 = vmatprep.subr.bf16.mxu0 %v11341_v20  ;;  %v11377_v54 = vld [vmem:[%s14842_s1 + $0x1e0] sm:$0xff]   ;;  %v11382_v58 = vld [vmem:[%s14842_s1 + $0x128] sm:$0xff]   ;;  %v11390_v1 = vld [vmem:[%s14842_s1 + $0x130] sm:$0xff]  }
  0x15   :  { %10176 = vmatpush3.bf16.msra.mxu1 %v11340_v19  ;;  %v11378_v55 = vld [vmem:[%s14842_s1 + $0x1a0] sm:$0xff]   ;;  %v11384_v60 = vld [vmem:[%s14842_s1 + $0x1e8] sm:$0xff]   ;;  %v11391_v2 = vld [vmem:[%s14842_s1 + $0x1f0] sm:$0xff]  }
  0x16   :  { %10177 = vmatprep.subr.bf16.mxu1 %v11343_v22  ;;  %v11383_v59 = vld [vmem:[%s14843_s0 + $0xd8] ss:$108 sps:$4 sm:$0xff]   ;;  %v11387_v62 = vld [vmem:[%s14842_s1 + $0x1a8] sm:$0xff]   ;;  %v11392_v3 = vld [vmem:[%s14842_s1 + $0x1b0] sm:$0xff]  }
  0x17   :  { %10150 = vmatpush3.bf16.msra.mxu0 %v11342_v21  ;;  %v11385_v61 = vld [vmem:[%s14843_s0 + $0xe4] ss:$108 sps:$4 sm:$0xff]   ;;  %v11388_v63 = vld [vmem:[%s14843_s0 + $0xe0] ss:$108 sps:$4 sm:$0xff]   ;;  %v11393_v4 = vld [vmem:[%s14842_s1 + $0x178] sm:$0xff]  }
  0x18   :  { %10151 = vmatprep.subr.bf16.mxu0 %v11345_v24  ;;  %v11394_v5 = vld [vmem:[%s14842_s1 + $0x138] sm:$0xff]   ;;  %v11398_v8 = vld [vmem:[%s14843_s0 + $0x14] ss:$108 sps:$4 sm:$0xff]   ;;  %v11407_v16 = vld [vmem:[%s14842_s1 + $0x248] sm:$0xff]  }
  0x19   :  { %10178 = vmatpush3.bf16.msra.mxu1 %v11344_v23  ;;  %v11395_v6 = vld [vmem:[%s14842_s1 + $0x1f8] sm:$0xff]   ;;  %v11400_v10 = vld [vmem:[%s14842_s1 + $0x240] sm:$0xff]   ;;  %v11408_v17 = vld [vmem:[%s14842_s1 + $0x208] sm:$0xff]  }
  0x1a   :  { %10179 = vmatprep.subr.bf16.mxu1 %v11347_v26  ;;  %v11396_v7 = vld [vmem:[%s14843_s0 + $0x10] ss:$108 sps:$4 sm:$0xff]   ;;  %v11401_v11 = vld [vmem:[%s14843_s0 + $0x18] ss:$108 sps:$4 sm:$0xff]   ;;  %v11409_v18 = vld [vmem:[%s14842_s1 + $0x2c8] sm:$0xff]  }
  0x1b   :  { %10152 = vmatpush3.bf16.msra.mxu0 %v11346_v25  ;;  %v11399_v9 = vld [vmem:[%s14842_s1 + $0x1b8] sm:$0xff]   ;;  %v11404_v13 = vld [vmem:[%s14842_s1 + $0x200] sm:$0xff]   ;;  %v11412_v20 = vld [vmem:[%s14842_s1 + $0x288] sm:$0xff]  }
  0x1c   :  { %10153 = vmatprep.subr.bf16.mxu0 %v11349_v28  ;;  %v11403_v12 = vld [vmem:[%s14843_s0 + $0x1c] ss:$108 sps:$4 sm:$0xff]   ;;  %v11405_v14 = vld [vmem:[%s14842_s1 + $0x2c0] sm:$0xff]   ;;  %v11410_v19 = vld [vmem:[%s14843_s0 + $0xec] ss:$108 sps:$4 sm:$0xff]  }
  0x1d   :  { %10180 = vmatpush3.bf16.msra.mxu1 %v11348_v27  ;;  %v11406_v15 = vld [vmem:[%s14842_s1 + $0x280] sm:$0xff]   ;;  %v11413_v21 = vld [vmem:[%s14843_s0 + $0xe8] ss:$108 sps:$4 sm:$0xff]   ;;  %v11418_v25 = vld [vmem:[%s14843_s0 + $0xf0] ss:$108 sps:$4 sm:$0xff]  }
  0x1e   :  { %10181 = vmatprep.subr.bf16.mxu1 %v11351_v30  ;;  %v11414_v22 = vld [vmem:[%s14842_s1 + $0x250] sm:$0xff]   ;;  %v11421_v28 = vld [vmem:[%s14842_s1 + $0x258] sm:$0xff]   ;;  %v11425_v32 = vld [vmem:[%s14842_s1 + $0x260] sm:$0xff]  }
  0x1f   :  { %10154 = vmatpush3.bf16.msra.mxu0 %v11350_v29  ;;  %v11415_v23 = vld [vmem:[%s14843_s0 + $0xf4] ss:$108 sps:$4 sm:$0xff]   ;;  %v11422_v29 = vld [vmem:[%s14842_s1 + $0x218] sm:$0xff]   ;;  %v11429_v36 = vld [vmem:[%s14842_s1 + $0x268] sm:$0xff]  }
  0x20   :  { %10195 = vmatprep.subr.bf16.mxu0 %v11356_v34  ;;  %v11417_v24 = vld [vmem:[%s14842_s1 + $0x210] sm:$0xff]   ;;  %v11423_v30 = vld [vmem:[%s14842_s1 + $0x2d8] sm:$0xff]   ;;  %v11427_v34 = vld [vmem:[%s14842_s1 + $0x2e0] sm:$0xff]  }
  0x21   :  { %10182 = vmatpush3.bf16.msra.mxu1 %v11355_v33  ;;  %v11419_v26 = vld [vmem:[%s14842_s1 + $0x2d0] sm:$0xff]   ;;  %v11426_v33 = vld [vmem:[%s14842_s1 + $0x220] sm:$0xff]  }
  0x22   :  { %2111 = vmatmul.mubr.bf16.vlgmr.msra.gmra.mrb[0].mxu0 %v11352_v31  ;;  %10223 = vmatprep.subr.bf16.mxu1 %v11361_v38  ;;  %v11420_v27 = vld [vmem:[%s14842_s1 + $0x290] sm:$0xff]   ;;  %v11424_v31 = vld [vmem:[%s14842_s1 + $0x298] sm:$0xff]   ;;  %v11431_v38 = vld [vmem:[%s14842_s1 + $0x2e8] sm:$0xff]  }
  0x23   :  { %10196 = vmatpush3.bf16.msra.mxu0 %v11360_v37  ;;  %2118 = vmatprep.mubr.bf16.mxu0 %v11380_v57  ;;  %v11430_v37 = vld [vmem:[%s14842_s1 + $0x228] sm:$0xff]  }
  0x24   :  { %2160 = vmatmul.mubr.bf16.vlgmr.msra.gmra.mrb[0].mxu1 %v11357_v35  ;;  %10197 = vmatprep.subr.bf16.mxu0 %v11363_v40  ;;  %v11428_v35 = vld [vmem:[%s14842_s1 + $0x2a0] sm:$0xff]   ;;  %v11433_v40 = vld [vmem:[%s14842_s1 + $0x270] sm:$0xff]   ;;  %v11452_v57 = vld [vmem:[%s14842_s1 + $0x308] sm:$0xff]  }
  0x25   :  { %10224 = vmatpush3.bf16.msra.mxu1 %v11362_v39  ;;  %2167 = vmatprep.mubr.bf16.mxu1 %v11385_v61  ;;  %v11432_v39 = vld [vmem:[%s14842_s1 + $0x2a8] sm:$0xff]   ;;  %v11457_v61 = vld [vmem:[%s14843_s0 + $0xf8] ss:$108 sps:$4 sm:$0xff]  }
  0x26   :  { %10225 = vmatprep.subr.bf16.mxu1 %v11365_v42  ;;  %v11435_v42 = vld [vmem:[%s14842_s1 + $0x2f0] sm:$0xff]  }
  0x27   :  { %10198 = vmatpush3.bf16.msra.mxu0 %v11364_v41  ;;  %v11434_v41 = vld [vmem:[%s14842_s1 + $0x230] sm:$0xff]  }
  0x28   :  { %10199 = vmatprep.subr.bf16.mxu0 %v11367_v44  ;;  %v11437_v44 = vld [vmem:[%s14842_s1 + $0x278] sm:$0xff]  }
  0x29   :  { %10226 = vmatpush3.bf16.msra.mxu1 %v11366_v43  ;;  %v11436_v43 = vld [vmem:[%s14842_s1 + $0x2b0] sm:$0xff]  }
  0x2a   :  { %10227 = vmatprep.subr.bf16.mxu1 %v11369_v46  ;;  %2119 = vmatmul.mubr.bf16.gmra.mrb[4].mxu0 %v11383_v59  ;;  %v11439_v46 = vld [vmem:[%s14842_s1 + $0x2f8] sm:$0xff]  }
  0x2b   :  { %10200 = vmatpush3.bf16.msra.mxu0 %v11368_v45  ;;  %2208 = vmatprep.mubr.bf16.mxu0 %v11398_v8  ;;  %v11438_v45 = vld [vmem:[%s14842_s1 + $0x238] sm:$0xff]   ;;  %v11469_v8 = vld [vmem:[%s14842_s1 + $0x360] sm:$0xff]  }
  0x2c   :  { %10201 = vmatprep.subr.bf16.mxu0 %v11371_v48  ;;  %2168 = vmatmul.mubr.bf16.gmra.mrb[4].mxu1 %v11388_v63  ;;  %v11442_v48 = vld [vmem:[%s14843_s0 + $0x24] ss:$108 sps:$4 sm:$0xff]   ;;  %v11454_v59 = vld [vmem:[%s14843_s0 + $0xfc] ss:$108 sps:$4 sm:$0xff]  }
  0x2d   :  { %10228 = vmatpush3.bf16.msra.mxu1 %v11370_v47  ;;  %2257 = vmatprep.mubr.bf16.mxu1 %v11403_v12  ;;  %v11440_v47 = vld [vmem:[%s14843_s0 + $0x20] ss:$108 sps:$4 sm:$0xff]   ;;  %v11459_v63 = vld [vmem:[%s14843_s0 + $0x104] ss:$108 sps:$4 sm:$0xff]  }
  0x2e   :  { %10229 = vmatprep.subr.bf16.mxu1 %v11373_v50  ;;  %v11444_v50 = vld [vmem:[%s14842_s1 + $0x340] sm:$0xff]   ;;  %v11473_v12 = vld [vmem:[%s14842_s1 + $0x368] sm:$0xff]  }
  0x2f   :  { %10202 = vmatpush3.bf16.msra.mxu0 %v11372_v49  ;;  %v11443_v49 = vld [vmem:[%s14842_s1 + $0x2b8] sm:$0xff]  }
  0x30   :  { %10203 = vmatprep.subr.bf16.mxu0 %v11375_v52  ;;  %v11447_v52 = vld [vmem:[%s14843_s0 + $0x2c] ss:$108 sps:$4 sm:$0xff]  }
  0x31   :  { %10230 = vmatpush3.bf16.msra.mxu1 %v11374_v51  ;;  %v11445_v51 = vld [vmem:[%s14843_s0 + $0x28] ss:$108 sps:$4 sm:$0xff]  }
  0x32   :  { %10231 = vmatprep.subr.bf16.mxu1 %v11377_v54  ;;  %v11449_v54 = vld [vmem:[%s14842_s1 + $0x3c0] sm:$0xff]  }
  0x33   :  { %10204 = vmatpush3.bf16.msra.mxu0 %v11376_v53  ;;  %v11448_v53 = vld [vmem:[%s14842_s1 + $0x300] sm:$0xff]  }
  0x34   :  { %10205 = vmatprep.subr.bf16.mxu0 %v11379_v56  ;;  %v11451_v56 = vld [vmem:[%s14842_s1 + $0x348] sm:$0xff]  }
  0x35   :  { %10232 = vmatpush3.bf16.msra.mxu1 %v11378_v55  ;;  %v11450_v55 = vld [vmem:[%s14842_s1 + $0x380] sm:$0xff]  }
  0x36   :  { %10233 = vmatprep.subr.bf16.mxu1 %v11384_v60  ;;  %v11456_v60 = vld [vmem:[%s14842_s1 + $0x388] sm:$0xff]  }
  0x37   :  { %10206 = vmatpush3.bf16.msra.mxu0 %v11382_v58  ;;  %v11453_v58 = vld [vmem:[%s14842_s1 + $0x3c8] sm:$0xff]  }
  0x38   :  { %10207 = vmatprep.subr.bf16.mxu0 %v11389_v0  ;;  %v11461_v0 = vld [vmem:[%s14842_s1 + $0x310] sm:$0xff]  }
  0x39   :  { %10234 = vmatpush3.bf16.msra.mxu1 %v11387_v62  ;;  %v11458_v62 = vld [vmem:[%s14842_s1 + $0x350] sm:$0xff]  }
  0x3a   :  { %10235 = vmatprep.subr.bf16.mxu1 %v11391_v2  ;;  %v11463_v2 = vld [vmem:[%s14842_s1 + $0x3d0] sm:$0xff]  }
  0x3b   :  { %10208 = vmatpush3.bf16.msra.mxu0 %v11390_v1  ;;  %v11462_v1 = vld [vmem:[%s14843_s0 + $0x100] ss:$108 sps:$4 sm:$0xff]  }
  0x3c   :  { %10209 = vmatprep.subr.bf16.mxu0 %v11393_v4  ;;  %v11465_v4 = vld [vmem:[%s14842_s1 + $0x358] sm:$0xff]  }
  0x3d   :  { %10236 = vmatpush3.bf16.msra.mxu1 %v11392_v3  ;;  %v11464_v3 = vld [vmem:[%s14842_s1 + $0x390] sm:$0xff]  }
  0x3e   :  { %10237 = vmatprep.subr.bf16.mxu1 %v11395_v6  ;;  %v11467_v6 = vld [vmem:[%s14842_s1 + $0x3d8] sm:$0xff]  }
  0x3f   :  { %10210 = vmatpush3.bf16.msra.mxu0 %v11394_v5  ;;  %v11466_v5 = vld [vmem:[%s14842_s1 + $0x318] sm:$0xff]  }
  0x40   :  { %10251 = vmatprep.subr.bf16.mxu0 %v11400_v10  ;;  %v11471_v10 = vld [vmem:[%s14842_s1 + $0x3e0] sm:$0xff]  }
  0x41   :  { %10238 = vmatpush3.bf16.msra.mxu1 %v11399_v9  ;;  %v11470_v9 = vld [vmem:[%s14842_s1 + $0x320] sm:$0xff]  }
  0x42   :  { %2209 = vmatmul.mubr.bf16.vlgmr.msra.gmra.mrb[8].mxu0 %v11396_v7  ;;  %10279 = vmatprep.subr.bf16.mxu1 %v11405_v14  ;;  %v11468_v7 = vld [vmem:[%s14842_s1 + $0x398] sm:$0xff]   ;;  %v11475_v14 = vld [vmem:[%s14842_s1 + $0x3e8] sm:$0xff]  }
  0x43   :  { %10252 = vmatpush3.bf16.msra.mxu0 %v11404_v13  ;;  %2216 = vmatprep.mubr.bf16.mxu0 %v11410_v19  ;;  %v11474_v13 = vld [vmem:[%s14842_s1 + $0x328] sm:$0xff]   ;;  %v11480_v19 = vld [vmem:[%s14842_s1 + $0x3b0] sm:$0xff]  }
  0x44   :  { %2258 = vmatmul.mubr.bf16.vlgmr.msra.gmra.mrb[8].mxu1 %v11401_v11  ;;  %10253 = vmatprep.subr.bf16.mxu0 %v11407_v16  ;;  %v11472_v11 = vld [vmem:[%s14842_s1 + $0x3a0] sm:$0xff]   ;;  %v11477_v16 = vld [vmem:[%s14842_s1 + $0x370] sm:$0xff]  }
  0x45   :  { %10280 = vmatpush3.bf16.msra.mxu1 %v11406_v15  ;;  %2265 = vmatprep.mubr.bf16.mxu1 %v11415_v23  ;;  %v11476_v15 = vld [vmem:[%s14842_s1 + $0x3a8] sm:$0xff]   ;;  %v11484_v23 = vld [vmem:[%s14843_s0 + $0x30] ss:$108 sps:$4 sm:$0xff]  }
  0x46   :  { %10281 = vmatprep.subr.bf16.mxu1 %v11409_v18  ;;  %v11479_v18 = vld [vmem:[%s14842_s1 + $0x3f0] sm:$0xff]  }
  0x47   :  { %10254 = vmatpush3.bf16.msra.mxu0 %v11408_v17  ;;  %v11478_v17 = vld [vmem:[%s14842_s1 + $0x330] sm:$0xff]  }
  0x48   :  { %10255 = vmatprep.subr.bf16.mxu0 %v11414_v22  ;;  %v11483_v22 = vld [vmem:[%s14842_s1 + $0x3f8] sm:$0xff]  }
  0x49   :  { %10282 = vmatpush3.bf16.msra.mxu1 %v11412_v20  ;;  %v11481_v20 = vld [vmem:[%s14842_s1 + $0x378] sm:$0xff]  }
  0x4a   :  { %2217 = vmatmul.mubr.bf16.gmra.mrb[12].mxu0 %v11413_v21  ;;  %10283 = vmatprep.subr.bf16.mxu1 %v11419_v26  ;;  %v11482_v21 = vld [vmem:[%s14842_s1 + $0x338] sm:$0xff]   ;;  %v11488_v26 = vld [vmem:[%s14842_s1 + $0x440] sm:$0xff]  }
  0x4b   :  { %10256 = vmatpush3.bf16.msra.mxu0 %v11417_v24  ;;  %2306 = vmatprep.mubr.bf16.mxu0 %v11442_v48  ;;  %v11486_v24 = vld [vmem:[%s14843_s0 + $0x34] ss:$108 sps:$4 sm:$0xff]  }
  0x4c   :  { %2266 = vmatmul.mubr.bf16.gmra.mrb[12].mxu1 %v11418_v25  ;;  %10257 = vmatprep.subr.bf16.mxu0 %v11421_v28  ;;  %v11487_v25 = vld [vmem:[%s14842_s1 + $0x3b8] sm:$0xff]   ;;  %v11513_v48 = vld [vmem:[%s14842_s1 + $0x460] sm:$0xff]  }
  0x4d   :  { %10284 = vmatpush3.bf16.msra.mxu1 %v11420_v27  ;;  %2355 = vmatprep.mubr.bf16.mxu1 %v11447_v52  ;;  %v11489_v27 = vld [vmem:[%s14843_s0 + $0x38] ss:$108 sps:$4 sm:$0xff]   ;;  %v11491_v28 = vld [vmem:[%s14843_s0 + $0x3c] ss:$108 sps:$4 sm:$0xff]  }
  0x4e   :  { %10285 = vmatprep.subr.bf16.mxu1 %v11423_v30  ;;  %v11493_v30 = vld [vmem:[%s14842_s1 + $0x4c0] sm:$0xff]   ;;  %v11517_v52 = vld [vmem:[%s14842_s1 + $0x468] sm:$0xff]  }
  0x4f   :  { %10258 = vmatpush3.bf16.msra.mxu0 %v11422_v29  ;;  %v11492_v29 = vld [vmem:[%s14842_s1 + $0x400] sm:$0xff]  }
  0x50   :  { %10259 = vmatprep.subr.bf16.mxu0 %v11425_v32  ;;  %v11495_v32 = vld [vmem:[%s14842_s1 + $0x448] sm:$0xff]  }
  0x51   :  { %10286 = vmatpush3.bf16.msra.mxu1 %v11424_v31  ;;  %v11494_v31 = vld [vmem:[%s14842_s1 + $0x480] sm:$0xff]  }
  0x52   :  { %10287 = vmatprep.subr.bf16.mxu1 %v11427_v34  ;;  %v11497_v34 = vld [vmem:[%s14842_s1 + $0x4c8] sm:$0xff]  }
  0x53   :  { %10260 = vmatpush3.bf16.msra.mxu0 %v11426_v33  ;;  %v11496_v33 = vld [vmem:[%s14842_s1 + $0x408] sm:$0xff]  }
  0x54   :  { %10261 = vmatprep.subr.bf16.mxu0 %v11429_v36  ;;  %v11500_v36 = vld [vmem:[%s14842_s1 + $0x488] sm:$0xff]  }
  0x55   :  { %10288 = vmatpush3.bf16.msra.mxu1 %v11428_v35  ;;  %v11498_v35 = vld [vmem:[%s14843_s0 + $0x10c] ss:$108 sps:$4 sm:$0xff]  }
  0x56   :  { %10289 = vmatprep.subr.bf16.mxu1 %v11431_v38  ;;  %v11502_v38 = vld [vmem:[%s14842_s1 + $0x450] sm:$0xff]  }
  0x57   :  { %10262 = vmatpush3.bf16.msra.mxu0 %v11430_v37  ;;  %v11501_v37 = vld [vmem:[%s14843_s0 + $0x108] ss:$108 sps:$4 sm:$0xff]  }
  0x58   :  { %10263 = vmatprep.subr.bf16.mxu0 %v11433_v40  ;;  %v11505_v40 = vld [vmem:[%s14842_s1 + $0x410] sm:$0xff]  }
  0x59   :  { %10290 = vmatpush3.bf16.msra.mxu1 %v11432_v39  ;;  %v11503_v39 = vld [vmem:[%s14843_s0 + $0x114] ss:$108 sps:$4 sm:$0xff]  }
  0x5a   :  { %10291 = vmatprep.subr.bf16.mxu1 %v11435_v42  ;;  %v11507_v42 = vld [vmem:[%s14842_s1 + $0x4d0] sm:$0xff]  }
  0x5b   :  { %10264 = vmatpush3.bf16.msra.mxu0 %v11434_v41  ;;  %v11506_v41 = vld [vmem:[%s14843_s0 + $0x110] ss:$108 sps:$4 sm:$0xff]  }
  0x5c   :  { %10265 = vmatprep.subr.bf16.mxu0 %v11437_v44  ;;  %v11509_v44 = vld [vmem:[%s14842_s1 + $0x458] sm:$0xff]  }
  0x5d   :  { %10292 = vmatpush3.bf16.msra.mxu1 %v11436_v43  ;;  %v11508_v43 = vld [vmem:[%s14842_s1 + $0x490] sm:$0xff]  }
  0x5e   :  { %10293 = vmatprep.subr.bf16.mxu1 %v11439_v46  ;;  %v11511_v46 = vld [vmem:[%s14842_s1 + $0x4d8] sm:$0xff]  }
  0x5f   :  { %10266 = vmatpush3.bf16.msra.mxu0 %v11438_v45  ;;  %v11510_v45 = vld [vmem:[%s14842_s1 + $0x418] sm:$0xff]  }
  0x60   :  { %10307 = vmatprep.subr.bf16.mxu0 %v11444_v50  ;;  %v11515_v50 = vld [vmem:[%s14842_s1 + $0x4e0] sm:$0xff]  }
  0x61   :  { %10294 = vmatpush3.bf16.msra.mxu1 %v11443_v49  ;;  %v11514_v49 = vld [vmem:[%s14842_s1 + $0x420] sm:$0xff]  }
  0x62   :  { %2307 = vmatmul.mubr.bf16.vlgmr.msra.gmra.mrb[16].mxu0 %v11440_v47  ;;  %10335 = vmatprep.subr.bf16.mxu1 %v11449_v54  ;;  %v11512_v47 = vld [vmem:[%s14842_s1 + $0x498] sm:$0xff]   ;;  %v11519_v54 = vld [vmem:[%s14842_s1 + $0x4e8] sm:$0xff]  }
  0x63   :  { %10308 = vmatpush3.bf16.msra.mxu0 %v11448_v53  ;;  %2314 = vmatprep.mubr.bf16.mxu0 %v11454_v59  ;;  %v11518_v53 = vld [vmem:[%s14842_s1 + $0x428] sm:$0xff]   ;;  %v11524_v59 = vld [vmem:[%s14842_s1 + $0x4b0] sm:$0xff]  }
  0x64   :  { %2356 = vmatmul.mubr.bf16.vlgmr.msra.gmra.mrb[16].mxu1 %v11445_v51  ;;  %10309 = vmatprep.subr.bf16.mxu0 %v11451_v56  ;;  %v11516_v51 = vld [vmem:[%s14842_s1 + $0x4a0] sm:$0xff]   ;;  %v11521_v56 = vld [vmem:[%s14842_s1 + $0x470] sm:$0xff]  }
  0x65   :  { %10336 = vmatpush3.bf16.msra.mxu1 %v11450_v55  ;;  %2363 = vmatprep.mubr.bf16.mxu1 %v11459_v63  ;;  %v11520_v55 = vld [vmem:[%s14842_s1 + $0x4a8] sm:$0xff]  }
  0x66   :  { %10337 = vmatprep.subr.bf16.mxu1 %v11453_v58  ;;  %v11523_v58 = vld [vmem:[%s14842_s1 + $0x4f0] sm:$0xff]   ;;  %v11528_v63 = vld [vmem:[%s14843_s0 + $0x40] ss:$108 sps:$4 sm:$0xff]  }
  0x67   :  { %10310 = vmatpush3.bf16.msra.mxu0 %v11452_v57  ;;  %v11522_v57 = vld [vmem:[%s14842_s1 + $0x430] sm:$0xff]  }
  0x68   :  { %10311 = vmatprep.subr.bf16.mxu0 %v11458_v62  ;;  %v11527_v62 = vld [vmem:[%s14842_s1 + $0x4f8] sm:$0xff]  }
  0x69   :  { %10338 = vmatpush3.bf16.msra.mxu1 %v11456_v60  ;;  %v11525_v60 = vld [vmem:[%s14842_s1 + $0x478] sm:$0xff]  }
  0x6a   :  { %2315 = vmatmul.mubr.bf16.gmra.mrb[20].mxu0 %v11457_v61  ;;  %10339 = vmatprep.subr.bf16.mxu1 %v11463_v2  ;;  %v11526_v61 = vld [vmem:[%s14842_s1 + $0x438] sm:$0xff]   ;;  %v11532_v2 = vld [vmem:[%s14842_s1 + $0x540] sm:$0xff]  }
  0x6b   :  { %10312 = vmatpush3.bf16.msra.mxu0 %v11461_v0  ;;  %2404 = vmatprep.mubr.bf16.mxu0 %v11486_v24  ;;  %v11530_v0 = vld [vmem:[%s14843_s0 + $0x44] ss:$108 sps:$4 sm:$0xff]  }
  0x6c   :  { %2364 = vmatmul.mubr.bf16.gmra.mrb[20].mxu1 %v11462_v1  ;;  %10313 = vmatprep.subr.bf16.mxu0 %v11465_v4  ;;  %v11531_v1 = vld [vmem:[%s14842_s1 + $0x4b8] sm:$0xff]   ;;  %v11557_v24 = vld [vmem:[%s14842_s1 + $0x560] sm:$0xff]  }
  0x6d   :  { %10340 = vmatpush3.bf16.msra.mxu1 %v11464_v3  ;;  %2453 = vmatprep.mubr.bf16.mxu1 %v11491_v28  ;;  %v11533_v3 = vld [vmem:[%s14843_s0 + $0x48] ss:$108 sps:$4 sm:$0xff]   ;;  %v11535_v4 = vld [vmem:[%s14843_s0 + $0x4c] ss:$108 sps:$4 sm:$0xff]  }
  0x6e   :  { %10341 = vmatprep.subr.bf16.mxu1 %v11467_v6  ;;  %v11537_v6 = vld [vmem:[%s14842_s1 + $0x5c0] sm:$0xff]   ;;  %v11561_v28 = vld [vmem:[%s14842_s1 + $0x568] sm:$0xff]  }
  0x6f   :  { %10314 = vmatpush3.bf16.msra.mxu0 %v11466_v5  ;;  %v11536_v5 = vld [vmem:[%s14842_s1 + $0x500] sm:$0xff]  }
  0x70   :  { %10315 = vmatprep.subr.bf16.mxu0 %v11469_v8  ;;  %v11539_v8 = vld [vmem:[%s14842_s1 + $0x548] sm:$0xff]  }
  0x71   :  { %10342 = vmatpush3.bf16.msra.mxu1 %v11468_v7  ;;  %v11538_v7 = vld [vmem:[%s14842_s1 + $0x580] sm:$0xff]  }
  0x72   :  { %10343 = vmatprep.subr.bf16.mxu1 %v11471_v10  ;;  %v11541_v10 = vld [vmem:[%s14842_s1 + $0x5c8] sm:$0xff]  }
  0x73   :  { %10316 = vmatpush3.bf16.msra.mxu0 %v11470_v9  ;;  %v11540_v9 = vld [vmem:[%s14842_s1 + $0x508] sm:$0xff]  }
  0x74   :  { %10317 = vmatprep.subr.bf16.mxu0 %v11473_v12  ;;  %v11544_v12 = vld [vmem:[%s14842_s1 + $0x588] sm:$0xff]  }
  0x75   :  { %10344 = vmatpush3.bf16.msra.mxu1 %v11472_v11  ;;  %v11542_v11 = vld [vmem:[%s14843_s0 + $0x11c] ss:$108 sps:$4 sm:$0xff]  }
  0x76   :  { %10345 = vmatprep.subr.bf16.mxu1 %v11475_v14  ;;  %v11546_v14 = vld [vmem:[%s14842_s1 + $0x550] sm:$0xff]  }
  0x77   :  { %10318 = vmatpush3.bf16.msra.mxu0 %v11474_v13  ;;  %v11545_v13 = vld [vmem:[%s14843_s0 + $0x118] ss:$108 sps:$4 sm:$0xff]  }
  0x78   :  { %10319 = vmatprep.subr.bf16.mxu0 %v11477_v16  ;;  %v11549_v16 = vld [vmem:[%s14842_s1 + $0x510] sm:$0xff]  }
  0x79   :  { %10346 = vmatpush3.bf16.msra.mxu1 %v11476_v15  ;;  %v11547_v15 = vld [vmem:[%s14843_s0 + $0x124] ss:$108 sps:$4 sm:$0xff]  }
  0x7a   :  { %10347 = vmatprep.subr.bf16.mxu1 %v11479_v18  ;;  %v11551_v18 = vld [vmem:[%s14842_s1 + $0x5d0] sm:$0xff]  }
  0x7b   :  { %10320 = vmatpush3.bf16.msra.mxu0 %v11478_v17  ;;  %v11550_v17 = vld [vmem:[%s14843_s0 + $0x120] ss:$108 sps:$4 sm:$0xff]  }
  0x7c   :  { %10321 = vmatprep.subr.bf16.mxu0 %v11481_v20  ;;  %v11553_v20 = vld [vmem:[%s14842_s1 + $0x558] sm:$0xff]  }
  0x7d   :  { %10348 = vmatpush3.bf16.msra.mxu1 %v11480_v19  ;;  %v11552_v19 = vld [vmem:[%s14842_s1 + $0x590] sm:$0xff]  }
  0x7e   :  { %10349 = vmatprep.subr.bf16.mxu1 %v11483_v22  ;;  %v11555_v22 = vld [vmem:[%s14842_s1 + $0x5d8] sm:$0xff]  }
  0x7f   :  { %10322 = vmatpush3.bf16.msra.mxu0 %v11482_v21  ;;  %v11554_v21 = vld [vmem:[%s14842_s1 + $0x518] sm:$0xff]  }
  0x80   :  { %10363 = vmatprep.subr.bf16.mxu0 %v11488_v26  ;;  %v11559_v26 = vld [vmem:[%s14842_s1 + $0x5e0] sm:$0xff]  }
  0x81   :  { %10350 = vmatpush3.bf16.msra.mxu1 %v11487_v25  ;;  %v11558_v25 = vld [vmem:[%s14842_s1 + $0x520] sm:$0xff]  }
  0x82   :  { %2405 = vmatmul.mubr.bf16.vlgmr.msra.gmra.mrb[24].mxu0 %v11484_v23  ;;  %10391 = vmatprep.subr.bf16.mxu1 %v11493_v30  ;;  %v11556_v23 = vld [vmem:[%s14842_s1 + $0x598] sm:$0xff]   ;;  %v11563_v30 = vld [vmem:[%s14842_s1 + $0x5e8] sm:$0xff]  }
  0x83   :  { %10364 = vmatpush3.bf16.msra.mxu0 %v11492_v29  ;;  %2412 = vmatprep.mubr.bf16.mxu0 %v11498_v35  ;;  %v11562_v29 = vld [vmem:[%s14842_s1 + $0x528] sm:$0xff]   ;;  %v11568_v35 = vld [vmem:[%s14842_s1 + $0x5b0] sm:$0xff]  }
  0x84   :  { %2454 = vmatmul.mubr.bf16.vlgmr.msra.gmra.mrb[24].mxu1 %v11489_v27  ;;  %10365 = vmatprep.subr.bf16.mxu0 %v11495_v32  ;;  %v11560_v27 = vld [vmem:[%s14842_s1 + $0x5a0] sm:$0xff]   ;;  %v11565_v32 = vld [vmem:[%s14842_s1 + $0x570] sm:$0xff]  }
  0x85   :  { %10392 = vmatpush3.bf16.msra.mxu1 %v11494_v31  ;;  %2461 = vmatprep.mubr.bf16.mxu1 %v11503_v39  ;;  %v11564_v31 = vld [vmem:[%s14842_s1 + $0x5a8] sm:$0xff]   ;;  %v11572_v39 = vld [vmem:[%s14843_s0 + $0x50] ss:$108 sps:$4 sm:$0xff]  }
  0x86   :  { %10393 = vmatprep.subr.bf16.mxu1 %v11497_v34  ;;  %v11567_v34 = vld [vmem:[%s14842_s1 + $0x5f0] sm:$0xff]  }
  0x87   :  { %10366 = vmatpush3.bf16.msra.mxu0 %v11496_v33  ;;  %v11566_v33 = vld [vmem:[%s14842_s1 + $0x530] sm:$0xff]  }
  0x88   :  { %10367 = vmatprep.subr.bf16.mxu0 %v11502_v38  ;;  %v11571_v38 = vld [vmem:[%s14842_s1 + $0x5f8] sm:$0xff]  }
  0x89   :  { %10394 = vmatpush3.bf16.msra.mxu1 %v11500_v36  ;;  %v11569_v36 = vld [vmem:[%s14842_s1 + $0x578] sm:$0xff]  }
  0x8a   :  { %2413 = vmatmul.mubr.bf16.gmra.mrb[28].mxu0 %v11501_v37  ;;  %10395 = vmatprep.subr.bf16.mxu1 %v11507_v42  ;;  %v11570_v37 = vld [vmem:[%s14842_s1 + $0x538] sm:$0xff]   ;;  %v11576_v42 = vld [vmem:[%s14842_s1 + $0x640] sm:$0xff]  }
  0x8b   :  { %10368 = vmatpush3.bf16.msra.mxu0 %v11505_v40  ;;  %2502 = vmatprep.mubr.bf16.mxu0 %v11530_v0  ;;  %v11574_v40 = vld [vmem:[%s14843_s0 + $0x54] ss:$108 sps:$4 sm:$0xff]   ;;  %v11601_v0 = vld [vmem:[%s14842_s1 + $0x628] sm:$0xff]  }
  0x8c   :  { %2462 = vmatmul.mubr.bf16.gmra.mrb[28].mxu1 %v11506_v41  ;;  %10369 = vmatprep.subr.bf16.mxu0 %v11509_v44  ;;  %v11575_v41 = vld [vmem:[%s14842_s1 + $0x5b8] sm:$0xff]  }
  0x8d   :  { %10396 = vmatpush3.bf16.msra.mxu1 %v11508_v43  ;;  %2551 = vmatprep.mubr.bf16.mxu1 %v11535_v4  ;;  %v11577_v43 = vld [vmem:[%s14843_s0 + $0x58] ss:$108 sps:$4 sm:$0xff]   ;;  %v11579_v44 = vld [vmem:[%s14843_s0 + $0x5c] ss:$108 sps:$4 sm:$0xff]   ;;  %v11604_v4 = vld [vmem:[%s14842_s1 + $0x630] sm:$0xff]  }
  0x8e   :  { %10397 = vmatprep.subr.bf16.mxu1 %v11511_v46  ;;  %v11581_v46 = vld [vmem:[%s14842_s1 + $0x680] sm:$0xff]  }
  0x8f   :  { %10370 = vmatpush3.bf16.msra.mxu0 %v11510_v45  ;;  %v11580_v45 = vld [vmem:[%s14842_s1 + $0x600] sm:$0xff]  }
  0x90   :  { %10371 = vmatprep.subr.bf16.mxu0 %v11513_v48  ;;  %v11583_v48 = vld [vmem:[%s14842_s1 + $0x608] sm:$0xff]  }
  0x91   :  { %10398 = vmatpush3.bf16.msra.mxu1 %v11512_v47  ;;  %v11582_v47 = vld [vmem:[%s14842_s1 + $0x648] sm:$0xff]  }
  0x92   :  { %10399 = vmatprep.subr.bf16.mxu1 %v11515_v50  ;;  %v11585_v50 = vld [vmem:[%s14843_s0 + $0x12c] ss:$108 sps:$4 sm:$0xff]  }
  0x93   :  { %10372 = vmatpush3.bf16.msra.mxu0 %v11514_v49  ;;  %v11584_v49 = vld [vmem:[%s14842_s1 + $0x688] sm:$0xff]  }
  0x94   :  { %10373 = vmatprep.subr.bf16.mxu0 %v11517_v52  ;;  %v11588_v52 = vld [vmem:[%s14842_s1 + $0x650] sm:$0xff]  }
  0x95   :  { %10400 = vmatpush3.bf16.msra.mxu1 %v11516_v51  ;;  %v11587_v51 = vld [vmem:[%s14843_s0 + $0x128] ss:$108 sps:$4 sm:$0xff]  }
  0x96   :  { %10401 = vmatprep.subr.bf16.mxu1 %v11519_v54  ;;  %v11591_v54 = vld [vmem:[%s14842_s1 + $0x610] sm:$0xff]  }
  0x97   :  { %10374 = vmatpush3.bf16.msra.mxu0 %v11518_v53  ;;  %v11589_v53 = vld [vmem:[%s14843_s0 + $0x134] ss:$108 sps:$4 sm:$0xff]  }
  0x98   :  { %10375 = vmatprep.subr.bf16.mxu0 %v11521_v56  ;;  %v11593_v56 = vld [vmem:[%s14842_s1 + $0x690] sm:$0xff]  }
  0x99   :  { %10402 = vmatpush3.bf16.msra.mxu1 %v11520_v55  ;;  %v11592_v55 = vld [vmem:[%s14843_s0 + $0x130] ss:$108 sps:$4 sm:$0xff]  }
  0x9a   :  { %10403 = vmatprep.subr.bf16.mxu1 %v11523_v58  ;;  %v11595_v58 = vld [vmem:[%s14842_s1 + $0x618] sm:$0xff]  }
  0x9b   :  { %10376 = vmatpush3.bf16.msra.mxu0 %v11522_v57  ;;  %v11594_v57 = vld [vmem:[%s14842_s1 + $0x658] sm:$0xff]  }
  0x9c   :  { %10377 = vmatprep.subr.bf16.mxu0 %v11525_v60  ;;  %v11597_v60 = vld [vmem:[%s14842_s1 + $0x660] sm:$0xff]  }
  0x9d   :  { %10404 = vmatpush3.bf16.msra.mxu1 %v11524_v59  ;;  %v11596_v59 = vld [vmem:[%s14842_s1 + $0x698] sm:$0xff]  }
  0x9e   :  { %10405 = vmatprep.subr.bf16.mxu1 %v11527_v62  ;;  %v11599_v62 = vld [vmem:[%s14842_s1 + $0x6a0] sm:$0xff]  }
  0x9f   :  { %10378 = vmatpush3.bf16.msra.mxu0 %v11526_v61  ;;  %v11598_v61 = vld [vmem:[%s14842_s1 + $0x620] sm:$0xff]  }
  0xa0   :  { %10419 = vmatprep.subr.bf16.mxu0 %v11532_v2  ;;  %v11603_v2 = vld [vmem:[%s14842_s1 + $0x670] sm:$0xff]  }
  0xa1   :  { %10406 = vmatpush3.bf16.msra.mxu1 %v11531_v1  ;;  %v11602_v1 = vld [vmem:[%s14842_s1 + $0x6a8] sm:$0xff]  }
  0xa2   :  { %2503 = vmatmul.mubr.bf16.vlgmr.msra.gmra.mrb[32].mxu0 %v11528_v63  ;;  %10447 = vmatprep.subr.bf16.mxu1 %v11537_v6  ;;  %v11600_v63 = vld [vmem:[%s14842_s1 + $0x668] sm:$0xff]  }
  0xa3   :  { %10420 = vmatpush3.bf16.msra.mxu0 %v11536_v5  ;;  %2510 = vmatprep.mubr.bf16.mxu0 %v11542_v11  ;;  %v11606_v5 = vld [vmem:[%s14842_s1 + $0x678] sm:$0xff]  }
  0xa4   :  { %2552 = vmatmul.mubr.bf16.vlgmr.msra.gmra.mrb[32].mxu1 %v11533_v3  ;;  %10421 = vmatprep.subr.bf16.mxu0 %v11539_v8  ;;  %v11605_v3 = vld [vmem:[%s14842_s1 + $0x6b0] sm:$0xff]  }
  0xa5   :  { %10448 = vmatpush3.bf16.msra.mxu1 %v11538_v7  ;;  %2559 = vmatprep.mubr.bf16.mxu1 %v11547_v15  ;;  %v11607_v7 = vld [vmem:[%s14842_s1 + $0x638] sm:$0xff]  }
  0xa6   :  { %10449 = vmatprep.subr.bf16.mxu1 %v11541_v10 }
  0xa7   :  { %10422 = vmatpush3.bf16.msra.mxu0 %v11540_v9  ;;  %v11608_v9 = vld [vmem:[%s14842_s1 + $0x6b8] sm:$0xff]  }
  0xa8   :  { %10423 = vmatprep.subr.bf16.mxu0 %v11546_v14  ;;  %v11612_v14 = vld [vmem:[%s14842_s1 + $0x700] sm:$0xff]  }
  0xa9   :  { %10450 = vmatpush3.bf16.msra.mxu1 %v11544_v12  ;;  %v11611_v12 = vld [vmem:[%s14843_s0 + $0x64] ss:$108 sps:$4 sm:$0xff]  }
  0xaa   :  { %2511 = vmatmul.mubr.bf16.gmra.mrb[36].mxu0 %v11545_v13  ;;  %10451 = vmatprep.subr.bf16.mxu1 %v11551_v18  ;;  %v11609_v13 = vld [vmem:[%s14843_s0 + $0x60] ss:$108 sps:$4 sm:$0xff]   ;;  %v11614_v18 = vld [vmem:[%s14843_s0 + $0x68] ss:$108 sps:$4 sm:$0xff]  }
  0xab   :  { %10424 = vmatpush3.bf16.msra.mxu0 %v11549_v16  ;;  %2600 = vmatprep.mubr.bf16.mxu0 %v11574_v40  ;;  %v11613_v16 = vld [vmem:[%s14842_s1 + $0x6c0] sm:$0xff]   ;;  %v11631_v40 = vld [vmem:[%s14842_s1 + $0x798] sm:$0xff]  }
  0xac   :  { %2560 = vmatmul.mubr.bf16.gmra.mrb[36].mxu1 %v11550_v17  ;;  %10425 = vmatprep.subr.bf16.mxu0 %v11553_v20  ;;  %v11615_v20 = vld [vmem:[%s14842_s1 + $0x780] sm:$0xff]  }
  0xad   :  { %10452 = vmatpush3.bf16.msra.mxu1 %v11552_v19  ;;  %2649 = vmatprep.mubr.bf16.mxu1 %v11579_v44  ;;  %v11635_v44 = vld [vmem:[%s14842_s1 + $0x7a0] sm:$0xff]  }
  0xae   :  { %10453 = vmatprep.subr.bf16.mxu1 %v11555_v22  ;;  %v11616_v22 = vld [vmem:[%s14843_s0 + $0x140] ss:$108 sps:$4 sm:$0xff]  }
  0xaf   :  { %10426 = vmatpush3.bf16.msra.mxu0 %v11554_v21 }
  0xb0   :  { %10427 = vmatprep.subr.bf16.mxu0 %v11557_v24  ;;  %v11617_v24 = vld [vmem:[%s14842_s1 + $0x740] sm:$0xff]  }
  0xb1   :  { %10454 = vmatpush3.bf16.msra.mxu1 %v11556_v23 }
  0xb2   :  { %10455 = vmatprep.subr.bf16.mxu1 %v11559_v26  ;;  %v11618_v26 = vld [vmem:[%s14842_s1 + $0x708] sm:$0xff]  }
  0xb3   :  { %10428 = vmatpush3.bf16.msra.mxu0 %v11558_v25 }
  0xb4   :  { %10429 = vmatprep.subr.bf16.mxu0 %v11561_v28  ;;  %v11619_v28 = vld [vmem:[%s14842_s1 + $0x6c8] sm:$0xff]  }
  0xb5   :  { %10456 = vmatpush3.bf16.msra.mxu1 %v11560_v27 }
  0xb6   :  { %10457 = vmatprep.subr.bf16.mxu1 %v11563_v30  ;;  %v11620_v30 = vld [vmem:[%s14842_s1 + $0x788] sm:$0xff]  }
  0xb7   :  { %10430 = vmatpush3.bf16.msra.mxu0 %v11562_v29 }
  0xb8   :  { %10431 = vmatprep.subr.bf16.mxu0 %v11565_v32  ;;  %v11623_v32 = vld [vmem:[%s14842_s1 + $0x748] sm:$0xff]  }
  0xb9   :  { %10458 = vmatpush3.bf16.msra.mxu1 %v11564_v31  ;;  %v11621_v31 = vld [vmem:[%s14843_s0 + $0x13c] ss:$108 sps:$4 sm:$0xff]  }
  0xba   :  { %10459 = vmatprep.subr.bf16.mxu1 %v11567_v34  ;;  %v11625_v34 = vld [vmem:[%s14842_s1 + $0x710] sm:$0xff]  }
  0xbb   :  { %10432 = vmatpush3.bf16.msra.mxu0 %v11566_v33  ;;  %v11624_v33 = vld [vmem:[%s14843_s0 + $0x138] ss:$108 sps:$4 sm:$0xff]  }
  0xbc   :  { %10433 = vmatprep.subr.bf16.mxu0 %v11569_v36  ;;  %v11627_v36 = vld [vmem:[%s14842_s1 + $0x790] sm:$0xff]  }
  0xbd   :  { %10460 = vmatpush3.bf16.msra.mxu1 %v11568_v35  ;;  %v11626_v35 = vld [vmem:[%s14842_s1 + $0x6d0] sm:$0xff]  }
  0xbe   :  { %10461 = vmatprep.subr.bf16.mxu1 %v11571_v38  ;;  %v11629_v38 = vld [vmem:[%s14842_s1 + $0x718] sm:$0xff]  }
  0xbf   :  { %10434 = vmatpush3.bf16.msra.mxu0 %v11570_v37  ;;  %v11628_v37 = vld [vmem:[%s14842_s1 + $0x750] sm:$0xff]  }
  0xc0   :  { %10475 = vmatprep.subr.bf16.mxu0 %v11576_v42  ;;  %v11633_v42 = vld [vmem:[%s14842_s1 + $0x720] sm:$0xff]  }
  0xc1   :  { %10462 = vmatpush3.bf16.msra.mxu1 %v11575_v41  ;;  %v11632_v41 = vld [vmem:[%s14842_s1 + $0x758] sm:$0xff]  }
  0xc2   :  { %2601 = vmatmul.mubr.bf16.vlgmr.msra.gmra.mrb[40].mxu0 %v11572_v39  ;;  %11261 = vmatprep.subr.bf16.mxu1 %v11581_v46  ;;  %v11630_v39 = vld [vmem:[%s14842_s1 + $0x6d8] sm:$0xff]  }
  0xc3   :  { %10476 = vmatpush3.bf16.msra.mxu0 %v11580_v45  ;;  %2608 = vmatprep.mubr.bf16.mxu0 %v11585_v50  ;;  %v11637_v50 = vld [vmem:[%s14842_s1 + $0x728] sm:$0xff]  }
  0xc4   :  { %2650 = vmatmul.mubr.bf16.vlgmr.msra.gmra.mrb[40].mxu1 %v11577_v43  ;;  %10477 = vmatprep.subr.bf16.mxu0 %v11582_v47  ;;  %v11634_v43 = vld [vmem:[%s14842_s1 + $0x6e0] sm:$0xff]  }
  0xc5   :  { %11262 = vmatpush3.bf16.msra.mxu1 %v11581_v46  ;;  %2657 = vmatprep.mubr.bf16.mxu1 %v11589_v53  ;;  %v11636_v46 = vld [vmem:[%s14842_s1 + $0x760] sm:$0xff]  }
  0xc6   :  { %11263 = vmatprep.subr.bf16.mxu1 %v11584_v49  ;;  %v8332_v47 = vld [vmem:[%s14844_s2] ss:$0 sm:$0xff] }
  0xc7   :  { %10478 = vmatpush3.bf16.msra.mxu0 %v11583_v48 }
  0xc8   :  { %10479 = vmatprep.subr.bf16.mxu0 %v11588_v52 }
  0xc9   :  { %11264 = vmatpush3.bf16.msra.mxu1 %v11584_v49 }
  0xca   :  { %2609 = vmatmul.mubr.bf16.gmra.mrb[44].mxu0 %v11587_v51  ;;  %11265 = vmatprep.subr.bf16.mxu1 %v11593_v56 }
  0xcb   :  { %10480 = vmatpush3.bf16.msra.mxu0 %v11591_v54  ;;  %2698 = vmatprep.mubr.bf16.mxu0 %v11611_v12  ;;  %v11638_v54 = vld [vmem:[%s14842_s1 + $0x6e8] sm:$0xff]   ;;  %v11646_v12 = vld [vmem:[%s14842_s1 + $0x6f8] sm:$0xff]  }
  0xcc   :  { %2658 = vmatmul.mubr.bf16.gmra.mrb[44].mxu1 %v11592_v55  ;;  %10481 = vmatprep.subr.bf16.mxu0 %v11594_v57  ;;  %v11639_v57 = vld [vmem:[%s14842_s1 + $0x7a8] sm:$0xff]  }
  0xcd   :  { %11266 = vmatpush3.bf16.msra.mxu1 %v11593_v56  ;;  %11277 = vmatprep.mubr.bf16.mxu1 %v11614_v18 }
  0xce   :  { %11267 = vmatprep.subr.bf16.mxu1 %v11596_v59 }
  0xcf   :  { %10482 = vmatpush3.bf16.msra.mxu0 %v11595_v58 }
  0xd0   :  { %10483 = vmatprep.subr.bf16.mxu0 %v11597_v60 }
  0xd1   :  { %11268 = vmatpush3.bf16.msra.mxu1 %v11596_v59 }
  0xd2   :  { %11269 = vmatprep.subr.bf16.mxu1 %v11599_v62 }
  0xd3   :  { %10484 = vmatpush3.bf16.msra.mxu0 %v11598_v61  ;;  %v11640_v61 = vld [vmem:[%s14842_s1 + $0x768] sm:$0xff]  }
  0xd4   :  { %10485 = vmatprep.subr.bf16.mxu0 %v11600_v63 }
  0xd5   :  { %11270 = vmatpush3.bf16.msra.mxu1 %v11599_v62 }
  0xd6   :  { %11271 = vmatprep.subr.bf16.mxu1 %v11602_v1 }
  0xd7   :  { %10486 = vmatpush3.bf16.msra.mxu0 %v11601_v0  ;;  %v11641_v0 = vld [vmem:[%s14842_s1 + $0x730] sm:$0xff]  }
  0xd8   :  { %10487 = vmatprep.subr.bf16.mxu0 %v11603_v2 }
  0xd9   :  { %11272 = vmatpush3.bf16.msra.mxu1 %v11602_v1 }
  0xda   :  { %11273 = vmatprep.subr.bf16.mxu1 %v11605_v3 }
  0xdb   :  { %10488 = vmatpush3.bf16.msra.mxu0 %v11604_v4 }
  0xdc   :  { %10489 = vmatprep.subr.bf16.mxu0 %v11606_v5 }
  0xdd   :  { %11274 = vmatpush3.bf16.msra.mxu1 %v11605_v3  ;;  %v11642_v3 = vld [vmem:[%s14842_s1 + $0x6f0] sm:$0xff]  }
  0xde   :  { %11275 = vmatprep.subr.bf16.mxu1 %v11608_v9 }
  0xdf   :  { %10490 = vmatpush3.bf16.msra.mxu0 %v11607_v7 }
  0xe0   :  { %10513 = vmatprep.subr.bf16.mxu0 %v11612_v14 }
  0xe1   :  { %11276 = vmatpush3.bf16.msra.mxu1 %v11608_v9  ;;  %v11644_v9 = vld [vmem:[%s14842_s1 + $0x770] sm:$0xff]  }
  0xe2   :  { %2699 = vmatmul.mubr.bf16.vlgmr.msra.gmra.mrb[48].mxu0 %v11609_v13  ;;  %10541 = vmatprep.subr.bf16.mxu1 %v11615_v20  ;;  %v11647_v13 = vld [vmem:[%s14842_s1 + $0x7b8] sm:$0xff]  }
  0xe3   :  { %10514 = vmatpush3.bf16.msra.mxu0 %v11613_v16  ;;  %2706 = vmatprep.mubr.bf16.mxu0 %v11621_v31 }
  0xe4   :  { %11278 = vmatmul.mubr.bf16.vlgmr.msra.gmra.mrb[48].mxu1 %v11616_v22  ;;  %10515 = vmatprep.subr.bf16.mxu0 %v11618_v26  ;;  %v11655_v26 = vld [vmem:[%s14843_s0 + $0x1bc] ss:$108 sps:$4 sm:$0xff]  }
  0xe5   :  { %10542 = vmatpush3.bf16.msra.mxu1 %v11617_v24  ;;  %4917 = vmatprep.mubr.bf16.mxu1 %v11655_v26 }
  0xe6   :  { %10543 = vmatprep.subr.bf16.mxu1 %v11620_v30  ;;  %v11657_v30 = vld [vmem:[%s14842_s1 + $0x880] sm:$0xff]  }
  0xe7   :  { %10516 = vmatpush3.bf16.msra.mxu0 %v11619_v28  ;;  %v11656_v28 = vld [vmem:[%s14842_s1 + $0x7c0] sm:$0xff]  }
  0xe8   :  { %10517 = vmatprep.subr.bf16.mxu0 %v11625_v34  ;;  %v11658_v34 = vld [vmem:[%s14842_s1 + $0x840] sm:$0xff]  }
  0xe9   :  { %10544 = vmatpush3.bf16.msra.mxu1 %v11623_v32 }
  0xea   :  { %2707 = vmatmul.mubr.bf16.gmra.mrb[52].mxu0 %v11624_v33  ;;  %10545 = vmatprep.subr.bf16.mxu1 %v11627_v36  ;;  %v11659_v36 = vld [vmem:[%s14842_s1 + $0x808] sm:$0xff]  }
  0xeb   :  { %10518 = vmatpush3.bf16.msra.mxu0 %v11626_v35 }
  0xec   :  { %10519 = vmatprep.subr.bf16.mxu0 %v11629_v38 }
  0xed   :  { %10546 = vmatpush3.bf16.msra.mxu1 %v11628_v37 }
  0xee   :  { %10547 = vmatprep.subr.bf16.mxu1 %v11631_v40  ;;  %v11661_v40 = vld [vmem:[%s14842_s1 + $0x888] sm:$0xff]  }
  0xef   :  { %10520 = vmatpush3.bf16.msra.mxu0 %v11630_v39  ;;  %v11660_v39 = vld [vmem:[%s14842_s1 + $0x7c8] sm:$0xff]  }
  0xf0   :  { %10521 = vmatprep.subr.bf16.mxu0 %v11633_v42 }
  0xf1   :  { %10548 = vmatpush3.bf16.msra.mxu1 %v11632_v41 }
  0xf2   :  { %10549 = vmatprep.subr.bf16.mxu1 %v11635_v44 }
  0xf3   :  { %10522 = vmatpush3.bf16.msra.mxu0 %v11634_v43  ;;  %v11662_v43 = vld [vmem:[%s14842_s1 + $0x848] sm:$0xff]  }
  0xf4   :  { %10523 = vmatprep.subr.bf16.mxu0 %v11637_v50  ;;  %v11665_v50 = vld [vmem:[%s14842_s1 + $0x890] sm:$0xff]  }
  0xf5   :  { %v10155_v6 = vpop.f32.mrb[0].mxu0  ;;  %10550 = vmatpush3.bf16.msra.mxu1 %v11636_v46 }
  0xf6   :  { %v10156_v8 = vpop.f32.mrb[1].mxu0  ;;  %10551 = vmatprep.subr.bf16.mxu1 %v11639_v57 }
  0xf7   :  { %v13021_v10 = vadd.f32 %v10156_v8, %v10155_v6  ;;  %v10158_v11 = vpop.f32.mrb[2].mxu0  ;;  %v10183_v15 = vpop.f32.mrb[0].mxu1  ;;  %10524 = vmatpush3.bf16.msra.mxu0 %v11638_v54  ;;  %v11643_v6 = vld [vmem:[%s14842_s1 + $0x7b0] sm:$0xff]  }
  0xf8   :  { %v10159_v17 = vpop.f32.mrb[3].mxu0  ;;  %v10184_v21 = vpop.f32.mrb[1].mxu1  ;;  %10525 = vmatprep.subr.bf16.mxu0 %v11641_v0 }
  0xf9   :  { %v10160_v19 = vadd.f32 %v10159_v17, %v10158_v11  ;;  %v10185_v23 = vadd.f32 %v10184_v21, %v10183_v15  ;;  %v10186_v25 = vpop.f32.mrb[2].mxu1  ;;  %v2113_v49 = vadd.f32 %v13021_v10, %v8332_v47  ;;  %10552 = vmatpush3.bf16.msra.mxu1 %v11640_v61  ;;  %v11645_v10 = vld [vmem:[%s14842_s1 + $0x738] sm:$0xff]   ;;  %v11650_v17 = vld [vmem:[%s14843_s0 + $0x1b4] ss:$108 sps:$4 sm:$0xff]  }
  0xfa   :  { %v10187_v27 = vpop.f32.mrb[3].mxu1  ;;  %10553 = vmatprep.subr.bf16.mxu1 %v11643_v6  ;;  %v11648_v15 = vld [vmem:[%s14843_s0 + $0x1b0] ss:$108 sps:$4 sm:$0xff]   ;;  %4868 = vmatprep.mubr.bf16.mxu0 %v11650_v17  ;;  %v11652_v21 = vld [vmem:[%s14842_s1 + $0x800] sm:$0xff]  }
  0xfb   :  { %v10188_v29 = vadd.f32 %v10187_v27, %v10186_v25  ;;  %v2116_v51 = vadd.f32 %v10160_v19, %v8332_v47  ;;  %v2162_v56 = vadd.f32 %v10185_v23, %v2113_v49  ;;  %10526 = vmatpush3.bf16.msra.mxu0 %v11642_v3  ;;  %v11651_v19 = vld [vmem:[%s14842_s1 + $0x778] sm:$0xff]   ;;  %v11674_v6 = vld [vmem:[%s14842_s1 + $0x860] sm:$0xff]   ;;  %v11687_v17 = vld [vmem:[%s14842_s1 + $0x8b0] sm:$0xff]  }
  0xfc   :  { %10527 = vmatprep.subr.bf16.mxu0 %v11645_v10  ;;  %v11653_v25 = vld [vmem:[%s14843_s0 + $0x1b8] ss:$108 sps:$4 sm:$0xff]   ;;  %v11679_v10 = vld [vmem:[%s14843_s0 + $0x288] ss:$108 sps:$4 sm:$0xff]  }
  0xfd   :  { %v10161_v45 = vpop.f32.mrb[4].mxu0  ;;  %v2165_v58 = vadd.f32 %v10188_v29, %v2116_v51  ;;  %10554 = vmatpush3.bf16.msra.mxu1 %v11644_v9  ;;  %v11678_v9 = vld [vmem:[%s14842_s1 + $0x7e8] sm:$0xff]  }
  0xfe   :  { %v10162_v48 = vpop.f32.mrb[5].mxu0  ;;  %10555 = vmatprep.subr.bf16.mxu1 %v11647_v13  ;;  %v11683_v13 = vld [vmem:[%s14842_s1 + $0x868] sm:$0xff]  }
  0xff   :  { %v10163_v52 = vadd.f32 %v10162_v48, %v10161_v45  ;;  %v10164_v53 = vpop.f32.mrb[6].mxu0  ;;  %v10189_v55 = vpop.f32.mrb[4].mxu1  ;;  %10528 = vmatpush3.bf16.msra.mxu0 %v11646_v12  ;;  %v11663_v45 = vld [vmem:[%s14842_s1 + $0x810] sm:$0xff]  }
 0x100   :  { %v10165_v60 = vpop.f32.mrb[7].mxu0  ;;  %v10190_v63 = vpop.f32.mrb[5].mxu1  ;;  %10569 = vmatprep.subr.bf16.mxu0 %v11652_v21  ;;  %v11664_v48 = vld [vmem:[%s14842_s1 + $0x7d0] sm:$0xff]  }
 0x101   :  { %v2121_v59 = vadd.f32 %v10163_v52, %v8332_v47  ;;  %v10166_v62 = vadd.f32 %v10165_v60, %v10164_v53  ;;  %v10191_v1 = vadd.f32 %v10190_v63, %v10189_v55  ;;  %v10192_v2 = vpop.f32.mrb[6].mxu1  ;;  %10556 = vmatpush3.bf16.msra.mxu1 %v11651_v19  ;;  %v11666_v53 = vld [vmem:[%s14842_s1 + $0x850] sm:$0xff]   ;;  %v11689_v19 = vld [vmem:[%s14842_s1 + $0x838] sm:$0xff]  }
 0x102   :  { %v10193_v5 = vpop.f32.mrb[7].mxu1  ;;  %4869 = vmatmul.mubr.bf16.vlgmr.msra.gmra.mrb[56].mxu0 %v11648_v15  ;;  %10597 = vmatprep.subr.bf16.mxu1 %v11657_v30  ;;  %v11681_v12 = vld [vmem:[%s14843_s0 + $0x294] ss:$108 sps:$4 sm:$0xff]  }
 0x103   :  { %v2124_v4 = vadd.f32 %v10166_v62, %v8332_v47  ;;  %v13126_v7 = vadd.f32 %v10191_v1, %v2121_v59  ;;  %v10194_v8 = vadd.f32 %v10193_v5, %v10192_v2  ;;  %10570 = vmatpush3.bf16.msra.mxu0 %v11656_v28  ;;  %v11668_v59 = vld [vmem:[%s14842_s1 + $0x7d8] sm:$0xff]   ;;  %v11671_v2 = vld [vmem:[%s14842_s1 + $0x820] sm:$0xff]   ;;  %v11685_v15 = vld [vmem:[%s14842_s1 + $0x830] sm:$0xff]  }
 0x104   :  { %4918 = vmatmul.mubr.bf16.vlgmr.msra.gmra.mrb[52].mxu1 %v11653_v25  ;;  %10571 = vmatprep.subr.bf16.mxu0 %v11659_v36  ;;  %v11669_v62 = vld [vmem:[%s14842_s1 + $0x898] sm:$0xff]   ;;  %v11673_v5 = vld [vmem:[%s14842_s1 + $0x8a0] sm:$0xff]  }
 0x105   :  { %v13134_v11 = vadd.f32 %v10194_v8, %v2124_v4  ;;  %10598 = vmatpush3.bf16.msra.mxu1 %v11658_v34  ;;  %v11670_v1 = vld [vmem:[%s14842_s1 + $0x858] sm:$0xff]   ;;  %v11672_v4 = vld [vmem:[%s14842_s1 + $0x7e0] sm:$0xff]   ;;  %4925 = vmatprep.mubr.bf16.mxu1 %v11681_v12 }
 0x106   :  { %10599 = vmatprep.subr.bf16.mxu1 %v11661_v40  ;;  %v11676_v8 = vld [vmem:[%s14843_s0 + $0x28c] ss:$108 sps:$4 sm:$0xff]   ;;  %v11694_v25 = vld [vmem:[%s14843_s0 + $0x1c4] ss:$108 sps:$4 sm:$0xff]  }
 0x107   :  { %10572 = vmatpush3.bf16.msra.mxu0 %v11660_v39  ;;  %4876 = vmatprep.mubr.bf16.mxu0 %v11676_v8  ;;  %v11699_v34 = vld [vmem:[%s14843_s0 + $0x1cc] ss:$108 sps:$4 sm:$0xff]   ;;  %v11701_v40 = vld [vmem:[%s14842_s1 + $0x980] sm:$0xff]  }
 0x108   :  { %10573 = vmatprep.subr.bf16.mxu0 %v11663_v45  ;;  %v11719_v12 = vld [vmem:[%s14842_s1 + $0x998] sm:$0xff]  }
 0x109   :  { %10600 = vmatpush3.bf16.msra.mxu1 %v11662_v43 }
 0x10a   :  { %10601 = vmatprep.subr.bf16.mxu1 %v11665_v50  ;;  %4877 = vmatmul.mubr.bf16.gmra.mrb[60].mxu0 %v11679_v10 }
 0x10b   :  { %10574 = vmatpush3.bf16.msra.mxu0 %v11664_v48  ;;  %4966 = vmatprep.mubr.bf16.mxu0 %v11694_v25  ;;  %v11731_v25 = vld [vmem:[%s14842_s1 + $0x9b0] sm:$0xff]  }
 0x10d   :  { %10602 = vmatpush3.bf16.msra.mxu1 %v11666_v53  ;;  %v11708_v53 = vld [vmem:[%s14842_s1 + $0x948] sm:$0xff]  }
 0x10e   :  { %10603 = vmatprep.subr.bf16.mxu1 %v11669_v62 }
 0x111   :  { %10604 = vmatpush3.bf16.msra.mxu1 %v11670_v1  ;;  %v11714_v1 = vld [vmem:[%s14843_s0 + $0x2a0] ss:$108 sps:$4 sm:$0xff]  }
 0x112   :  { %10605 = vmatprep.subr.bf16.mxu1 %v11673_v5 }
 0x115   :  { %v10211_v14 = vpop.f32.mrb[8].mxu0  ;;  %10606 = vmatpush3.bf16.msra.mxu1 %v11674_v6 }
 0x116   :  { %v10212_v16 = vpop.f32.mrb[9].mxu0 }
 0x117   :  { %v10213_v18 = vadd.f32 %v10212_v16, %v10211_v14  ;;  %v10214_v20 = vpop.f32.mrb[10].mxu0  ;;  %v10239_v23 = vpop.f32.mrb[8].mxu1  ;;  %v11684_v14 = vld [vmem:[%s14843_s0 + $0x290] ss:$108 sps:$4 sm:$0xff]  }
 0x118   :  { %v10215_v24 = vpop.f32.mrb[11].mxu0  ;;  %v10240_v29 = vpop.f32.mrb[9].mxu1  ;;  %4926 = vmatmul.mubr.bf16.gmra.mrb[56].mxu1 %v11684_v14  ;;  %v11686_v16 = vld [vmem:[%s14842_s1 + $0x7f0] sm:$0xff]   ;;  %v11720_v14 = vld [vmem:[%s14842_s1 + $0x958] sm:$0xff]  }
 0x119   :  { %v2211_v22 = vadd.f32 %v10213_v18, %v2162_v56  ;;  %v10216_v27 = vadd.f32 %v10215_v24, %v10214_v20  ;;  %v10241_v32 = vadd.f32 %v10240_v29, %v10239_v23  ;;  %v10242_v33 = vpop.f32.mrb[10].mxu1  ;;  %v11667_v56 = vld [vmem:[%s14842_s1 + $0x818] sm:$0xff]   ;;  %v11688_v18 = vld [vmem:[%s14842_s1 + $0x870] sm:$0xff]   ;;  %v11692_v24 = vld [vmem:[%s14843_s0 + $0x1c0] ss:$108 sps:$4 sm:$0xff]   ;;  %5015 = vmatprep.mubr.bf16.mxu1 %v11699_v34 }
 0x11a   :  { %v10243_v35 = vpop.f32.mrb[11].mxu1  ;;  %10575 = vmatprep.subr.bf16.mxu0 %v11667_v56  ;;  %v11690_v20 = vld [vmem:[%s14842_s1 + $0x7f8] sm:$0xff]   ;;  %v11696_v29 = vld [vmem:[%s14842_s1 + $0x900] sm:$0xff]  }
 0x11b   :  { %v2214_v31 = vadd.f32 %v10216_v27, %v2165_v58  ;;  %v13172_v37 = vadd.f32 %v10241_v32, %v2211_v22  ;;  %v10244_v38 = vadd.f32 %v10243_v35, %v10242_v33  ;;  %10576 = vmatpush3.bf16.msra.mxu0 %v11668_v59  ;;  %v11691_v22 = vld [vmem:[%s14842_s1 + $0x8b8] sm:$0xff]   ;;  %v11697_v33 = vld [vmem:[%s14843_s0 + $0x1c8] ss:$108 sps:$4 sm:$0xff]  }
 0x11c   :  { %10577 = vmatprep.subr.bf16.mxu0 %v11671_v2  ;;  %v11695_v27 = vld [vmem:[%s14842_s1 + $0x878] sm:$0xff]  }
 0x11d   :  { %v13180_v41 = vadd.f32 %v10244_v38, %v2214_v31  ;;  %v10217_v42 = vpop.f32.mrb[12].mxu0  ;;  %v11700_v38 = vld [vmem:[%s14842_s1 + $0x8c0] sm:$0xff]   ;;  %v11739_v34 = vld [vmem:[%s14842_s1 + $0x978] sm:$0xff]  }
 0x11e   :  { %v10218_v44 = vpop.f32.mrb[13].mxu0  ;;  %v11709_v56 = vld [vmem:[%s14843_s0 + $0x298] ss:$108 sps:$4 sm:$0xff]  }
 0x11f   :  { %v10219_v46 = vadd.f32 %v10218_v44, %v10217_v42  ;;  %v10220_v47 = vpop.f32.mrb[14].mxu0  ;;  %v10245_v49 = vpop.f32.mrb[12].mxu1  ;;  %10578 = vmatpush3.bf16.msra.mxu0 %v11672_v4  ;;  %v11702_v44 = vld [vmem:[%s14842_s1 + $0x940] sm:$0xff]  }
 0x120   :  { %v10221_v52 = vpop.f32.mrb[15].mxu0  ;;  %v10246_v55 = vpop.f32.mrb[13].mxu1 }
 0x121   :  { %v2219_v51 = vadd.f32 %v10219_v46, %v13126_v7  ;;  %v10222_v54 = vadd.f32 %v10221_v52, %v10220_v47  ;;  %v10247_v57 = vadd.f32 %v10246_v55, %v10245_v49  ;;  %v10248_v58 = vpop.f32.mrb[14].mxu1  ;;  %v11675_v7 = vld [vmem:[%s14842_s1 + $0x828] sm:$0xff]  }
 0x122   :  { %v10249_v61 = vpop.f32.mrb[15].mxu1  ;;  %10579 = vmatprep.subr.bf16.mxu0 %v11675_v7  ;;  %v11703_v47 = vld [vmem:[%s14842_s1 + $0x908] sm:$0xff]   ;;  %v11716_v7 = vld [vmem:[%s14842_s1 + $0x950] sm:$0xff]  }
 0x123   :  { %v2222_v60 = vadd.f32 %v10222_v54, %v13134_v11  ;;  %v13208_v63 = vadd.f32 %v10247_v57, %v2219_v51  ;;  %v10250_v0 = vadd.f32 %v10249_v61, %v10248_v58  ;;  %v11680_v11 = vld [vmem:[%s14842_s1 + $0x8a8] sm:$0xff]   ;;  %10580 = vmatpush3.bf16.msra.mxu0 %v11678_v9  ;;  %v11710_v57 = vld [vmem:[%s14842_s1 + $0x910] sm:$0xff]   ;;  %v11717_v9 = vld [vmem:[%s14842_s1 + $0x918] sm:$0xff]  }
 0x124   :  { %10607 = vmatprep.subr.bf16.mxu1 %v11680_v11  ;;  %10581 = vmatprep.subr.bf16.mxu0 %v11685_v15  ;;  %v11705_v49 = vld [vmem:[%s14842_s1 + $0x988] sm:$0xff]   ;;  %v11711_v61 = vld [vmem:[%s14843_s0 + $0x2a4] ss:$108 sps:$4 sm:$0xff]  }
 0x125   :  { %v13216_v3 = vadd.f32 %v10250_v0, %v2222_v60  ;;  %10608 = vmatpush3.bf16.msra.mxu1 %v11683_v13  ;;  %v11706_v51 = vld [vmem:[%s14843_s0 + $0x29c] ss:$108 sps:$4 sm:$0xff]   ;;  %v11713_v0 = vld [vmem:[%s14842_s1 + $0x8d0] sm:$0xff]   ;;  %v11721_v15 = vld [vmem:[%s14842_s1 + $0x920] sm:$0xff]  }
 0x126   :  { %10609 = vmatprep.subr.bf16.mxu1 %v11687_v17  ;;  %v11723_v17 = vld [vmem:[%s14842_s1 + $0x9a0] sm:$0xff]  }
 0x127   :  { %10582 = vmatpush3.bf16.msra.mxu0 %v11686_v16  ;;  %v11722_v16 = vld [vmem:[%s14842_s1 + $0x8e0] sm:$0xff]  }
 0x128   :  { %10583 = vmatprep.subr.bf16.mxu0 %v11689_v19  ;;  %v11725_v19 = vld [vmem:[%s14842_s1 + $0x928] sm:$0xff]  }
 0x129   :  { %10610 = vmatpush3.bf16.msra.mxu1 %v11688_v18  ;;  %v11724_v18 = vld [vmem:[%s14842_s1 + $0x960] sm:$0xff]  }
 0x12a   :  { %10611 = vmatprep.subr.bf16.mxu1 %v11691_v22  ;;  %v11728_v22 = vld [vmem:[%s14842_s1 + $0x968] sm:$0xff]  }
 0x12b   :  { %10584 = vmatpush3.bf16.msra.mxu0 %v11690_v20  ;;  %v11726_v20 = vld [vmem:[%s14842_s1 + $0x8e8] sm:$0xff]  }
 0x12c   :  { %10625 = vmatprep.subr.bf16.mxu0 %v11696_v29  ;;  %v11735_v29 = vld [vmem:[%s14842_s1 + $0x9b8] sm:$0xff]  }
 0x12d   :  { %10612 = vmatpush3.bf16.msra.mxu1 %v11695_v27  ;;  %v11733_v27 = vld [vmem:[%s14842_s1 + $0x938] sm:$0xff]  }
 0x12e   :  { %4967 = vmatmul.mubr.bf16.vlgmr.msra.gmra.mrb[64].mxu0 %v11692_v24  ;;  %10653 = vmatprep.subr.bf16.mxu1 %v11701_v40  ;;  %v11730_v24 = vld [vmem:[%s14842_s1 + $0x8f0] sm:$0xff]  }
 0x12f   :  { %10626 = vmatpush3.bf16.msra.mxu0 %v11700_v38  ;;  %4974 = vmatprep.mubr.bf16.mxu0 %v11706_v51  ;;  %v11740_v38 = vld [vmem:[%s14842_s1 + $0xa00] sm:$0xff]  }
 0x130   :  { %5016 = vmatmul.mubr.bf16.vlgmr.msra.gmra.mrb[60].mxu1 %v11697_v33  ;;  %10627 = vmatprep.subr.bf16.mxu0 %v11703_v47 }
 0x131   :  { %10654 = vmatpush3.bf16.msra.mxu1 %v11702_v44  ;;  %5023 = vmatprep.mubr.bf16.mxu1 %v11711_v61  ;;  %v11743_v44 = vld [vmem:[%s14843_s0 + $0x1dc] ss:$108 sps:$4 sm:$0xff]  }
 0x132   :  { %10655 = vmatprep.subr.bf16.mxu1 %v11705_v49 }
 0x135   :  { %v10267_v21 = vpop.f32.mrb[16].mxu0  ;;  %10656 = vmatpush3.bf16.msra.mxu1 %v11708_v53  ;;  %v11746_v53 = vld [vmem:[%s14842_s1 + $0xa40] sm:$0xff]  }
 0x136   :  { %v10268_v23 = vpop.f32.mrb[17].mxu0  ;;  %4975 = vmatmul.mubr.bf16.gmra.mrb[68].mxu0 %v11709_v56 }
 0x137   :  { %v10269_v26 = vadd.f32 %v10268_v23, %v10267_v21  ;;  %v10270_v28 = vpop.f32.mrb[18].mxu0  ;;  %v10295_v31 = vpop.f32.mrb[16].mxu1  ;;  %v11727_v21 = vld [vmem:[%s14842_s1 + $0x9a8] sm:$0xff]   ;;  %v11729_v23 = vld [vmem:[%s14842_s1 + $0x930] sm:$0xff]  }
 0x138   :  { %v10271_v32 = vpop.f32.mrb[19].mxu0  ;;  %v10296_v36 = vpop.f32.mrb[17].mxu1  ;;  %5024 = vmatmul.mubr.bf16.gmra.mrb[64].mxu1 %v11714_v1 }
 0x139   :  { %v2309_v30 = vadd.f32 %v10269_v26, %v13172_v37  ;;  %v10272_v35 = vadd.f32 %v10271_v32, %v10270_v28  ;;  %v10297_v37 = vadd.f32 %v10296_v36, %v10295_v31  ;;  %v10298_v39 = vpop.f32.mrb[18].mxu1  ;;  %v11732_v26 = vld [vmem:[%s14842_s1 + $0x970] sm:$0xff]   ;;  %v11734_v28 = vld [vmem:[%s14842_s1 + $0x8f8] sm:$0xff]   ;;  %5113 = vmatprep.mubr.bf16.mxu1 %v11743_v44 }
 0x13a   :  { %v10299_v43 = vpop.f32.mrb[19].mxu1  ;;  %v11736_v31 = vld [vmem:[%s14843_s0 + $0x1d0] ss:$108 sps:$4 sm:$0xff]   ;;  %v11738_v32 = vld [vmem:[%s14843_s0 + $0x1d4] ss:$108 sps:$4 sm:$0xff]  }
 0x13b   :  { %v2312_v42 = vadd.f32 %v10272_v35, %v13180_v41  ;;  %v13301_v45 = vadd.f32 %v10297_v37, %v2309_v30  ;;  %v10300_v46 = vadd.f32 %v10299_v43, %v10298_v39  ;;  %v11704_v41 = vld [vmem:[%s14842_s1 + $0x8c8] sm:$0xff]   ;;  %5064 = vmatprep.mubr.bf16.mxu0 %v11738_v32  ;;  %v11741_v39 = vld [vmem:[%s14843_s0 + $0x1d8] ss:$108 sps:$4 sm:$0xff]   ;;  %v11774_v32 = vld [vmem:[%s14842_s1 + $0x9f0] sm:$0xff]  }
 0x13c   :  { %10628 = vmatpush3.bf16.msra.mxu0 %v11704_v41  ;;  %v11744_v41 = vld [vmem:[%s14842_s1 + $0x9c0] sm:$0xff]   ;;  %v11783_v44 = vld [vmem:[%s14842_s1 + $0xa78] sm:$0xff]  }
 0x13d   :  { %v13309_v48 = vadd.f32 %v10300_v46, %v2312_v42  ;;  %v10273_v50 = vpop.f32.mrb[20].mxu0  ;;  %10629 = vmatprep.subr.bf16.mxu0 %v11710_v57 }
 0x13e   :  { %v10274_v52 = vpop.f32.mrb[21].mxu0 }
 0x13f   :  { %v10275_v54 = vadd.f32 %v10274_v52, %v10273_v50  ;;  %v10276_v55 = vpop.f32.mrb[22].mxu0  ;;  %v10301_v59 = vpop.f32.mrb[20].mxu1  ;;  %v11745_v50 = vld [vmem:[%s14842_s1 + $0xa80] sm:$0xff]  }
 0x140   :  { %v10277_v60 = vpop.f32.mrb[23].mxu0  ;;  %v10302_v2 = vpop.f32.mrb[21].mxu1  ;;  %10630 = vmatpush3.bf16.msra.mxu0 %v11713_v0  ;;  %v11753_v0 = vld [vmem:[%s14843_s0 + $0x2a8] ss:$108 sps:$4 sm:$0xff]  }
 0x141   :  { %v2317_v58 = vadd.f32 %v10275_v54, %v13208_v63  ;;  %v10278_v62 = vadd.f32 %v10277_v60, %v10276_v55  ;;  %v11715_v63 = vld [vmem:[%s14842_s1 + $0x990] sm:$0xff]   ;;  %v10303_v5 = vadd.f32 %v10302_v2, %v10301_v59  ;;  %v10304_v6 = vpop.f32.mrb[22].mxu1  ;;  %10631 = vmatprep.subr.bf16.mxu0 %v11717_v9  ;;  %v11747_v55 = vld [vmem:[%s14842_s1 + $0xa08] sm:$0xff]  }
 0x142   :  { %v10305_v8 = vpop.f32.mrb[23].mxu1  ;;  %10657 = vmatprep.subr.bf16.mxu1 %v11715_v63  ;;  %v11750_v60 = vld [vmem:[%s14843_s0 + $0x2ac] ss:$108 sps:$4 sm:$0xff]   ;;  %v11754_v2 = vld [vmem:[%s14842_s1 + $0xa10] sm:$0xff]  }
 0x143   :  { %v2320_v4 = vadd.f32 %v10278_v62, %v13216_v3  ;;  %v13346_v10 = vadd.f32 %v10303_v5, %v2317_v58  ;;  %v10306_v11 = vadd.f32 %v10305_v8, %v10304_v6  ;;  %10658 = vmatpush3.bf16.msra.mxu1 %v11716_v7  ;;  %v11718_v3 = vld [vmem:[%s14842_s1 + $0x8d8] sm:$0xff]   ;;  %v11749_v58 = vld [vmem:[%s14842_s1 + $0xa88] sm:$0xff]   ;;  %v11755_v6 = vld [vmem:[%s14843_s0 + $0x2b4] ss:$108 sps:$4 sm:$0xff]  }
 0x144   :  { %10632 = vmatpush3.bf16.msra.mxu0 %v11718_v3  ;;  %10659 = vmatprep.subr.bf16.mxu1 %v11719_v12  ;;  %v11752_v62 = vld [vmem:[%s14842_s1 + $0xa48] sm:$0xff]   ;;  %v11757_v9 = vld [vmem:[%s14842_s1 + $0x9d0] sm:$0xff]  }
 0x145   :  { %v13354_v13 = vadd.f32 %v10306_v11, %v2320_v4  ;;  %10633 = vmatprep.subr.bf16.mxu0 %v11721_v15  ;;  %v11758_v11 = vld [vmem:[%s14843_s0 + $0x2b0] ss:$108 sps:$4 sm:$0xff]  }
 0x146   :  { %v11759_v12 = vld [vmem:[%s14842_s1 + $0xa90] sm:$0xff]  }
 0x147   :  { %10660 = vmatpush3.bf16.msra.mxu1 %v11720_v14 }
 0x148   :  { %10634 = vmatpush3.bf16.msra.mxu0 %v11722_v16  ;;  %10661 = vmatprep.subr.bf16.mxu1 %v11723_v17  ;;  %v11760_v16 = vld [vmem:[%s14842_s1 + $0xa50] sm:$0xff]  }
 0x149   :  { %10635 = vmatprep.subr.bf16.mxu0 %v11725_v19  ;;  %v11761_v19 = vld [vmem:[%s14842_s1 + $0xa18] sm:$0xff]  }
 0x14b   :  { %10662 = vmatpush3.bf16.msra.mxu1 %v11724_v18 }
 0x14c   :  { %10636 = vmatpush3.bf16.msra.mxu0 %v11726_v20  ;;  %10663 = vmatprep.subr.bf16.mxu1 %v11727_v21  ;;  %v11763_v21 = vld [vmem:[%s14842_s1 + $0xa98] sm:$0xff]  }
 0x14d   :  { %10637 = vmatprep.subr.bf16.mxu0 %v11729_v23  ;;  %v11765_v23 = vld [vmem:[%s14842_s1 + $0xa20] sm:$0xff]  }
 0x14f   :  { %10664 = vmatpush3.bf16.msra.mxu1 %v11728_v22  ;;  %v11764_v22 = vld [vmem:[%s14842_s1 + $0xa58] sm:$0xff]  }
 0x150   :  { %10638 = vmatpush3.bf16.msra.mxu0 %v11730_v24  ;;  %10665 = vmatprep.subr.bf16.mxu1 %v11731_v25  ;;  %v11766_v24 = vld [vmem:[%s14842_s1 + $0x9e0] sm:$0xff]  }
 0x151   :  { %10639 = vmatprep.subr.bf16.mxu0 %v11733_v27  ;;  %v11767_v25 = vld [vmem:[%s14842_s1 + $0xaa0] sm:$0xff]   ;;  %v11769_v27 = vld [vmem:[%s14842_s1 + $0xa28] sm:$0xff]  }
 0x153   :  { %10666 = vmatpush3.bf16.msra.mxu1 %v11732_v26  ;;  %v11768_v26 = vld [vmem:[%s14842_s1 + $0xa60] sm:$0xff]  }
 0x154   :  { %10640 = vmatpush3.bf16.msra.mxu0 %v11734_v28  ;;  %10667 = vmatprep.subr.bf16.mxu1 %v11735_v29  ;;  %v11770_v28 = vld [vmem:[%s14842_s1 + $0x9e8] sm:$0xff]  }
 0x155   :  { %v10323_v30 = vpop.f32.mrb[24].mxu0  ;;  %10681 = vmatprep.subr.bf16.mxu0 %v11740_v38  ;;  %v11771_v29 = vld [vmem:[%s14842_s1 + $0xaa8] sm:$0xff]   ;;  %v11779_v38 = vld [vmem:[%s14842_s1 + $0xab8] sm:$0xff]  }
 0x156   :  { %v10324_v33 = vpop.f32.mrb[25].mxu0 }
 0x157   :  { %v10325_v35 = vadd.f32 %v10324_v33, %v10323_v30  ;;  %v10326_v36 = vpop.f32.mrb[26].mxu0  ;;  %v10351_v37 = vpop.f32.mrb[24].mxu1  ;;  %10668 = vmatpush3.bf16.msra.mxu1 %v11739_v34  ;;  %5065 = vmatmul.mubr.bf16.vlgmr.msra.gmra.mrb[72].mxu0 %v11736_v31  ;;  %v11772_v30 = vld [vmem:[%s14842_s1 + $0xa68] sm:$0xff]   ;;  %v11773_v31 = vld [vmem:[%s14842_s1 + $0xa30] sm:$0xff]  }
 0x158   :  { %v10327_v42 = vpop.f32.mrb[27].mxu0  ;;  %v10352_v43 = vpop.f32.mrb[25].mxu1  ;;  %10682 = vmatpush3.bf16.msra.mxu0 %v11744_v41  ;;  %10709 = vmatprep.subr.bf16.mxu1 %v11745_v50  ;;  %v11775_v33 = vld [vmem:[%s14842_s1 + $0xab0] sm:$0xff]  }
 0x159   :  { %v2407_v40 = vadd.f32 %v10325_v35, %v13301_v45  ;;  %v10328_v46 = vadd.f32 %v10327_v42, %v10326_v36  ;;  %v10353_v47 = vadd.f32 %v10352_v43, %v10351_v37  ;;  %v10354_v49 = vpop.f32.mrb[26].mxu1  ;;  %10683 = vmatprep.subr.bf16.mxu0 %v11747_v55  ;;  %5072 = vmatprep.mubr.bf16.mxu0 %v11750_v60  ;;  %v11776_v34 = vld [vmem:[%s14842_s1 + $0xa70] sm:$0xff]   ;;  %v11777_v35 = vld [vmem:[%s14842_s1 + $0xa38] sm:$0xff]  }
 0x15a   :  { %v10355_v52 = vpop.f32.mrb[27].mxu1  ;;  %5114 = vmatmul.mubr.bf16.vlgmr.msra.gmra.mrb[68].mxu1 %v11741_v39  ;;  %v11778_v36 = vld [vmem:[%s14842_s1 + $0x9f8] sm:$0xff]   ;;  %v11780_v39 = vld [vmem:[%s14843_s0 + $0x1e0] ss:$108 sps:$4 sm:$0xff]   ;;  %v11782_v42 = vld [vmem:[%s14843_s0 + $0x1e4] ss:$108 sps:$4 sm:$0xff]  }
 0x15b   :  { %v2410_v45 = vadd.f32 %v10328_v46, %v13309_v48  ;;  %v13430_v51 = vadd.f32 %v10353_v47, %v2407_v40  ;;  %v10356_v54 = vadd.f32 %v10355_v52, %v10354_v49  ;;  %10710 = vmatpush3.bf16.msra.mxu1 %v11746_v53  ;;  %v11748_v48 = vld [vmem:[%s14842_s1 + $0x9c8] sm:$0xff]   ;;  %5121 = vmatprep.mubr.bf16.mxu1 %v11755_v6  ;;  %v11784_v47 = vld [vmem:[%s14842_s1 + $0xb00] sm:$0xff]  }
 0x15c   :  { %10684 = vmatpush3.bf16.msra.mxu0 %v11748_v48  ;;  %10711 = vmatprep.subr.bf16.mxu1 %v11749_v58  ;;  %v11787_v52 = vld [vmem:[%s14843_s0 + $0x1ec] ss:$108 sps:$4 sm:$0xff]  }
 0x15d   :  { %v13441_v56 = vadd.f32 %v10356_v54, %v2410_v45  ;;  %v10329_v57 = vpop.f32.mrb[28].mxu0  ;;  %10685 = vmatprep.subr.bf16.mxu0 %v11754_v2  ;;  %v11785_v45 = vld [vmem:[%s14843_s0 + $0x1e8] ss:$108 sps:$4 sm:$0xff]   ;;  %v11788_v54 = vld [vmem:[%s14842_s1 + $0xac0] sm:$0xff]  }
 0x15e   :  { %v10330_v59 = vpop.f32.mrb[29].mxu0  ;;  %v11796_v6 = vld [vmem:[%s14842_s1 + $0xb48] sm:$0xff]  }
 0x15f   :  { %v10331_v61 = vadd.f32 %v10330_v59, %v10329_v57  ;;  %v10332_v1 = vpop.f32.mrb[30].mxu0  ;;  %v10357_v4 = vpop.f32.mrb[28].mxu1  ;;  %10712 = vmatpush3.bf16.msra.mxu1 %v11752_v62  ;;  %5073 = vmatmul.mubr.bf16.gmra.mrb[76].mxu0 %v11753_v0  ;;  %v11790_v59 = vld [vmem:[%s14842_s1 + $0xb40] sm:$0xff]  }
 0x160   :  { %v10333_v5 = vpop.f32.mrb[31].mxu0  ;;  %v10358_v8 = vpop.f32.mrb[29].mxu1  ;;  %10686 = vmatpush3.bf16.msra.mxu0 %v11757_v9  ;;  %10713 = vmatprep.subr.bf16.mxu1 %v11759_v12 }
 0x161   :  { %v2415_v63 = vadd.f32 %v10331_v61, %v13346_v10  ;;  %v10334_v7 = vadd.f32 %v10333_v5, %v10332_v1  ;;  %v10359_v10 = vadd.f32 %v10358_v8, %v10357_v4  ;;  %v10360_v3 = vpop.f32.mrb[30].mxu1  ;;  %10687 = vmatprep.subr.bf16.mxu0 %v11761_v19  ;;  %5162 = vmatprep.mubr.bf16.mxu0 %v11782_v42  ;;  %v11791_v61 = vld [vmem:[%s14842_s1 + $0xb08] sm:$0xff]   ;;  %v11819_v42 = vld [vmem:[%s14842_s1 + $0xbb0] sm:$0xff]  }
 0x162   :  { %v10361_v15 = vpop.f32.mrb[31].mxu1  ;;  %5122 = vmatmul.mubr.bf16.gmra.mrb[72].mxu1 %v11758_v11  ;;  %v11793_v1 = vld [vmem:[%s14842_s1 + $0xb88] sm:$0xff]   ;;  %v11798_v11 = vld [vmem:[%s14842_s1 + $0xb10] sm:$0xff]  }
 0x163   :  { %v2418_v14 = vadd.f32 %v10334_v7, %v13354_v13  ;;  %v13475_v17 = vadd.f32 %v10359_v10, %v2415_v63  ;;  %v10362_v18 = vadd.f32 %v10361_v15, %v10360_v3  ;;  %10714 = vmatpush3.bf16.msra.mxu1 %v11760_v16  ;;  %v11762_v13 = vld [vmem:[%s14842_s1 + $0x9d8] sm:$0xff]   ;;  %5211 = vmatprep.mubr.bf16.mxu1 %v11787_v52  ;;  %v11799_v3 = vld [vmem:[%s14843_s0 + $0x2c4] ss:$108 sps:$4 sm:$0xff]  }
 0x164   :  { %10688 = vmatpush3.bf16.msra.mxu0 %v11762_v13  ;;  %10715 = vmatprep.subr.bf16.mxu1 %v11763_v21  ;;  %v11794_v4 = vld [vmem:[%s14843_s0 + $0x2bc] ss:$108 sps:$4 sm:$0xff]   ;;  %v11797_v7 = vld [vmem:[%s14843_s0 + $0x2b8] ss:$108 sps:$4 sm:$0xff]   ;;  %v11801_v16 = vld [vmem:[%s14842_s1 + $0xad0] sm:$0xff]  }
 0x165   :  { %v13483_v20 = vadd.f32 %v10362_v18, %v2418_v14  ;;  %10689 = vmatprep.subr.bf16.mxu0 %v11765_v23  ;;  %v11802_v21 = vld [vmem:[%s14843_s0 + $0x2c0] ss:$108 sps:$4 sm:$0xff]  }
 0x167   :  { %10716 = vmatpush3.bf16.msra.mxu1 %v11764_v22 }
 0x168   :  { %10690 = vmatpush3.bf16.msra.mxu0 %v11766_v24  ;;  %10717 = vmatprep.subr.bf16.mxu1 %v11767_v25  ;;  %v11804_v25 = vld [vmem:[%s14842_s1 + $0xb50] sm:$0xff]  }
 0x169   :  { %10691 = vmatprep.subr.bf16.mxu0 %v11769_v27  ;;  %v11805_v27 = vld [vmem:[%s14842_s1 + $0xb18] sm:$0xff]  }
 0x16b   :  { %10718 = vmatpush3.bf16.msra.mxu1 %v11768_v26 }
 0x16c   :  { %10692 = vmatpush3.bf16.msra.mxu0 %v11770_v28  ;;  %10719 = vmatprep.subr.bf16.mxu1 %v11771_v29  ;;  %v11806_v28 = vld [vmem:[%s14842_s1 + $0xad8] sm:$0xff]  }
 0x16d   :  { %10693 = vmatprep.subr.bf16.mxu0 %v11773_v31  ;;  %v11807_v29 = vld [vmem:[%s14842_s1 + $0xb98] sm:$0xff]   ;;  %v11809_v31 = vld [vmem:[%s14842_s1 + $0xb20] sm:$0xff]  }
 0x16f   :  { %10720 = vmatpush3.bf16.msra.mxu1 %v11772_v30  ;;  %v11808_v30 = vld [vmem:[%s14842_s1 + $0xb58] sm:$0xff]  }
 0x170   :  { %10694 = vmatpush3.bf16.msra.mxu0 %v11774_v32  ;;  %10721 = vmatprep.subr.bf16.mxu1 %v11775_v33  ;;  %v11810_v32 = vld [vmem:[%s14842_s1 + $0xae0] sm:$0xff]  }
 0x171   :  { %10695 = vmatprep.subr.bf16.mxu0 %v11777_v35  ;;  %v11811_v33 = vld [vmem:[%s14842_s1 + $0xba0] sm:$0xff]   ;;  %v11813_v35 = vld [vmem:[%s14842_s1 + $0xb28] sm:$0xff]  }
 0x173   :  { %10722 = vmatpush3.bf16.msra.mxu1 %v11776_v34  ;;  %v11812_v34 = vld [vmem:[%s14842_s1 + $0xb60] sm:$0xff]  }
 0x174   :  { %10696 = vmatpush3.bf16.msra.mxu0 %v11778_v36  ;;  %10723 = vmatprep.subr.bf16.mxu1 %v11779_v38  ;;  %v11814_v36 = vld [vmem:[%s14842_s1 + $0xae8] sm:$0xff]  }
 0x175   :  { %v10379_v37 = vpop.f32.mrb[32].mxu0  ;;  %10737 = vmatprep.subr.bf16.mxu0 %v11784_v47  ;;  %v11815_v38 = vld [vmem:[%s14842_s1 + $0xba8] sm:$0xff]  }
 0x176   :  { %v10380_v40 = vpop.f32.mrb[33].mxu0 }
 0x177   :  { %v10381_v43 = vadd.f32 %v10380_v40, %v10379_v37  ;;  %v10382_v46 = vpop.f32.mrb[34].mxu0  ;;  %v10407_v49 = vpop.f32.mrb[32].mxu1  ;;  %10724 = vmatpush3.bf16.msra.mxu1 %v11783_v44  ;;  %5163 = vmatmul.mubr.bf16.vlgmr.msra.gmra.mrb[80].mxu0 %v11780_v39  ;;  %v11816_v37 = vld [vmem:[%s14842_s1 + $0xb68] sm:$0xff]   ;;  %v11817_v39 = vld [vmem:[%s14842_s1 + $0xb30] sm:$0xff]   ;;  %v11821_v44 = vld [vmem:[%s14842_s1 + $0xb38] sm:$0xff]  }
 0x178   :  { %v10383_v50 = vpop.f32.mrb[35].mxu0  ;;  %v10408_v55 = vpop.f32.mrb[33].mxu1  ;;  %10738 = vmatpush3.bf16.msra.mxu0 %v11788_v54  ;;  %5170 = vmatprep.mubr.bf16.mxu0 %v11794_v4  ;;  %v11818_v40 = vld [vmem:[%s14842_s1 + $0xaf0] sm:$0xff]  }
 0x179   :  { %v2505_v41 = vadd.f32 %v10381_v43, %v13430_v51  ;;  %v10384_v53 = vadd.f32 %v10383_v50, %v10382_v46  ;;  %v11789_v51 = vld [vmem:[%s14842_s1 + $0xb80] sm:$0xff]   ;;  %v10409_v57 = vadd.f32 %v10408_v55, %v10407_v49  ;;  %v10410_v58 = vpop.f32.mrb[34].mxu1  ;;  %10739 = vmatprep.subr.bf16.mxu0 %v11791_v61  ;;  %v11820_v43 = vld [vmem:[%s14842_s1 + $0xb70] sm:$0xff]   ;;  %v11822_v46 = vld [vmem:[%s14842_s1 + $0xaf8] sm:$0xff]  }
 0x17a   :  { %5212 = vmatmul.mubr.bf16.vlgmr.msra.gmra.mrb[76].mxu1 %v11785_v45  ;;  %v10411_v60 = vpop.f32.mrb[35].mxu1  ;;  %10765 = vmatprep.subr.bf16.mxu1 %v11789_v51  ;;  %v11824_v50 = vld [vmem:[%s14843_s0 + $0x1f0] ss:$108 sps:$4 sm:$0xff]   ;;  %v11826_v45 = vld [vmem:[%s14843_s0 + $0x1f4] ss:$108 sps:$4 sm:$0xff]  }
 0x17b   :  { %v2508_v48 = vadd.f32 %v10384_v53, %v13441_v56  ;;  %v13568_v62 = vadd.f32 %v10409_v57, %v2505_v41  ;;  %v10412_v0 = vadd.f32 %v10411_v60, %v10410_v58  ;;  %10766 = vmatpush3.bf16.msra.mxu1 %v11790_v59  ;;  %v11792_v56 = vld [vmem:[%s14842_s1 + $0xac8] sm:$0xff]   ;;  %5219 = vmatprep.mubr.bf16.mxu1 %v11799_v3  ;;  %v11823_v41 = vld [vmem:[%s14842_s1 + $0xbb8] sm:$0xff]   ;;  %v11828_v55 = vld [vmem:[%s14842_s1 + $0xc00] sm:$0xff]  }
 0x17c   :  { %10740 = vmatpush3.bf16.msra.mxu0 %v11792_v56  ;;  %10767 = vmatprep.subr.bf16.mxu1 %v11793_v1  ;;  %v11827_v53 = vld [vmem:[%s14842_s1 + $0xb78] sm:$0xff]   ;;  %v11833_v1 = vld [vmem:[%s14842_s1 + $0xc80] sm:$0xff]  }
 0x17d   :  { %v13576_v2 = vadd.f32 %v10412_v0, %v2508_v48  ;;  %v10385_v63 = vpop.f32.mrb[36].mxu0  ;;  %10741 = vmatprep.subr.bf16.mxu0 %v11798_v11  ;;  %v11829_v58 = vld [vmem:[%s14843_s0 + $0x1f8] ss:$108 sps:$4 sm:$0xff]   ;;  %v11831_v59 = vld [vmem:[%s14843_s0 + $0x1fc] ss:$108 sps:$4 sm:$0xff]  }
 0x17e   :  { %v10386_v5 = vpop.f32.mrb[37].mxu0  ;;  %v11832_v0 = vld [vmem:[%s14842_s1 + $0xbc0] sm:$0xff]  }
 0x17f   :  { %v10387_v8 = vadd.f32 %v10386_v5, %v10385_v63  ;;  %v10388_v9 = vpop.f32.mrb[38].mxu0  ;;  %v10413_v10 = vpop.f32.mrb[36].mxu1  ;;  %10768 = vmatpush3.bf16.msra.mxu1 %v11796_v6  ;;  %5171 = vmatmul.mubr.bf16.gmra.mrb[84].mxu0 %v11797_v7  ;;  %v11834_v5 = vld [vmem:[%s14842_s1 + $0xc40] sm:$0xff]  }
 0x180   :  { %v10389_v14 = vpop.f32.mrb[39].mxu0  ;;  %v10414_v15 = vpop.f32.mrb[37].mxu1  ;;  %10742 = vmatpush3.bf16.msra.mxu0 %v11801_v16  ;;  %5260 = vmatprep.mubr.bf16.mxu0 %v11826_v45  ;;  %v11863_v45 = vld [vmem:[%s14842_s1 + $0xcb0] sm:$0xff]  }
 0x181   :  { %v2513_v12 = vadd.f32 %v10387_v8, %v13475_v17  ;;  %v10390_v18 = vadd.f32 %v10389_v14, %v10388_v9  ;;  %v10415_v19 = vadd.f32 %v10414_v15, %v10413_v10  ;;  %v10416_v13 = vpop.f32.mrb[38].mxu1  ;;  %v11803_v17 = vld [vmem:[%s14842_s1 + $0xb90] sm:$0xff]   ;;  %10743 = vmatprep.subr.bf16.mxu0 %v11805_v27  ;;  %v11835_v8 = vld [vmem:[%s14842_s1 + $0xc08] sm:$0xff]  }
 0x182   :  { %v10417_v24 = vpop.f32.mrb[39].mxu1  ;;  %5220 = vmatmul.mubr.bf16.gmra.mrb[80].mxu1 %v11802_v21  ;;  %10769 = vmatprep.subr.bf16.mxu1 %v11803_v17  ;;  %v11837_v10 = vld [vmem:[%s14842_s1 + $0xc88] sm:$0xff]  }
 0x183   :  { %v2516_v22 = vadd.f32 %v10390_v18, %v13483_v20  ;;  %v13604_v23 = vadd.f32 %v10415_v19, %v2513_v12  ;;  %v10418_v26 = vadd.f32 %v10417_v24, %v10416_v13  ;;  %10770 = vmatpush3.bf16.msra.mxu1 %v11804_v25  ;;  %5309 = vmatprep.mubr.bf16.mxu1 %v11831_v59  ;;  %v11838_v12 = vld [vmem:[%s14843_s0 + $0x2cc] ss:$108 sps:$4 sm:$0xff]   ;;  %v11841_v13 = vld [vmem:[%s14843_s0 + $0x2c8] ss:$108 sps:$4 sm:$0xff]  }
 0x184   :  { %10744 = vmatpush3.bf16.msra.mxu0 %v11806_v28  ;;  %10771 = vmatprep.subr.bf16.mxu1 %v11807_v29  ;;  %v11840_v18 = vld [vmem:[%s14842_s1 + $0xc48] sm:$0xff]   ;;  %v11843_v25 = vld [vmem:[%s14843_s0 + $0x2d4] ss:$108 sps:$4 sm:$0xff]   ;;  %v11846_v28 = vld [vmem:[%s14843_s0 + $0x2d0] ss:$108 sps:$4 sm:$0xff]  }
 0x185   :  { %v13615_v20 = vadd.f32 %v10418_v26, %v2516_v22  ;;  %10745 = vmatprep.subr.bf16.mxu0 %v11809_v31  ;;  %v11842_v22 = vld [vmem:[%s14842_s1 + $0xc10] sm:$0xff]  }
 0x187   :  { %10772 = vmatpush3.bf16.msra.mxu1 %v11808_v30  ;;  %v11847_v30 = vld [vmem:[%s14842_s1 + $0xc90] sm:$0xff]  }
 0x188   :  { %10746 = vmatpush3.bf16.msra.mxu0 %v11810_v32  ;;  %10773 = vmatprep.subr.bf16.mxu1 %v11811_v33 }
 0x189   :  { %10747 = vmatprep.subr.bf16.mxu0 %v11813_v35  ;;  %v11850_v35 = vld [vmem:[%s14842_s1 + $0xbd8] sm:$0xff]  }
 0x18b   :  { %10774 = vmatpush3.bf16.msra.mxu1 %v11812_v34  ;;  %v11849_v34 = vld [vmem:[%s14842_s1 + $0xc18] sm:$0xff]  }
 0x18c   :  { %10748 = vmatpush3.bf16.msra.mxu0 %v11814_v36  ;;  %10775 = vmatprep.subr.bf16.mxu1 %v11815_v38  ;;  %v11851_v38 = vld [vmem:[%s14842_s1 + $0xc98] sm:$0xff]  }
 0x18d   :  { %10749 = vmatprep.subr.bf16.mxu0 %v11817_v39  ;;  %v11853_v39 = vld [vmem:[%s14842_s1 + $0xc20] sm:$0xff]  }
 0x18f   :  { %10776 = vmatpush3.bf16.msra.mxu1 %v11816_v37  ;;  %v11852_v37 = vld [vmem:[%s14842_s1 + $0xc58] sm:$0xff]  }
 0x190   :  { %10750 = vmatpush3.bf16.msra.mxu0 %v11818_v40  ;;  %10777 = vmatprep.subr.bf16.mxu1 %v11819_v42  ;;  %v11854_v40 = vld [vmem:[%s14842_s1 + $0xbe0] sm:$0xff]  }
 0x191   :  { %10751 = vmatprep.subr.bf16.mxu0 %v11821_v44  ;;  %v11855_v42 = vld [vmem:[%s14842_s1 + $0xca0] sm:$0xff]   ;;  %v11857_v44 = vld [vmem:[%s14842_s1 + $0xc28] sm:$0xff]  }
 0x193   :  { %10778 = vmatpush3.bf16.msra.mxu1 %v11820_v43  ;;  %v11856_v43 = vld [vmem:[%s14842_s1 + $0xc60] sm:$0xff]  }
 0x194   :  { %10752 = vmatpush3.bf16.msra.mxu0 %v11822_v46  ;;  %10779 = vmatprep.subr.bf16.mxu1 %v11823_v41  ;;  %v11858_v46 = vld [vmem:[%s14842_s1 + $0xbe8] sm:$0xff]  }
 0x195   :  { %v10435_v47 = vpop.f32.mrb[40].mxu0  ;;  %10793 = vmatprep.subr.bf16.mxu0 %v11828_v55  ;;  %v11860_v41 = vld [vmem:[%s14842_s1 + $0xc68] sm:$0xff]  }
 0x196   :  { %v10436_v49 = vpop.f32.mrb[41].mxu0 }
 0x197   :  { %v10437_v52 = vadd.f32 %v10436_v49, %v10435_v47  ;;  %v10438_v54 = vpop.f32.mrb[42].mxu0  ;;  %v10463_v48 = vpop.f32.mrb[40].mxu1  ;;  %10780 = vmatpush3.bf16.msra.mxu1 %v11827_v53  ;;  %5261 = vmatmul.mubr.bf16.vlgmr.msra.gmra.mrb[88].mxu0 %v11824_v50  ;;  %v11859_v47 = vld [vmem:[%s14842_s1 + $0xca8] sm:$0xff]   ;;  %v11861_v49 = vld [vmem:[%s14842_s1 + $0xc30] sm:$0xff]  }
 0x198   :  { %v10439_v57 = vpop.f32.mrb[43].mxu0  ;;  %v10464_v61 = vpop.f32.mrb[41].mxu1  ;;  %10794 = vmatpush3.bf16.msra.mxu0 %v11832_v0  ;;  %10821 = vmatprep.subr.bf16.mxu1 %v11833_v1  ;;  %v11862_v50 = vld [vmem:[%s14842_s1 + $0xbf0] sm:$0xff]  }
 0x199   :  { %v2603_v51 = vadd.f32 %v10437_v52, %v13568_v62  ;;  %v10440_v60 = vadd.f32 %v10439_v57, %v10438_v54  ;;  %v10465_v62 = vadd.f32 %v10464_v61, %v10463_v48  ;;  %v10466_v56 = vpop.f32.mrb[42].mxu1  ;;  %10795 = vmatprep.subr.bf16.mxu0 %v11835_v8  ;;  %5268 = vmatprep.mubr.bf16.mxu0 %v11838_v12  ;;  %v11864_v52 = vld [vmem:[%s14842_s1 + $0xc70] sm:$0xff]   ;;  %v11865_v54 = vld [vmem:[%s14842_s1 + $0xc38] sm:$0xff]   ;;  %v11868_v61 = vld [vmem:[%s14843_s0 + $0x200] ss:$108 sps:$4 sm:$0xff]  }
 0x19a   :  { %v10467_v4 = vpop.f32.mrb[43].mxu1  ;;  %5310 = vmatmul.mubr.bf16.vlgmr.msra.gmra.mrb[84].mxu1 %v11829_v58  ;;  %v11867_v58 = vld [vmem:[%s14842_s1 + $0xcb8] sm:$0xff]   ;;  %v11870_v0 = vld [vmem:[%s14843_s0 + $0x204] ss:$108 sps:$4 sm:$0xff]   ;;  %v11878_v12 = vld [vmem:[%s14842_s1 + $0xd08] sm:$0xff]  }
 0x19b   :  { %v2606_v63 = vadd.f32 %v10440_v60, %v13576_v2  ;;  %v13697_v6 = vadd.f32 %v10465_v62, %v2603_v51  ;;  %v10468_v7 = vadd.f32 %v10467_v4, %v10466_v56  ;;  %10822 = vmatpush3.bf16.msra.mxu1 %v11834_v5  ;;  %v11836_v2 = vld [vmem:[%s14842_s1 + $0xbc8] sm:$0xff]   ;;  %5317 = vmatprep.mubr.bf16.mxu1 %v11843_v25  ;;  %v11866_v51 = vld [vmem:[%s14842_s1 + $0xbf8] sm:$0xff]   ;;  %v11872_v5 = vld [vmem:[%s14842_s1 + $0xd00] sm:$0xff]  }
 0x19c   :  { %10796 = vmatpush3.bf16.msra.mxu0 %v11836_v2  ;;  %10823 = vmatprep.subr.bf16.mxu1 %v11837_v10 }
 0x19d   :  { %v13705_v9 = vadd.f32 %v10468_v7, %v2606_v63  ;;  %v10441_v11 = vpop.f32.mrb[44].mxu0  ;;  %10797 = vmatprep.subr.bf16.mxu0 %v11842_v22  ;;  %v11871_v63 = vld [vmem:[%s14842_s1 + $0xc78] sm:$0xff]   ;;  %v11884_v22 = vld [vmem:[%s14842_s1 + $0xd10] sm:$0xff]  }
 0x19e   :  { %v10442_v3 = vpop.f32.mrb[45].mxu0 }
 0x19f   :  { %v10443_v14 = vadd.f32 %v10442_v3, %v10441_v11  ;;  %v10444_v15 = vpop.f32.mrb[46].mxu0  ;;  %v10469_v16 = vpop.f32.mrb[44].mxu1  ;;  %10824 = vmatpush3.bf16.msra.mxu1 %v11840_v18  ;;  %5269 = vmatmul.mubr.bf16.gmra.mrb[92].mxu0 %v11841_v13  ;;  %v11875_v11 = vld [vmem:[%s14843_s0 + $0x20c] ss:$108 sps:$4 sm:$0xff]   ;;  %v11876_v3 = vld [vmem:[%s14842_s1 + $0xcc0] sm:$0xff]  }
 0x1a0   :  { %v10445_v19 = vpop.f32.mrb[47].mxu0  ;;  %v10470_v24 = vpop.f32.mrb[45].mxu1  ;;  %10825 = vmatprep.subr.bf16.mxu1 %v11847_v30  ;;  %5358 = vmatprep.mubr.bf16.mxu0 %v11870_v0  ;;  %v11880_v18 = vld [vmem:[%s14842_s1 + $0xd48] sm:$0xff]   ;;  %v11889_v30 = vld [vmem:[%s14842_s1 + $0xd50] sm:$0xff]  }
 0x1a1   :  { %v2611_v21 = vadd.f32 %v10443_v14, %v13604_v23  ;;  %v10446_v17 = vadd.f32 %v10445_v19, %v10444_v15  ;;  %v10471_v27 = vadd.f32 %v10470_v24, %v10469_v16  ;;  %v11845_v23 = vld [vmem:[%s14842_s1 + $0xbd0] sm:$0xff]   ;;  %v10472_v29 = vpop.f32.mrb[46].mxu1  ;;  %v11879_v15 = vld [vmem:[%s14842_s1 + $0xcc8] sm:$0xff]  }
 0x1a2   :  { %v10473_v32 = vpop.f32.mrb[47].mxu1  ;;  %10798 = vmatpush3.bf16.msra.mxu0 %v11845_v23  ;;  %5318 = vmatmul.mubr.bf16.gmra.mrb[88].mxu1 %v11846_v28  ;;  %v11887_v23 = vld [vmem:[%s14842_s1 + $0xcd0] sm:$0xff]   ;;  %v11888_v28 = vld [vmem:[%s14843_s0 + $0x2e0] ss:$108 sps:$4 sm:$0xff]  }
 0x1a3   :  { %v2614_v26 = vadd.f32 %v10446_v17, %v13615_v20  ;;  %v13736_v31 = vadd.f32 %v10471_v27, %v2611_v21  ;;  %v11848_v20 = vld [vmem:[%s14842_s1 + $0xc50] sm:$0xff]   ;;  %v10474_v33 = vadd.f32 %v10473_v32, %v10472_v29  ;;  %10799 = vmatprep.subr.bf16.mxu0 %v11849_v34  ;;  %5407 = vmatprep.mubr.bf16.mxu1 %v11875_v11  ;;  %v11881_v21 = vld [vmem:[%s14843_s0 + $0x2dc] ss:$108 sps:$4 sm:$0xff]   ;;  %v11883_v17 = vld [vmem:[%s14843_s0 + $0x2d8] ss:$108 sps:$4 sm:$0xff]  }
 0x1a4   :  { %10826 = vmatpush3.bf16.msra.mxu1 %v11848_v20  ;;  %v11890_v32 = vld [vmem:[%s14842_s1 + $0xd18] sm:$0xff]   ;;  %v11919_v11 = vld [vmem:[%s14842_s1 + $0xe08] sm:$0xff]  }
 0x1a5   :  { %v13747_v36 = vadd.f32 %v10474_v33, %v2614_v26  ;;  %10827 = vmatprep.subr.bf16.mxu1 %v11851_v38  ;;  %v11885_v26 = vld [vmem:[%s14843_s0 + $0x2e4] ss:$108 sps:$4 sm:$0xff]   ;;  %v11891_v20 = vld [vmem:[%s14842_s1 + $0xcd8] sm:$0xff]  }
 0x1a6   :  { %10800 = vmatpush3.bf16.msra.mxu0 %v11850_v35  ;;  %v11892_v34 = vld [vmem:[%s14842_s1 + $0xd58] sm:$0xff]   ;;  %v11893_v35 = vld [vmem:[%s14842_s1 + $0xd20] sm:$0xff]  }
 0x1a7   :  { %10801 = vmatprep.subr.bf16.mxu0 %v11853_v39  ;;  %v11895_v38 = vld [vmem:[%s14842_s1 + $0xd60] sm:$0xff]   ;;  %v11897_v39 = vld [vmem:[%s14842_s1 + $0xce8] sm:$0xff]   ;;  %v11912_v0 = vld [vmem:[%s14843_s0 + $0x2f0] ss:$108 sps:$4 sm:$0xff]  }
 0x1a8   :  { %10828 = vmatpush3.bf16.msra.mxu1 %v11852_v37  ;;  %v11896_v37 = vld [vmem:[%s14842_s1 + $0xd28] sm:$0xff]  }
 0x1a9   :  { %10829 = vmatprep.subr.bf16.mxu1 %v11855_v42  ;;  %v11899_v42 = vld [vmem:[%s14842_s1 + $0xd30] sm:$0xff]  }
 0x1aa   :  { %10802 = vmatpush3.bf16.msra.mxu0 %v11854_v40  ;;  %v11898_v40 = vld [vmem:[%s14842_s1 + $0xd68] sm:$0xff]  }
 0x1ab   :  { %10803 = vmatprep.subr.bf16.mxu0 %v11857_v44  ;;  %v11900_v44 = vld [vmem:[%s14842_s1 + $0xcf0] sm:$0xff]  }
 0x1ac   :  { %10830 = vmatpush3.bf16.msra.mxu1 %v11856_v43  ;;  %v11901_v43 = vld [vmem:[%s14842_s1 + $0xd70] sm:$0xff]  }
 0x1ad   :  { %10831 = vmatprep.subr.bf16.mxu1 %v11859_v47 }
 0x1ae   :  { %10804 = vmatpush3.bf16.msra.mxu0 %v11858_v46  ;;  %v11902_v46 = vld [vmem:[%s14842_s1 + $0xd38] sm:$0xff]  }
 0x1af   :  { %10805 = vmatprep.subr.bf16.mxu0 %v11861_v49 }
 0x1b0   :  { %10832 = vmatpush3.bf16.msra.mxu1 %v11860_v41  ;;  %v11903_v41 = vld [vmem:[%s14842_s1 + $0xcf8] sm:$0xff]  }
 0x1b1   :  { %10833 = vmatprep.subr.bf16.mxu1 %v11863_v45 }
 0x1b2   :  { %10806 = vmatpush3.bf16.msra.mxu0 %v11862_v50  ;;  %v11904_v50 = vld [vmem:[%s14842_s1 + $0xd78] sm:$0xff]  }
 0x1b3   :  { %10807 = vmatprep.subr.bf16.mxu0 %v11865_v54  ;;  %v11905_v54 = vld [vmem:[%s14843_s0 + $0x210] ss:$108 sps:$4 sm:$0xff]  }
 0x1b4   :  { %10834 = vmatpush3.bf16.msra.mxu1 %v11864_v52 }
 0x1b5   :  { %v10491_v53 = vpop.f32.mrb[48].mxu0  ;;  %10835 = vmatprep.subr.bf16.mxu1 %v11867_v58  ;;  %v11910_v58 = vld [vmem:[%s14843_s0 + $0x218] ss:$108 sps:$4 sm:$0xff]  }
 0x1b6   :  { %v10492_v55 = vpop.f32.mrb[49].mxu0  ;;  %10808 = vmatpush3.bf16.msra.mxu0 %v11866_v51 }
 0x1b7   :  { %v10493_v48 = vadd.f32 %v10492_v55, %v10491_v53  ;;  %v10494_v57 = vpop.f32.mrb[50].mxu0  ;;  %v11279_v60 = vpop.f32.mrb[48].mxu1  ;;  %10849 = vmatprep.subr.bf16.mxu0 %v11872_v5  ;;  %v11907_v53 = vld [vmem:[%s14843_s0 + $0x214] ss:$108 sps:$4 sm:$0xff]   ;;  %v11915_v5 = vld [vmem:[%s14842_s1 + $0xd88] sm:$0xff]  }
 0x1b8   :  { %v10495_v59 = vpop.f32.mrb[51].mxu0  ;;  %v2749_v1 = vpop.f32.mrb[49].mxu1  ;;  %10836 = vmatpush3.bf16.msra.mxu1 %v11871_v63  ;;  %v11908_v55 = vld [vmem:[%s14842_s1 + $0xdc0] sm:$0xff]   ;;  %v11914_v63 = vld [vmem:[%s14842_s1 + $0xdc8] sm:$0xff]  }
 0x1b9   :  { %v10496_v62 = vadd.f32 %v10495_v59, %v10494_v57  ;;  %v2701_v56 = vadd.f32 %v10493_v48, %v13697_v6  ;;  %v11280_v4 = vpop.f32.mrb[50].mxu1  ;;  %5359 = vmatmul.mubr.bf16.vlgmr.msra.gmra.mrb[96].mxu0 %v11868_v61  ;;  %v11873_v6 = vld [vmem:[%s14843_s0 + $0x208] ss:$108 sps:$4 sm:$0xff]   ;;  %v11909_v48 = vld [vmem:[%s14842_s1 + $0xd80] sm:$0xff]  }
 0x1ba   :  { %v2752_v2 = vpop.f32.mrb[51].mxu1  ;;  %10850 = vmatpush3.bf16.msra.mxu0 %v11876_v3  ;;  %5366 = vmatprep.mubr.bf16.mxu0 %v11881_v21  ;;  %v11920_v3 = vld [vmem:[%s14843_s0 + $0x2e8] ss:$108 sps:$4 sm:$0xff]   ;;  %v11929_v21 = vld [vmem:[%s14842_s1 + $0xde0] sm:$0xff]  }
 0x1bb   :  { %v13813_v7 = vadd.f32 %v2749_v1, %v2701_v56  ;;  %v2704_v8 = vadd.f32 %v10496_v62, %v13705_v9  ;;  %v11877_v9 = vld [vmem:[%s14842_s1 + $0xd40] sm:$0xff]   ;;  %5408 = vmatmul.mubr.bf16.vlgmr.msra.gmra.mrb[92].mxu1 %v11873_v6  ;;  %10851 = vmatprep.subr.bf16.mxu0 %v11878_v12  ;;  %v11917_v6 = vld [vmem:[%s14843_s0 + $0x2ec] ss:$108 sps:$4 sm:$0xff]   ;;  %v11922_v12 = vld [vmem:[%s14842_s1 + $0xd90] sm:$0xff]  }
 0x1bc   :  { %11281 = vmatprep.subr.bf16.mxu1 %v11877_v9  ;;  %5415 = vmatprep.mubr.bf16.mxu1 %v11885_v26  ;;  %v11913_v56 = vld [vmem:[%s14842_s1 + $0xe00] sm:$0xff]  }
 0x1bd   :  { %v13822_v10 = vadd.f32 %v2752_v2, %v2704_v8  ;;  %v10497_v14 = vpop.f32.mrb[52].mxu0  ;;  %11282 = vmatpush3.bf16.msra.mxu1 %v11877_v9  ;;  %v11916_v2 = vld [vmem:[%s14842_s1 + $0xe48] sm:$0xff]   ;;  %v11921_v9 = vld [vmem:[%s14842_s1 + $0xdd0] sm:$0xff]   ;;  %v9092_v26 = vld [vmem:[%s14844_s2 + $0x1] ss:$0 sm:$0xff] }
 0x1be   :  { %v10498_v16 = vpop.f32.mrb[53].mxu0  ;;  %10852 = vmatpush3.bf16.msra.mxu0 %v11879_v15  ;;  %11283 = vmatprep.subr.bf16.mxu1 %v11880_v18  ;;  %v11924_v15 = vld [vmem:[%s14842_s1 + $0xe10] sm:$0xff]  }
 0x1bf   :  { %v10499_v19 = vadd.f32 %v10498_v16, %v10497_v14  ;;  %v10500_v13 = vpop.f32.mrb[54].mxu0  ;;  %10853 = vmatprep.subr.bf16.mxu0 %v11884_v22  ;;  %v11923_v14 = vld [vmem:[%s14842_s1 + $0xe50] sm:$0xff]   ;;  %v11925_v16 = vld [vmem:[%s14842_s1 + $0xdd8] sm:$0xff]   ;;  %v11931_v22 = vld [vmem:[%s14842_s1 + $0xe60] sm:$0xff]  }
 0x1c0   :  { %v10501_v25 = vpop.f32.mrb[55].mxu0 }
 0x1c1   :  { %v2709_v24 = vadd.f32 %v10499_v19, %v13736_v31  ;;  %v10502_v27 = vadd.f32 %v10501_v25, %v10500_v13  ;;  %11284 = vmatpush3.bf16.msra.mxu1 %v11880_v18  ;;  %5367 = vmatmul.mubr.bf16.gmra.mrb[100].mxu0 %v11883_v17  ;;  %v11926_v18 = vld [vmem:[%s14842_s1 + $0xd98] sm:$0xff]   ;;  %v11930_v17 = vld [vmem:[%s14842_s1 + $0xda0] sm:$0xff]  }
 0x1c2   :  { %10854 = vmatpush3.bf16.msra.mxu0 %v11887_v23  ;;  %11285 = vmatprep.subr.bf16.mxu1 %v11889_v30  ;;  %v11927_v19 = vld [vmem:[%s14842_s1 + $0xe58] sm:$0xff]   ;;  %v11932_v25 = vld [vmem:[%s14842_s1 + $0xe20] sm:$0xff]  }
 0x1c3   :  { %v13858_v29 = vadd.f32 %v11279_v60, %v2709_v24  ;;  %v2712_v31 = vadd.f32 %v10502_v27, %v13747_v36  ;;  %5416 = vmatmul.mubr.bf16.gmra.mrb[96].mxu1 %v11888_v28  ;;  %10855 = vmatprep.subr.bf16.mxu0 %v11890_v32  ;;  %v11894_v36 = vld [vmem:[%s14842_s1 + $0xce0] sm:$0xff]   ;;  %v11928_v13 = vld [vmem:[%s14842_s1 + $0xe18] sm:$0xff]   ;;  %v11933_v28 = vld [vmem:[%s14842_s1 + $0xde8] sm:$0xff]  }
 0x1c4   :  { %5456 = vmatprep.mubr.bf16.mxu0 %v11907_v53  ;;  %v11911_v60 = vld [vmem:[%s14842_s1 + $0xe40] sm:$0xff]   ;;  %11297 = vmatprep.mubr.bf16.mxu1 %v11910_v58 }
 0x1c5   :  { %v13870_v33 = vadd.f32 %v11280_v4, %v2712_v31  ;;  %11286 = vmatpush3.bf16.msra.mxu1 %v11889_v30 }
 0x1c6   :  { %10856 = vmatpush3.bf16.msra.mxu0 %v11891_v20  ;;  %11287 = vmatprep.subr.bf16.mxu1 %v11892_v34  ;;  %v11934_v20 = vld [vmem:[%s14842_s1 + $0xda8] sm:$0xff]  }
 0x1c7   :  { %10857 = vmatprep.subr.bf16.mxu0 %v11893_v35 }
 0x1c9   :  { %11288 = vmatpush3.bf16.msra.mxu1 %v11892_v34 }
 0x1ca   :  { %11289 = vmatprep.subr.bf16.mxu1 %v11895_v38  ;;  %10858 = vmatpush3.bf16.msra.mxu0 %v11894_v36  ;;  %v11935_v36 = vld [vmem:[%s14842_s1 + $0xe68] sm:$0xff]  }
 0x1cb   :  { %10859 = vmatprep.subr.bf16.mxu0 %v11896_v37 }
 0x1cd   :  { %11290 = vmatpush3.bf16.msra.mxu1 %v11895_v38 }
 0x1ce   :  { %11291 = vmatprep.subr.bf16.mxu1 %v11898_v40  ;;  %10860 = vmatpush3.bf16.msra.mxu0 %v11897_v39 }
 0x1cf   :  { %10861 = vmatprep.subr.bf16.mxu0 %v11899_v42 }
 0x1d1   :  { %11292 = vmatpush3.bf16.msra.mxu1 %v11898_v40  ;;  %v11936_v40 = vld [vmem:[%s14842_s1 + $0xe28] sm:$0xff]  }
 0x1d2   :  { %11293 = vmatprep.subr.bf16.mxu1 %v11901_v43  ;;  %10862 = vmatpush3.bf16.msra.mxu0 %v11900_v44  ;;  %v11937_v44 = vld [vmem:[%s14842_s1 + $0xdf0] sm:$0xff]  }
 0x1d3   :  { %10863 = vmatprep.subr.bf16.mxu0 %v11902_v46 }
 0x1d5   :  { %v10529_v47 = vpop.f32.mrb[56].mxu0  ;;  %11294 = vmatpush3.bf16.msra.mxu1 %v11901_v43 }
 0x1d6   :  { %v10530_v49 = vpop.f32.mrb[57].mxu0  ;;  %11295 = vmatprep.subr.bf16.mxu1 %v11904_v50  ;;  %10864 = vmatpush3.bf16.msra.mxu0 %v11903_v41  ;;  %v11938_v41 = vld [vmem:[%s14842_s1 + $0xdb0] sm:$0xff]  }
 0x1d7   :  { %v13911_v45 = vadd.f32 %v10530_v49, %v10529_v47  ;;  %v10532_v52 = vpop.f32.mrb[58].mxu0  ;;  %v10557_v51 = vpop.f32.mrb[52].mxu1  ;;  %10887 = vmatprep.subr.bf16.mxu0 %v11908_v55  ;;  %v11941_v55 = vld [vmem:[%s14842_s1 + $0xdf8] sm:$0xff]  }
 0x1d8   :  { %v10533_v57 = vpop.f32.mrb[59].mxu0  ;;  %v10558_v61 = vpop.f32.mrb[53].mxu1 }
 0x1d9   :  { %v10534_v59 = vadd.f32 %v10533_v57, %v10532_v52  ;;  %v10559_v62 = vadd.f32 %v10558_v61, %v10557_v51  ;;  %11296 = vmatpush3.bf16.msra.mxu1 %v11904_v50  ;;  %v10560_v1 = vpop.f32.mrb[54].mxu1  ;;  %5457 = vmatmul.mubr.bf16.vlgmr.msra.gmra.mrb[104].mxu0 %v11905_v54  ;;  %v4871_v23 = vadd.f32 %v13911_v45, %v9092_v26  ;;  %v11939_v45 = vld [vmem:[%s14842_s1 + $0xe70] sm:$0xff]   ;;  %v11943_v57 = vld [vmem:[%s14842_s1 + $0xe78] sm:$0xff]  }
 0x1da   :  { %10915 = vmatprep.subr.bf16.mxu1 %v11911_v60  ;;  %v10561_v4 = vpop.f32.mrb[55].mxu1  ;;  %10888 = vmatpush3.bf16.msra.mxu0 %v11909_v48  ;;  %v11940_v54 = vld [vmem:[%s14842_s1 + $0xe30] sm:$0xff]   ;;  %v11942_v48 = vld [vmem:[%s14842_s1 + $0xdb8] sm:$0xff]  }
 0x1db   :  { %v10562_v8 = vadd.f32 %v10561_v4, %v10560_v1  ;;  %10889 = vmatprep.subr.bf16.mxu0 %v11914_v63  ;;  %5464 = vmatprep.mubr.bf16.mxu0 %v11917_v6  ;;  %v4874_v30 = vadd.f32 %v10534_v59, %v9092_v26  ;;  %v4920_v35 = vadd.f32 %v10559_v62, %v4871_v23  ;;  %v11944_v59 = vld [vmem:[%s14843_s0 + $0x360] ss:$108 sps:$4 sm:$0xff]   ;;  %v11946_v61 = vld [vmem:[%s14843_s0 + $0x364] ss:$108 sps:$4 sm:$0xff]   ;;  %v11947_v62 = vld [vmem:[%s14842_s1 + $0xe38] sm:$0xff]  }
 0x1dc   :  { %11298 = vmatmul.mubr.bf16.vlgmr.msra.gmra.mrb[100].mxu1 %v11912_v0  ;;  %v11948_v1 = vld [vmem:[%s14842_s1 + $0xec0] sm:$0xff]   ;;  %v11959_v23 = vld [vmem:[%s14842_s1 + $0xed0] sm:$0xff]  }
 0x1dd   :  { %10916 = vmatpush3.bf16.msra.mxu1 %v11913_v56  ;;  %v10535_v24 = vpop.f32.mrb[60].mxu0  ;;  %v4923_v38 = vadd.f32 %v10562_v8, %v4874_v30  ;;  %v11949_v8 = vld [vmem:[%s14843_s0 + $0x368] ss:$108 sps:$4 sm:$0xff]  }
 0x1de   :  { %10917 = vmatprep.subr.bf16.mxu1 %v11916_v2  ;;  %10890 = vmatpush3.bf16.msra.mxu0 %v11915_v5  ;;  %v10536_v27 = vpop.f32.mrb[61].mxu0  ;;  %v11951_v2 = vld [vmem:[%s14843_s0 + $0x36c] ss:$108 sps:$4 sm:$0xff]  }
 0x1df   :  { %10891 = vmatprep.subr.bf16.mxu0 %v11921_v9  ;;  %v10537_v31 = vadd.f32 %v10536_v27, %v10535_v24  ;;  %v10538_v32 = vpop.f32.mrb[62].mxu0  ;;  %7675 = vmatprep.mubr.bf16.mxu1 %v11951_v2  ;;  %v11953_v9 = vld [vmem:[%s14842_s1 + $0xf40] sm:$0xff]   ;;  %v11987_v2 = vld [vmem:[%s14842_s1 + $0xf78] sm:$0xff]  }
 0x1e0   :  { %v10539_v39 = vpop.f32.mrb[63].mxu0 }
 0x1e1   :  { %10918 = vmatpush3.bf16.msra.mxu1 %v11919_v11  ;;  %5465 = vmatmul.mubr.bf16.gmra.mrb[108].mxu0 %v11920_v3  ;;  %v4879_v37 = vadd.f32 %v10537_v31, %v9092_v26  ;;  %v10540_v42 = vadd.f32 %v10539_v39, %v10538_v32  ;;  %v11952_v11 = vld [vmem:[%s14842_s1 + $0xe80] sm:$0xff]   ;;  %v11960_v31 = vld [vmem:[%s14842_s1 + $0xe90] sm:$0xff]   ;;  %v11963_v39 = vld [vmem:[%s14842_s1 + $0xed8] sm:$0xff]  }
 0x1e2   :  { %10892 = vmatpush3.bf16.msra.mxu0 %v11922_v12  ;;  %10919 = vmatprep.subr.bf16.mxu1 %v11923_v14 }
 0x1e3   :  { %10893 = vmatprep.subr.bf16.mxu0 %v11925_v16  ;;  %v4882_v49 = vadd.f32 %v10540_v42, %v9092_v26  ;;  %7626 = vmatprep.mubr.bf16.mxu0 %v11946_v61  ;;  %v11954_v16 = vld [vmem:[%s14842_s1 + $0xf00] sm:$0xff]   ;;  %v11958_v26 = vld [vmem:[%s14842_s1 + $0xf08] sm:$0xff]  }
 0x1e4   :  { %v11979_v61 = vld [vmem:[%s14842_s1 + $0xf28] sm:$0xff]  }
 0x1e5   :  { %10920 = vmatpush3.bf16.msra.mxu1 %v11924_v15 }
 0x1e6   :  { %10894 = vmatpush3.bf16.msra.mxu0 %v11926_v18  ;;  %10921 = vmatprep.subr.bf16.mxu1 %v11927_v19  ;;  %v11955_v19 = vld [vmem:[%s14842_s1 + $0xec8] sm:$0xff]  }
 0x1e7   :  { %10895 = vmatprep.subr.bf16.mxu0 %v11929_v21 }
 0x1e9   :  { %10922 = vmatpush3.bf16.msra.mxu1 %v11928_v13 }
 0x1ea   :  { %10896 = vmatpush3.bf16.msra.mxu0 %v11930_v17  ;;  %10923 = vmatprep.subr.bf16.mxu1 %v11931_v22  ;;  %v11956_v17 = vld [vmem:[%s14842_s1 + $0xe88] sm:$0xff]  }
 0x1eb   :  { %v10563_v34 = vpop.f32.mrb[56].mxu1  ;;  %10897 = vmatprep.subr.bf16.mxu0 %v11933_v28  ;;  %v11957_v22 = vld [vmem:[%s14842_s1 + $0xf48] sm:$0xff]  }
 0x1ec   :  { %v10564_v43 = vpop.f32.mrb[57].mxu1 }
 0x1ed   :  { %10924 = vmatpush3.bf16.msra.mxu1 %v11932_v25  ;;  %v10565_v46 = vadd.f32 %v10564_v43, %v10563_v34  ;;  %v10566_v47 = vpop.f32.mrb[58].mxu1  ;;  %v11964_v43 = vld [vmem:[%s14842_s1 + $0xe98] sm:$0xff]  }
 0x1ee   :  { %10898 = vmatpush3.bf16.msra.mxu0 %v11934_v20  ;;  %10925 = vmatprep.subr.bf16.mxu1 %v11935_v36  ;;  %v10567_v50 = vpop.f32.mrb[59].mxu1  ;;  %v11961_v20 = vld [vmem:[%s14842_s1 + $0xf50] sm:$0xff]  }
 0x1ef   :  { %10899 = vmatprep.subr.bf16.mxu0 %v11937_v44  ;;  %v14016_v52 = vadd.f32 %v10565_v46, %v4879_v37  ;;  %v10568_v53 = vadd.f32 %v10567_v50, %v10566_v47  ;;  %v11962_v36 = vld [vmem:[%s14842_s1 + $0xf10] sm:$0xff]   ;;  %v11965_v47 = vld [vmem:[%s14842_s1 + $0xf58] sm:$0xff]  }
 0x1f0   :  { %v11966_v50 = vld [vmem:[%s14842_s1 + $0xf18] sm:$0xff]  }
 0x1f1   :  { %10926 = vmatpush3.bf16.msra.mxu1 %v11936_v40  ;;  %v14024_v51 = vadd.f32 %v10568_v53, %v4882_v49  ;;  %v11968_v53 = vld [vmem:[%s14842_s1 + $0xea0] sm:$0xff]  }
 0x1f2   :  { %10900 = vmatpush3.bf16.msra.mxu0 %v11938_v41  ;;  %10927 = vmatprep.subr.bf16.mxu1 %v11939_v45  ;;  %v11967_v45 = vld [vmem:[%s14842_s1 + $0xee0] sm:$0xff]  }
 0x1f3   :  { %10901 = vmatprep.subr.bf16.mxu0 %v11941_v55  ;;  %v11970_v55 = vld [vmem:[%s14842_s1 + $0xf20] sm:$0xff]  }
 0x1f5   :  { %10928 = vmatpush3.bf16.msra.mxu1 %v11940_v54  ;;  %v11969_v54 = vld [vmem:[%s14842_s1 + $0xf60] sm:$0xff]  }
 0x1f6   :  { %10902 = vmatpush3.bf16.msra.mxu0 %v11942_v48  ;;  %10929 = vmatprep.subr.bf16.mxu1 %v11943_v57  ;;  %v11972_v48 = vld [vmem:[%s14843_s0 + $0x43c] ss:$108 sps:$4 sm:$0xff]  }
 0x1f7   :  { %10943 = vmatprep.subr.bf16.mxu0 %v11948_v1  ;;  %v11974_v57 = vld [vmem:[%s14842_s1 + $0xea8] sm:$0xff]   ;;  %v11983_v1 = vld [vmem:[%s14842_s1 + $0xf70] sm:$0xff]  }
 0x1f9   :  { %10930 = vmatpush3.bf16.msra.mxu1 %v11947_v62  ;;  %7627 = vmatmul.mubr.bf16.vlgmr.msra.gmra.mrb[112].mxu0 %v11944_v59  ;;  %v11976_v59 = vld [vmem:[%s14842_s1 + $0xf68] sm:$0xff]   ;;  %v11981_v62 = vld [vmem:[%s14842_s1 + $0xef0] sm:$0xff]  }
 0x1fa   :  { %10944 = vmatpush3.bf16.msra.mxu0 %v11952_v11  ;;  %10971 = vmatprep.subr.bf16.mxu1 %v11953_v9  ;;  %v11988_v11 = vld [vmem:[%s14843_s0 + $0x370] ss:$108 sps:$4 sm:$0xff]  }
 0x1fb   :  { %10945 = vmatprep.subr.bf16.mxu0 %v11955_v19  ;;  %7634 = vmatprep.mubr.bf16.mxu0 %v11972_v48 }
 0x1fc   :  { %7676 = vmatmul.mubr.bf16.vlgmr.msra.gmra.mrb[104].mxu1 %v11949_v8 }
 0x1fd   :  { %10972 = vmatpush3.bf16.msra.mxu1 %v11954_v16 }
 0x1fe   :  { %10946 = vmatpush3.bf16.msra.mxu0 %v11956_v17  ;;  %10973 = vmatprep.subr.bf16.mxu1 %v11957_v22  ;;  %v11995_v17 = vld [vmem:[%s14843_s0 + $0x37c] ss:$108 sps:$4 sm:$0xff]  }
 0x1ff   :  { %10947 = vmatprep.subr.bf16.mxu0 %v11959_v23  ;;  %v11997_v23 = vld [vmem:[%s14842_s1 + $0x1040] sm:$0xff]  }
 0x201   :  { %v10585_v58 = vpop.f32.mrb[64].mxu0  ;;  %10974 = vmatpush3.bf16.msra.mxu1 %v11958_v26  ;;  %v11996_v26 = vld [vmem:[%s14842_s1 + $0xf80] sm:$0xff]  }
 0x202   :  { %v10586_v60 = vpop.f32.mrb[65].mxu0  ;;  %10948 = vmatpush3.bf16.msra.mxu0 %v11960_v31  ;;  %10975 = vmatprep.subr.bf16.mxu1 %v11961_v20  ;;  %v11998_v31 = vld [vmem:[%s14842_s1 + $0x1000] sm:$0xff]  }
 0x203   :  { %v10587_v0 = vadd.f32 %v10586_v60, %v10585_v58  ;;  %v10588_v56 = vpop.f32.mrb[66].mxu0  ;;  %v10613_v4 = vpop.f32.mrb[60].mxu1  ;;  %10949 = vmatprep.subr.bf16.mxu0 %v11963_v39  ;;  %v11975_v58 = vld [vmem:[%s14843_s0 + $0x438] ss:$108 sps:$4 sm:$0xff]  }
 0x204   :  { %v10589_v5 = vpop.f32.mrb[67].mxu0  ;;  %v10614_v3 = vpop.f32.mrb[61].mxu1  ;;  %v11977_v60 = vld [vmem:[%s14843_s0 + $0x444] ss:$108 sps:$4 sm:$0xff]   ;;  %7635 = vmatmul.mubr.bf16.gmra.mrb[116].mxu0 %v11975_v58 }
 0x205   :  { %v4969_v63 = vadd.f32 %v10587_v0, %v4920_v35  ;;  %v10590_v6 = vadd.f32 %v10589_v5, %v10588_v56  ;;  %v10615_v14 = vadd.f32 %v10614_v3, %v10613_v4  ;;  %v10616_v15 = vpop.f32.mrb[62].mxu1  ;;  %10976 = vmatpush3.bf16.msra.mxu1 %v11962_v36  ;;  %7683 = vmatprep.mubr.bf16.mxu1 %v11977_v60  ;;  %v11980_v0 = vld [vmem:[%s14843_s0 + $0x440] ss:$108 sps:$4 sm:$0xff]   ;;  %v11982_v56 = vld [vmem:[%s14842_s1 + $0xeb0] sm:$0xff]   ;;  %v11985_v4 = vld [vmem:[%s14842_s1 + $0xef8] sm:$0xff]  }
 0x206   :  { %v10617_v18 = vpop.f32.mrb[63].mxu1  ;;  %10950 = vmatpush3.bf16.msra.mxu0 %v11964_v43  ;;  %10977 = vmatprep.subr.bf16.mxu1 %v11965_v47  ;;  %v11986_v5 = vld [vmem:[%s14842_s1 + $0xeb8] sm:$0xff]   ;;  %v11990_v3 = vld [vmem:[%s14843_s0 + $0x374] ss:$108 sps:$4 sm:$0xff]   ;;  %v12001_v36 = vld [vmem:[%s14842_s1 + $0x1048] sm:$0xff]  }
 0x207   :  { %v4972_v12 = vadd.f32 %v10590_v6, %v4923_v38  ;;  %v14062_v13 = vadd.f32 %v10615_v14, %v4969_v63  ;;  %v10618_v21 = vadd.f32 %v10617_v18, %v10616_v15  ;;  %10951 = vmatprep.subr.bf16.mxu0 %v11967_v45  ;;  %7684 = vmatmul.mubr.bf16.gmra.mrb[108].mxu1 %v11980_v0  ;;  %v11984_v63 = vld [vmem:[%s14842_s1 + $0xf30] sm:$0xff]   ;;  %v11992_v15 = vld [vmem:[%s14842_s1 + $0xfc0] sm:$0xff]  }
 0x208   :  { %7724 = vmatprep.mubr.bf16.mxu0 %v11990_v3  ;;  %7773 = vmatprep.mubr.bf16.mxu1 %v11995_v17  ;;  %v12007_v45 = vld [vmem:[%s14843_s0 + $0x454] ss:$108 sps:$4 sm:$0xff]   ;;  %v12023_v3 = vld [vmem:[%s14842_s1 + $0x1068] sm:$0xff]  }
 0x209   :  { %v14070_v24 = vadd.f32 %v10618_v21, %v4972_v12  ;;  %v10591_v25 = vpop.f32.mrb[68].mxu0  ;;  %10978 = vmatpush3.bf16.msra.mxu1 %v11966_v50  ;;  %v11991_v12 = vld [vmem:[%s14842_s1 + $0xf38] sm:$0xff]  }
 0x20a   :  { %v10592_v27 = vpop.f32.mrb[69].mxu0  ;;  %10952 = vmatpush3.bf16.msra.mxu0 %v11968_v53  ;;  %10979 = vmatprep.subr.bf16.mxu1 %v11969_v54  ;;  %v11993_v21 = vld [vmem:[%s14843_s0 + $0x378] ss:$108 sps:$4 sm:$0xff]   ;;  %v12009_v54 = vld [vmem:[%s14842_s1 + $0xf90] sm:$0xff]  }
 0x20b   :  { %v10593_v28 = vadd.f32 %v10592_v27, %v10591_v25  ;;  %v10594_v30 = vpop.f32.mrb[70].mxu0  ;;  %v10619_v32 = vpop.f32.mrb[64].mxu1 }
 0x20c   :  { %v10595_v35 = vpop.f32.mrb[71].mxu0  ;;  %v10620_v37 = vpop.f32.mrb[65].mxu1 }
 0x20d   :  { %v4977_v34 = vadd.f32 %v10593_v28, %v14016_v52  ;;  %v10596_v38 = vadd.f32 %v10595_v35, %v10594_v30  ;;  %v10621_v40 = vadd.f32 %v10620_v37, %v10619_v32  ;;  %v10622_v42 = vpop.f32.mrb[66].mxu1  ;;  %10980 = vmatpush3.bf16.msra.mxu1 %v11970_v55  ;;  %v12002_v37 = vld [vmem:[%s14843_s0 + $0x44c] ss:$108 sps:$4 sm:$0xff]   ;;  %v12010_v55 = vld [vmem:[%s14843_s0 + $0x450] ss:$108 sps:$4 sm:$0xff]  }
 0x20e   :  { %v10623_v46 = vpop.f32.mrb[67].mxu1  ;;  %10981 = vmatprep.subr.bf16.mxu1 %v11976_v59  ;;  %v12012_v59 = vld [vmem:[%s14842_s1 + $0x1010] sm:$0xff]  }
 0x20f   :  { %v4980_v44 = vadd.f32 %v10596_v38, %v14024_v51  ;;  %v14098_v41 = vadd.f32 %v10621_v40, %v4977_v34  ;;  %v10624_v49 = vadd.f32 %v10623_v46, %v10622_v42  ;;  %v11971_v51 = vld [vmem:[%s14842_s1 + $0xee8] sm:$0xff]   ;;  %v12006_v46 = vld [vmem:[%s14842_s1 + $0xfd0] sm:$0xff]  }
 0x210   :  { %10953 = vmatprep.subr.bf16.mxu0 %v11971_v51  ;;  %v11999_v34 = vld [vmem:[%s14842_s1 + $0xfc8] sm:$0xff]  }
 0x211   :  { %v14106_v52 = vadd.f32 %v10624_v49, %v4980_v44  ;;  %10954 = vmatpush3.bf16.msra.mxu0 %v11974_v57  ;;  %10982 = vmatpush3.bf16.msra.mxu1 %v11979_v61  ;;  %v12004_v40 = vld [vmem:[%s14842_s1 + $0x1008] sm:$0xff]   ;;  %v12013_v61 = vld [vmem:[%s14842_s1 + $0xfd8] sm:$0xff]  }
 0x212   :  { %10955 = vmatprep.subr.bf16.mxu0 %v11981_v62  ;;  %10983 = vmatprep.subr.bf16.mxu1 %v11983_v1  ;;  %v12005_v44 = vld [vmem:[%s14843_s0 + $0x448] ss:$108 sps:$4 sm:$0xff]  }
 0x215   :  { %10956 = vmatpush3.bf16.msra.mxu0 %v11982_v56  ;;  %10984 = vmatpush3.bf16.msra.mxu1 %v11984_v63  ;;  %v12015_v56 = vld [vmem:[%s14842_s1 + $0x1058] sm:$0xff]  }
 0x216   :  { %10957 = vmatprep.subr.bf16.mxu0 %v11985_v4  ;;  %10985 = vmatprep.subr.bf16.mxu1 %v11987_v2  ;;  %v12016_v63 = vld [vmem:[%s14842_s1 + $0x1018] sm:$0xff]   ;;  %v12017_v4 = vld [vmem:[%s14842_s1 + $0xfe0] sm:$0xff]  }
 0x217   :  { %v12020_v2 = vld [vmem:[%s14842_s1 + $0x1020] sm:$0xff]  }
 0x219   :  { %10958 = vmatpush3.bf16.msra.mxu0 %v11986_v5  ;;  %10986 = vmatpush3.bf16.msra.mxu1 %v11991_v12  ;;  %v12018_v5 = vld [vmem:[%s14842_s1 + $0xfa0] sm:$0xff]   ;;  %v12025_v12 = vld [vmem:[%s14842_s1 + $0xff0] sm:$0xff]  }
 0x21a   :  { %10999 = vmatprep.subr.bf16.mxu0 %v11992_v15  ;;  %11027 = vmatprep.subr.bf16.mxu1 %v11997_v23  ;;  %v12027_v15 = vld [vmem:[%s14842_s1 + $0x1070] sm:$0xff]  }
 0x21c   :  { %7725 = vmatmul.mubr.bf16.vlgmr.msra.gmra.mrb[120].mxu0 %v11988_v11  ;;  %7774 = vmatmul.mubr.bf16.vlgmr.msra.gmra.mrb[112].mxu1 %v11993_v21  ;;  %v12022_v11 = vld [vmem:[%s14842_s1 + $0xfa8] sm:$0xff]   ;;  %v12031_v21 = vld [vmem:[%s14842_s1 + $0x1078] sm:$0xff]  }
 0x21d   :  { %11000 = vmatpush3.bf16.msra.mxu0 %v11996_v26  ;;  %11028 = vmatpush3.bf16.msra.mxu1 %v11998_v31  ;;  %v12037_v31 = vld [vmem:[%s14843_s0 + $0x388] ss:$108 sps:$4 sm:$0xff]  }
 0x21e   :  { %11001 = vmatprep.subr.bf16.mxu0 %v11999_v34  ;;  %11029 = vmatprep.subr.bf16.mxu1 %v12001_v36  ;;  %v12039_v36 = vld [vmem:[%s14843_s0 + $0x38c] ss:$108 sps:$4 sm:$0xff]  }
 0x21f   :  { %7732 = vmatprep.mubr.bf16.mxu0 %v12002_v37  ;;  %7781 = vmatprep.mubr.bf16.mxu1 %v12007_v45 }
 0x221   :  { %11030 = vmatpush3.bf16.msra.mxu1 %v12004_v40 }
 0x224   :  { %7733 = vmatmul.mubr.bf16.gmra.mrb[124].mxu0 %v12005_v44  ;;  %7782 = vmatmul.mubr.bf16.gmra.mrb[116].mxu1 %v12010_v55  ;;  %v12046_v55 = vld [vmem:[%s14843_s0 + $0x45c] ss:$108 sps:$4 sm:$0xff]  }
 0x225   :  { %7871 = vmatprep.mubr.bf16.mxu1 %v12039_v36  ;;  %v12076_v36 = vld [vmem:[%s14843_s0 + $0x390] ss:$108 sps:$4 sm:$0xff]  }
 0x22a   :  { %v10641_v8 = vpop.f32.mrb[72].mxu0 }
 0x22b   :  { %v10642_v6 = vpop.f32.mrb[73].mxu0 }
 0x22c   :  { %v10643_v9 = vadd.f32 %v10642_v6, %v10641_v8  ;;  %v10644_v14 = vpop.f32.mrb[74].mxu0  ;;  %v12019_v8 = vld [vmem:[%s14842_s1 + $0x1060] sm:$0xff]   ;;  %v12021_v6 = vld [vmem:[%s14842_s1 + $0xfe8] sm:$0xff]  }
 0x22d   :  { %v10669_v18 = vpop.f32.mrb[68].mxu1  ;;  %v10645_v19 = vpop.f32.mrb[75].mxu0 }
 0x22e   :  { %v5067_v16 = vadd.f32 %v10643_v9, %v14062_v13  ;;  %v10646_v22 = vadd.f32 %v10645_v19, %v10644_v14  ;;  %v10670_v25 = vpop.f32.mrb[69].mxu1  ;;  %v12024_v9 = vld [vmem:[%s14842_s1 + $0x1028] sm:$0xff]   ;;  %v12026_v14 = vld [vmem:[%s14842_s1 + $0xfb0] sm:$0xff]   ;;  %v12030_v19 = vld [vmem:[%s14842_s1 + $0xfb8] sm:$0xff]  }
 0x22f   :  { %v10671_v13 = vadd.f32 %v10670_v25, %v10669_v18  ;;  %v10672_v27 = vpop.f32.mrb[70].mxu1  ;;  %v12029_v18 = vld [vmem:[%s14842_s1 + $0xff8] sm:$0xff]   ;;  %v12034_v25 = vld [vmem:[%s14843_s0 + $0x384] ss:$108 sps:$4 sm:$0xff]  }
 0x230   :  { %v5070_v28 = vadd.f32 %v10646_v22, %v14070_v24  ;;  %v10673_v30 = vpop.f32.mrb[71].mxu1  ;;  %v12000_v24 = vld [vmem:[%s14842_s1 + $0xf88] sm:$0xff]   ;;  %7822 = vmatprep.mubr.bf16.mxu0 %v12034_v25 }
 0x231   :  { %v14191_v32 = vadd.f32 %v10671_v13, %v5067_v16  ;;  %v10674_v20 = vadd.f32 %v10673_v30, %v10672_v27  ;;  %11002 = vmatpush3.bf16.msra.mxu0 %v12000_v24  ;;  %v12028_v16 = vld [vmem:[%s14842_s1 + $0x1030] sm:$0xff]   ;;  %v12032_v22 = vld [vmem:[%s14843_s0 + $0x380] ss:$108 sps:$4 sm:$0xff]   ;;  %v12035_v13 = vld [vmem:[%s14842_s1 + $0x1038] sm:$0xff]  }
 0x232   :  { %v10647_v38 = vpop.f32.mrb[76].mxu0  ;;  %11003 = vmatprep.subr.bf16.mxu0 %v12006_v46  ;;  %v12042_v46 = vld [vmem:[%s14842_s1 + $0x1100] sm:$0xff]   ;;  %v12066_v25 = vld [vmem:[%s14842_s1 + $0x10a8] sm:$0xff]  }
 0x233   :  { %v14199_v35 = vadd.f32 %v10674_v20, %v5070_v28  ;;  %v10648_v39 = vpop.f32.mrb[77].mxu0  ;;  %v12036_v28 = vld [vmem:[%s14842_s1 + $0x10c0] sm:$0xff]  }
 0x234   :  { %v10649_v42 = vadd.f32 %v10648_v39, %v10647_v38  ;;  %v10650_v43 = vpop.f32.mrb[78].mxu0  ;;  %v12040_v39 = vld [vmem:[%s14842_s1 + $0x1080] sm:$0xff]  }
 0x235   :  { %v10675_v49 = vpop.f32.mrb[72].mxu1  ;;  %v10651_v50 = vpop.f32.mrb[79].mxu0  ;;  %11004 = vmatpush3.bf16.msra.mxu0 %v12009_v54 }
 0x236   :  { %v5075_v47 = vadd.f32 %v10649_v42, %v14098_v41  ;;  %v10652_v53 = vadd.f32 %v10651_v50, %v10650_v43  ;;  %v10676_v51 = vpop.f32.mrb[73].mxu1  ;;  %v12011_v41 = vld [vmem:[%s14842_s1 + $0x1050] sm:$0xff]   ;;  %11005 = vmatprep.subr.bf16.mxu0 %v12013_v61  ;;  %v12041_v42 = vld [vmem:[%s14842_s1 + $0x1140] sm:$0xff]  }
 0x237   :  { %v10677_v57 = vadd.f32 %v10676_v51, %v10675_v49  ;;  %v10678_v58 = vpop.f32.mrb[74].mxu1  ;;  %11031 = vmatprep.subr.bf16.mxu1 %v12011_v41  ;;  %v12043_v49 = vld [vmem:[%s14842_s1 + $0x10c8] sm:$0xff]  }
 0x238   :  { %v5078_v48 = vadd.f32 %v10652_v53, %v14106_v52  ;;  %v10679_v60 = vpop.f32.mrb[75].mxu1  ;;  %11032 = vmatpush3.bf16.msra.mxu1 %v12012_v59  ;;  %v12014_v52 = vld [vmem:[%s14842_s1 + $0xf98] sm:$0xff]   ;;  %v12045_v53 = vld [vmem:[%s14842_s1 + $0x1148] sm:$0xff]  }
 0x239   :  { %v14236_v0 = vadd.f32 %v10677_v57, %v5075_v47  ;;  %v10680_v62 = vadd.f32 %v10679_v60, %v10678_v58  ;;  %11006 = vmatpush3.bf16.msra.mxu0 %v12014_v52  ;;  %11033 = vmatprep.subr.bf16.mxu1 %v12015_v56  ;;  %v12048_v41 = vld [vmem:[%s14842_s1 + $0x1108] sm:$0xff]   ;;  %v12050_v58 = vld [vmem:[%s14842_s1 + $0x10d0] sm:$0xff]  }
 0x23a   :  { %11007 = vmatprep.subr.bf16.mxu0 %v12017_v4  ;;  %v12054_v4 = vld [vmem:[%s14843_s0 + $0x460] ss:$108 sps:$4 sm:$0xff]  }
 0x23b   :  { %v14244_v1 = vadd.f32 %v10680_v62, %v5078_v48  ;;  %v12049_v48 = vld [vmem:[%s14843_s0 + $0x458] ss:$108 sps:$4 sm:$0xff]  }
 0x23c   :  { %11034 = vmatpush3.bf16.msra.mxu1 %v12016_v63  ;;  %v12051_v62 = vld [vmem:[%s14843_s0 + $0x464] ss:$108 sps:$4 sm:$0xff]  }
 0x23d   :  { %11008 = vmatpush3.bf16.msra.mxu0 %v12018_v5  ;;  %11035 = vmatprep.subr.bf16.mxu1 %v12019_v8  ;;  %v12053_v63 = vld [vmem:[%s14842_s1 + $0x1090] sm:$0xff]  }
 0x23e   :  { %11009 = vmatprep.subr.bf16.mxu0 %v12021_v6  ;;  %v12055_v8 = vld [vmem:[%s14842_s1 + $0x1150] sm:$0xff]  }
 0x240   :  { %11036 = vmatpush3.bf16.msra.mxu1 %v12020_v2 }
 0x241   :  { %11010 = vmatpush3.bf16.msra.mxu0 %v12022_v11  ;;  %11037 = vmatprep.subr.bf16.mxu1 %v12023_v3  ;;  %v12056_v11 = vld [vmem:[%s14842_s1 + $0x1110] sm:$0xff]  }
 0x242   :  { %11011 = vmatprep.subr.bf16.mxu0 %v12025_v12  ;;  %v12057_v12 = vld [vmem:[%s14842_s1 + $0x10d8] sm:$0xff]  }
 0x244   :  { %11038 = vmatpush3.bf16.msra.mxu1 %v12024_v9 }
 0x245   :  { %11012 = vmatpush3.bf16.msra.mxu0 %v12026_v14  ;;  %11039 = vmatprep.subr.bf16.mxu1 %v12027_v15  ;;  %v12059_v15 = vld [vmem:[%s14842_s1 + $0x1158] sm:$0xff]  }
 0x246   :  { %11013 = vmatprep.subr.bf16.mxu0 %v12029_v18  ;;  %v12061_v18 = vld [vmem:[%s14842_s1 + $0x10e0] sm:$0xff]  }
 0x248   :  { %11040 = vmatpush3.bf16.msra.mxu1 %v12028_v16  ;;  %v12060_v16 = vld [vmem:[%s14842_s1 + $0x1118] sm:$0xff]  }
 0x249   :  { %11014 = vmatpush3.bf16.msra.mxu0 %v12030_v19  ;;  %11041 = vmatprep.subr.bf16.mxu1 %v12031_v21  ;;  %v12062_v19 = vld [vmem:[%s14842_s1 + $0x10a0] sm:$0xff]  }
 0x24a   :  { %v10697_v17 = vpop.f32.mrb[80].mxu0  ;;  %11055 = vmatprep.subr.bf16.mxu0 %v12036_v28  ;;  %v12063_v21 = vld [vmem:[%s14842_s1 + $0x1160] sm:$0xff]   ;;  %v12071_v28 = vld [vmem:[%s14842_s1 + $0x1170] sm:$0xff]  }
 0x24b   :  { %v10698_v26 = vpop.f32.mrb[81].mxu0 }
 0x24c   :  { %v10699_v27 = vadd.f32 %v10698_v26, %v10697_v17  ;;  %v10700_v23 = vpop.f32.mrb[82].mxu0  ;;  %11042 = vmatpush3.bf16.msra.mxu1 %v12035_v13  ;;  %7823 = vmatmul.mubr.bf16.vlgmr.msra.gmra.mrb[128].mxu0 %v12032_v22  ;;  %v12064_v17 = vld [vmem:[%s14842_s1 + $0x1120] sm:$0xff]   ;;  %v12065_v22 = vld [vmem:[%s14842_s1 + $0x10e8] sm:$0xff]  }
 0x24d   :  { %v10725_v30 = vpop.f32.mrb[76].mxu1  ;;  %v10701_v34 = vpop.f32.mrb[83].mxu0  ;;  %11056 = vmatpush3.bf16.msra.mxu0 %v12040_v39  ;;  %11083 = vmatprep.subr.bf16.mxu1 %v12041_v42  ;;  %v12067_v26 = vld [vmem:[%s14842_s1 + $0x1168] sm:$0xff]  }
 0x24e   :  { %v5165_v20 = vadd.f32 %v10699_v27, %v14191_v32  ;;  %v10726_v24 = vpop.f32.mrb[77].mxu1  ;;  %v10702_v38 = vadd.f32 %v10701_v34, %v10700_v23  ;;  %11057 = vmatprep.subr.bf16.mxu0 %v12043_v49  ;;  %7830 = vmatprep.mubr.bf16.mxu0 %v12046_v55  ;;  %v12068_v13 = vld [vmem:[%s14842_s1 + $0x1128] sm:$0xff]   ;;  %v12069_v27 = vld [vmem:[%s14842_s1 + $0x10f0] sm:$0xff]   ;;  %v12075_v34 = vld [vmem:[%s14842_s1 + $0x1178] sm:$0xff]  }
 0x24f   :  { %v10727_v37 = vadd.f32 %v10726_v24, %v10725_v30  ;;  %v10728_v40 = vpop.f32.mrb[78].mxu1  ;;  %7872 = vmatmul.mubr.bf16.vlgmr.msra.gmra.mrb[120].mxu1 %v12037_v31  ;;  %v12070_v23 = vld [vmem:[%s14842_s1 + $0x10b0] sm:$0xff]   ;;  %v12073_v31 = vld [vmem:[%s14842_s1 + $0x10f8] sm:$0xff]  }
 0x250   :  { %v5168_v32 = vadd.f32 %v10702_v38, %v14199_v35  ;;  %v10729_v44 = vpop.f32.mrb[79].mxu1  ;;  %11084 = vmatpush3.bf16.msra.mxu1 %v12042_v46  ;;  %v12044_v35 = vld [vmem:[%s14842_s1 + $0x1088] sm:$0xff]   ;;  %7879 = vmatprep.mubr.bf16.mxu1 %v12051_v62  ;;  %v12072_v30 = vld [vmem:[%s14842_s1 + $0x1130] sm:$0xff]   ;;  %v12081_v49 = vld [vmem:[%s14843_s0 + $0x398] ss:$108 sps:$4 sm:$0xff]  }
 0x251   :  { %v14320_v43 = vadd.f32 %v10727_v37, %v5165_v20  ;;  %v10730_v47 = vadd.f32 %v10729_v44, %v10728_v40  ;;  %11058 = vmatpush3.bf16.msra.mxu0 %v12044_v35  ;;  %11085 = vmatprep.subr.bf16.mxu1 %v12045_v53  ;;  %v12074_v20 = vld [vmem:[%s14842_s1 + $0x10b8] sm:$0xff]   ;;  %v12078_v37 = vld [vmem:[%s14843_s0 + $0x394] ss:$108 sps:$4 sm:$0xff]  }
 0x252   :  { %v10703_v45 = vpop.f32.mrb[84].mxu0  ;;  %11059 = vmatprep.subr.bf16.mxu0 %v12050_v58  ;;  %v12079_v40 = vld [vmem:[%s14842_s1 + $0x1138] sm:$0xff]   ;;  %v12084_v53 = vld [vmem:[%s14842_s1 + $0x1180] sm:$0xff]   ;;  %v12087_v58 = vld [vmem:[%s14842_s1 + $0x11c8] sm:$0xff]  }
 0x253   :  { %v14331_v50 = vadd.f32 %v10730_v47, %v5168_v32  ;;  %v10704_v54 = vpop.f32.mrb[85].mxu0  ;;  %v12080_v32 = vld [vmem:[%s14842_s1 + $0x11c0] sm:$0xff]   ;;  %v12083_v35 = vld [vmem:[%s14843_s0 + $0x39c] ss:$108 sps:$4 sm:$0xff]  }
 0x254   :  { %v10705_v51 = vadd.f32 %v10704_v54, %v10703_v45  ;;  %v10706_v57 = vpop.f32.mrb[86].mxu0  ;;  %11086 = vmatpush3.bf16.msra.mxu1 %v12048_v41  ;;  %7831 = vmatmul.mubr.bf16.gmra.mrb[132].mxu0 %v12049_v48  ;;  %v12086_v48 = vld [vmem:[%s14842_s1 + $0x1200] sm:$0xff]  }
 0x255   :  { %v10731_v60 = vpop.f32.mrb[80].mxu1  ;;  %v10707_v61 = vpop.f32.mrb[87].mxu0  ;;  %11060 = vmatpush3.bf16.msra.mxu0 %v12053_v63  ;;  %11087 = vmatprep.subr.bf16.mxu1 %v12055_v8 }
 0x256   :  { %v5173_v59 = vadd.f32 %v10705_v51, %v14236_v0  ;;  %v10708_v52 = vadd.f32 %v10707_v61, %v10706_v57  ;;  %v10732_v56 = vpop.f32.mrb[81].mxu1  ;;  %11061 = vmatprep.subr.bf16.mxu0 %v12057_v12  ;;  %7920 = vmatprep.mubr.bf16.mxu0 %v12078_v37  ;;  %v12089_v61 = vld [vmem:[%s14842_s1 + $0x1248] sm:$0xff]  }
 0x257   :  { %v10733_v0 = vadd.f32 %v10732_v56, %v10731_v60  ;;  %v10734_v5 = vpop.f32.mrb[82].mxu1  ;;  %7880 = vmatmul.mubr.bf16.gmra.mrb[124].mxu1 %v12054_v4  ;;  %v12090_v56 = vld [vmem:[%s14843_s0 + $0x46c] ss:$108 sps:$4 sm:$0xff]  }
 0x258   :  { %v5176_v2 = vadd.f32 %v10708_v52, %v14244_v1  ;;  %v10735_v6 = vpop.f32.mrb[83].mxu1  ;;  %11088 = vmatpush3.bf16.msra.mxu1 %v12056_v11  ;;  %v12058_v1 = vld [vmem:[%s14842_s1 + $0x1098] sm:$0xff]   ;;  %7969 = vmatprep.mubr.bf16.mxu1 %v12083_v35  ;;  %v12092_v4 = vld [vmem:[%s14842_s1 + $0x1208] sm:$0xff]   ;;  %v12095_v11 = vld [vmem:[%s14843_s0 + $0x474] ss:$108 sps:$4 sm:$0xff]  }
 0x259   :  { %v14365_v3 = vadd.f32 %v10733_v0, %v5173_v59  ;;  %v10736_v9 = vadd.f32 %v10735_v6, %v10734_v5  ;;  %11062 = vmatpush3.bf16.msra.mxu0 %v12058_v1  ;;  %11089 = vmatprep.subr.bf16.mxu1 %v12059_v15  ;;  %v12093_v0 = vld [vmem:[%s14843_s0 + $0x468] ss:$108 sps:$4 sm:$0xff]   ;;  %v12119_v35 = vld [vmem:[%s14842_s1 + $0x1278] sm:$0xff]  }
 0x25a   :  { %11063 = vmatprep.subr.bf16.mxu0 %v12061_v18  ;;  %v12097_v15 = vld [vmem:[%s14842_s1 + $0x1190] sm:$0xff]   ;;  %v12111_v37 = vld [vmem:[%s14842_s1 + $0x1268] sm:$0xff]  }
 0x25b   :  { %v14373_v14 = vadd.f32 %v10736_v9, %v5176_v2  ;;  %v12094_v2 = vld [vmem:[%s14842_s1 + $0x11d0] sm:$0xff]  }
 0x25c   :  { %11090 = vmatpush3.bf16.msra.mxu1 %v12060_v16 }
 0x25d   :  { %11064 = vmatpush3.bf16.msra.mxu0 %v12062_v19  ;;  %11091 = vmatprep.subr.bf16.mxu1 %v12063_v21  ;;  %v12098_v21 = vld [vmem:[%s14843_s0 + $0x470] ss:$108 sps:$4 sm:$0xff]  }
 0x25e   :  { %11065 = vmatprep.subr.bf16.mxu0 %v12065_v22 }
 0x260   :  { %11092 = vmatpush3.bf16.msra.mxu1 %v12064_v17 }
 0x261   :  { %11066 = vmatpush3.bf16.msra.mxu0 %v12066_v25  ;;  %11093 = vmatprep.subr.bf16.mxu1 %v12067_v26  ;;  %v12100_v26 = vld [vmem:[%s14842_s1 + $0x1210] sm:$0xff]  }
 0x262   :  { %11067 = vmatprep.subr.bf16.mxu0 %v12069_v27  ;;  %v12101_v27 = vld [vmem:[%s14842_s1 + $0x11d8] sm:$0xff]  }
 0x264   :  { %11094 = vmatpush3.bf16.msra.mxu1 %v12068_v13 }
 0x265   :  { %11068 = vmatpush3.bf16.msra.mxu0 %v12070_v23  ;;  %11095 = vmatprep.subr.bf16.mxu1 %v12071_v28  ;;  %v12102_v23 = vld [vmem:[%s14842_s1 + $0x1198] sm:$0xff]  }
 0x266   :  { %11069 = vmatprep.subr.bf16.mxu0 %v12073_v31  ;;  %v12103_v28 = vld [vmem:[%s14842_s1 + $0x1258] sm:$0xff]   ;;  %v12105_v31 = vld [vmem:[%s14842_s1 + $0x11e0] sm:$0xff]  }
 0x268   :  { %11096 = vmatpush3.bf16.msra.mxu1 %v12072_v30  ;;  %v12104_v30 = vld [vmem:[%s14842_s1 + $0x1218] sm:$0xff]  }
 0x269   :  { %11070 = vmatpush3.bf16.msra.mxu0 %v12074_v20  ;;  %11097 = vmatprep.subr.bf16.mxu1 %v12075_v34  ;;  %v12106_v20 = vld [vmem:[%s14842_s1 + $0x11a0] sm:$0xff]  }
 0x26a   :  { %v10753_v24 = vpop.f32.mrb[88].mxu0  ;;  %11111 = vmatprep.subr.bf16.mxu0 %v12080_v32  ;;  %v12107_v34 = vld [vmem:[%s14842_s1 + $0x1260] sm:$0xff]   ;;  %v12115_v32 = vld [vmem:[%s14842_s1 + $0x1270] sm:$0xff]  }
 0x26b   :  { %v10754_v38 = vpop.f32.mrb[89].mxu0 }
 0x26c   :  { %v10755_v39 = vadd.f32 %v10754_v38, %v10753_v24  ;;  %v10756_v42 = vpop.f32.mrb[90].mxu0  ;;  %11098 = vmatpush3.bf16.msra.mxu1 %v12079_v40  ;;  %7921 = vmatmul.mubr.bf16.vlgmr.msra.gmra.mrb[136].mxu0 %v12076_v36  ;;  %v12108_v24 = vld [vmem:[%s14842_s1 + $0x1220] sm:$0xff]   ;;  %v12109_v36 = vld [vmem:[%s14842_s1 + $0x11e8] sm:$0xff]   ;;  %v12113_v40 = vld [vmem:[%s14842_s1 + $0x11f0] sm:$0xff]  }
 0x26d   :  { %v10781_v46 = vpop.f32.mrb[84].mxu1  ;;  %v10757_v47 = vpop.f32.mrb[91].mxu0  ;;  %11112 = vmatpush3.bf16.msra.mxu0 %v12084_v53  ;;  %7928 = vmatprep.mubr.bf16.mxu0 %v12090_v56  ;;  %v12110_v38 = vld [vmem:[%s14842_s1 + $0x11a8] sm:$0xff]   ;;  %v12128_v56 = vld [vmem:[%s14842_s1 + $0x1280] sm:$0xff]  }
 0x26e   :  { %v5263_v44 = vadd.f32 %v10755_v39, %v14320_v43  ;;  %v10758_v45 = vadd.f32 %v10757_v47, %v10756_v42  ;;  %v10782_v54 = vpop.f32.mrb[85].mxu1  ;;  %v12085_v43 = vld [vmem:[%s14842_s1 + $0x1240] sm:$0xff]   ;;  %11113 = vmatprep.subr.bf16.mxu0 %v12087_v58  ;;  %v12112_v39 = vld [vmem:[%s14842_s1 + $0x1228] sm:$0xff]   ;;  %v12114_v42 = vld [vmem:[%s14842_s1 + $0x11b0] sm:$0xff]  }
 0x26f   :  { %v10783_v51 = vadd.f32 %v10782_v54, %v10781_v46  ;;  %v10784_v41 = vpop.f32.mrb[86].mxu1  ;;  %7970 = vmatmul.mubr.bf16.vlgmr.msra.gmra.mrb[128].mxu1 %v12081_v49  ;;  %11139 = vmatprep.subr.bf16.mxu1 %v12085_v43  ;;  %v12117_v46 = vld [vmem:[%s14842_s1 + $0x11f8] sm:$0xff]   ;;  %v12120_v53 = vld [vmem:[%s14843_s0 + $0x3a0] ss:$108 sps:$4 sm:$0xff]   ;;  %v12122_v54 = vld [vmem:[%s14843_s0 + $0x3a4] ss:$108 sps:$4 sm:$0xff]  }
 0x270   :  { %v5266_v55 = vadd.f32 %v10758_v45, %v14331_v50  ;;  %v10785_v57 = vpop.f32.mrb[87].mxu1  ;;  %11140 = vmatpush3.bf16.msra.mxu1 %v12086_v48  ;;  %v12088_v50 = vld [vmem:[%s14842_s1 + $0x1188] sm:$0xff]   ;;  %7977 = vmatprep.mubr.bf16.mxu1 %v12095_v11  ;;  %v12118_v47 = vld [vmem:[%s14842_s1 + $0x11b8] sm:$0xff]  }
 0x271   :  { %v14458_v59 = vadd.f32 %v10783_v51, %v5263_v44  ;;  %v10786_v60 = vadd.f32 %v10785_v57, %v10784_v41  ;;  %11114 = vmatpush3.bf16.msra.mxu0 %v12088_v50  ;;  %11141 = vmatprep.subr.bf16.mxu1 %v12089_v61  ;;  %v12116_v44 = vld [vmem:[%s14842_s1 + $0x1230] sm:$0xff]   ;;  %v12124_v41 = vld [vmem:[%s14842_s1 + $0x12c0] sm:$0xff]   ;;  %v12127_v50 = vld [vmem:[%s14843_s0 + $0x3ac] ss:$108 sps:$4 sm:$0xff]  }
 0x272   :  { %v10759_v52 = vpop.f32.mrb[92].mxu0  ;;  %11115 = vmatprep.subr.bf16.mxu0 %v12094_v2  ;;  %v12131_v11 = vld [vmem:[%s14842_s1 + $0x12c8] sm:$0xff]  }
 0x273   :  { %v14466_v62 = vadd.f32 %v10786_v60, %v5266_v55  ;;  %v10760_v63 = vpop.f32.mrb[93].mxu0  ;;  %v12123_v55 = vld [vmem:[%s14842_s1 + $0x1238] sm:$0xff]   ;;  %v12125_v60 = vld [vmem:[%s14843_s0 + $0x3a8] ss:$108 sps:$4 sm:$0xff]  }
 0x274   :  { %v10761_v5 = vadd.f32 %v10760_v63, %v10759_v52  ;;  %v10762_v8 = vpop.f32.mrb[94].mxu0  ;;  %11142 = vmatpush3.bf16.msra.mxu1 %v12092_v4  ;;  %7929 = vmatmul.mubr.bf16.gmra.mrb[140].mxu0 %v12093_v0  ;;  %v12129_v4 = vld [vmem:[%s14842_s1 + $0x1340] sm:$0xff]  }
 0x275   :  { %v10787_v6 = vpop.f32.mrb[88].mxu1  ;;  %v10763_v12 = vpop.f32.mrb[95].mxu0  ;;  %11116 = vmatpush3.bf16.msra.mxu0 %v12097_v15  ;;  %8018 = vmatprep.mubr.bf16.mxu0 %v12122_v54  ;;  %v12155_v54 = vld [vmem:[%s14842_s1 + $0x1368] sm:$0xff]  }
 0x276   :  { %v5271_v9 = vadd.f32 %v10761_v5, %v14365_v3  ;;  %v10788_v1 = vpop.f32.mrb[89].mxu1  ;;  %v10764_v16 = vadd.f32 %v10763_v12, %v10762_v8  ;;  %v12099_v3 = vld [vmem:[%s14842_s1 + $0x1250] sm:$0xff]   ;;  %11117 = vmatprep.subr.bf16.mxu0 %v12101_v27  ;;  %v12130_v8 = vld [vmem:[%s14842_s1 + $0x1300] sm:$0xff]  }
 0x277   :  { %v10789_v18 = vadd.f32 %v10788_v1, %v10787_v6  ;;  %v10790_v19 = vpop.f32.mrb[90].mxu1  ;;  %7978 = vmatmul.mubr.bf16.gmra.mrb[132].mxu1 %v12098_v21  ;;  %11143 = vmatprep.subr.bf16.mxu1 %v12099_v3  ;;  %v12133_v1 = vld [vmem:[%s14842_s1 + $0x1348] sm:$0xff]   ;;  %v12138_v27 = vld [vmem:[%s14842_s1 + $0x12d0] sm:$0xff]  }
 0x278   :  { %v5274_v17 = vadd.f32 %v10764_v16, %v14373_v14  ;;  %v10791_v25 = vpop.f32.mrb[91].mxu1  ;;  %11144 = vmatpush3.bf16.msra.mxu1 %v12100_v26  ;;  %8067 = vmatprep.mubr.bf16.mxu1 %v12127_v50  ;;  %v12134_v16 = vld [vmem:[%s14843_s0 + $0x47c] ss:$108 sps:$4 sm:$0xff]  }
 0x279   :  { %v14494_v22 = vadd.f32 %v10789_v18, %v5271_v9  ;;  %v10792_v13 = vadd.f32 %v10791_v25, %v10790_v19  ;;  %11118 = vmatpush3.bf16.msra.mxu0 %v12102_v23  ;;  %11145 = vmatprep.subr.bf16.mxu1 %v12103_v28  ;;  %v12136_v3 = vld [vmem:[%s14842_s1 + $0x1308] sm:$0xff]   ;;  %v12137_v25 = vld [vmem:[%s14843_s0 + $0x478] ss:$108 sps:$4 sm:$0xff]  }
 0x27a   :  { %11119 = vmatprep.subr.bf16.mxu0 %v12105_v31  ;;  %v12139_v28 = vld [vmem:[%s14843_s0 + $0x484] ss:$108 sps:$4 sm:$0xff]   ;;  %v12162_v50 = vld [vmem:[%s14842_s1 + $0x12b8] sm:$0xff]  }
 0x27b   :  { %v14505_v14 = vadd.f32 %v10792_v13, %v5274_v17 }
 0x27c   :  { %11146 = vmatpush3.bf16.msra.mxu1 %v12104_v30 }
 0x27d   :  { %11120 = vmatpush3.bf16.msra.mxu0 %v12106_v20  ;;  %11147 = vmatprep.subr.bf16.mxu1 %v12107_v34  ;;  %v12142_v20 = vld [vmem:[%s14843_s0 + $0x480] ss:$108 sps:$4 sm:$0xff]  }
 0x27e   :  { %11121 = vmatprep.subr.bf16.mxu0 %v12109_v36 }
 0x280   :  { %11148 = vmatpush3.bf16.msra.mxu1 %v12108_v24  ;;  %v12143_v24 = vld [vmem:[%s14842_s1 + $0x1350] sm:$0xff]  }
 0x281   :  { %11122 = vmatpush3.bf16.msra.mxu0 %v12110_v38  ;;  %11149 = vmatprep.subr.bf16.mxu1 %v12111_v37 }
 0x282   :  { %11123 = vmatprep.subr.bf16.mxu0 %v12113_v40  ;;  %v12146_v40 = vld [vmem:[%s14842_s1 + $0x1298] sm:$0xff]  }
 0x284   :  { %11150 = vmatpush3.bf16.msra.mxu1 %v12112_v39  ;;  %v12145_v39 = vld [vmem:[%s14842_s1 + $0x12d8] sm:$0xff]  }
 0x285   :  { %11124 = vmatpush3.bf16.msra.mxu0 %v12114_v42  ;;  %11151 = vmatprep.subr.bf16.mxu1 %v12115_v32  ;;  %v12147_v32 = vld [vmem:[%s14842_s1 + $0x1358] sm:$0xff]  }
 0x286   :  { %11125 = vmatprep.subr.bf16.mxu0 %v12117_v46  ;;  %v12149_v46 = vld [vmem:[%s14842_s1 + $0x12e0] sm:$0xff]  }
 0x288   :  { %11152 = vmatpush3.bf16.msra.mxu1 %v12116_v44  ;;  %v12148_v44 = vld [vmem:[%s14842_s1 + $0x1318] sm:$0xff]  }
 0x289   :  { %11126 = vmatpush3.bf16.msra.mxu0 %v12118_v47  ;;  %11153 = vmatprep.subr.bf16.mxu1 %v12119_v35  ;;  %v12150_v47 = vld [vmem:[%s14842_s1 + $0x12a0] sm:$0xff]  }
 0x28a   :  { %11167 = vmatprep.subr.bf16.mxu0 %v12124_v41  ;;  %v12152_v35 = vld [vmem:[%s14842_s1 + $0x1320] sm:$0xff]   ;;  %v12159_v41 = vld [vmem:[%s14842_s1 + $0x1370] sm:$0xff]  }
 0x28c   :  { %v10809_v49 = vpop.f32.mrb[96].mxu0  ;;  %11154 = vmatpush3.bf16.msra.mxu1 %v12123_v55  ;;  %8019 = vmatmul.mubr.bf16.vlgmr.msra.gmra.mrb[144].mxu0 %v12120_v53  ;;  %v12154_v53 = vld [vmem:[%s14842_s1 + $0x12a8] sm:$0xff]   ;;  %v12157_v55 = vld [vmem:[%s14842_s1 + $0x12f0] sm:$0xff]  }
 0x28d   :  { %v10810_v45 = vpop.f32.mrb[97].mxu0  ;;  %11168 = vmatpush3.bf16.msra.mxu0 %v12128_v56  ;;  %11195 = vmatprep.subr.bf16.mxu1 %v12129_v4  ;;  %v12163_v56 = vld [vmem:[%s14842_s1 + $0x1378] sm:$0xff]  }
 0x28e   :  { %v10811_v43 = vadd.f32 %v10810_v45, %v10809_v49  ;;  %v10812_v51 = vpop.f32.mrb[98].mxu0  ;;  %v10837_v57 = vpop.f32.mrb[92].mxu1  ;;  %11169 = vmatprep.subr.bf16.mxu0 %v12131_v11  ;;  %8026 = vmatprep.mubr.bf16.mxu0 %v12134_v16  ;;  %v12151_v49 = vld [vmem:[%s14842_s1 + $0x1360] sm:$0xff]   ;;  %v12153_v45 = vld [vmem:[%s14842_s1 + $0x12e8] sm:$0xff]   ;;  %v12164_v4 = vld [vmem:[%s14843_s0 + $0x3b0] ss:$108 sps:$4 sm:$0xff]  }
 0x28f   :  { %v10813_v58 = vpop.f32.mrb[99].mxu0  ;;  %v10838_v52 = vpop.f32.mrb[93].mxu1  ;;  %8068 = vmatmul.mubr.bf16.vlgmr.msra.gmra.mrb[136].mxu1 %v12125_v60  ;;  %v12167_v11 = vld [vmem:[%s14842_s1 + $0x1338] sm:$0xff]  }
 0x290   :  { %v5361_v48 = vadd.f32 %v10811_v43, %v14458_v59  ;;  %v10814_v61 = vadd.f32 %v10813_v58, %v10812_v51  ;;  %v10839_v59 = vadd.f32 %v10838_v52, %v10837_v57  ;;  %v10840_v63 = vpop.f32.mrb[94].mxu1  ;;  %11196 = vmatpush3.bf16.msra.mxu1 %v12130_v8  ;;  %8075 = vmatprep.mubr.bf16.mxu1 %v12139_v28  ;;  %v12156_v43 = vld [vmem:[%s14842_s1 + $0x1328] sm:$0xff]   ;;  %v12158_v51 = vld [vmem:[%s14842_s1 + $0x12b0] sm:$0xff]   ;;  %v12161_v58 = vld [vmem:[%s14842_s1 + $0x12f8] sm:$0xff]  }
 0x291   :  { %v10841_v5 = vpop.f32.mrb[95].mxu1  ;;  %11197 = vmatprep.subr.bf16.mxu1 %v12133_v1 }
 0x292   :  { %v5364_v0 = vadd.f32 %v10814_v61, %v14466_v62  ;;  %v14587_v2 = vadd.f32 %v10839_v59, %v5361_v48  ;;  %v10842_v6 = vadd.f32 %v10841_v5, %v10840_v63  ;;  %v12132_v62 = vld [vmem:[%s14842_s1 + $0x1288] sm:$0xff]   ;;  %v12160_v48 = vld [vmem:[%s14842_s1 + $0x1330] sm:$0xff]  }
 0x293   :  { %11170 = vmatpush3.bf16.msra.mxu0 %v12132_v62 }
 0x294   :  { %v14595_v9 = vadd.f32 %v10842_v6, %v5364_v0  ;;  %v10815_v12 = vpop.f32.mrb[100].mxu0  ;;  %11198 = vmatpush3.bf16.msra.mxu1 %v12136_v3  ;;  %8027 = vmatmul.mubr.bf16.gmra.mrb[148].mxu0 %v12137_v25  ;;  %v12166_v0 = vld [vmem:[%s14843_s0 + $0x3b4] ss:$108 sps:$4 sm:$0xff]  }
 0x295   :  { %v10816_v15 = vpop.f32.mrb[101].mxu0  ;;  %11171 = vmatprep.subr.bf16.mxu0 %v12138_v27  ;;  %11199 = vmatprep.subr.bf16.mxu1 %v12143_v24  ;;  %v12174_v25 = vld [vmem:[%s14842_s1 + $0x1400] sm:$0xff]   ;;  %v12175_v27 = vld [vmem:[%s14842_s1 + $0x1388] sm:$0xff]  }
 0x296   :  { %v10817_v18 = vadd.f32 %v10816_v15, %v10815_v12  ;;  %v10818_v19 = vpop.f32.mrb[102].mxu0  ;;  %v10843_v21 = vpop.f32.mrb[96].mxu1  ;;  %8116 = vmatprep.mubr.bf16.mxu0 %v12166_v0  ;;  %v12168_v12 = vld [vmem:[%s14842_s1 + $0x13c0] sm:$0xff]   ;;  %v12180_v24 = vld [vmem:[%s14842_s1 + $0x1408] sm:$0xff]  }
 0x297   :  { %v10819_v17 = vpop.f32.mrb[103].mxu0  ;;  %v10844_v23 = vpop.f32.mrb[97].mxu1  ;;  %8076 = vmatmul.mubr.bf16.gmra.mrb[140].mxu1 %v12142_v20  ;;  %v12179_v20 = vld [vmem:[%s14842_s1 + $0x13d0] sm:$0xff]  }
 0x298   :  { %v5369_v26 = vadd.f32 %v10817_v18, %v14494_v22  ;;  %v10820_v13 = vadd.f32 %v10819_v17, %v10818_v19  ;;  %v10845_v31 = vadd.f32 %v10844_v23, %v10843_v21  ;;  %v12141_v22 = vld [vmem:[%s14842_s1 + $0x1290] sm:$0xff]   ;;  %v10846_v34 = vpop.f32.mrb[98].mxu1  ;;  %v2764_v18 = vmax.f32 %v13813_v7, 0.0  ;;  %v12169_v19 = vld [vmem:[%s14843_s0 + $0x3b8] ss:$108 sps:$4 sm:$0xff]   ;;  %v12173_v7 = vld [vmem:[%s14842_s1 + $0x13c8] sm:$0xff]  }
 0x299   :  { %v10847_v38 = vpop.f32.mrb[99].mxu1  ;;  %11172 = vmatpush3.bf16.msra.mxu0 %v12141_v22  ;;  %v12171_v21 = vld [vmem:[%s14843_s0 + $0x3bc] ss:$108 sps:$4 sm:$0xff]  }
 0x29a   :  { %v5372_v30 = vadd.f32 %v10820_v13, %v14505_v14  ;;  %v14626_v36 = vadd.f32 %v10845_v31, %v5369_v26  ;;  %v12144_v14 = vld [vmem:[%s14842_s1 + $0x1310] sm:$0xff]   ;;  %v10848_v37 = vadd.f32 %v10847_v38, %v10846_v34  ;;  %11173 = vmatprep.subr.bf16.mxu0 %v12145_v39  ;;  %8165 = vmatprep.mubr.bf16.mxu1 %v12171_v21 }
 0x29b   :  { %11200 = vmatpush3.bf16.msra.mxu1 %v12144_v14  ;;  %v12178_v31 = vld [vmem:[%s14843_s0 + $0x488] ss:$108 sps:$4 sm:$0xff]  }
 0x29c   :  { %v14637_v42 = vadd.f32 %v10848_v37, %v5372_v30  ;;  %11201 = vmatprep.subr.bf16.mxu1 %v12147_v32  ;;  %v12176_v30 = vld [vmem:[%s14843_s0 + $0x48c] ss:$108 sps:$4 sm:$0xff]   ;;  %v12181_v37 = vld [vmem:[%s14843_s0 + $0x494] ss:$108 sps:$4 sm:$0xff]   ;;  %v12184_v32 = vld [vmem:[%s14843_s0 + $0x490] ss:$108 sps:$4 sm:$0xff]  }
 0x29d   :  { %11174 = vmatpush3.bf16.msra.mxu0 %v12146_v40  ;;  %v12183_v40 = vld [vmem:[%s14842_s1 + $0x1390] sm:$0xff]  }
 0x29e   :  { %11175 = vmatprep.subr.bf16.mxu0 %v12149_v46  ;;  %v12185_v46 = vld [vmem:[%s14842_s1 + $0x13d8] sm:$0xff]  }
 0x29f   :  { %11202 = vmatpush3.bf16.msra.mxu1 %v12148_v44 }
 0x2a0   :  { %11203 = vmatprep.subr.bf16.mxu1 %v12151_v49  ;;  %v12186_v49 = vld [vmem:[%s14842_s1 + $0x1410] sm:$0xff]  }
 0x2a1   :  { %11176 = vmatpush3.bf16.msra.mxu0 %v12150_v47 }
 0x2a2   :  { %11177 = vmatprep.subr.bf16.mxu0 %v12153_v45 }
 0x2a3   :  { %11204 = vmatpush3.bf16.msra.mxu1 %v12152_v35 }
 0x2a4   :  { %11205 = vmatprep.subr.bf16.mxu1 %v12155_v54 }
 0x2a5   :  { %11178 = vmatpush3.bf16.msra.mxu0 %v12154_v53  ;;  %v2767_v53 = vmax.f32 %v13870_v33, 0.0  ;;  %v12191_v33 = vld [vmem:[%s14842_s1 + $0x13e8] sm:$0xff]  }
 0x2a6   :  { %11179 = vmatprep.subr.bf16.mxu0 %v12157_v55 }
 0x2a7   :  { %11206 = vmatpush3.bf16.msra.mxu1 %v12156_v43  ;;  %v12189_v43 = vld [vmem:[%s14842_s1 + $0x1418] sm:$0xff]  }
 0x2a8   :  { %11207 = vmatprep.subr.bf16.mxu1 %v12159_v41 }
 0x2a9   :  { %11180 = vmatpush3.bf16.msra.mxu0 %v12158_v51  ;;  %v12190_v51 = vld [vmem:[%s14842_s1 + $0x13a0] sm:$0xff]  }
 0x2aa   :  { %11181 = vmatprep.subr.bf16.mxu0 %v12161_v58  ;;  %v12194_v58 = vld [vmem:[%s14842_s1 + $0x13f0] sm:$0xff]  }
 0x2ab   :  { %11208 = vmatpush3.bf16.msra.mxu1 %v12160_v48  ;;  %v12192_v48 = vld [vmem:[%s14842_s1 + $0x1420] sm:$0xff]  }
 0x2ac   :  { %v10865_v57 = vpop.f32.mrb[104].mxu0  ;;  %11209 = vmatprep.subr.bf16.mxu1 %v12163_v56 }
 0x2ad   :  { %v10866_v60 = vpop.f32.mrb[105].mxu0  ;;  %11182 = vmatpush3.bf16.msra.mxu0 %v12162_v50  ;;  %v12196_v50 = vld [vmem:[%s14842_s1 + $0x13b0] sm:$0xff]  }
 0x2ae   :  { %v10867_v61 = vadd.f32 %v10866_v60, %v10865_v57  ;;  %v10868_v52 = vpop.f32.mrb[106].mxu0  ;;  %11223 = vmatprep.subr.bf16.mxu0 %v12168_v12  ;;  %v12193_v57 = vld [vmem:[%s14842_s1 + $0x13a8] sm:$0xff]  }
 0x2af   :  { %v10869_v59 = vpop.f32.mrb[107].mxu0  ;;  %v11299_v63 = vpop.f32.mrb[100].mxu1  ;;  %11210 = vmatpush3.bf16.msra.mxu1 %v12167_v11  ;;  %v12195_v60 = vld [vmem:[%s14842_s1 + $0x1428] sm:$0xff]  }
 0x2b0   :  { %v10870_v5 = vadd.f32 %v10869_v59, %v10868_v52  ;;  %v5459_v8 = vadd.f32 %v10867_v61, %v14587_v2  ;;  %v5507_v6 = vpop.f32.mrb[101].mxu1  ;;  %v2765_v2 = vmax.f32 %v13822_v10, 0.0  ;;  %8117 = vmatmul.mubr.bf16.vlgmr.msra.gmra.mrb[152].mxu0 %v12164_v4  ;;  %11301 = vmatprep.subr.bf16.mxu1 %v12174_v25  ;;  %v12198_v61 = vld [vmem:[%s14842_s1 + $0x1430] sm:$0xff]   ;;  %v12197_v52 = vld [vmem:[%s14842_s1 + $0x13f8] sm:$0xff]   ;;  %v12200_v12 = vld [vmem:[%s14843_s0 + $0x3c0] ss:$108 sps:$4 sm:$0xff]  }
 0x2b1   :  { %v11300_v62 = vpop.f32.mrb[102].mxu1  ;;  %8124 = vmatprep.mubr.bf16.mxu0 %v12176_v30  ;;  %v12199_v59 = vld [vmem:[%s14842_s1 + $0x13b8] sm:$0xff]   ;;  %v12202_v4 = vld [vmem:[%s14843_s0 + $0x3c4] ss:$108 sps:$4 sm:$0xff]  }
 0x2b2   :  { %v5508_v1 = vadd.f32 %v5507_v6, %v5459_v8  ;;  %v5462_v15 = vadd.f32 %v10870_v5, %v14595_v9  ;;  %v5510_v16 = vpop.f32.mrb[103].mxu1  ;;  %v12172_v9 = vld [vmem:[%s14842_s1 + $0x1380] sm:$0xff]   ;;  %8166 = vmatmul.mubr.bf16.vlgmr.msra.gmra.mrb[144].mxu1 %v12169_v19  ;;  %v12203_v5 = vld [vmem:[%s14842_s1 + $0x1438] sm:$0xff]   ;;  %v12204_v6 = vld [vmem:[%s14843_s0 + $0x3c8] ss:$108 sps:$4 sm:$0xff]  }
 0x2b3   :  { %11224 = vmatpush3.bf16.msra.mxu0 %v12172_v9  ;;  %11302 = vmatpush3.bf16.msra.mxu1 %v12174_v25  ;;  %v12205_v9 = vld [vmem:[%s14843_s0 + $0x4a0] ss:$108 sps:$4 sm:$0xff]  }
 0x2b4   :  { %v5511_v3 = vadd.f32 %v5510_v16, %v5462_v15  ;;  %v5522_v17 = vmax.f32 %v5508_v1, 0.0  ;;  %v10871_v13 = vpop.f32.mrb[108].mxu0  ;;  %11225 = vmatprep.subr.bf16.mxu0 %v12173_v7  ;;  %11303 = vmatprep.subr.bf16.mxu1 %v12180_v24  ;;  %v9852_v1 = vld [vmem:[%s14844_s2 + $0x2] ss:$0 sm:$0xff]  ;;  %v12206_v16 = vld [vmem:[%s14843_s0 + $0x49c] ss:$108 sps:$4 sm:$0xff]  }
 0x2b5   :  { %v10872_v28 = vpop.f32.mrb[109].mxu0  ;;  %8173 = vmatprep.mubr.bf16.mxu1 %v12181_v37 }
 0x2b6   :  { %v5523_v10 = vmax.f32 %v5511_v3, 0.0  ;;  %v10131_v26 = vpack.c.bf16 %v5522_v17, %v2764_v18  ;;  %v10873_v22 = vadd.f32 %v10872_v28, %v10871_v13  ;;  %v10874_v34 = vpop.f32.mrb[110].mxu0 }
 0x2b7   :  { %11226 = vmatpush3.bf16.msra.mxu0 %v12175_v27  ;;  %v10875_v14 = vpop.f32.mrb[111].mxu0  ;;  %11304 = vmatpush3.bf16.msra.mxu1 %v12180_v24 }
 0x2b8   :  { %v10133_v23 = vpack.c.bf16 %v5523_v10, %v2765_v2  ;;  %8320 = vst [vmem:[%s14845_s3] sm:$0xff] %v10131_v26  ;;  %v5467_v38 = vadd.f32 %v10873_v22, %v14626_v36  ;;  %8125 = vmatmul.mubr.bf16.gmra.mrb[156].mxu0 %v12178_v31  ;;  %11227 = vmatprep.subr.bf16.mxu0 %v12179_v20  ;;  %v2766_v36 = vmax.f32 %v13858_v29, 0.0  ;;  %v12187_v29 = vld [vmem:[%s14842_s1 + $0x1398] sm:$0xff]  }
 0x2b9   :  { %v10876_v39 = vadd.f32 %v10875_v14, %v10874_v34  ;;  %11305 = vmatprep.subr.bf16.mxu1 %v12186_v49  ;;  %8214 = vmatprep.mubr.bf16.mxu0 %v12202_v4  ;;  %v12208_v26 = vld [vmem:[%s14843_s0 + $0x498] ss:$108 sps:$4 sm:$0xff]  }
 0x2ba   :  { %8322 = vst [vmem:[%s14845_s3 + $0xc] sm:$0xff] %v10133_v23  ;;  %v5516_v44 = vadd.f32 %v11299_v63, %v5467_v38  ;;  %8174 = vmatmul.mubr.bf16.gmra.mrb[148].mxu1 %v12184_v32 }
 0x2bb   :  { %v5470_v47 = vadd.f32 %v10876_v39, %v14637_v42  ;;  %11228 = vmatpush3.bf16.msra.mxu0 %v12183_v40  ;;  %v12188_v42 = vld [vmem:[%s14842_s1 + $0x13e0] sm:$0xff]   ;;  %11306 = vmatpush3.bf16.msra.mxu1 %v12186_v49 }
 0x2bc   :  { %v5524_v35 = vmax.f32 %v5516_v44, 0.0  ;;  %11229 = vmatprep.subr.bf16.mxu0 %v12185_v46  ;;  %11307 = vmatprep.subr.bf16.mxu1 %v12189_v43 }
 0x2bd   :  { %v5519_v45 = vadd.f32 %v11300_v62, %v5470_v47  ;;  %11317 = vmatprep.mubr.bf16.mxu1 %v12204_v6 }
 0x2be   :  { %v10135_v54 = vpack.c.bf16 %v5524_v35, %v2766_v36 }
 0x2bf   :  { %v5525_v55 = vmax.f32 %v5519_v45, 0.0  ;;  %11230 = vmatpush3.bf16.msra.mxu0 %v12187_v29  ;;  %11308 = vmatpush3.bf16.msra.mxu1 %v12189_v43 }
 0x2c0   :  { %8324 = vst [vmem:[%s14845_s3 + $0x18] sm:$0xff] %v10135_v54  ;;  %11231 = vmatprep.subr.bf16.mxu0 %v12188_v42  ;;  %11309 = vmatprep.subr.bf16.mxu1 %v12192_v48 }
 0x2c1   :  { %v10137_v41 = vpack.c.bf16 %v5525_v55, %v2767_v53 }
 0x2c3   :  { %8326 = vst [vmem:[%s14845_s3 + $0x24] sm:$0xff] %v10137_v41  ;;  %11232 = vmatpush3.bf16.msra.mxu0 %v12190_v51  ;;  %11310 = vmatpush3.bf16.msra.mxu1 %v12192_v48 }
 0x2c4   :  { %11233 = vmatprep.subr.bf16.mxu0 %v12191_v33  ;;  %11311 = vmatprep.subr.bf16.mxu1 %v12195_v60 }
 0x2c7   :  { %11234 = vmatpush3.bf16.msra.mxu0 %v12193_v57  ;;  %11312 = vmatpush3.bf16.msra.mxu1 %v12195_v60 }
 0x2c8   :  { %11235 = vmatprep.subr.bf16.mxu0 %v12194_v58  ;;  %11313 = vmatprep.subr.bf16.mxu1 %v12198_v61 }
 0x2cb   :  { %11236 = vmatpush3.bf16.msra.mxu0 %v12196_v50  ;;  %11314 = vmatpush3.bf16.msra.mxu1 %v12198_v61 }
 0x2cc   :  { %v10903_v56 = vpop.f32.mrb[112].mxu0  ;;  %11237 = vmatprep.subr.bf16.mxu0 %v12197_v52  ;;  %11315 = vmatprep.subr.bf16.mxu1 %v12203_v5 }
 0x2cd   :  { %v10904_v63 = vpop.f32.mrb[113].mxu0 }
 0x2ce   :  { %v10905_v0 = vadd.f32 %v10904_v63, %v10903_v56  ;;  %v10906_v8 = vpop.f32.mrb[114].mxu0 }
 0x2cf   :  { %v10931_v11 = vpop.f32.mrb[104].mxu1  ;;  %v10907_v62 = vpop.f32.mrb[115].mxu0  ;;  %11238 = vmatpush3.bf16.msra.mxu0 %v12199_v59  ;;  %11316 = vmatpush3.bf16.msra.mxu1 %v12203_v5 }
 0x2d0   :  { %v10908_v15 = vadd.f32 %v10907_v62, %v10906_v8  ;;  %v7629_v18 = vadd.f32 %v10905_v0, %v9852_v1  ;;  %v10932_v2 = vpop.f32.mrb[105].mxu1 }
 0x2d1   :  { %v10933_v21 = vadd.f32 %v10932_v2, %v10931_v11  ;;  %v10934_v3 = vpop.f32.mrb[106].mxu1 }
 0x2d2   :  { %v7632_v19 = vadd.f32 %v10908_v15, %v9852_v1  ;;  %v10935_v17 = vpop.f32.mrb[107].mxu1  ;;  %8215 = vmatmul.mubr.bf16.vlgmr.msra.gmra.mrb[160].mxu0 %v12200_v12  ;;  %11318 = vmatmul.mubr.bf16.vlgmr.msra.gmra.mrb[152].mxu1 %v12205_v9 }
 0x2d3   :  { %v7678_v7 = vadd.f32 %v10933_v21, %v7629_v18  ;;  %v10936_v10 = vadd.f32 %v10935_v17, %v10934_v3  ;;  %8222 = vmatprep.mubr.bf16.mxu0 %v12206_v16 }
 0x2d5   :  { %v7681_v25 = vadd.f32 %v10936_v10, %v7632_v19 }
 0x2d7   :  { %v10909_v13 = vpop.f32.mrb[116].mxu0 }
 0x2d8   :  { %v10910_v27 = vpop.f32.mrb[117].mxu0 }
 0x2d9   :  { %v10911_v23 = vadd.f32 %v10910_v27, %v10909_v13  ;;  %v10912_v28 = vpop.f32.mrb[118].mxu0 }
 0x2da   :  { %8223 = vmatmul.mubr.bf16.gmra.mrb[164].mxu0 %v12208_v26  ;;  %v10937_v30 = vpop.f32.mrb[108].mxu1  ;;  %v10913_v31 = vpop.f32.mrb[119].mxu0 }
 0x2db   :  { %v7637_v22 = vadd.f32 %v10911_v23, %v9852_v1  ;;  %v10914_v20 = vadd.f32 %v10913_v31, %v10912_v28  ;;  %v10938_v34 = vpop.f32.mrb[109].mxu1 }
 0x2dc   :  { %v10939_v24 = vadd.f32 %v10938_v34, %v10937_v30  ;;  %v10940_v38 = vpop.f32.mrb[110].mxu1 }
 0x2dd   :  { %v7640_v14 = vadd.f32 %v10914_v20, %v9852_v1  ;;  %v10941_v37 = vpop.f32.mrb[111].mxu1 }
 0x2de   :  { %v7686_v39 = vadd.f32 %v10939_v24, %v7637_v22  ;;  %v10942_v40 = vadd.f32 %v10941_v37, %v10940_v38 }
 0x2e0   :  { %v7689_v32 = vadd.f32 %v10942_v40, %v7640_v14 }
 0x2ef   :  { %v10959_v44 = vpop.f32.mrb[120].mxu0  ;;  %v10987_v49 = vpop.f32.mrb[112].mxu1 }
 0x2f0   :  { %v10960_v36 = vpop.f32.mrb[121].mxu0  ;;  %v10988_v53 = vpop.f32.mrb[113].mxu1 }
 0x2f1   :  { %v10961_v46 = vadd.f32 %v10960_v36, %v10959_v44  ;;  %v10962_v47 = vpop.f32.mrb[122].mxu0  ;;  %v10989_v42 = vadd.f32 %v10988_v53, %v10987_v49  ;;  %v10990_v54 = vpop.f32.mrb[114].mxu1 }
 0x2f2   :  { %v10963_v35 = vpop.f32.mrb[123].mxu0  ;;  %v10991_v55 = vpop.f32.mrb[115].mxu1 }
 0x2f3   :  { %v7727_v29 = vadd.f32 %v10961_v46, %v7678_v7  ;;  %v10964_v45 = vadd.f32 %v10963_v35, %v10962_v47  ;;  %v10992_v33 = vadd.f32 %v10991_v55, %v10990_v54 }
 0x2f5   :  { %v7730_v43 = vadd.f32 %v10964_v45, %v7681_v25  ;;  %v7776_v51 = vadd.f32 %v10989_v42, %v7727_v29 }
 0x2f7   :  { %v7779_v41 = vadd.f32 %v10992_v33, %v7730_v43  ;;  %v10965_v48 = vpop.f32.mrb[124].mxu0  ;;  %v10993_v50 = vpop.f32.mrb[116].mxu1 }
 0x2f8   :  { %v10966_v57 = vpop.f32.mrb[125].mxu0  ;;  %v10994_v59 = vpop.f32.mrb[117].mxu1 }
 0x2f9   :  { %v10967_v58 = vadd.f32 %v10966_v57, %v10965_v48  ;;  %v10968_v60 = vpop.f32.mrb[126].mxu0  ;;  %v10995_v63 = vadd.f32 %v10994_v59, %v10993_v50  ;;  %v10996_v4 = vpop.f32.mrb[118].mxu1 }
 0x2fa   :  { %v10969_v61 = vpop.f32.mrb[127].mxu0  ;;  %v10997_v5 = vpop.f32.mrb[119].mxu1 }
 0x2fb   :  { %v7735_v52 = vadd.f32 %v10967_v58, %v7686_v39  ;;  %v10970_v56 = vadd.f32 %v10969_v61, %v10968_v60  ;;  %v10998_v6 = vadd.f32 %v10997_v5, %v10996_v4 }
 0x2fd   :  { %v7738_v0 = vadd.f32 %v10970_v56, %v7689_v32  ;;  %v7784_v8 = vadd.f32 %v10995_v63, %v7735_v52 }
 0x2ff   :  { %v7787_v11 = vadd.f32 %v10998_v6, %v7738_v0 }
 0x31f   :  { %v11015_v62 = vpop.f32.mrb[128].mxu0 }
 0x320   :  { %v11016_v12 = vpop.f32.mrb[129].mxu0 }
 0x321   :  { %v11017_v1 = vadd.f32 %v11016_v12, %v11015_v62  ;;  %v11018_v15 = vpop.f32.mrb[130].mxu0 }
 0x322   :  { %v11019_v16 = vpop.f32.mrb[131].mxu0  ;;  %v11043_v2 = vpop.f32.mrb[120].mxu1 }
 0x323   :  { %v7825_v18 = vadd.f32 %v11017_v1, %v7776_v51  ;;  %v11020_v19 = vadd.f32 %v11019_v16, %v11018_v15  ;;  %v11044_v21 = vpop.f32.mrb[121].mxu1 }
 0x324   :  { %v11045_v9 = vadd.f32 %v11044_v21, %v11043_v2  ;;  %v11046_v17 = vpop.f32.mrb[122].mxu1 }
 0x325   :  { %v7828_v3 = vadd.f32 %v11020_v19, %v7779_v41  ;;  %v11047_v7 = vpop.f32.mrb[123].mxu1 }
 0x326   :  { %v7874_v10 = vadd.f32 %v11045_v9, %v7825_v18  ;;  %v11048_v25 = vadd.f32 %v11047_v7, %v11046_v17 }
 0x327   :  { %v11021_v13 = vpop.f32.mrb[132].mxu0 }
 0x328   :  { %v7877_v26 = vadd.f32 %v11048_v25, %v7828_v3  ;;  %v11022_v27 = vpop.f32.mrb[133].mxu0 }
 0x329   :  { %v11023_v23 = vadd.f32 %v11022_v27, %v11021_v13  ;;  %v11024_v28 = vpop.f32.mrb[134].mxu0 }
 0x32a   :  { %v11049_v30 = vpop.f32.mrb[124].mxu1  ;;  %v11025_v31 = vpop.f32.mrb[135].mxu0 }
 0x32b   :  { %v7833_v22 = vadd.f32 %v11023_v23, %v7784_v8  ;;  %v11026_v20 = vadd.f32 %v11025_v31, %v11024_v28  ;;  %v11050_v34 = vpop.f32.mrb[125].mxu1 }
 0x32c   :  { %v11051_v24 = vadd.f32 %v11050_v34, %v11049_v30  ;;  %v11052_v38 = vpop.f32.mrb[126].mxu1 }
 0x32d   :  { %v7836_v14 = vadd.f32 %v11026_v20, %v7787_v11  ;;  %v11053_v37 = vpop.f32.mrb[127].mxu1 }
 0x32e   :  { %v7882_v39 = vadd.f32 %v11051_v24, %v7833_v22  ;;  %v11054_v40 = vadd.f32 %v11053_v37, %v11052_v38 }
 0x330   :  { %v7885_v32 = vadd.f32 %v11054_v40, %v7836_v14 }
 0x33f   :  { %v11071_v44 = vpop.f32.mrb[136].mxu0 }
 0x340   :  { %v11072_v36 = vpop.f32.mrb[137].mxu0 }
 0x341   :  { %v11073_v46 = vadd.f32 %v11072_v36, %v11071_v44  ;;  %v11074_v47 = vpop.f32.mrb[138].mxu0 }
 0x342   :  { %v11099_v49 = vpop.f32.mrb[128].mxu1  ;;  %v11075_v35 = vpop.f32.mrb[139].mxu0 }
 0x343   :  { %v7923_v29 = vadd.f32 %v11073_v46, %v7874_v10  ;;  %v11076_v45 = vadd.f32 %v11075_v35, %v11074_v47  ;;  %v11100_v53 = vpop.f32.mrb[129].mxu1 }
 0x344   :  { %v11101_v42 = vadd.f32 %v11100_v53, %v11099_v49  ;;  %v11102_v54 = vpop.f32.mrb[130].mxu1 }
 0x345   :  { %v7926_v43 = vadd.f32 %v11076_v45, %v7877_v26  ;;  %v11103_v55 = vpop.f32.mrb[131].mxu1 }
 0x346   :  { %v7972_v51 = vadd.f32 %v11101_v42, %v7923_v29  ;;  %v11104_v33 = vadd.f32 %v11103_v55, %v11102_v54 }
 0x347   :  { %v11077_v48 = vpop.f32.mrb[140].mxu0 }
 0x348   :  { %v7975_v41 = vadd.f32 %v11104_v33, %v7926_v43  ;;  %v11078_v57 = vpop.f32.mrb[141].mxu0 }
 0x349   :  { %v11079_v58 = vadd.f32 %v11078_v57, %v11077_v48  ;;  %v11080_v60 = vpop.f32.mrb[142].mxu0 }
 0x34a   :  { %v11081_v50 = vpop.f32.mrb[143].mxu0  ;;  %v11105_v52 = vpop.f32.mrb[132].mxu1 }
 0x34b   :  { %v7931_v61 = vadd.f32 %v11079_v58, %v7882_v39  ;;  %v11082_v56 = vadd.f32 %v11081_v50, %v11080_v60  ;;  %v11106_v59 = vpop.f32.mrb[133].mxu1 }
 0x34c   :  { %v11107_v4 = vadd.f32 %v11106_v59, %v11105_v52  ;;  %v11108_v0 = vpop.f32.mrb[134].mxu1 }
 0x34d   :  { %v7934_v63 = vadd.f32 %v11082_v56, %v7885_v32  ;;  %v11109_v5 = vpop.f32.mrb[135].mxu1 }
 0x34e   :  { %v7980_v8 = vadd.f32 %v11107_v4, %v7931_v61  ;;  %v11110_v6 = vadd.f32 %v11109_v5, %v11108_v0 }
 0x350   :  { %v7983_v11 = vadd.f32 %v11110_v6, %v7934_v63 }
 0x35f   :  { %v11127_v62 = vpop.f32.mrb[144].mxu0 }
 0x360   :  { %v11128_v12 = vpop.f32.mrb[145].mxu0 }
 0x361   :  { %v11129_v1 = vadd.f32 %v11128_v12, %v11127_v62  ;;  %v11130_v15 = vpop.f32.mrb[146].mxu0 }
 0x362   :  { %v11155_v16 = vpop.f32.mrb[136].mxu1  ;;  %v11131_v18 = vpop.f32.mrb[147].mxu0 }
 0x363   :  { %v8021_v2 = vadd.f32 %v11129_v1, %v7972_v51  ;;  %v11132_v19 = vadd.f32 %v11131_v18, %v11130_v15  ;;  %v11156_v21 = vpop.f32.mrb[137].mxu1 }
 0x364   :  { %v11157_v3 = vadd.f32 %v11156_v21, %v11155_v16  ;;  %v11158_v9 = vpop.f32.mrb[138].mxu1 }
 0x365   :  { %v8024_v17 = vadd.f32 %v11132_v19, %v7975_v41  ;;  %v11159_v7 = vpop.f32.mrb[139].mxu1 }
 0x366   :  { %v8070_v10 = vadd.f32 %v11157_v3, %v8021_v2  ;;  %v11160_v25 = vadd.f32 %v11159_v7, %v11158_v9 }
 0x367   :  { %v11133_v13 = vpop.f32.mrb[148].mxu0 }
 0x368   :  { %v8073_v26 = vadd.f32 %v11160_v25, %v8024_v17  ;;  %v11134_v27 = vpop.f32.mrb[149].mxu0 }
 0x369   :  { %v11135_v23 = vadd.f32 %v11134_v27, %v11133_v13  ;;  %v11136_v28 = vpop.f32.mrb[150].mxu0 }
 0x36a   :  { %v11161_v30 = vpop.f32.mrb[140].mxu1  ;;  %v11137_v31 = vpop.f32.mrb[151].mxu0 }
 0x36b   :  { %v8029_v22 = vadd.f32 %v11135_v23, %v7980_v8  ;;  %v11138_v20 = vadd.f32 %v11137_v31, %v11136_v28  ;;  %v11162_v34 = vpop.f32.mrb[141].mxu1 }
 0x36c   :  { %v11163_v24 = vadd.f32 %v11162_v34, %v11161_v30  ;;  %v11164_v38 = vpop.f32.mrb[142].mxu1 }
 0x36d   :  { %v8032_v14 = vadd.f32 %v11138_v20, %v7983_v11  ;;  %v11165_v37 = vpop.f32.mrb[143].mxu1 }
 0x36e   :  { %v8078_v39 = vadd.f32 %v11163_v24, %v8029_v22  ;;  %v11166_v40 = vadd.f32 %v11165_v37, %v11164_v38 }
 0x370   :  { %v8081_v32 = vadd.f32 %v11166_v40, %v8032_v14 }
 0x383   :  { %v11183_v44 = vpop.f32.mrb[152].mxu0 }
 0x384   :  { %v11184_v36 = vpop.f32.mrb[153].mxu0 }
 0x385   :  { %v11185_v46 = vadd.f32 %v11184_v36, %v11183_v44  ;;  %v11186_v47 = vpop.f32.mrb[154].mxu0  ;;  %v11211_v29 = vpop.f32.mrb[144].mxu1 }
 0x386   :  { %v11187_v49 = vpop.f32.mrb[155].mxu0  ;;  %v11212_v53 = vpop.f32.mrb[145].mxu1 }
 0x387   :  { %v8119_v35 = vadd.f32 %v11185_v46, %v8070_v10  ;;  %v11188_v45 = vadd.f32 %v11187_v49, %v11186_v47  ;;  %v11213_v54 = vadd.f32 %v11212_v53, %v11211_v29  ;;  %v11214_v43 = vpop.f32.mrb[146].mxu1 }
 0x388   :  { %v11215_v55 = vpop.f32.mrb[147].mxu1 }
 0x389   :  { %v8122_v42 = vadd.f32 %v11188_v45, %v8073_v26  ;;  %v8168_v51 = vadd.f32 %v11213_v54, %v8119_v35  ;;  %v11216_v33 = vadd.f32 %v11215_v55, %v11214_v43 }
 0x38b   :  { %v11189_v41 = vpop.f32.mrb[156].mxu0  ;;  %v8171_v48 = vadd.f32 %v11216_v33, %v8122_v42 }
 0x38c   :  { %v11190_v57 = vpop.f32.mrb[157].mxu0 }
 0x38d   :  { %v11191_v58 = vadd.f32 %v11190_v57, %v11189_v41  ;;  %v11192_v60 = vpop.f32.mrb[158].mxu0  ;;  %v11217_v50 = vpop.f32.mrb[148].mxu1 }
 0x38e   :  { %v11193_v61 = vpop.f32.mrb[159].mxu0  ;;  %v11218_v59 = vpop.f32.mrb[149].mxu1 }
 0x38f   :  { %v8127_v52 = vadd.f32 %v11191_v58, %v8078_v39  ;;  %v11194_v56 = vadd.f32 %v11193_v61, %v11192_v60  ;;  %v11219_v63 = vadd.f32 %v11218_v59, %v11217_v50  ;;  %v11220_v4 = vpop.f32.mrb[150].mxu1 }
 0x390   :  { %v11221_v5 = vpop.f32.mrb[151].mxu1 }
 0x391   :  { %v8130_v0 = vadd.f32 %v11194_v56, %v8081_v32  ;;  %v8176_v8 = vadd.f32 %v11219_v63, %v8127_v52  ;;  %v11222_v6 = vadd.f32 %v11221_v5, %v11220_v4 }
 0x393   :  { %v8179_v11 = vadd.f32 %v11222_v6, %v8130_v0 }
 0x3a5   :  { %v11239_v62 = vpop.f32.mrb[160].mxu0  ;;  %v11319_v18 = vpop.f32.mrb[152].mxu1 }
 0x3a6   :  { %v11240_v12 = vpop.f32.mrb[161].mxu0  ;;  %v8265_v21 = vpop.f32.mrb[153].mxu1 }
 0x3a7   :  { %v11241_v1 = vadd.f32 %v11240_v12, %v11239_v62  ;;  %v11242_v15 = vpop.f32.mrb[162].mxu0  ;;  %v11320_v3 = vpop.f32.mrb[154].mxu1 }
 0x3a8   :  { %v11243_v16 = vpop.f32.mrb[163].mxu0  ;;  %v8268_v7 = vpop.f32.mrb[155].mxu1 }
 0x3a9   :  { %v11244_v2 = vadd.f32 %v11243_v16, %v11242_v15  ;;  %v8217_v19 = vadd.f32 %v11241_v1, %v8168_v51 }
 0x3ab   :  { %v8266_v9 = vadd.f32 %v8265_v21, %v8217_v19  ;;  %v8220_v17 = vadd.f32 %v11244_v2, %v8171_v48 }
 0x3ad   :  { %v8280_v10 = vmax.f32 %v8266_v9, 0.0  ;;  %v8269_v25 = vadd.f32 %v8268_v7, %v8220_v17  ;;  %v11245_v26 = vpop.f32.mrb[164].mxu0 }
 0x3ae   :  { %v11246_v13 = vpop.f32.mrb[165].mxu0 }
 0x3af   :  { %v10132_v27 = vpack.c.bf16 %v8280_v10, %v8280_v10  ;;  %v8281_v23 = vmax.f32 %v8269_v25, 0.0  ;;  %v11247_v28 = vadd.f32 %v11246_v13, %v11245_v26  ;;  %v11248_v30 = vpop.f32.mrb[166].mxu0 }
 0x3b0   :  { %v11249_v31 = vpop.f32.mrb[167].mxu0 }
 0x3b1   :  { %8321 = vst [vmem:[%s14845_s3 + $0x8] sm:$0xf] %v10132_v27  ;;  %v10134_v22 = vpack.c.bf16 %v8281_v23, %v8281_v23  ;;  %v8225_v20 = vadd.f32 %v11247_v28, %v8176_v8  ;;  %v11250_v34 = vadd.f32 %v11249_v31, %v11248_v30 }
 0x3b3   :  { %8323 = vst [vmem:[%s14845_s3 + $0x14] sm:$0xf] %v10134_v22  ;;  %v8274_v24 = vadd.f32 %v11319_v18, %v8225_v20  ;;  %v8228_v38 = vadd.f32 %v11250_v34, %v8179_v11 }
 0x3b5   :  { %v8282_v14 = vmax.f32 %v8274_v24, 0.0  ;;  %v8277_v37 = vadd.f32 %v11320_v3, %v8228_v38 }
 0x3b7   :  { %v10136_v39 = vpack.c.bf16 %v8282_v14, %v8282_v14  ;;  %v8283_v40 = vmax.f32 %v8277_v37, 0.0 }
 0x3b9   :  { %8325 = vst [vmem:[%s14845_s3 + $0x20] sm:$0xf] %v10136_v39  ;;  %v10138_v32 = vpack.c.bf16 %v8283_v40, %v8283_v40 }
 0x3bb   :  { %8327 = vst [vmem:[%s14845_s3 + $0x2c] sm:$0xf] %v10138_v32 }

</bundles_post_ra>
